<compile_context>
chip_gen: v5e
topology: v5e:2x2
jax: 0.10.0
libtpu: 0.0.40
codegen_flags: <defaults>
</compile_context>

<pallas_src>
import functools
import math

import jax
import jax.numpy as jnp
from jax import lax
from jax.experimental import pallas as pl
from jax.experimental.pallas import tpu as pltpu


_EXACT_SOFTMAX = False  # True -> exact divide in softmax (tight parity tests).


# =============================================================================
# Small helpers
# =============================================================================

def _full_spec(shape):
    """BlockSpec covering the whole array (weights / biases, fetched once)."""
    n = len(shape)
    return pl.BlockSpec(tuple(shape), lambda *_, n=n: (0,) * n)


def _bf16(x):
    return x.astype(jnp.bfloat16)


def _layernorm(x, g, b, eps=1e-5):
    mu = jnp.mean(x, axis=-1, keepdims=True)
    xc = x - mu
    var = jnp.mean(xc * xc, axis=-1, keepdims=True)
    return xc * lax.rsqrt(var + eps) * g + b


def _mha(q_src, k_src, v_src, q_off, k_off, v_off, num_heads, dh):
    """Per-head attention on values; returns a single full-width [Q, D] value."""
    scale = 1.0 / math.sqrt(dh)
    outs = []
    for h in range(num_heads):
        qh = q_src[:, q_off + h * dh:q_off + (h + 1) * dh]
        kh = k_src[:, k_off + h * dh:k_off + (h + 1) * dh]
        vh = v_src[:, v_off + h * dh:v_off + (h + 1) * dh]
        # q @ k^T without materializing k.T (transposed-RHS dot_general), bf16 MXU.
        s = lax.dot_general(_bf16(qh), _bf16(kh), (((1,), (1,)), ((), ())),
                            preferred_element_type=jnp.float32) * scale
        s = s - jnp.max(s, axis=-1, keepdims=True)
        p = jnp.exp(s)
        denom = jnp.sum(p, axis=-1, keepdims=True)
        if _EXACT_SOFTMAX:
            p = p / denom
        else:
            p = p * pl.reciprocal(denom, approx=True)
        outs.append(jnp.dot(_bf16(p), _bf16(vh), preferred_element_type=jnp.float32))
    return jnp.concatenate(outs, axis=-1)                                        # [Q, D]


# =============================================================================
# Kernel 1: fused bev encoder
#   4 x ResBottleneckBlock + 1x1 projection + learned positional encoding,
#   one BEV image (H*W rows, NHWC-flat) per grid step.
# =============================================================================

def _bev_kernel(x_ref, pos_ref, wa_ref, ba_ref, wb_ref, bb_ref, wc_ref, bc_ref,
                wp_ref, bp_ref, o_ref, pad_scr, *, H, W, num_blocks, pad):
    HW = H * W
    x = x_ref[...]                                                               # [HW, C] f32

    # Horizontal-tap validity masks from an in-kernel iota (no mask HBM traffic).
    r = lax.broadcasted_iota(jnp.int32, (HW, 1), 0)
    if (W & (W - 1)) == 0:
        ww = r & (W - 1)
    else:
        ww = r - (r // W) * W
    mask_left = (ww >= 1).astype(jnp.float32)        # reading neighbour at w-1 is valid
    mask_right = (ww <= W - 2).astype(jnp.float32)   # reading neighbour at w+1 is valid

    # Zero-padded scratch: rows [pad, pad+HW) hold conv_a output, halo rows stay 0 so
    # vertical out-of-image taps read zeros (matches the torch conv's zero padding).
    pad_scr[...] = jnp.zeros_like(pad_scr)

    for i in range(num_blocks):
        # conv1x1_a + ReLU (BatchNorm folded: identity at fresh init).  Computed once
        # per row (no 9x im2col redundancy).
        ya = jnp.maximum(
            jnp.dot(_bf16(x), wa_ref[i], preferred_element_type=jnp.float32) + ba_ref[i],
            0.0)
        # 3x3 conv_b: stage ya into the zero-padded scratch, read 9 shifted row views.
        pad_scr[pad:pad + HW, :] = ya
        acc = bb_ref[i]
        for kh in range(3):
            for kw in range(3):
                dh, dw = kh - 1, kw - 1
                off = dh * W + dw
                tap = pad_scr[pad + off:pad + off + HW, :]                       # [HW, C]
                if dw == -1:
                    tap = tap * mask_left
                elif dw == 1:
                    tap = tap * mask_right
                acc = acc + jnp.dot(_bf16(tap), wb_ref[i, kh * 3 + kw],
                                    preferred_element_type=jnp.float32)
        yb = jnp.maximum(acc, 0.0)                                               # conv_b + ReLU
        # conv1x1_c + residual + ReLU
        x = jnp.maximum(
            jnp.dot(_bf16(yb), wc_ref[i], preferred_element_type=jnp.float32)
            + bc_ref[i] + x, 0.0)

    # 1x1 bev->dim projection + learned positional encoding.
    mem = (jnp.dot(_bf16(x), wp_ref[...], preferred_element_type=jnp.float32)
           + bp_ref[...] + pos_ref[...])
    o_ref[...] = mem.astype(o_ref.dtype)


def bev_encoder(bev, params, dim):
    B, C, H, W = bev.shape
    HW = H * W
    # single NCHW -> NHWC-flat transpose; the whole stage then stays [rows, C].
    x = bev.transpose(0, 2, 3, 1).reshape(B * HW, C).astype(jnp.float32)
    pos = params["pos_enc"].transpose(0, 2, 3, 1).reshape(HW, dim).astype(jnp.float32)
    st = params["bev_stage"]
    num_blocks = st["wa"].shape[0]
    pad = max(8, -(-(W + 1) // 8) * 8)                 # sublane-aligned halo size

    args = [x, pos, st["wa"], st["ba"], st["wb"], st["bb"], st["wc"], st["bc"],
            params["bev_proj_w"], params["bev_proj_b"]]
    in_specs = ([pl.BlockSpec((HW, C), lambda b: (b, 0)),
                 _full_spec(pos.shape)] +
                [_full_spec(a.shape) for a in args[2:]])

    # TODO(synk): for large BEV (H*W rows per image exceeding VMEM on v7x), tile H
    # with a 1-row halo via manual make_async_copy instead of one image per step.
    return pl.pallas_call(
        functools.partial(_bev_kernel, H=H, W=W, num_blocks=num_blocks, pad=pad),
        out_shape=jax.ShapeDtypeStruct((B * HW, dim), jnp.float32),
        grid=(B,),
        in_specs=in_specs,
        out_specs=pl.BlockSpec((HW, dim), lambda b: (b, 0)),
        scratch_shapes=[pltpu.VMEM((HW + 2 * pad, C), jnp.float32)],
        compiler_params=pltpu.CompilerParams(
            dimension_semantics=("parallel",),
            vmem_limit_bytes=32 * 1024 * 1024),
    )(*args)


# =============================================================================
# Kernel 2: fused static_encoder + transformer decoder + pos_decoder
#   grid = (B, num_layers); per-layer weights streamed; hidden state in VMEM scratch.
# =============================================================================

def _decoder_kernel(sf_ref, qe_ref,
                    sw1_ref, sb1_ref, sw2_ref, sb2_ref, sw3_ref, sb3_ref,
                    mem_ref,
                    wqkv_ref, bqkv_ref, wos_ref, bos_ref, ln1g_ref, ln1b_ref,
                    wqc_ref, bqc_ref, wkvc_ref, bkvc_ref, woc_ref, boc_ref,
                    ln2g_ref, ln2b_ref,
                    wf1_ref, bf1_ref, wf2_ref, bf2_ref, ln3g_ref, ln3b_ref,
                    pw1_ref, pb1_ref, pw2_ref, pb2_ref, pw3_ref, pb3_ref,
                    o_ref, x_scr, *, num_heads, num_layers):
    l = pl.program_id(1)
    D = qe_ref.shape[-1]
    dh = D // num_heads

    @pl.when(l == 0)
    def _():
        # static_encoder MLP + query construction (queries = query_embed + MLP(static)).
        s = sf_ref[0]                                                            # [1, F] f32
        s = jnp.maximum(jnp.dot(_bf16(s), sw1_ref[...],
                                preferred_element_type=jnp.float32) + sb1_ref[...], 0.0)
        s = jnp.maximum(jnp.dot(_bf16(s), sw2_ref[...],
                                preferred_element_type=jnp.float32) + sb2_ref[...], 0.0)
        s = jnp.dot(_bf16(s), sw3_ref[...], preferred_element_type=jnp.float32) + sb3_ref[...]
        x_scr[...] = qe_ref[...] + s                                             # broadcast over Q

    x = x_scr[...]                                                               # [Q, D] f32
    mem = mem_ref[...]                                                           # [Lk, D] f32

    # --- decoder layer `l` (post-norm, this layer's weights only are resident) -----
    # self attention (fused QKV) + residual + LayerNorm1
    qkv = jnp.dot(_bf16(x), wqkv_ref[0], preferred_element_type=jnp.float32) + bqkv_ref[0]
    attn = _mha(qkv, qkv, qkv, 0, D, 2 * D, num_heads, dh)
    h = jnp.dot(_bf16(attn), wos_ref[0], preferred_element_type=jnp.float32) + bos_ref[0] + x
    x = _layernorm(h, ln1g_ref[0], ln1b_ref[0])
    # cross attention (fused KV) + residual + LayerNorm2
    # TODO(synk): at realistic BEV resolutions, tile Lk flash-style instead of loading
    # the full memory block per batch (v7x 64 MiB VMEM).
    qc = jnp.dot(_bf16(x), wqc_ref[0], preferred_element_type=jnp.float32) + bqc_ref[0]
    kv = jnp.dot(_bf16(mem), wkvc_ref[0], preferred_element_type=jnp.float32) + bkvc_ref[0]
    attn = _mha(qc, kv, kv, 0, 0, D, num_heads, dh)
    h = jnp.dot(_bf16(attn), woc_ref[0], preferred_element_type=jnp.float32) + boc_ref[0] + x
    x = _layernorm(h, ln2g_ref[0], ln2b_ref[0])
    # feed-forward + residual + LayerNorm3
    ff = jnp.maximum(jnp.dot(_bf16(x), wf1_ref[0],
                             preferred_element_type=jnp.float32) + bf1_ref[0], 0.0)
    h = jnp.dot(_bf16(ff), wf2_ref[0], preferred_element_type=jnp.float32) + bf2_ref[0] + x
    x = _layernorm(h, ln3g_ref[0], ln3b_ref[0])

    x_scr[...] = x

    @pl.when(l == num_layers - 1)
    def _():
        # pos_decoder MLP on the flattened [1, Q*D] decoder output, fused here so the
        # decoder output never round-trips HBM.  The first layer's [Q*D, inter] weight
        # is stored as [Q, D, inter]; the q-loop avoids an in-kernel (Q,D)->(1,Q*D)
        # value reshape.
        xb = _bf16(x)
        h1 = pb1_ref[...]                                                        # [1, inter]
        for q_i in range(x.shape[0]):
            h1 = h1 + jnp.dot(xb[q_i:q_i + 1, :], pw1_ref[q_i],
                              preferred_element_type=jnp.float32)
        h1 = jnp.maximum(h1, 0.0)
        h2 = jnp.maximum(jnp.dot(_bf16(h1), pw2_ref[...],
                                 preferred_element_type=jnp.float32) + pb2_ref[...], 0.0)
        h3 = jnp.dot(_bf16(h2), pw3_ref[...], preferred_element_type=jnp.float32) + pb3_ref[...]
        o_ref[0] = h3.astype(o_ref.dtype)                                        # [1, out_dim]


def decoder_forward(static_features, memory, params, cfg, B):
    dim = cfg["dim"]
    Q = cfg["num_queries"]
    L = cfg["num_layers"]
    num_heads = cfg["num_heads"]
    F = cfg["static_features"]
    Lk = cfg["bev_shape"][0] * cfg["bev_shape"][1]
    out_dim = cfg["max_seq_len"] * cfg["pos_dim"]
    se = params["static_encoder"]
    dec = params["decoder"]

    sf = static_features.astype(jnp.float32).reshape(B, 1, F)

    head_tensors = [params["query_embed"],
                    se["w1"], se["b1"], se["w2"], se["b2"], se["w3"], se["b3"]]
    layer_tensors = [dec["wqkv"], dec["bqkv"], dec["wo_s"], dec["bo_s"],
                     dec["ln1_g"], dec["ln1_b"],
                     dec["wq_c"], dec["bq_c"], dec["wkv_c"], dec["bkv_c"],
                     dec["wo_c"], dec["bo_c"], dec["ln2_g"], dec["ln2_b"],
                     dec["w1"], dec["b1"], dec["w2"], dec["b2"],
                     dec["ln3_g"], dec["ln3_b"]]
    tail_tensors = [params["dec_w1"], params["dec_b1"], params["dec_w2"],
                    params["dec_b2"], params["dec_w3"], params["dec_b3"]]

    def layer_spec(a):
        n = a.ndim
        return pl.BlockSpec((1,) + tuple(a.shape[1:]),
                            lambda b, l, n=n: (l,) + (0,) * (n - 1))

    in_specs = ([pl.BlockSpec((1, 1, F), lambda b, l: (b, 0, 0))] +
                [_full_spec(a.shape) for a in head_tensors] +
                [pl.BlockSpec((Lk, dim), lambda b, l: (b, 0))] +
                [layer_spec(a) for a in layer_tensors] +
                [_full_spec(a.shape) for a in tail_tensors])

    return pl.pallas_call(
        functools.partial(_decoder_kernel, num_heads=num_heads, num_layers=L),
        out_shape=jax.ShapeDtypeStruct((B, 1, out_dim), jnp.float32),
        grid=(B, L),
        in_specs=in_specs,
        out_specs=pl.BlockSpec((1, 1, out_dim), lambda b, l: (b, 0, 0)),
        scratch_shapes=[pltpu.VMEM((Q, dim), jnp.float32)],   # hidden state across layers
        compiler_params=pltpu.CompilerParams(
            dimension_semantics=("parallel", "arbitrary"),
            vmem_limit_bytes=32 * 1024 * 1024),
    )(sf, *head_tensors, memory, *layer_tensors, *tail_tensors)


# =============================================================================
# PathOneShotTransformer forward (2 pallas_call launches)
# =============================================================================

def path_one_shot_transformer_forward(params, cfg, bev, positions, static_features):
    B = bev.shape[0]
    dim = cfg["dim"]
    pos_dim = cfg["pos_dim"]
    max_seq_len = cfg["max_seq_len"]
    num_pos = positions.shape[2]
    assert num_pos <= max_seq_len, (num_pos, max_seq_len)

    # Kernel 1: bev encoder (4 res blocks + 1x1 projection + pos enc), NHWC-flat memory.
    memory = bev_encoder(bev, params, dim)                               # [B*H*W, dim]

    # Kernel 2: static_encoder + all decoder layers + pos_decoder MLP.
    out = decoder_forward(static_features, memory, params, cfg, B)       # [B, 1, pos_dim*max_seq_len]

    pred_pos = out.reshape(B, pos_dim, max_seq_len)[..., :num_pos]
    return pred_pos, jnp.array(0)


# =============================================================================
# Deterministic synthetic parameter init (bf16 matmul weights, f32 bias/LN/pos)
# =============================================================================

def init_params(key, cfg):
    bev_dim, dim = cfg["bev_dim"], cfg["dim"]
    H, W = cfg["bev_shape"]
    F = cfg["static_features"]
    Q = cfg["num_queries"]
    L = cfg["num_layers"]
    nblocks = 4
    inter = 4 * dim
    out_dim = cfg["max_seq_len"] * cfg["pos_dim"]

    keys = iter(jax.random.split(key, 32))
    nk = lambda: next(keys)
    w16 = lambda shape: (0.02 * jax.random.normal(nk(), shape, jnp.float32)).astype(jnp.bfloat16)
    f32n = lambda shape: 0.02 * jax.random.normal(nk(), shape, jnp.float32)
    zeros = lambda *s: jnp.zeros(s, jnp.float32)
    ones = lambda *s: jnp.ones(s, jnp.float32)

    return dict(
        query_embed=f32n((Q, dim)),
        static_encoder=dict(
            w1=w16((F, dim)), b1=zeros(1, dim),
            w2=w16((dim, dim)), b2=zeros(1, dim),
            w3=w16((dim, dim)), b3=zeros(1, dim),
        ),
        # BatchNorm inside the res blocks is identity at fresh init and folded out.
        bev_stage=dict(
            wa=w16((nblocks, bev_dim, bev_dim)), ba=zeros(nblocks, 1, bev_dim),
            # wb[i, t] corresponds to torch w[:, :, kh, kw].T with t = kh*3 + kw
            wb=w16((nblocks, 9, bev_dim, bev_dim)), bb=zeros(nblocks, 1, bev_dim),
            wc=w16((nblocks, bev_dim, bev_dim)), bc=zeros(nblocks, 1, bev_dim),
        ),
        bev_proj_w=w16((bev_dim, dim)),
        bev_proj_b=zeros(1, dim),
        pos_enc=f32n((1, dim, H, W)),
        decoder=dict(
            wqkv=w16((L, dim, 3 * dim)), bqkv=zeros(L, 1, 3 * dim),
            wo_s=w16((L, dim, dim)), bo_s=zeros(L, 1, dim),
            ln1_g=ones(L, 1, dim), ln1_b=zeros(L, 1, dim),
            wq_c=w16((L, dim, dim)), bq_c=zeros(L, 1, dim),
            wkv_c=w16((L, dim, 2 * dim)), bkv_c=zeros(L, 1, 2 * dim),
            wo_c=w16((L, dim, dim)), bo_c=zeros(L, 1, dim),
            ln2_g=ones(L, 1, dim), ln2_b=zeros(L, 1, dim),
            w1=w16((L, dim, inter)), b1=zeros(L, 1, inter),
            w2=w16((L, inter, dim)), b2=zeros(L, 1, dim),
            ln3_g=ones(L, 1, dim), ln3_b=zeros(L, 1, dim),
        ),
        # pos_decoder first layer stored as [Q, dim, inter] (reshape of [Q*dim, inter]).
        dec_w1=w16((Q, dim, inter)), dec_b1=zeros(1, inter),
        dec_w2=w16((inter, inter)), dec_b2=zeros(1, inter),
        dec_w3=w16((inter, out_dim)), dec_b3=zeros(1, out_dim),
    )


# =============================================================================
# Main
# =============================================================================

if __name__ == "__main__":
    cfg = dict(
        bev_shape=(8, 8),
        bev_dim=16,
        dim=32,
        max_seq_len=8,
        static_features=6,
        num_heads=4,
        num_layers=3,
        pos_dim=3,
        num_queries=16,
    )
    B = 2
    num_pos = 6

    root = jax.random.PRNGKey(0)
    kparam, kbev, kpos, kstat = jax.random.split(root, 4)

    params = init_params(kparam, cfg)
    bev = jax.random.normal(kbev, (B, cfg["bev_dim"], *cfg["bev_shape"]), jnp.float32)
    positions = jax.random.normal(kpos, (B, 2, num_pos), jnp.float32)
    static_features = jax.random.normal(kstat, (B, cfg["static_features"]), jnp.float32)

    fwd = jax.jit(lambda p, b, pos, s: path_one_shot_transformer_forward(p, cfg, b, pos, s))
    pred_pos, aux = fwd(params, bev, positions, static_features)
    jax.block_until_ready(pred_pos)

    assert pred_pos.shape == (B, cfg["pos_dim"], num_pos), pred_pos.shape
    assert pred_pos.dtype == jnp.float32
    assert bool(jnp.all(jnp.isfinite(pred_pos)))
    print("KERNEL_OK")
</pallas_src>

<mosaic_0001>
module attributes {stable_mosaic.version = 11 : i64} {
  func.func @_bev_kernel(%arg0: i32, %arg1: memref<64x16xf32, #tpu.memory_space<vmem>>, %arg2: memref<64x32xf32, #tpu.memory_space<vmem>>, %arg3: memref<4x16x16xbf16, #tpu.memory_space<vmem>>, %arg4: memref<4x1x16xf32, #tpu.memory_space<vmem>>, %arg5: memref<4x9x16x16xbf16, #tpu.memory_space<vmem>>, %arg6: memref<4x1x16xf32, #tpu.memory_space<vmem>>, %arg7: memref<4x16x16xbf16, #tpu.memory_space<vmem>>, %arg8: memref<4x1x16xf32, #tpu.memory_space<vmem>>, %arg9: memref<16x32xbf16, #tpu.memory_space<vmem>>, %arg10: memref<1x32xf32, #tpu.memory_space<vmem>>, %arg11: memref<64x32xf32, #tpu.memory_space<vmem>>, %arg12: memref<96x16xf32, #tpu.memory_space<vmem>>) attributes {dimension_semantics = [#tpu.dimension_semantics<parallel>], iteration_bounds = array<i64: 2>, scalar_prefetch = 0 : i64, scratch_operands = 1 : i64, tpu.core_type = #tpu.core_type<tc>, window_params = [{transform_indices = @transform_0, window_bounds = array<i64: 64, 16>}, {pipeline_mode = #tpu.pipeline_mode<synchronous>, transform_indices = @transform_1, window_bounds = array<i64: 64, 32>}, {pipeline_mode = #tpu.pipeline_mode<synchronous>, transform_indices = @transform_2, window_bounds = array<i64: 4, 16, 16>}, {pipeline_mode = #tpu.pipeline_mode<synchronous>, transform_indices = @transform_3, window_bounds = array<i64: 4, 1, 16>}, {pipeline_mode = #tpu.pipeline_mode<synchronous>, transform_indices = @transform_4, window_bounds = array<i64: 4, 9, 16, 16>}, {pipeline_mode = #tpu.pipeline_mode<synchronous>, transform_indices = @transform_5, window_bounds = array<i64: 4, 1, 16>}, {pipeline_mode = #tpu.pipeline_mode<synchronous>, transform_indices = @transform_6, window_bounds = array<i64: 4, 16, 16>}, {pipeline_mode = #tpu.pipeline_mode<synchronous>, transform_indices = @transform_7, window_bounds = array<i64: 4, 1, 16>}, {pipeline_mode = #tpu.pipeline_mode<synchronous>, transform_indices = @transform_8, window_bounds = array<i64: 16, 32>}, {pipeline_mode = #tpu.pipeline_mode<synchronous>, transform_indices = @transform_9, window_bounds = array<i64: 1, 32>}, {transform_indices = @transform_10, window_bounds = array<i64: 64, 32>}]} {
    %c0 = arith.constant 0 : index
    %c0_0 = arith.constant 0 : index
    %0 = vector.load %arg1[%c0, %c0_0] : memref<64x16xf32, #tpu.memory_space<vmem>>, vector<64x16xf32>
    %1 = tpu.iota {dimensions = array<i32: 0>} : vector<64x1xi32>
    %c7_i32 = arith.constant 7 : i32
    %2 = vector.broadcast %c7_i32 : i32 to vector<64x1xi32>
    %3 = arith.andi %1, %2 : vector<64x1xi32>
    %c1_i32 = arith.constant 1 : i32
    %4 = vector.broadcast %c1_i32 : i32 to vector<64x1xi32>
    %5 = arith.cmpi sge, %3, %4 : vector<64x1xi32>
    %6 = arith.extui %5 : vector<64x1xi1> to vector<64x1xi32>
    %7 = arith.sitofp %6 : vector<64x1xi32> to vector<64x1xf32>
    %c6_i32 = arith.constant 6 : i32
    %8 = vector.broadcast %c6_i32 : i32 to vector<64x1xi32>
    %9 = arith.cmpi sle, %3, %8 : vector<64x1xi32>
    %10 = arith.extui %9 : vector<64x1xi1> to vector<64x1xi32>
    %11 = arith.sitofp %10 : vector<64x1xi32> to vector<64x1xf32>
    %cst = arith.constant 0.000000e+00 : f32
    %12 = vector.broadcast %cst : f32 to vector<96x16xf32>
    %c0_1 = arith.constant 0 : index
    %c0_2 = arith.constant 0 : index
    %13 = vector.load %arg12[%c0_1, %c0_2] : memref<96x16xf32, #tpu.memory_space<vmem>>, vector<96x16xf32>
    tpu.vector_store %arg12[%c0_1, %c0_2], %12 {strides = array<i32>} : memref<96x16xf32, #tpu.memory_space<vmem>>, vector<96x16xf32>,
    %14 = arith.truncf %0 : vector<64x16xf32> to vector<64x16xbf16>
    %c0_3 = arith.constant 0 : index
    %c0_4 = arith.constant 0 : index
    %c0_5 = arith.constant 0 : index
    %15 = vector.load %arg3[%c0_3, %c0_4, %c0_5] : memref<4x16x16xbf16, #tpu.memory_space<vmem>>, vector<1x16x16xbf16>
    %16 = vector.shape_cast %15 : vector<1x16x16xbf16> to vector<16x16xbf16>
    %cst_6 = arith.constant dense<0.000000e+00> : vector<64x16xf32>
    %17 = tpu.matmul %14, %16, %cst_6 {dimension_numbers = #tpu.dot_dimension_numbers<[1], [0], [0], [1], [0, 0, 1, 1], [], []>} : vector<64x16xbf16>, vector<16x16xbf16>, vector<64x16xf32> -> vector<64x16xf32>
    %c0_7 = arith.constant 0 : index
    %c0_8 = arith.constant 0 : index
    %c0_9 = arith.constant 0 : index
    %18 = vector.load %arg4[%c0_7, %c0_8, %c0_9] : memref<4x1x16xf32, #tpu.memory_space<vmem>>, vector<1x1x16xf32>
    %19 = vector.shape_cast %18 : vector<1x1x16xf32> to vector<1x16xf32>
    %20 = vector.broadcast %19 : vector<1x16xf32> to vector<64x16xf32>
    %21 = arith.addf %17, %20 : vector<64x16xf32>
    %cst_10 = arith.constant 0.000000e+00 : f32
    %22 = vector.broadcast %cst_10 : f32 to vector<64x16xf32>
    %23 = arith.maximumf %21, %22 : vector<64x16xf32>
    %c16 = arith.constant 16 : index
    %c0_11 = arith.constant 0 : index
    %24 = vector.load %arg12[%c16, %c0_11] : memref<96x16xf32, #tpu.memory_space<vmem>>, vector<64x16xf32>
    tpu.vector_store %arg12[%c16, %c0_11], %23 {strides = array<i32>} : memref<96x16xf32, #tpu.memory_space<vmem>>, vector<64x16xf32>,
    %c0_12 = arith.constant 0 : index
    %c0_13 = arith.constant 0 : index
    %c0_14 = arith.constant 0 : index
    %25 = vector.load %arg6[%c0_12, %c0_13, %c0_14] : memref<4x1x16xf32, #tpu.memory_space<vmem>>, vector<1x1x16xf32>
    %26 = vector.shape_cast %25 : vector<1x1x16xf32> to vector<1x16xf32>
    %c7 = arith.constant 7 : index
    %c0_15 = arith.constant 0 : index
    %27 = vector.load %arg12[%c7, %c0_15] : memref<96x16xf32, #tpu.memory_space<vmem>>, vector<64x16xf32>
    %28 = vector.broadcast %7 : vector<64x1xf32> to vector<64x16xf32>
    %29 = arith.mulf %27, %28 : vector<64x16xf32>
    %30 = arith.truncf %29 : vector<64x16xf32> to vector<64x16xbf16>
    %c0_16 = arith.constant 0 : index
    %c0_17 = arith.constant 0 : index
    %c0_18 = arith.constant 0 : index
    %c0_19 = arith.constant 0 : index
    %31 = vector.load %arg5[%c0_16, %c0_17, %c0_18, %c0_19] : memref<4x9x16x16xbf16, #tpu.memory_space<vmem>>, vector<1x1x16x16xbf16>
    %32 = vector.shape_cast %31 : vector<1x1x16x16xbf16> to vector<16x16xbf16>
    %cst_20 = arith.constant dense<0.000000e+00> : vector<64x16xf32>
    %33 = tpu.matmul %30, %32, %cst_20 {dimension_numbers = #tpu.dot_dimension_numbers<[1], [0], [0], [1], [0, 0, 1, 1], [], []>} : vector<64x16xbf16>, vector<16x16xbf16>, vector<64x16xf32> -> vector<64x16xf32>
    %34 = vector.broadcast %26 : vector<1x16xf32> to vector<64x16xf32>
    %35 = arith.addf %34, %33 : vector<64x16xf32>
    %c8 = arith.constant 8 : index
    %c0_21 = arith.constant 0 : index
    %36 = vector.load %arg12[%c8, %c0_21] : memref<96x16xf32, #tpu.memory_space<vmem>>, vector<64x16xf32>
    %37 = arith.truncf %36 : vector<64x16xf32> to vector<64x16xbf16>
    %c0_22 = arith.constant 0 : index
    %c1 = arith.constant 1 : index
    %c0_23 = arith.constant 0 : index
    %c0_24 = arith.constant 0 : index
    %38 = vector.load %arg5[%c0_22, %c1, %c0_23, %c0_24] : memref<4x9x16x16xbf16, #tpu.memory_space<vmem>>, vector<1x1x16x16xbf16>
    %39 = vector.shape_cast %38 : vector<1x1x16x16xbf16> to vector<16x16xbf16>
    %cst_25 = arith.constant dense<0.000000e+00> : vector<64x16xf32>
    %40 = tpu.matmul %37, %39, %cst_25 {dimension_numbers = #tpu.dot_dimension_numbers<[1], [0], [0], [1], [0, 0, 1, 1], [], []>} : vector<64x16xbf16>, vector<16x16xbf16>, vector<64x16xf32> -> vector<64x16xf32>
    %41 = arith.addf %35, %40 : vector<64x16xf32>
    %c9 = arith.constant 9 : index
    %c0_26 = arith.constant 0 : index
    %42 = vector.load %arg12[%c9, %c0_26] : memref<96x16xf32, #tpu.memory_space<vmem>>, vector<64x16xf32>
    %43 = vector.broadcast %11 : vector<64x1xf32> to vector<64x16xf32>
    %44 = arith.mulf %42, %43 : vector<64x16xf32>
    %45 = arith.truncf %44 : vector<64x16xf32> to vector<64x16xbf16>
    %c0_27 = arith.constant 0 : index
    %c2 = arith.constant 2 : index
    %c0_28 = arith.constant 0 : index
    %c0_29 = arith.constant 0 : index
    %46 = vector.load %arg5[%c0_27, %c2, %c0_28, %c0_29] : memref<4x9x16x16xbf16, #tpu.memory_space<vmem>>, vector<1x1x16x16xbf16>
    %47 = vector.shape_cast %46 : vector<1x1x16x16xbf16> to vector<16x16xbf16>
    %cst_30 = arith.constant dense<0.000000e+00> : vector<64x16xf32>
    %48 = tpu.matmul %45, %47, %cst_30 {dimension_numbers = #tpu.dot_dimension_numbers<[1], [0], [0], [1], [0, 0, 1, 1], [], []>} : vector<64x16xbf16>, vector<16x16xbf16>, vector<64x16xf32> -> vector<64x16xf32>
    %49 = arith.addf %41, %48 : vector<64x16xf32>
    %c15 = arith.constant 15 : index
    %c0_31 = arith.constant 0 : index
    %50 = vector.load %arg12[%c15, %c0_31] : memref<96x16xf32, #tpu.memory_space<vmem>>, vector<64x16xf32>
    %51 = vector.broadcast %7 : vector<64x1xf32> to vector<64x16xf32>
    %52 = arith.mulf %50, %51 : vector<64x16xf32>
    %53 = arith.truncf %52 : vector<64x16xf32> to vector<64x16xbf16>
    %c0_32 = arith.constant 0 : index
    %c3 = arith.constant 3 : index
    %c0_33 = arith.constant 0 : index
    %c0_34 = arith.constant 0 : index
    %54 = vector.load %arg5[%c0_32, %c3, %c0_33, %c0_34] : memref<4x9x16x16xbf16, #tpu.memory_space<vmem>>, vector<1x1x16x16xbf16>
    %55 = vector.shape_cast %54 : vector<1x1x16x16xbf16> to vector<16x16xbf16>
    %cst_35 = arith.constant dense<0.000000e+00> : vector<64x16xf32>
    %56 = tpu.matmul %53, %55, %cst_35 {dimension_numbers = #tpu.dot_dimension_numbers<[1], [0], [0], [1], [0, 0, 1, 1], [], []>} : vector<64x16xbf16>, vector<16x16xbf16>, vector<64x16xf32> -> vector<64x16xf32>
    %57 = arith.addf %49, %56 : vector<64x16xf32>
    %c16_36 = arith.constant 16 : index
    %c0_37 = arith.constant 0 : index
    %58 = vector.load %arg12[%c16_36, %c0_37] : memref<96x16xf32, #tpu.memory_space<vmem>>, vector<64x16xf32>
    %59 = arith.truncf %58 : vector<64x16xf32> to vector<64x16xbf16>
    %c0_38 = arith.constant 0 : index
    %c4 = arith.constant 4 : index
    %c0_39 = arith.constant 0 : index
    %c0_40 = arith.constant 0 : index
    %60 = vector.load %arg5[%c0_38, %c4, %c0_39, %c0_40] : memref<4x9x16x16xbf16, #tpu.memory_space<vmem>>, vector<1x1x16x16xbf16>
    %61 = vector.shape_cast %60 : vector<1x1x16x16xbf16> to vector<16x16xbf16>
    %cst_41 = arith.constant dense<0.000000e+00> : vector<64x16xf32>
    %62 = tpu.matmul %59, %61, %cst_41 {dimension_numbers = #tpu.dot_dimension_numbers<[1], [0], [0], [1], [0, 0, 1, 1], [], []>} : vector<64x16xbf16>, vector<16x16xbf16>, vector<64x16xf32> -> vector<64x16xf32>
    %63 = arith.addf %57, %62 : vector<64x16xf32>
    %c17 = arith.constant 17 : index
    %c0_42 = arith.constant 0 : index
    %64 = vector.load %arg12[%c17, %c0_42] : memref<96x16xf32, #tpu.memory_space<vmem>>, vector<64x16xf32>
    %65 = vector.broadcast %11 : vector<64x1xf32> to vector<64x16xf32>
    %66 = arith.mulf %64, %65 : vector<64x16xf32>
    %67 = arith.truncf %66 : vector<64x16xf32> to vector<64x16xbf16>
    %c0_43 = arith.constant 0 : index
    %c5 = arith.constant 5 : index
    %c0_44 = arith.constant 0 : index
    %c0_45 = arith.constant 0 : index
    %68 = vector.load %arg5[%c0_43, %c5, %c0_44, %c0_45] : memref<4x9x16x16xbf16, #tpu.memory_space<vmem>>, vector<1x1x16x16xbf16>
    %69 = vector.shape_cast %68 : vector<1x1x16x16xbf16> to vector<16x16xbf16>
    %cst_46 = arith.constant dense<0.000000e+00> : vector<64x16xf32>
    %70 = tpu.matmul %67, %69, %cst_46 {dimension_numbers = #tpu.dot_dimension_numbers<[1], [0], [0], [1], [0, 0, 1, 1], [], []>} : vector<64x16xbf16>, vector<16x16xbf16>, vector<64x16xf32> -> vector<64x16xf32>
    %71 = arith.addf %63, %70 : vector<64x16xf32>
    %c23 = arith.constant 23 : index
    %c0_47 = arith.constant 0 : index
    %72 = vector.load %arg12[%c23, %c0_47] : memref<96x16xf32, #tpu.memory_space<vmem>>, vector<64x16xf32>
    %73 = vector.broadcast %7 : vector<64x1xf32> to vector<64x16xf32>
    %74 = arith.mulf %72, %73 : vector<64x16xf32>
    %75 = arith.truncf %74 : vector<64x16xf32> to vector<64x16xbf16>
    %c0_48 = arith.constant 0 : index
    %c6 = arith.constant 6 : index
    %c0_49 = arith.constant 0 : index
    %c0_50 = arith.constant 0 : index
    %76 = vector.load %arg5[%c0_48, %c6, %c0_49, %c0_50] : memref<4x9x16x16xbf16, #tpu.memory_space<vmem>>, vector<1x1x16x16xbf16>
    %77 = vector.shape_cast %76 : vector<1x1x16x16xbf16> to vector<16x16xbf16>
    %cst_51 = arith.constant dense<0.000000e+00> : vector<64x16xf32>
    %78 = tpu.matmul %75, %77, %cst_51 {dimension_numbers = #tpu.dot_dimension_numbers<[1], [0], [0], [1], [0, 0, 1, 1], [], []>} : vector<64x16xbf16>, vector<16x16xbf16>, vector<64x16xf32> -> vector<64x16xf32>
    %79 = arith.addf %71, %78 : vector<64x16xf32>
    %c24 = arith.constant 24 : index
    %c0_52 = arith.constant 0 : index
    %80 = vector.load %arg12[%c24, %c0_52] : memref<96x16xf32, #tpu.memory_space<vmem>>, vector<64x16xf32>
    %81 = arith.truncf %80 : vector<64x16xf32> to vector<64x16xbf16>
    %c0_53 = arith.constant 0 : index
    %c7_54 = arith.constant 7 : index
    %c0_55 = arith.constant 0 : index
    %c0_56 = arith.constant 0 : index
    %82 = vector.load %arg5[%c0_53, %c7_54, %c0_55, %c0_56] : memref<4x9x16x16xbf16, #tpu.memory_space<vmem>>, vector<1x1x16x16xbf16>
    %83 = vector.shape_cast %82 : vector<1x1x16x16xbf16> to vector<16x16xbf16>
    %cst_57 = arith.constant dense<0.000000e+00> : vector<64x16xf32>
    %84 = tpu.matmul %81, %83, %cst_57 {dimension_numbers = #tpu.dot_dimension_numbers<[1], [0], [0], [1], [0, 0, 1, 1], [], []>} : vector<64x16xbf16>, vector<16x16xbf16>, vector<64x16xf32> -> vector<64x16xf32>
    %85 = arith.addf %79, %84 : vector<64x16xf32>
    %c25 = arith.constant 25 : index
    %c0_58 = arith.constant 0 : index
    %86 = vector.load %arg12[%c25, %c0_58] : memref<96x16xf32, #tpu.memory_space<vmem>>, vector<64x16xf32>
    %87 = vector.broadcast %11 : vector<64x1xf32> to vector<64x16xf32>
    %88 = arith.mulf %86, %87 : vector<64x16xf32>
    %89 = arith.truncf %88 : vector<64x16xf32> to vector<64x16xbf16>
    %c0_59 = arith.constant 0 : index
    %c8_60 = arith.constant 8 : index
    %c0_61 = arith.constant 0 : index
    %c0_62 = arith.constant 0 : index
    %90 = vector.load %arg5[%c0_59, %c8_60, %c0_61, %c0_62] : memref<4x9x16x16xbf16, #tpu.memory_space<vmem>>, vector<1x1x16x16xbf16>
    %91 = vector.shape_cast %90 : vector<1x1x16x16xbf16> to vector<16x16xbf16>
    %cst_63 = arith.constant dense<0.000000e+00> : vector<64x16xf32>
    %92 = tpu.matmul %89, %91, %cst_63 {dimension_numbers = #tpu.dot_dimension_numbers<[1], [0], [0], [1], [0, 0, 1, 1], [], []>} : vector<64x16xbf16>, vector<16x16xbf16>, vector<64x16xf32> -> vector<64x16xf32>
    %93 = arith.addf %85, %92 : vector<64x16xf32>
    %cst_64 = arith.constant 0.000000e+00 : f32
    %94 = vector.broadcast %cst_64 : f32 to vector<64x16xf32>
    %95 = arith.maximumf %93, %94 : vector<64x16xf32>
    %96 = arith.truncf %95 : vector<64x16xf32> to vector<64x16xbf16>
    %c0_65 = arith.constant 0 : index
    %c0_66 = arith.constant 0 : index
    %c0_67 = arith.constant 0 : index
    %97 = vector.load %arg7[%c0_65, %c0_66, %c0_67] : memref<4x16x16xbf16, #tpu.memory_space<vmem>>, vector<1x16x16xbf16>
    %98 = vector.shape_cast %97 : vector<1x16x16xbf16> to vector<16x16xbf16>
    %cst_68 = arith.constant dense<0.000000e+00> : vector<64x16xf32>
    %99 = tpu.matmul %96, %98, %cst_68 {dimension_numbers = #tpu.dot_dimension_numbers<[1], [0], [0], [1], [0, 0, 1, 1], [], []>} : vector<64x16xbf16>, vector<16x16xbf16>, vector<64x16xf32> -> vector<64x16xf32>
    %c0_69 = arith.constant 0 : index
    %c0_70 = arith.constant 0 : index
    %c0_71 = arith.constant 0 : index
    %100 = vector.load %arg8[%c0_69, %c0_70, %c0_71] : memref<4x1x16xf32, #tpu.memory_space<vmem>>, vector<1x1x16xf32>
    %101 = vector.shape_cast %100 : vector<1x1x16xf32> to vector<1x16xf32>
    %102 = vector.broadcast %101 : vector<1x16xf32> to vector<64x16xf32>
    %103 = arith.addf %99, %102 : vector<64x16xf32>
    %104 = arith.addf %103, %0 : vector<64x16xf32>
    %cst_72 = arith.constant 0.000000e+00 : f32
    %105 = vector.broadcast %cst_72 : f32 to vector<64x16xf32>
    %106 = arith.maximumf %104, %105 : vector<64x16xf32>
    %107 = arith.truncf %106 : vector<64x16xf32> to vector<64x16xbf16>
    %c1_73 = arith.constant 1 : index
    %c0_74 = arith.constant 0 : index
    %c0_75 = arith.constant 0 : index
    %108 = vector.load %arg3[%c1_73, %c0_74, %c0_75] : memref<4x16x16xbf16, #tpu.memory_space<vmem>>, vector<1x16x16xbf16>
    %109 = vector.shape_cast %108 : vector<1x16x16xbf16> to vector<16x16xbf16>
    %cst_76 = arith.constant dense<0.000000e+00> : vector<64x16xf32>
    %110 = tpu.matmul %107, %109, %cst_76 {dimension_numbers = #tpu.dot_dimension_numbers<[1], [0], [0], [1], [0, 0, 1, 1], [], []>} : vector<64x16xbf16>, vector<16x16xbf16>, vector<64x16xf32> -> vector<64x16xf32>
    %c1_77 = arith.constant 1 : index
    %c0_78 = arith.constant 0 : index
    %c0_79 = arith.constant 0 : index
    %111 = vector.load %arg4[%c1_77, %c0_78, %c0_79] : memref<4x1x16xf32, #tpu.memory_space<vmem>>, vector<1x1x16xf32>
    %112 = vector.shape_cast %111 : vector<1x1x16xf32> to vector<1x16xf32>
    %113 = vector.broadcast %112 : vector<1x16xf32> to vector<64x16xf32>
    %114 = arith.addf %110, %113 : vector<64x16xf32>
    %cst_80 = arith.constant 0.000000e+00 : f32
    %115 = vector.broadcast %cst_80 : f32 to vector<64x16xf32>
    %116 = arith.maximumf %114, %115 : vector<64x16xf32>
    %c16_81 = arith.constant 16 : index
    %c0_82 = arith.constant 0 : index
    %117 = vector.load %arg12[%c16_81, %c0_82] : memref<96x16xf32, #tpu.memory_space<vmem>>, vector<64x16xf32>
    tpu.vector_store %arg12[%c16_81, %c0_82], %116 {strides = array<i32>} : memref<96x16xf32, #tpu.memory_space<vmem>>, vector<64x16xf32>,
    %c1_83 = arith.constant 1 : index
    %c0_84 = arith.constant 0 : index
    %c0_85 = arith.constant 0 : index
    %118 = vector.load %arg6[%c1_83, %c0_84, %c0_85] : memref<4x1x16xf32, #tpu.memory_space<vmem>>, vector<1x1x16xf32>
    %119 = vector.shape_cast %118 : vector<1x1x16xf32> to vector<1x16xf32>
    %c7_86 = arith.constant 7 : index
    %c0_87 = arith.constant 0 : index
    %120 = vector.load %arg12[%c7_86, %c0_87] : memref<96x16xf32, #tpu.memory_space<vmem>>, vector<64x16xf32>
    %121 = vector.broadcast %7 : vector<64x1xf32> to vector<64x16xf32>
    %122 = arith.mulf %120, %121 : vector<64x16xf32>
    %123 = arith.truncf %122 : vector<64x16xf32> to vector<64x16xbf16>
    %c1_88 = arith.constant 1 : index
    %c0_89 = arith.constant 0 : index
    %c0_90 = arith.constant 0 : index
    %c0_91 = arith.constant 0 : index
    %124 = vector.load %arg5[%c1_88, %c0_89, %c0_90, %c0_91] : memref<4x9x16x16xbf16, #tpu.memory_space<vmem>>, vector<1x1x16x16xbf16>
    %125 = vector.shape_cast %124 : vector<1x1x16x16xbf16> to vector<16x16xbf16>
    %cst_92 = arith.constant dense<0.000000e+00> : vector<64x16xf32>
    %126 = tpu.matmul %123, %125, %cst_92 {dimension_numbers = #tpu.dot_dimension_numbers<[1], [0], [0], [1], [0, 0, 1, 1], [], []>} : vector<64x16xbf16>, vector<16x16xbf16>, vector<64x16xf32> -> vector<64x16xf32>
    %127 = vector.broadcast %119 : vector<1x16xf32> to vector<64x16xf32>
    %128 = arith.addf %127, %126 : vector<64x16xf32>
    %c8_93 = arith.constant 8 : index
    %c0_94 = arith.constant 0 : index
    %129 = vector.load %arg12[%c8_93, %c0_94] : memref<96x16xf32, #tpu.memory_space<vmem>>, vector<64x16xf32>
    %130 = arith.truncf %129 : vector<64x16xf32> to vector<64x16xbf16>
    %c1_95 = arith.constant 1 : index
    %c1_96 = arith.constant 1 : index
    %c0_97 = arith.constant 0 : index
    %c0_98 = arith.constant 0 : index
    %131 = vector.load %arg5[%c1_95, %c1_96, %c0_97, %c0_98] : memref<4x9x16x16xbf16, #tpu.memory_space<vmem>>, vector<1x1x16x16xbf16>
    %132 = vector.shape_cast %131 : vector<1x1x16x16xbf16> to vector<16x16xbf16>
    %cst_99 = arith.constant dense<0.000000e+00> : vector<64x16xf32>
    %133 = tpu.matmul %130, %132, %cst_99 {dimension_numbers = #tpu.dot_dimension_numbers<[1], [0], [0], [1], [0, 0, 1, 1], [], []>} : vector<64x16xbf16>, vector<16x16xbf16>, vector<64x16xf32> -> vector<64x16xf32>
    %134 = arith.addf %128, %133 : vector<64x16xf32>
    %c9_100 = arith.constant 9 : index
    %c0_101 = arith.constant 0 : index
    %135 = vector.load %arg12[%c9_100, %c0_101] : memref<96x16xf32, #tpu.memory_space<vmem>>, vector<64x16xf32>
    %136 = vector.broadcast %11 : vector<64x1xf32> to vector<64x16xf32>
    %137 = arith.mulf %135, %136 : vector<64x16xf32>
    %138 = arith.truncf %137 : vector<64x16xf32> to vector<64x16xbf16>
    %c1_102 = arith.constant 1 : index
    %c2_103 = arith.constant 2 : index
    %c0_104 = arith.constant 0 : index
    %c0_105 = arith.constant 0 : index
    %139 = vector.load %arg5[%c1_102, %c2_103, %c0_104, %c0_105] : memref<4x9x16x16xbf16, #tpu.memory_space<vmem>>, vector<1x1x16x16xbf16>
    %140 = vector.shape_cast %139 : vector<1x1x16x16xbf16> to vector<16x16xbf16>
    %cst_106 = arith.constant dense<0.000000e+00> : vector<64x16xf32>
    %141 = tpu.matmul %138, %140, %cst_106 {dimension_numbers = #tpu.dot_dimension_numbers<[1], [0], [0], [1], [0, 0, 1, 1], [], []>} : vector<64x16xbf16>, vector<16x16xbf16>, vector<64x16xf32> -> vector<64x16xf32>
    %142 = arith.addf %134, %141 : vector<64x16xf32>
    %c15_107 = arith.constant 15 : index
    %c0_108 = arith.constant 0 : index
    %143 = vector.load %arg12[%c15_107, %c0_108] : memref<96x16xf32, #tpu.memory_space<vmem>>, vector<64x16xf32>
    %144 = vector.broadcast %7 : vector<64x1xf32> to vector<64x16xf32>
    %145 = arith.mulf %143, %144 : vector<64x16xf32>
    %146 = arith.truncf %145 : vector<64x16xf32> to vector<64x16xbf16>
    %c1_109 = arith.constant 1 : index
    %c3_110 = arith.constant 3 : index
    %c0_111 = arith.constant 0 : index
    %c0_112 = arith.constant 0 : index
    %147 = vector.load %arg5[%c1_109, %c3_110, %c0_111, %c0_112] : memref<4x9x16x16xbf16, #tpu.memory_space<vmem>>, vector<1x1x16x16xbf16>
    %148 = vector.shape_cast %147 : vector<1x1x16x16xbf16> to vector<16x16xbf16>
    %cst_113 = arith.constant dense<0.000000e+00> : vector<64x16xf32>
    %149 = tpu.matmul %146, %148, %cst_113 {dimension_numbers = #tpu.dot_dimension_numbers<[1], [0], [0], [1], [0, 0, 1, 1], [], []>} : vector<64x16xbf16>, vector<16x16xbf16>, vector<64x16xf32> -> vector<64x16xf32>
    %150 = arith.addf %142, %149 : vector<64x16xf32>
    %c16_114 = arith.constant 16 : index
    %c0_115 = arith.constant 0 : index
    %151 = vector.load %arg12[%c16_114, %c0_115] : memref<96x16xf32, #tpu.memory_space<vmem>>, vector<64x16xf32>
    %152 = arith.truncf %151 : vector<64x16xf32> to vector<64x16xbf16>
    %c1_116 = arith.constant 1 : index
    %c4_117 = arith.constant 4 : index
    %c0_118 = arith.constant 0 : index
    %c0_119 = arith.constant 0 : index
    %153 = vector.load %arg5[%c1_116, %c4_117, %c0_118, %c0_119] : memref<4x9x16x16xbf16, #tpu.memory_space<vmem>>, vector<1x1x16x16xbf16>
    %154 = vector.shape_cast %153 : vector<1x1x16x16xbf16> to vector<16x16xbf16>
    %cst_120 = arith.constant dense<0.000000e+00> : vector<64x16xf32>
    %155 = tpu.matmul %152, %154, %cst_120 {dimension_numbers = #tpu.dot_dimension_numbers<[1], [0], [0], [1], [0, 0, 1, 1], [], []>} : vector<64x16xbf16>, vector<16x16xbf16>, vector<64x16xf32> -> vector<64x16xf32>
    %156 = arith.addf %150, %155 : vector<64x16xf32>
    %c17_121 = arith.constant 17 : index
    %c0_122 = arith.constant 0 : index
    %157 = vector.load %arg12[%c17_121, %c0_122] : memref<96x16xf32, #tpu.memory_space<vmem>>, vector<64x16xf32>
    %158 = vector.broadcast %11 : vector<64x1xf32> to vector<64x16xf32>
    %159 = arith.mulf %157, %158 : vector<64x16xf32>
    %160 = arith.truncf %159 : vector<64x16xf32> to vector<64x16xbf16>
    %c1_123 = arith.constant 1 : index
    %c5_124 = arith.constant 5 : index
    %c0_125 = arith.constant 0 : index
    %c0_126 = arith.constant 0 : index
    %161 = vector.load %arg5[%c1_123, %c5_124, %c0_125, %c0_126] : memref<4x9x16x16xbf16, #tpu.memory_space<vmem>>, vector<1x1x16x16xbf16>
    %162 = vector.shape_cast %161 : vector<1x1x16x16xbf16> to vector<16x16xbf16>
    %cst_127 = arith.constant dense<0.000000e+00> : vector<64x16xf32>
    %163 = tpu.matmul %160, %162, %cst_127 {dimension_numbers = #tpu.dot_dimension_numbers<[1], [0], [0], [1], [0, 0, 1, 1], [], []>} : vector<64x16xbf16>, vector<16x16xbf16>, vector<64x16xf32> -> vector<64x16xf32>
    %164 = arith.addf %156, %163 : vector<64x16xf32>
    %c23_128 = arith.constant 23 : index
    %c0_129 = arith.constant 0 : index
    %165 = vector.load %arg12[%c23_128, %c0_129] : memref<96x16xf32, #tpu.memory_space<vmem>>, vector<64x16xf32>
    %166 = vector.broadcast %7 : vector<64x1xf32> to vector<64x16xf32>
    %167 = arith.mulf %165, %166 : vector<64x16xf32>
    %168 = arith.truncf %167 : vector<64x16xf32> to vector<64x16xbf16>
    %c1_130 = arith.constant 1 : index
    %c6_131 = arith.constant 6 : index
    %c0_132 = arith.constant 0 : index
    %c0_133 = arith.constant 0 : index
    %169 = vector.load %arg5[%c1_130, %c6_131, %c0_132, %c0_133] : memref<4x9x16x16xbf16, #tpu.memory_space<vmem>>, vector<1x1x16x16xbf16>
    %170 = vector.shape_cast %169 : vector<1x1x16x16xbf16> to vector<16x16xbf16>
    %cst_134 = arith.constant dense<0.000000e+00> : vector<64x16xf32>
    %171 = tpu.matmul %168, %170, %cst_134 {dimension_numbers = #tpu.dot_dimension_numbers<[1], [0], [0], [1], [0, 0, 1, 1], [], []>} : vector<64x16xbf16>, vector<16x16xbf16>, vector<64x16xf32> -> vector<64x16xf32>
    %172 = arith.addf %164, %171 : vector<64x16xf32>
    %c24_135 = arith.constant 24 : index
    %c0_136 = arith.constant 0 : index
    %173 = vector.load %arg12[%c24_135, %c0_136] : memref<96x16xf32, #tpu.memory_space<vmem>>, vector<64x16xf32>
    %174 = arith.truncf %173 : vector<64x16xf32> to vector<64x16xbf16>
    %c1_137 = arith.constant 1 : index
    %c7_138 = arith.constant 7 : index
    %c0_139 = arith.constant 0 : index
    %c0_140 = arith.constant 0 : index
    %175 = vector.load %arg5[%c1_137, %c7_138, %c0_139, %c0_140] : memref<4x9x16x16xbf16, #tpu.memory_space<vmem>>, vector<1x1x16x16xbf16>
    %176 = vector.shape_cast %175 : vector<1x1x16x16xbf16> to vector<16x16xbf16>
    %cst_141 = arith.constant dense<0.000000e+00> : vector<64x16xf32>
    %177 = tpu.matmul %174, %176, %cst_141 {dimension_numbers = #tpu.dot_dimension_numbers<[1], [0], [0], [1], [0, 0, 1, 1], [], []>} : vector<64x16xbf16>, vector<16x16xbf16>, vector<64x16xf32> -> vector<64x16xf32>
    %178 = arith.addf %172, %177 : vector<64x16xf32>
    %c25_142 = arith.constant 25 : index
    %c0_143 = arith.constant 0 : index
    %179 = vector.load %arg12[%c25_142, %c0_143] : memref<96x16xf32, #tpu.memory_space<vmem>>, vector<64x16xf32>
    %180 = vector.broadcast %11 : vector<64x1xf32> to vector<64x16xf32>
    %181 = arith.mulf %179, %180 : vector<64x16xf32>
    %182 = arith.truncf %181 : vector<64x16xf32> to vector<64x16xbf16>
    %c1_144 = arith.constant 1 : index
    %c8_145 = arith.constant 8 : index
    %c0_146 = arith.constant 0 : index
    %c0_147 = arith.constant 0 : index
    %183 = vector.load %arg5[%c1_144, %c8_145, %c0_146, %c0_147] : memref<4x9x16x16xbf16, #tpu.memory_space<vmem>>, vector<1x1x16x16xbf16>
    %184 = vector.shape_cast %183 : vector<1x1x16x16xbf16> to vector<16x16xbf16>
    %cst_148 = arith.constant dense<0.000000e+00> : vector<64x16xf32>
    %185 = tpu.matmul %182, %184, %cst_148 {dimension_numbers = #tpu.dot_dimension_numbers<[1], [0], [0], [1], [0, 0, 1, 1], [], []>} : vector<64x16xbf16>, vector<16x16xbf16>, vector<64x16xf32> -> vector<64x16xf32>
    %186 = arith.addf %178, %185 : vector<64x16xf32>
    %cst_149 = arith.constant 0.000000e+00 : f32
    %187 = vector.broadcast %cst_149 : f32 to vector<64x16xf32>
    %188 = arith.maximumf %186, %187 : vector<64x16xf32>
    %189 = arith.truncf %188 : vector<64x16xf32> to vector<64x16xbf16>
    %c1_150 = arith.constant 1 : index
    %c0_151 = arith.constant 0 : index
    %c0_152 = arith.constant 0 : index
    %190 = vector.load %arg7[%c1_150, %c0_151, %c0_152] : memref<4x16x16xbf16, #tpu.memory_space<vmem>>, vector<1x16x16xbf16>
    %191 = vector.shape_cast %190 : vector<1x16x16xbf16> to vector<16x16xbf16>
    %cst_153 = arith.constant dense<0.000000e+00> : vector<64x16xf32>
    %192 = tpu.matmul %189, %191, %cst_153 {dimension_numbers = #tpu.dot_dimension_numbers<[1], [0], [0], [1], [0, 0, 1, 1], [], []>} : vector<64x16xbf16>, vector<16x16xbf16>, vector<64x16xf32> -> vector<64x16xf32>
    %c1_154 = arith.constant 1 : index
    %c0_155 = arith.constant 0 : index
    %c0_156 = arith.constant 0 : index
    %193 = vector.load %arg8[%c1_154, %c0_155, %c0_156] : memref<4x1x16xf32, #tpu.memory_space<vmem>>, vector<1x1x16xf32>
    %194 = vector.shape_cast %193 : vector<1x1x16xf32> to vector<1x16xf32>
    %195 = vector.broadcast %194 : vector<1x16xf32> to vector<64x16xf32>
    %196 = arith.addf %192, %195 : vector<64x16xf32>
    %197 = arith.addf %196, %106 : vector<64x16xf32>
    %cst_157 = arith.constant 0.000000e+00 : f32
    %198 = vector.broadcast %cst_157 : f32 to vector<64x16xf32>
    %199 = arith.maximumf %197, %198 : vector<64x16xf32>
    %200 = arith.truncf %199 : vector<64x16xf32> to vector<64x16xbf16>
    %c2_158 = arith.constant 2 : index
    %c0_159 = arith.constant 0 : index
    %c0_160 = arith.constant 0 : index
    %201 = vector.load %arg3[%c2_158, %c0_159, %c0_160] : memref<4x16x16xbf16, #tpu.memory_space<vmem>>, vector<1x16x16xbf16>
    %202 = vector.shape_cast %201 : vector<1x16x16xbf16> to vector<16x16xbf16>
    %cst_161 = arith.constant dense<0.000000e+00> : vector<64x16xf32>
    %203 = tpu.matmul %200, %202, %cst_161 {dimension_numbers = #tpu.dot_dimension_numbers<[1], [0], [0], [1], [0, 0, 1, 1], [], []>} : vector<64x16xbf16>, vector<16x16xbf16>, vector<64x16xf32> -> vector<64x16xf32>
    %c2_162 = arith.constant 2 : index
    %c0_163 = arith.constant 0 : index
    %c0_164 = arith.constant 0 : index
    %204 = vector.load %arg4[%c2_162, %c0_163, %c0_164] : memref<4x1x16xf32, #tpu.memory_space<vmem>>, vector<1x1x16xf32>
    %205 = vector.shape_cast %204 : vector<1x1x16xf32> to vector<1x16xf32>
    %206 = vector.broadcast %205 : vector<1x16xf32> to vector<64x16xf32>
    %207 = arith.addf %203, %206 : vector<64x16xf32>
    %cst_165 = arith.constant 0.000000e+00 : f32
    %208 = vector.broadcast %cst_165 : f32 to vector<64x16xf32>
    %209 = arith.maximumf %207, %208 : vector<64x16xf32>
    %c16_166 = arith.constant 16 : index
    %c0_167 = arith.constant 0 : index
    %210 = vector.load %arg12[%c16_166, %c0_167] : memref<96x16xf32, #tpu.memory_space<vmem>>, vector<64x16xf32>
    tpu.vector_store %arg12[%c16_166, %c0_167], %209 {strides = array<i32>} : memref<96x16xf32, #tpu.memory_space<vmem>>, vector<64x16xf32>,
    %c2_168 = arith.constant 2 : index
    %c0_169 = arith.constant 0 : index
    %c0_170 = arith.constant 0 : index
    %211 = vector.load %arg6[%c2_168, %c0_169, %c0_170] : memref<4x1x16xf32, #tpu.memory_space<vmem>>, vector<1x1x16xf32>
    %212 = vector.shape_cast %211 : vector<1x1x16xf32> to vector<1x16xf32>
    %c7_171 = arith.constant 7 : index
    %c0_172 = arith.constant 0 : index
    %213 = vector.load %arg12[%c7_171, %c0_172] : memref<96x16xf32, #tpu.memory_space<vmem>>, vector<64x16xf32>
    %214 = vector.broadcast %7 : vector<64x1xf32> to vector<64x16xf32>
    %215 = arith.mulf %213, %214 : vector<64x16xf32>
    %216 = arith.truncf %215 : vector<64x16xf32> to vector<64x16xbf16>
    %c2_173 = arith.constant 2 : index
    %c0_174 = arith.constant 0 : index
    %c0_175 = arith.constant 0 : index
    %c0_176 = arith.constant 0 : index
    %217 = vector.load %arg5[%c2_173, %c0_174, %c0_175, %c0_176] : memref<4x9x16x16xbf16, #tpu.memory_space<vmem>>, vector<1x1x16x16xbf16>
    %218 = vector.shape_cast %217 : vector<1x1x16x16xbf16> to vector<16x16xbf16>
    %cst_177 = arith.constant dense<0.000000e+00> : vector<64x16xf32>
    %219 = tpu.matmul %216, %218, %cst_177 {dimension_numbers = #tpu.dot_dimension_numbers<[1], [0], [0], [1], [0, 0, 1, 1], [], []>} : vector<64x16xbf16>, vector<16x16xbf16>, vector<64x16xf32> -> vector<64x16xf32>
    %220 = vector.broadcast %212 : vector<1x16xf32> to vector<64x16xf32>
    %221 = arith.addf %220, %219 : vector<64x16xf32>
    %c8_178 = arith.constant 8 : index
    %c0_179 = arith.constant 0 : index
    %222 = vector.load %arg12[%c8_178, %c0_179] : memref<96x16xf32, #tpu.memory_space<vmem>>, vector<64x16xf32>
    %223 = arith.truncf %222 : vector<64x16xf32> to vector<64x16xbf16>
    %c2_180 = arith.constant 2 : index
    %c1_181 = arith.constant 1 : index
    %c0_182 = arith.constant 0 : index
    %c0_183 = arith.constant 0 : index
    %224 = vector.load %arg5[%c2_180, %c1_181, %c0_182, %c0_183] : memref<4x9x16x16xbf16, #tpu.memory_space<vmem>>, vector<1x1x16x16xbf16>
    %225 = vector.shape_cast %224 : vector<1x1x16x16xbf16> to vector<16x16xbf16>
    %cst_184 = arith.constant dense<0.000000e+00> : vector<64x16xf32>
    %226 = tpu.matmul %223, %225, %cst_184 {dimension_numbers = #tpu.dot_dimension_numbers<[1], [0], [0], [1], [0, 0, 1, 1], [], []>} : vector<64x16xbf16>, vector<16x16xbf16>, vector<64x16xf32> -> vector<64x16xf32>
    %227 = arith.addf %221, %226 : vector<64x16xf32>
    %c9_185 = arith.constant 9 : index
    %c0_186 = arith.constant 0 : index
    %228 = vector.load %arg12[%c9_185, %c0_186] : memref<96x16xf32, #tpu.memory_space<vmem>>, vector<64x16xf32>
    %229 = vector.broadcast %11 : vector<64x1xf32> to vector<64x16xf32>
    %230 = arith.mulf %228, %229 : vector<64x16xf32>
    %231 = arith.truncf %230 : vector<64x16xf32> to vector<64x16xbf16>
    %c2_187 = arith.constant 2 : index
    %c2_188 = arith.constant 2 : index
    %c0_189 = arith.constant 0 : index
    %c0_190 = arith.constant 0 : index
    %232 = vector.load %arg5[%c2_187, %c2_188, %c0_189, %c0_190] : memref<4x9x16x16xbf16, #tpu.memory_space<vmem>>, vector<1x1x16x16xbf16>
    %233 = vector.shape_cast %232 : vector<1x1x16x16xbf16> to vector<16x16xbf16>
    %cst_191 = arith.constant dense<0.000000e+00> : vector<64x16xf32>
    %234 = tpu.matmul %231, %233, %cst_191 {dimension_numbers = #tpu.dot_dimension_numbers<[1], [0], [0], [1], [0, 0, 1, 1], [], []>} : vector<64x16xbf16>, vector<16x16xbf16>, vector<64x16xf32> -> vector<64x16xf32>
    %235 = arith.addf %227, %234 : vector<64x16xf32>
    %c15_192 = arith.constant 15 : index
    %c0_193 = arith.constant 0 : index
    %236 = vector.load %arg12[%c15_192, %c0_193] : memref<96x16xf32, #tpu.memory_space<vmem>>, vector<64x16xf32>
    %237 = vector.broadcast %7 : vector<64x1xf32> to vector<64x16xf32>
    %238 = arith.mulf %236, %237 : vector<64x16xf32>
    %239 = arith.truncf %238 : vector<64x16xf32> to vector<64x16xbf16>
    %c2_194 = arith.constant 2 : index
    %c3_195 = arith.constant 3 : index
    %c0_196 = arith.constant 0 : index
    %c0_197 = arith.constant 0 : index
    %240 = vector.load %arg5[%c2_194, %c3_195, %c0_196, %c0_197] : memref<4x9x16x16xbf16, #tpu.memory_space<vmem>>, vector<1x1x16x16xbf16>
    %241 = vector.shape_cast %240 : vector<1x1x16x16xbf16> to vector<16x16xbf16>
    %cst_198 = arith.constant dense<0.000000e+00> : vector<64x16xf32>
    %242 = tpu.matmul %239, %241, %cst_198 {dimension_numbers = #tpu.dot_dimension_numbers<[1], [0], [0], [1], [0, 0, 1, 1], [], []>} : vector<64x16xbf16>, vector<16x16xbf16>, vector<64x16xf32> -> vector<64x16xf32>
    %243 = arith.addf %235, %242 : vector<64x16xf32>
    %c16_199 = arith.constant 16 : index
    %c0_200 = arith.constant 0 : index
    %244 = vector.load %arg12[%c16_199, %c0_200] : memref<96x16xf32, #tpu.memory_space<vmem>>, vector<64x16xf32>
    %245 = arith.truncf %244 : vector<64x16xf32> to vector<64x16xbf16>
    %c2_201 = arith.constant 2 : index
    %c4_202 = arith.constant 4 : index
    %c0_203 = arith.constant 0 : index
    %c0_204 = arith.constant 0 : index
    %246 = vector.load %arg5[%c2_201, %c4_202, %c0_203, %c0_204] : memref<4x9x16x16xbf16, #tpu.memory_space<vmem>>, vector<1x1x16x16xbf16>
    %247 = vector.shape_cast %246 : vector<1x1x16x16xbf16> to vector<16x16xbf16>
    %cst_205 = arith.constant dense<0.000000e+00> : vector<64x16xf32>
    %248 = tpu.matmul %245, %247, %cst_205 {dimension_numbers = #tpu.dot_dimension_numbers<[1], [0], [0], [1], [0, 0, 1, 1], [], []>} : vector<64x16xbf16>, vector<16x16xbf16>, vector<64x16xf32> -> vector<64x16xf32>
    %249 = arith.addf %243, %248 : vector<64x16xf32>
    %c17_206 = arith.constant 17 : index
    %c0_207 = arith.constant 0 : index
    %250 = vector.load %arg12[%c17_206, %c0_207] : memref<96x16xf32, #tpu.memory_space<vmem>>, vector<64x16xf32>
    %251 = vector.broadcast %11 : vector<64x1xf32> to vector<64x16xf32>
    %252 = arith.mulf %250, %251 : vector<64x16xf32>
    %253 = arith.truncf %252 : vector<64x16xf32> to vector<64x16xbf16>
    %c2_208 = arith.constant 2 : index
    %c5_209 = arith.constant 5 : index
    %c0_210 = arith.constant 0 : index
    %c0_211 = arith.constant 0 : index
    %254 = vector.load %arg5[%c2_208, %c5_209, %c0_210, %c0_211] : memref<4x9x16x16xbf16, #tpu.memory_space<vmem>>, vector<1x1x16x16xbf16>
    %255 = vector.shape_cast %254 : vector<1x1x16x16xbf16> to vector<16x16xbf16>
    %cst_212 = arith.constant dense<0.000000e+00> : vector<64x16xf32>
    %256 = tpu.matmul %253, %255, %cst_212 {dimension_numbers = #tpu.dot_dimension_numbers<[1], [0], [0], [1], [0, 0, 1, 1], [], []>} : vector<64x16xbf16>, vector<16x16xbf16>, vector<64x16xf32> -> vector<64x16xf32>
    %257 = arith.addf %249, %256 : vector<64x16xf32>
    %c23_213 = arith.constant 23 : index
    %c0_214 = arith.constant 0 : index
    %258 = vector.load %arg12[%c23_213, %c0_214] : memref<96x16xf32, #tpu.memory_space<vmem>>, vector<64x16xf32>
    %259 = vector.broadcast %7 : vector<64x1xf32> to vector<64x16xf32>
    %260 = arith.mulf %258, %259 : vector<64x16xf32>
    %261 = arith.truncf %260 : vector<64x16xf32> to vector<64x16xbf16>
    %c2_215 = arith.constant 2 : index
    %c6_216 = arith.constant 6 : index
    %c0_217 = arith.constant 0 : index
    %c0_218 = arith.constant 0 : index
    %262 = vector.load %arg5[%c2_215, %c6_216, %c0_217, %c0_218] : memref<4x9x16x16xbf16, #tpu.memory_space<vmem>>, vector<1x1x16x16xbf16>
    %263 = vector.shape_cast %262 : vector<1x1x16x16xbf16> to vector<16x16xbf16>
    %cst_219 = arith.constant dense<0.000000e+00> : vector<64x16xf32>
    %264 = tpu.matmul %261, %263, %cst_219 {dimension_numbers = #tpu.dot_dimension_numbers<[1], [0], [0], [1], [0, 0, 1, 1], [], []>} : vector<64x16xbf16>, vector<16x16xbf16>, vector<64x16xf32> -> vector<64x16xf32>
    %265 = arith.addf %257, %264 : vector<64x16xf32>
    %c24_220 = arith.constant 24 : index
    %c0_221 = arith.constant 0 : index
    %266 = vector.load %arg12[%c24_220, %c0_221] : memref<96x16xf32, #tpu.memory_space<vmem>>, vector<64x16xf32>
    %267 = arith.truncf %266 : vector<64x16xf32> to vector<64x16xbf16>
    %c2_222 = arith.constant 2 : index
    %c7_223 = arith.constant 7 : index
    %c0_224 = arith.constant 0 : index
    %c0_225 = arith.constant 0 : index
    %268 = vector.load %arg5[%c2_222, %c7_223, %c0_224, %c0_225] : memref<4x9x16x16xbf16, #tpu.memory_space<vmem>>, vector<1x1x16x16xbf16>
    %269 = vector.shape_cast %268 : vector<1x1x16x16xbf16> to vector<16x16xbf16>
    %cst_226 = arith.constant dense<0.000000e+00> : vector<64x16xf32>
    %270 = tpu.matmul %267, %269, %cst_226 {dimension_numbers = #tpu.dot_dimension_numbers<[1], [0], [0], [1], [0, 0, 1, 1], [], []>} : vector<64x16xbf16>, vector<16x16xbf16>, vector<64x16xf32> -> vector<64x16xf32>
    %271 = arith.addf %265, %270 : vector<64x16xf32>
    %c25_227 = arith.constant 25 : index
    %c0_228 = arith.constant 0 : index
    %272 = vector.load %arg12[%c25_227, %c0_228] : memref<96x16xf32, #tpu.memory_space<vmem>>, vector<64x16xf32>
    %273 = vector.broadcast %11 : vector<64x1xf32> to vector<64x16xf32>
    %274 = arith.mulf %272, %273 : vector<64x16xf32>
    %275 = arith.truncf %274 : vector<64x16xf32> to vector<64x16xbf16>
    %c2_229 = arith.constant 2 : index
    %c8_230 = arith.constant 8 : index
    %c0_231 = arith.constant 0 : index
    %c0_232 = arith.constant 0 : index
    %276 = vector.load %arg5[%c2_229, %c8_230, %c0_231, %c0_232] : memref<4x9x16x16xbf16, #tpu.memory_space<vmem>>, vector<1x1x16x16xbf16>
    %277 = vector.shape_cast %276 : vector<1x1x16x16xbf16> to vector<16x16xbf16>
    %cst_233 = arith.constant dense<0.000000e+00> : vector<64x16xf32>
    %278 = tpu.matmul %275, %277, %cst_233 {dimension_numbers = #tpu.dot_dimension_numbers<[1], [0], [0], [1], [0, 0, 1, 1], [], []>} : vector<64x16xbf16>, vector<16x16xbf16>, vector<64x16xf32> -> vector<64x16xf32>
    %279 = arith.addf %271, %278 : vector<64x16xf32>
    %cst_234 = arith.constant 0.000000e+00 : f32
    %280 = vector.broadcast %cst_234 : f32 to vector<64x16xf32>
    %281 = arith.maximumf %279, %280 : vector<64x16xf32>
    %282 = arith.truncf %281 : vector<64x16xf32> to vector<64x16xbf16>
    %c2_235 = arith.constant 2 : index
    %c0_236 = arith.constant 0 : index
    %c0_237 = arith.constant 0 : index
    %283 = vector.load %arg7[%c2_235, %c0_236, %c0_237] : memref<4x16x16xbf16, #tpu.memory_space<vmem>>, vector<1x16x16xbf16>
    %284 = vector.shape_cast %283 : vector<1x16x16xbf16> to vector<16x16xbf16>
    %cst_238 = arith.constant dense<0.000000e+00> : vector<64x16xf32>
    %285 = tpu.matmul %282, %284, %cst_238 {dimension_numbers = #tpu.dot_dimension_numbers<[1], [0], [0], [1], [0, 0, 1, 1], [], []>} : vector<64x16xbf16>, vector<16x16xbf16>, vector<64x16xf32> -> vector<64x16xf32>
    %c2_239 = arith.constant 2 : index
    %c0_240 = arith.constant 0 : index
    %c0_241 = arith.constant 0 : index
    %286 = vector.load %arg8[%c2_239, %c0_240, %c0_241] : memref<4x1x16xf32, #tpu.memory_space<vmem>>, vector<1x1x16xf32>
    %287 = vector.shape_cast %286 : vector<1x1x16xf32> to vector<1x16xf32>
    %288 = vector.broadcast %287 : vector<1x16xf32> to vector<64x16xf32>
    %289 = arith.addf %285, %288 : vector<64x16xf32>
    %290 = arith.addf %289, %199 : vector<64x16xf32>
    %cst_242 = arith.constant 0.000000e+00 : f32
    %291 = vector.broadcast %cst_242 : f32 to vector<64x16xf32>
    %292 = arith.maximumf %290, %291 : vector<64x16xf32>
    %293 = arith.truncf %292 : vector<64x16xf32> to vector<64x16xbf16>
    %c3_243 = arith.constant 3 : index
    %c0_244 = arith.constant 0 : index
    %c0_245 = arith.constant 0 : index
    %294 = vector.load %arg3[%c3_243, %c0_244, %c0_245] : memref<4x16x16xbf16, #tpu.memory_space<vmem>>, vector<1x16x16xbf16>
    %295 = vector.shape_cast %294 : vector<1x16x16xbf16> to vector<16x16xbf16>
    %cst_246 = arith.constant dense<0.000000e+00> : vector<64x16xf32>
    %296 = tpu.matmul %293, %295, %cst_246 {dimension_numbers = #tpu.dot_dimension_numbers<[1], [0], [0], [1], [0, 0, 1, 1], [], []>} : vector<64x16xbf16>, vector<16x16xbf16>, vector<64x16xf32> -> vector<64x16xf32>
    %c3_247 = arith.constant 3 : index
    %c0_248 = arith.constant 0 : index
    %c0_249 = arith.constant 0 : index
    %297 = vector.load %arg4[%c3_247, %c0_248, %c0_249] : memref<4x1x16xf32, #tpu.memory_space<vmem>>, vector<1x1x16xf32>
    %298 = vector.shape_cast %297 : vector<1x1x16xf32> to vector<1x16xf32>
    %299 = vector.broadcast %298 : vector<1x16xf32> to vector<64x16xf32>
    %300 = arith.addf %296, %299 : vector<64x16xf32>
    %cst_250 = arith.constant 0.000000e+00 : f32
    %301 = vector.broadcast %cst_250 : f32 to vector<64x16xf32>
    %302 = arith.maximumf %300, %301 : vector<64x16xf32>
    %c16_251 = arith.constant 16 : index
    %c0_252 = arith.constant 0 : index
    %303 = vector.load %arg12[%c16_251, %c0_252] : memref<96x16xf32, #tpu.memory_space<vmem>>, vector<64x16xf32>
    tpu.vector_store %arg12[%c16_251, %c0_252], %302 {strides = array<i32>} : memref<96x16xf32, #tpu.memory_space<vmem>>, vector<64x16xf32>,
    %c3_253 = arith.constant 3 : index
    %c0_254 = arith.constant 0 : index
    %c0_255 = arith.constant 0 : index
    %304 = vector.load %arg6[%c3_253, %c0_254, %c0_255] : memref<4x1x16xf32, #tpu.memory_space<vmem>>, vector<1x1x16xf32>
    %305 = vector.shape_cast %304 : vector<1x1x16xf32> to vector<1x16xf32>
    %c7_256 = arith.constant 7 : index
    %c0_257 = arith.constant 0 : index
    %306 = vector.load %arg12[%c7_256, %c0_257] : memref<96x16xf32, #tpu.memory_space<vmem>>, vector<64x16xf32>
    %307 = vector.broadcast %7 : vector<64x1xf32> to vector<64x16xf32>
    %308 = arith.mulf %306, %307 : vector<64x16xf32>
    %309 = arith.truncf %308 : vector<64x16xf32> to vector<64x16xbf16>
    %c3_258 = arith.constant 3 : index
    %c0_259 = arith.constant 0 : index
    %c0_260 = arith.constant 0 : index
    %c0_261 = arith.constant 0 : index
    %310 = vector.load %arg5[%c3_258, %c0_259, %c0_260, %c0_261] : memref<4x9x16x16xbf16, #tpu.memory_space<vmem>>, vector<1x1x16x16xbf16>
    %311 = vector.shape_cast %310 : vector<1x1x16x16xbf16> to vector<16x16xbf16>
    %cst_262 = arith.constant dense<0.000000e+00> : vector<64x16xf32>
    %312 = tpu.matmul %309, %311, %cst_262 {dimension_numbers = #tpu.dot_dimension_numbers<[1], [0], [0], [1], [0, 0, 1, 1], [], []>} : vector<64x16xbf16>, vector<16x16xbf16>, vector<64x16xf32> -> vector<64x16xf32>
    %313 = vector.broadcast %305 : vector<1x16xf32> to vector<64x16xf32>
    %314 = arith.addf %313, %312 : vector<64x16xf32>
    %c8_263 = arith.constant 8 : index
    %c0_264 = arith.constant 0 : index
    %315 = vector.load %arg12[%c8_263, %c0_264] : memref<96x16xf32, #tpu.memory_space<vmem>>, vector<64x16xf32>
    %316 = arith.truncf %315 : vector<64x16xf32> to vector<64x16xbf16>
    %c3_265 = arith.constant 3 : index
    %c1_266 = arith.constant 1 : index
    %c0_267 = arith.constant 0 : index
    %c0_268 = arith.constant 0 : index
    %317 = vector.load %arg5[%c3_265, %c1_266, %c0_267, %c0_268] : memref<4x9x16x16xbf16, #tpu.memory_space<vmem>>, vector<1x1x16x16xbf16>
    %318 = vector.shape_cast %317 : vector<1x1x16x16xbf16> to vector<16x16xbf16>
    %cst_269 = arith.constant dense<0.000000e+00> : vector<64x16xf32>
    %319 = tpu.matmul %316, %318, %cst_269 {dimension_numbers = #tpu.dot_dimension_numbers<[1], [0], [0], [1], [0, 0, 1, 1], [], []>} : vector<64x16xbf16>, vector<16x16xbf16>, vector<64x16xf32> -> vector<64x16xf32>
    %320 = arith.addf %314, %319 : vector<64x16xf32>
    %c9_270 = arith.constant 9 : index
    %c0_271 = arith.constant 0 : index
    %321 = vector.load %arg12[%c9_270, %c0_271] : memref<96x16xf32, #tpu.memory_space<vmem>>, vector<64x16xf32>
    %322 = vector.broadcast %11 : vector<64x1xf32> to vector<64x16xf32>
    %323 = arith.mulf %321, %322 : vector<64x16xf32>
    %324 = arith.truncf %323 : vector<64x16xf32> to vector<64x16xbf16>
    %c3_272 = arith.constant 3 : index
    %c2_273 = arith.constant 2 : index
    %c0_274 = arith.constant 0 : index
    %c0_275 = arith.constant 0 : index
    %325 = vector.load %arg5[%c3_272, %c2_273, %c0_274, %c0_275] : memref<4x9x16x16xbf16, #tpu.memory_space<vmem>>, vector<1x1x16x16xbf16>
    %326 = vector.shape_cast %325 : vector<1x1x16x16xbf16> to vector<16x16xbf16>
    %cst_276 = arith.constant dense<0.000000e+00> : vector<64x16xf32>
    %327 = tpu.matmul %324, %326, %cst_276 {dimension_numbers = #tpu.dot_dimension_numbers<[1], [0], [0], [1], [0, 0, 1, 1], [], []>} : vector<64x16xbf16>, vector<16x16xbf16>, vector<64x16xf32> -> vector<64x16xf32>
    %328 = arith.addf %320, %327 : vector<64x16xf32>
    %c15_277 = arith.constant 15 : index
    %c0_278 = arith.constant 0 : index
    %329 = vector.load %arg12[%c15_277, %c0_278] : memref<96x16xf32, #tpu.memory_space<vmem>>, vector<64x16xf32>
    %330 = vector.broadcast %7 : vector<64x1xf32> to vector<64x16xf32>
    %331 = arith.mulf %329, %330 : vector<64x16xf32>
    %332 = arith.truncf %331 : vector<64x16xf32> to vector<64x16xbf16>
    %c3_279 = arith.constant 3 : index
    %c3_280 = arith.constant 3 : index
    %c0_281 = arith.constant 0 : index
    %c0_282 = arith.constant 0 : index
    %333 = vector.load %arg5[%c3_279, %c3_280, %c0_281, %c0_282] : memref<4x9x16x16xbf16, #tpu.memory_space<vmem>>, vector<1x1x16x16xbf16>
    %334 = vector.shape_cast %333 : vector<1x1x16x16xbf16> to vector<16x16xbf16>
    %cst_283 = arith.constant dense<0.000000e+00> : vector<64x16xf32>
    %335 = tpu.matmul %332, %334, %cst_283 {dimension_numbers = #tpu.dot_dimension_numbers<[1], [0], [0], [1], [0, 0, 1, 1], [], []>} : vector<64x16xbf16>, vector<16x16xbf16>, vector<64x16xf32> -> vector<64x16xf32>
    %336 = arith.addf %328, %335 : vector<64x16xf32>
    %c16_284 = arith.constant 16 : index
    %c0_285 = arith.constant 0 : index
    %337 = vector.load %arg12[%c16_284, %c0_285] : memref<96x16xf32, #tpu.memory_space<vmem>>, vector<64x16xf32>
    %338 = arith.truncf %337 : vector<64x16xf32> to vector<64x16xbf16>
    %c3_286 = arith.constant 3 : index
    %c4_287 = arith.constant 4 : index
    %c0_288 = arith.constant 0 : index
    %c0_289 = arith.constant 0 : index
    %339 = vector.load %arg5[%c3_286, %c4_287, %c0_288, %c0_289] : memref<4x9x16x16xbf16, #tpu.memory_space<vmem>>, vector<1x1x16x16xbf16>
    %340 = vector.shape_cast %339 : vector<1x1x16x16xbf16> to vector<16x16xbf16>
    %cst_290 = arith.constant dense<0.000000e+00> : vector<64x16xf32>
    %341 = tpu.matmul %338, %340, %cst_290 {dimension_numbers = #tpu.dot_dimension_numbers<[1], [0], [0], [1], [0, 0, 1, 1], [], []>} : vector<64x16xbf16>, vector<16x16xbf16>, vector<64x16xf32> -> vector<64x16xf32>
    %342 = arith.addf %336, %341 : vector<64x16xf32>
    %c17_291 = arith.constant 17 : index
    %c0_292 = arith.constant 0 : index
    %343 = vector.load %arg12[%c17_291, %c0_292] : memref<96x16xf32, #tpu.memory_space<vmem>>, vector<64x16xf32>
    %344 = vector.broadcast %11 : vector<64x1xf32> to vector<64x16xf32>
    %345 = arith.mulf %343, %344 : vector<64x16xf32>
    %346 = arith.truncf %345 : vector<64x16xf32> to vector<64x16xbf16>
    %c3_293 = arith.constant 3 : index
    %c5_294 = arith.constant 5 : index
    %c0_295 = arith.constant 0 : index
    %c0_296 = arith.constant 0 : index
    %347 = vector.load %arg5[%c3_293, %c5_294, %c0_295, %c0_296] : memref<4x9x16x16xbf16, #tpu.memory_space<vmem>>, vector<1x1x16x16xbf16>
    %348 = vector.shape_cast %347 : vector<1x1x16x16xbf16> to vector<16x16xbf16>
    %cst_297 = arith.constant dense<0.000000e+00> : vector<64x16xf32>
    %349 = tpu.matmul %346, %348, %cst_297 {dimension_numbers = #tpu.dot_dimension_numbers<[1], [0], [0], [1], [0, 0, 1, 1], [], []>} : vector<64x16xbf16>, vector<16x16xbf16>, vector<64x16xf32> -> vector<64x16xf32>
    %350 = arith.addf %342, %349 : vector<64x16xf32>
    %c23_298 = arith.constant 23 : index
    %c0_299 = arith.constant 0 : index
    %351 = vector.load %arg12[%c23_298, %c0_299] : memref<96x16xf32, #tpu.memory_space<vmem>>, vector<64x16xf32>
    %352 = vector.broadcast %7 : vector<64x1xf32> to vector<64x16xf32>
    %353 = arith.mulf %351, %352 : vector<64x16xf32>
    %354 = arith.truncf %353 : vector<64x16xf32> to vector<64x16xbf16>
    %c3_300 = arith.constant 3 : index
    %c6_301 = arith.constant 6 : index
    %c0_302 = arith.constant 0 : index
    %c0_303 = arith.constant 0 : index
    %355 = vector.load %arg5[%c3_300, %c6_301, %c0_302, %c0_303] : memref<4x9x16x16xbf16, #tpu.memory_space<vmem>>, vector<1x1x16x16xbf16>
    %356 = vector.shape_cast %355 : vector<1x1x16x16xbf16> to vector<16x16xbf16>
    %cst_304 = arith.constant dense<0.000000e+00> : vector<64x16xf32>
    %357 = tpu.matmul %354, %356, %cst_304 {dimension_numbers = #tpu.dot_dimension_numbers<[1], [0], [0], [1], [0, 0, 1, 1], [], []>} : vector<64x16xbf16>, vector<16x16xbf16>, vector<64x16xf32> -> vector<64x16xf32>
    %358 = arith.addf %350, %357 : vector<64x16xf32>
    %c24_305 = arith.constant 24 : index
    %c0_306 = arith.constant 0 : index
    %359 = vector.load %arg12[%c24_305, %c0_306] : memref<96x16xf32, #tpu.memory_space<vmem>>, vector<64x16xf32>
    %360 = arith.truncf %359 : vector<64x16xf32> to vector<64x16xbf16>
    %c3_307 = arith.constant 3 : index
    %c7_308 = arith.constant 7 : index
    %c0_309 = arith.constant 0 : index
    %c0_310 = arith.constant 0 : index
    %361 = vector.load %arg5[%c3_307, %c7_308, %c0_309, %c0_310] : memref<4x9x16x16xbf16, #tpu.memory_space<vmem>>, vector<1x1x16x16xbf16>
    %362 = vector.shape_cast %361 : vector<1x1x16x16xbf16> to vector<16x16xbf16>
    %cst_311 = arith.constant dense<0.000000e+00> : vector<64x16xf32>
    %363 = tpu.matmul %360, %362, %cst_311 {dimension_numbers = #tpu.dot_dimension_numbers<[1], [0], [0], [1], [0, 0, 1, 1], [], []>} : vector<64x16xbf16>, vector<16x16xbf16>, vector<64x16xf32> -> vector<64x16xf32>
    %364 = arith.addf %358, %363 : vector<64x16xf32>
    %c25_312 = arith.constant 25 : index
    %c0_313 = arith.constant 0 : index
    %365 = vector.load %arg12[%c25_312, %c0_313] : memref<96x16xf32, #tpu.memory_space<vmem>>, vector<64x16xf32>
    %366 = vector.broadcast %11 : vector<64x1xf32> to vector<64x16xf32>
    %367 = arith.mulf %365, %366 : vector<64x16xf32>
    %368 = arith.truncf %367 : vector<64x16xf32> to vector<64x16xbf16>
    %c3_314 = arith.constant 3 : index
    %c8_315 = arith.constant 8 : index
    %c0_316 = arith.constant 0 : index
    %c0_317 = arith.constant 0 : index
    %369 = vector.load %arg5[%c3_314, %c8_315, %c0_316, %c0_317] : memref<4x9x16x16xbf16, #tpu.memory_space<vmem>>, vector<1x1x16x16xbf16>
    %370 = vector.shape_cast %369 : vector<1x1x16x16xbf16> to vector<16x16xbf16>
    %cst_318 = arith.constant dense<0.000000e+00> : vector<64x16xf32>
    %371 = tpu.matmul %368, %370, %cst_318 {dimension_numbers = #tpu.dot_dimension_numbers<[1], [0], [0], [1], [0, 0, 1, 1], [], []>} : vector<64x16xbf16>, vector<16x16xbf16>, vector<64x16xf32> -> vector<64x16xf32>
    %372 = arith.addf %364, %371 : vector<64x16xf32>
    %cst_319 = arith.constant 0.000000e+00 : f32
    %373 = vector.broadcast %cst_319 : f32 to vector<64x16xf32>
    %374 = arith.maximumf %372, %373 : vector<64x16xf32>
    %375 = arith.truncf %374 : vector<64x16xf32> to vector<64x16xbf16>
    %c3_320 = arith.constant 3 : index
    %c0_321 = arith.constant 0 : index
    %c0_322 = arith.constant 0 : index
    %376 = vector.load %arg7[%c3_320, %c0_321, %c0_322] : memref<4x16x16xbf16, #tpu.memory_space<vmem>>, vector<1x16x16xbf16>
    %377 = vector.shape_cast %376 : vector<1x16x16xbf16> to vector<16x16xbf16>
    %cst_323 = arith.constant dense<0.000000e+00> : vector<64x16xf32>
    %378 = tpu.matmul %375, %377, %cst_323 {dimension_numbers = #tpu.dot_dimension_numbers<[1], [0], [0], [1], [0, 0, 1, 1], [], []>} : vector<64x16xbf16>, vector<16x16xbf16>, vector<64x16xf32> -> vector<64x16xf32>
    %c3_324 = arith.constant 3 : index
    %c0_325 = arith.constant 0 : index
    %c0_326 = arith.constant 0 : index
    %379 = vector.load %arg8[%c3_324, %c0_325, %c0_326] : memref<4x1x16xf32, #tpu.memory_space<vmem>>, vector<1x1x16xf32>
    %380 = vector.shape_cast %379 : vector<1x1x16xf32> to vector<1x16xf32>
    %381 = vector.broadcast %380 : vector<1x16xf32> to vector<64x16xf32>
    %382 = arith.addf %378, %381 : vector<64x16xf32>
    %383 = arith.addf %382, %292 : vector<64x16xf32>
    %cst_327 = arith.constant 0.000000e+00 : f32
    %384 = vector.broadcast %cst_327 : f32 to vector<64x16xf32>
    %385 = arith.maximumf %383, %384 : vector<64x16xf32>
    %386 = arith.truncf %385 : vector<64x16xf32> to vector<64x16xbf16>
    %c0_328 = arith.constant 0 : index
    %c0_329 = arith.constant 0 : index
    %387 = vector.load %arg9[%c0_328, %c0_329] : memref<16x32xbf16, #tpu.memory_space<vmem>>, vector<16x32xbf16>
    %cst_330 = arith.constant dense<0.000000e+00> : vector<64x32xf32>
    %388 = tpu.matmul %386, %387, %cst_330 {dimension_numbers = #tpu.dot_dimension_numbers<[1], [0], [0], [1], [0, 0, 1, 1], [], []>} : vector<64x16xbf16>, vector<16x32xbf16>, vector<64x32xf32> -> vector<64x32xf32>
    %c0_331 = arith.constant 0 : index
    %c0_332 = arith.constant 0 : index
    %389 = vector.load %arg10[%c0_331, %c0_332] : memref<1x32xf32, #tpu.memory_space<vmem>>, vector<1x32xf32>
    %390 = vector.broadcast %389 : vector<1x32xf32> to vector<64x32xf32>
    %391 = arith.addf %388, %390 : vector<64x32xf32>
    %c0_333 = arith.constant 0 : index
    %c0_334 = arith.constant 0 : index
    %392 = vector.load %arg2[%c0_333, %c0_334] : memref<64x32xf32, #tpu.memory_space<vmem>>, vector<64x32xf32>
    %393 = arith.addf %391, %392 : vector<64x32xf32>
    %c0_335 = arith.constant 0 : index
    %c0_336 = arith.constant 0 : index
    %394 = vector.load %arg11[%c0_335, %c0_336] : memref<64x32xf32, #tpu.memory_space<vmem>>, vector<64x32xf32>
    tpu.vector_store %arg11[%c0_335, %c0_336], %393 {strides = array<i32>} : memref<64x32xf32, #tpu.memory_space<vmem>>, vector<64x32xf32>,
    return
  }
  func.func @transform_0(%arg0: i32) -> (i32, i32) {
    %c0_i32 = arith.constant 0 : i32
    %c0_i32_0 = arith.constant 0 : i32
    return %arg0, %c0_i32 : i32, i32
  }
  func.func @transform_1(%arg0: i32) -> (i32, i32) {
    %c0_i32 = arith.constant 0 : i32
    %c0_i32_0 = arith.constant 0 : i32
    %c0_i32_1 = arith.constant 0 : i32
    return %c0_i32, %c0_i32_0 : i32, i32
  }
  func.func @transform_2(%arg0: i32) -> (i32, i32, i32) {
    %c0_i32 = arith.constant 0 : i32
    %c0_i32_0 = arith.constant 0 : i32
    %c0_i32_1 = arith.constant 0 : i32
    %c0_i32_2 = arith.constant 0 : i32
    return %c0_i32, %c0_i32_0, %c0_i32_1 : i32, i32, i32
  }
  func.func @transform_3(%arg0: i32) -> (i32, i32, i32) {
    %c0_i32 = arith.constant 0 : i32
    %c0_i32_0 = arith.constant 0 : i32
    %c0_i32_1 = arith.constant 0 : i32
    %c0_i32_2 = arith.constant 0 : i32
    return %c0_i32, %c0_i32_0, %c0_i32_1 : i32, i32, i32
  }
  func.func @transform_4(%arg0: i32) -> (i32, i32, i32, i32) {
    %c0_i32 = arith.constant 0 : i32
    %c0_i32_0 = arith.constant 0 : i32
    %c0_i32_1 = arith.constant 0 : i32
    %c0_i32_2 = arith.constant 0 : i32
    %c0_i32_3 = arith.constant 0 : i32
    return %c0_i32, %c0_i32_0, %c0_i32_1, %c0_i32_2 : i32, i32, i32, i32
  }
  func.func @transform_5(%arg0: i32) -> (i32, i32, i32) {
    %c0_i32 = arith.constant 0 : i32
    %c0_i32_0 = arith.constant 0 : i32
    %c0_i32_1 = arith.constant 0 : i32
    %c0_i32_2 = arith.constant 0 : i32
    return %c0_i32, %c0_i32_0, %c0_i32_1 : i32, i32, i32
  }
  func.func @transform_6(%arg0: i32) -> (i32, i32, i32) {
    %c0_i32 = arith.constant 0 : i32
    %c0_i32_0 = arith.constant 0 : i32
    %c0_i32_1 = arith.constant 0 : i32
    %c0_i32_2 = arith.constant 0 : i32
    return %c0_i32, %c0_i32_0, %c0_i32_1 : i32, i32, i32
  }
  func.func @transform_7(%arg0: i32) -> (i32, i32, i32) {
    %c0_i32 = arith.constant 0 : i32
    %c0_i32_0 = arith.constant 0 : i32
    %c0_i32_1 = arith.constant 0 : i32
    %c0_i32_2 = arith.constant 0 : i32
    return %c0_i32, %c0_i32_0, %c0_i32_1 : i32, i32, i32
  }
  func.func @transform_8(%arg0: i32) -> (i32, i32) {
    %c0_i32 = arith.constant 0 : i32
    %c0_i32_0 = arith.constant 0 : i32
    %c0_i32_1 = arith.constant 0 : i32
    return %c0_i32, %c0_i32_0 : i32, i32
  }
  func.func @transform_9(%arg0: i32) -> (i32, i32) {
    %c0_i32 = arith.constant 0 : i32
    %c0_i32_0 = arith.constant 0 : i32
    %c0_i32_1 = arith.constant 0 : i32
    return %c0_i32, %c0_i32_0 : i32, i32
  }
  func.func @transform_10(%arg0: i32) -> (i32, i32) {
    %c0_i32 = arith.constant 0 : i32
    %c0_i32_0 = arith.constant 0 : i32
    return %arg0, %c0_i32 : i32, i32
  }
}

module attributes {stable_mosaic.version = 11 : i64} {
  func.func @_decoder_kernel(%arg0: i32, %arg1: i32, %arg2: memref<1x1x6xf32, #tpu.memory_space<vmem>>, %arg3: memref<16x32xf32, #tpu.memory_space<vmem>>, %arg4: memref<6x32xbf16, #tpu.memory_space<vmem>>, %arg5: memref<1x32xf32, #tpu.memory_space<vmem>>, %arg6: memref<32x32xbf16, #tpu.memory_space<vmem>>, %arg7: memref<1x32xf32, #tpu.memory_space<vmem>>, %arg8: memref<32x32xbf16, #tpu.memory_space<vmem>>, %arg9: memref<1x32xf32, #tpu.memory_space<vmem>>, %arg10: memref<64x32xf32, #tpu.memory_space<vmem>>, %arg11: memref<1x32x96xbf16, #tpu.memory_space<vmem>>, %arg12: memref<1x1x96xf32, #tpu.memory_space<vmem>>, %arg13: memref<1x32x32xbf16, #tpu.memory_space<vmem>>, %arg14: memref<1x1x32xf32, #tpu.memory_space<vmem>>, %arg15: memref<1x1x32xf32, #tpu.memory_space<vmem>>, %arg16: memref<1x1x32xf32, #tpu.memory_space<vmem>>, %arg17: memref<1x32x32xbf16, #tpu.memory_space<vmem>>, %arg18: memref<1x1x32xf32, #tpu.memory_space<vmem>>, %arg19: memref<1x32x64xbf16, #tpu.memory_space<vmem>>, %arg20: memref<1x1x64xf32, #tpu.memory_space<vmem>>, %arg21: memref<1x32x32xbf16, #tpu.memory_space<vmem>>, %arg22: memref<1x1x32xf32, #tpu.memory_space<vmem>>, %arg23: memref<1x1x32xf32, #tpu.memory_space<vmem>>, %arg24: memref<1x1x32xf32, #tpu.memory_space<vmem>>, %arg25: memref<1x32x128xbf16, #tpu.memory_space<vmem>>, %arg26: memref<1x1x128xf32, #tpu.memory_space<vmem>>, %arg27: memref<1x128x32xbf16, #tpu.memory_space<vmem>>, %arg28: memref<1x1x32xf32, #tpu.memory_space<vmem>>, %arg29: memref<1x1x32xf32, #tpu.memory_space<vmem>>, %arg30: memref<1x1x32xf32, #tpu.memory_space<vmem>>, %arg31: memref<16x32x128xbf16, #tpu.memory_space<vmem>>, %arg32: memref<1x128xf32, #tpu.memory_space<vmem>>, %arg33: memref<128x128xbf16, #tpu.memory_space<vmem>>, %arg34: memref<1x128xf32, #tpu.memory_space<vmem>>, %arg35: memref<128x24xbf16, #tpu.memory_space<vmem>>, %arg36: memref<1x24xf32, #tpu.memory_space<vmem>>, %arg37: memref<1x1x24xf32, #tpu.memory_space<vmem>>, %arg38: memref<16x32xf32, #tpu.memory_space<vmem>>) attributes {dimension_semantics = [#tpu.dimension_semantics<parallel>, #tpu.dimension_semantics<arbitrary>], iteration_bounds = array<i64: 2, 3>, scalar_prefetch = 0 : i64, scratch_operands = 1 : i64, tpu.core_type = #tpu.core_type<tc>, window_params = [{transform_indices = @transform_0, window_bounds = array<i64: 1, 1, 6>}, {pipeline_mode = #tpu.pipeline_mode<synchronous>, transform_indices = @transform_1, window_bounds = array<i64: 16, 32>}, {pipeline_mode = #tpu.pipeline_mode<synchronous>, transform_indices = @transform_2, window_bounds = array<i64: 6, 32>}, {pipeline_mode = #tpu.pipeline_mode<synchronous>, transform_indices = @transform_3, window_bounds = array<i64: 1, 32>}, {pipeline_mode = #tpu.pipeline_mode<synchronous>, transform_indices = @transform_4, window_bounds = array<i64: 32, 32>}, {pipeline_mode = #tpu.pipeline_mode<synchronous>, transform_indices = @transform_5, window_bounds = array<i64: 1, 32>}, {pipeline_mode = #tpu.pipeline_mode<synchronous>, transform_indices = @transform_6, window_bounds = array<i64: 32, 32>}, {pipeline_mode = #tpu.pipeline_mode<synchronous>, transform_indices = @transform_7, window_bounds = array<i64: 1, 32>}, {transform_indices = @transform_8, window_bounds = array<i64: 64, 32>}, {transform_indices = @transform_9, window_bounds = array<i64: 1, 32, 96>}, {transform_indices = @transform_10, window_bounds = array<i64: 1, 1, 96>}, {transform_indices = @transform_11, window_bounds = array<i64: 1, 32, 32>}, {transform_indices = @transform_12, window_bounds = array<i64: 1, 1, 32>}, {transform_indices = @transform_13, window_bounds = array<i64: 1, 1, 32>}, {transform_indices = @transform_14, window_bounds = array<i64: 1, 1, 32>}, {transform_indices = @transform_15, window_bounds = array<i64: 1, 32, 32>}, {transform_indices = @transform_16, window_bounds = array<i64: 1, 1, 32>}, {transform_indices = @transform_17, window_bounds = array<i64: 1, 32, 64>}, {transform_indices = @transform_18, window_bounds = array<i64: 1, 1, 64>}, {transform_indices = @transform_19, window_bounds = array<i64: 1, 32, 32>}, {transform_indices = @transform_20, window_bounds = array<i64: 1, 1, 32>}, {transform_indices = @transform_21, window_bounds = array<i64: 1, 1, 32>}, {transform_indices = @transform_22, window_bounds = array<i64: 1, 1, 32>}, {transform_indices = @transform_23, window_bounds = array<i64: 1, 32, 128>}, {transform_indices = @transform_24, window_bounds = array<i64: 1, 1, 128>}, {transform_indices = @transform_25, window_bounds = array<i64: 1, 128, 32>}, {transform_indices = @transform_26, window_bounds = array<i64: 1, 1, 32>}, {transform_indices = @transform_27, window_bounds = array<i64: 1, 1, 32>}, {transform_indices = @transform_28, window_bounds = array<i64: 1, 1, 32>}, {pipeline_mode = #tpu.pipeline_mode<synchronous>, transform_indices = @transform_29, window_bounds = array<i64: 16, 32, 128>}, {pipeline_mode = #tpu.pipeline_mode<synchronous>, transform_indices = @transform_30, window_bounds = array<i64: 1, 128>}, {pipeline_mode = #tpu.pipeline_mode<synchronous>, transform_indices = @transform_31, window_bounds = array<i64: 128, 128>}, {pipeline_mode = #tpu.pipeline_mode<synchronous>, transform_indices = @transform_32, window_bounds = array<i64: 1, 128>}, {pipeline_mode = #tpu.pipeline_mode<synchronous>, transform_indices = @transform_33, window_bounds = array<i64: 128, 24>}, {pipeline_mode = #tpu.pipeline_mode<synchronous>, transform_indices = @transform_34, window_bounds = array<i64: 1, 24>}, {transform_indices = @transform_35, window_bounds = array<i64: 1, 1, 24>}]} {
    %c0_i32 = arith.constant 0 : i32
    %0 = arith.cmpi eq, %arg1, %c0_i32 : i32
    %1 = arith.extui %0 : i1 to i32
    %c0_i32_0 = arith.constant 0 : i32
    %2 = arith.cmpi ne, %1, %c0_i32_0 : i32
    scf.if %2 {
      %c0_129 = arith.constant 0 : index
      %c0_130 = arith.constant 0 : index
      %c0_131 = arith.constant 0 : index
      %312 = vector.load %arg2[%c0_129, %c0_130, %c0_131] : memref<1x1x6xf32, #tpu.memory_space<vmem>>, vector<1x1x6xf32>
      %313 = vector.shape_cast %312 : vector<1x1x6xf32> to vector<1x6xf32>
      %314 = arith.truncf %313 : vector<1x6xf32> to vector<1x6xbf16>
      %c0_132 = arith.constant 0 : index
      %c0_133 = arith.constant 0 : index
      %315 = vector.load %arg4[%c0_132, %c0_133] : memref<6x32xbf16, #tpu.memory_space<vmem>>, vector<6x32xbf16>
      %cst_134 = arith.constant dense<0.000000e+00> : vector<1x32xf32>
      %316 = tpu.matmul %314, %315, %cst_134 {dimension_numbers = #tpu.dot_dimension_numbers<[1], [0], [0], [1], [0, 0, 1, 1], [], []>} : vector<1x6xbf16>, vector<6x32xbf16>, vector<1x32xf32> -> vector<1x32xf32>
      %c0_135 = arith.constant 0 : index
      %c0_136 = arith.constant 0 : index
      %317 = vector.load %arg5[%c0_135, %c0_136] : memref<1x32xf32, #tpu.memory_space<vmem>>, vector<1x32xf32>
      %318 = arith.addf %316, %317 : vector<1x32xf32>
      %cst_137 = arith.constant 0.000000e+00 : f32
      %319 = vector.broadcast %cst_137 : f32 to vector<1x32xf32>
      %320 = arith.maximumf %318, %319 : vector<1x32xf32>
      %321 = arith.truncf %320 : vector<1x32xf32> to vector<1x32xbf16>
      %c0_138 = arith.constant 0 : index
      %c0_139 = arith.constant 0 : index
      %322 = vector.load %arg6[%c0_138, %c0_139] : memref<32x32xbf16, #tpu.memory_space<vmem>>, vector<32x32xbf16>
      %cst_140 = arith.constant dense<0.000000e+00> : vector<1x32xf32>
      %323 = tpu.matmul %321, %322, %cst_140 {dimension_numbers = #tpu.dot_dimension_numbers<[1], [0], [0], [1], [0, 0, 1, 1], [], []>} : vector<1x32xbf16>, vector<32x32xbf16>, vector<1x32xf32> -> vector<1x32xf32>
      %c0_141 = arith.constant 0 : index
      %c0_142 = arith.constant 0 : index
      %324 = vector.load %arg7[%c0_141, %c0_142] : memref<1x32xf32, #tpu.memory_space<vmem>>, vector<1x32xf32>
      %325 = arith.addf %323, %324 : vector<1x32xf32>
      %cst_143 = arith.constant 0.000000e+00 : f32
      %326 = vector.broadcast %cst_143 : f32 to vector<1x32xf32>
      %327 = arith.maximumf %325, %326 : vector<1x32xf32>
      %328 = arith.truncf %327 : vector<1x32xf32> to vector<1x32xbf16>
      %c0_144 = arith.constant 0 : index
      %c0_145 = arith.constant 0 : index
      %329 = vector.load %arg8[%c0_144, %c0_145] : memref<32x32xbf16, #tpu.memory_space<vmem>>, vector<32x32xbf16>
      %cst_146 = arith.constant dense<0.000000e+00> : vector<1x32xf32>
      %330 = tpu.matmul %328, %329, %cst_146 {dimension_numbers = #tpu.dot_dimension_numbers<[1], [0], [0], [1], [0, 0, 1, 1], [], []>} : vector<1x32xbf16>, vector<32x32xbf16>, vector<1x32xf32> -> vector<1x32xf32>
      %c0_147 = arith.constant 0 : index
      %c0_148 = arith.constant 0 : index
      %331 = vector.load %arg9[%c0_147, %c0_148] : memref<1x32xf32, #tpu.memory_space<vmem>>, vector<1x32xf32>
      %332 = arith.addf %330, %331 : vector<1x32xf32>
      %c0_149 = arith.constant 0 : index
      %c0_150 = arith.constant 0 : index
      %333 = vector.load %arg3[%c0_149, %c0_150] : memref<16x32xf32, #tpu.memory_space<vmem>>, vector<16x32xf32>
      %334 = vector.broadcast %332 : vector<1x32xf32> to vector<16x32xf32>
      %335 = arith.addf %333, %334 : vector<16x32xf32>
      %c0_151 = arith.constant 0 : index
      %c0_152 = arith.constant 0 : index
      %336 = vector.load %arg38[%c0_151, %c0_152] : memref<16x32xf32, #tpu.memory_space<vmem>>, vector<16x32xf32>
      tpu.vector_store %arg38[%c0_151, %c0_152], %335 {strides = array<i32>} : memref<16x32xf32, #tpu.memory_space<vmem>>, vector<16x32xf32>,
    } else {
    }
    %c0 = arith.constant 0 : index
    %c0_1 = arith.constant 0 : index
    %3 = vector.load %arg38[%c0, %c0_1] : memref<16x32xf32, #tpu.memory_space<vmem>>, vector<16x32xf32>
    %c0_2 = arith.constant 0 : index
    %c0_3 = arith.constant 0 : index
    %4 = vector.load %arg10[%c0_2, %c0_3] : memref<64x32xf32, #tpu.memory_space<vmem>>, vector<64x32xf32>
    %5 = arith.truncf %3 : vector<16x32xf32> to vector<16x32xbf16>
    %c0_4 = arith.constant 0 : index
    %c0_5 = arith.constant 0 : index
    %c0_6 = arith.constant 0 : index
    %6 = vector.load %arg11[%c0_4, %c0_5, %c0_6] : memref<1x32x96xbf16, #tpu.memory_space<vmem>>, vector<1x32x96xbf16>
    %7 = vector.shape_cast %6 : vector<1x32x96xbf16> to vector<32x96xbf16>
    %cst = arith.constant dense<0.000000e+00> : vector<16x96xf32>
    %8 = tpu.matmul %5, %7, %cst {dimension_numbers = #tpu.dot_dimension_numbers<[1], [0], [0], [1], [0, 0, 1, 1], [], []>} : vector<16x32xbf16>, vector<32x96xbf16>, vector<16x96xf32> -> vector<16x96xf32>
    %c0_7 = arith.constant 0 : index
    %c0_8 = arith.constant 0 : index
    %c0_9 = arith.constant 0 : index
    %9 = vector.load %arg12[%c0_7, %c0_8, %c0_9] : memref<1x1x96xf32, #tpu.memory_space<vmem>>, vector<1x1x96xf32>
    %10 = vector.shape_cast %9 : vector<1x1x96xf32> to vector<1x96xf32>
    %11 = vector.broadcast %10 : vector<1x96xf32> to vector<16x96xf32>
    %12 = arith.addf %8, %11 : vector<16x96xf32>
    %13 = vector.extract_strided_slice %12 {offsets = [0, 0], sizes = [16, 8], strides = [1, 1]} : vector<16x96xf32> to vector<16x8xf32>
    %14 = vector.extract_strided_slice %12 {offsets = [0, 32], sizes = [16, 8], strides = [1, 1]} : vector<16x96xf32> to vector<16x8xf32>
    %15 = vector.extract_strided_slice %12 {offsets = [0, 64], sizes = [16, 8], strides = [1, 1]} : vector<16x96xf32> to vector<16x8xf32>
    %16 = arith.truncf %13 : vector<16x8xf32> to vector<16x8xbf16>
    %17 = arith.truncf %14 : vector<16x8xf32> to vector<16x8xbf16>
    %cst_10 = arith.constant dense<0.000000e+00> : vector<16x16xf32>
    %18 = tpu.matmul %16, %17, %cst_10 {dimension_numbers = #tpu.dot_dimension_numbers<[1], [1], [0], [0], [0, 0, 1, 0], [], []>} : vector<16x8xbf16>, vector<16x8xbf16>, vector<16x16xf32> -> vector<16x16xf32>
    %cst_11 = arith.constant 0.353553385 : f32
    %19 = vector.broadcast %cst_11 : f32 to vector<16x16xf32>
    %20 = arith.mulf %18, %19 : vector<16x16xf32>
    %cst_12 = arith.constant dense<0xFF800000> : vector<16xf32>
    %21 = vector.multi_reduction <maximumf>, %20, %cst_12 [1] : vector<16x16xf32> to vector<16xf32>
    %22 = vector.shape_cast %21 : vector<16xf32> to vector<16x1xf32>
    %23 = vector.broadcast %22 : vector<16x1xf32> to vector<16x16xf32>
    %24 = arith.subf %20, %23 : vector<16x16xf32>
    %25 = math.exp %24 : vector<16x16xf32>
    %cst_13 = arith.constant dense<0.000000e+00> : vector<16xf32>
    %26 = vector.multi_reduction <add>, %25, %cst_13 [1] : vector<16x16xf32> to vector<16xf32>
    %27 = vector.shape_cast %26 : vector<16xf32> to vector<16x1xf32>
    %28 = tpu.reciprocal %27 {approx = true} : vector<16x1xf32> -> vector<16x1xf32>
    %29 = vector.broadcast %28 : vector<16x1xf32> to vector<16x16xf32>
    %30 = arith.mulf %25, %29 : vector<16x16xf32>
    %31 = arith.truncf %30 : vector<16x16xf32> to vector<16x16xbf16>
    %32 = arith.truncf %15 : vector<16x8xf32> to vector<16x8xbf16>
    %cst_14 = arith.constant dense<0.000000e+00> : vector<16x8xf32>
    %33 = tpu.matmul %31, %32, %cst_14 {dimension_numbers = #tpu.dot_dimension_numbers<[1], [0], [0], [1], [0, 0, 1, 1], [], []>} : vector<16x16xbf16>, vector<16x8xbf16>, vector<16x8xf32> -> vector<16x8xf32>
    %34 = vector.extract_strided_slice %12 {offsets = [0, 8], sizes = [16, 8], strides = [1, 1]} : vector<16x96xf32> to vector<16x8xf32>
    %35 = vector.extract_strided_slice %12 {offsets = [0, 40], sizes = [16, 8], strides = [1, 1]} : vector<16x96xf32> to vector<16x8xf32>
    %36 = vector.extract_strided_slice %12 {offsets = [0, 72], sizes = [16, 8], strides = [1, 1]} : vector<16x96xf32> to vector<16x8xf32>
    %37 = arith.truncf %34 : vector<16x8xf32> to vector<16x8xbf16>
    %38 = arith.truncf %35 : vector<16x8xf32> to vector<16x8xbf16>
    %cst_15 = arith.constant dense<0.000000e+00> : vector<16x16xf32>
    %39 = tpu.matmul %37, %38, %cst_15 {dimension_numbers = #tpu.dot_dimension_numbers<[1], [1], [0], [0], [0, 0, 1, 0], [], []>} : vector<16x8xbf16>, vector<16x8xbf16>, vector<16x16xf32> -> vector<16x16xf32>
    %cst_16 = arith.constant 0.353553385 : f32
    %40 = vector.broadcast %cst_16 : f32 to vector<16x16xf32>
    %41 = arith.mulf %39, %40 : vector<16x16xf32>
    %cst_17 = arith.constant dense<0xFF800000> : vector<16xf32>
    %42 = vector.multi_reduction <maximumf>, %41, %cst_17 [1] : vector<16x16xf32> to vector<16xf32>
    %43 = vector.shape_cast %42 : vector<16xf32> to vector<16x1xf32>
    %44 = vector.broadcast %43 : vector<16x1xf32> to vector<16x16xf32>
    %45 = arith.subf %41, %44 : vector<16x16xf32>
    %46 = math.exp %45 : vector<16x16xf32>
    %cst_18 = arith.constant dense<0.000000e+00> : vector<16xf32>
    %47 = vector.multi_reduction <add>, %46, %cst_18 [1] : vector<16x16xf32> to vector<16xf32>
    %48 = vector.shape_cast %47 : vector<16xf32> to vector<16x1xf32>
    %49 = tpu.reciprocal %48 {approx = true} : vector<16x1xf32> -> vector<16x1xf32>
    %50 = vector.broadcast %49 : vector<16x1xf32> to vector<16x16xf32>
    %51 = arith.mulf %46, %50 : vector<16x16xf32>
    %52 = arith.truncf %51 : vector<16x16xf32> to vector<16x16xbf16>
    %53 = arith.truncf %36 : vector<16x8xf32> to vector<16x8xbf16>
    %cst_19 = arith.constant dense<0.000000e+00> : vector<16x8xf32>
    %54 = tpu.matmul %52, %53, %cst_19 {dimension_numbers = #tpu.dot_dimension_numbers<[1], [0], [0], [1], [0, 0, 1, 1], [], []>} : vector<16x16xbf16>, vector<16x8xbf16>, vector<16x8xf32> -> vector<16x8xf32>
    %55 = vector.extract_strided_slice %12 {offsets = [0, 16], sizes = [16, 8], strides = [1, 1]} : vector<16x96xf32> to vector<16x8xf32>
    %56 = vector.extract_strided_slice %12 {offsets = [0, 48], sizes = [16, 8], strides = [1, 1]} : vector<16x96xf32> to vector<16x8xf32>
    %57 = vector.extract_strided_slice %12 {offsets = [0, 80], sizes = [16, 8], strides = [1, 1]} : vector<16x96xf32> to vector<16x8xf32>
    %58 = arith.truncf %55 : vector<16x8xf32> to vector<16x8xbf16>
    %59 = arith.truncf %56 : vector<16x8xf32> to vector<16x8xbf16>
    %cst_20 = arith.constant dense<0.000000e+00> : vector<16x16xf32>
    %60 = tpu.matmul %58, %59, %cst_20 {dimension_numbers = #tpu.dot_dimension_numbers<[1], [1], [0], [0], [0, 0, 1, 0], [], []>} : vector<16x8xbf16>, vector<16x8xbf16>, vector<16x16xf32> -> vector<16x16xf32>
    %cst_21 = arith.constant 0.353553385 : f32
    %61 = vector.broadcast %cst_21 : f32 to vector<16x16xf32>
    %62 = arith.mulf %60, %61 : vector<16x16xf32>
    %cst_22 = arith.constant dense<0xFF800000> : vector<16xf32>
    %63 = vector.multi_reduction <maximumf>, %62, %cst_22 [1] : vector<16x16xf32> to vector<16xf32>
    %64 = vector.shape_cast %63 : vector<16xf32> to vector<16x1xf32>
    %65 = vector.broadcast %64 : vector<16x1xf32> to vector<16x16xf32>
    %66 = arith.subf %62, %65 : vector<16x16xf32>
    %67 = math.exp %66 : vector<16x16xf32>
    %cst_23 = arith.constant dense<0.000000e+00> : vector<16xf32>
    %68 = vector.multi_reduction <add>, %67, %cst_23 [1] : vector<16x16xf32> to vector<16xf32>
    %69 = vector.shape_cast %68 : vector<16xf32> to vector<16x1xf32>
    %70 = tpu.reciprocal %69 {approx = true} : vector<16x1xf32> -> vector<16x1xf32>
    %71 = vector.broadcast %70 : vector<16x1xf32> to vector<16x16xf32>
    %72 = arith.mulf %67, %71 : vector<16x16xf32>
    %73 = arith.truncf %72 : vector<16x16xf32> to vector<16x16xbf16>
    %74 = arith.truncf %57 : vector<16x8xf32> to vector<16x8xbf16>
    %cst_24 = arith.constant dense<0.000000e+00> : vector<16x8xf32>
    %75 = tpu.matmul %73, %74, %cst_24 {dimension_numbers = #tpu.dot_dimension_numbers<[1], [0], [0], [1], [0, 0, 1, 1], [], []>} : vector<16x16xbf16>, vector<16x8xbf16>, vector<16x8xf32> -> vector<16x8xf32>
    %76 = vector.extract_strided_slice %12 {offsets = [0, 24], sizes = [16, 8], strides = [1, 1]} : vector<16x96xf32> to vector<16x8xf32>
    %77 = vector.extract_strided_slice %12 {offsets = [0, 56], sizes = [16, 8], strides = [1, 1]} : vector<16x96xf32> to vector<16x8xf32>
    %78 = vector.extract_strided_slice %12 {offsets = [0, 88], sizes = [16, 8], strides = [1, 1]} : vector<16x96xf32> to vector<16x8xf32>
    %79 = arith.truncf %76 : vector<16x8xf32> to vector<16x8xbf16>
    %80 = arith.truncf %77 : vector<16x8xf32> to vector<16x8xbf16>
    %cst_25 = arith.constant dense<0.000000e+00> : vector<16x16xf32>
    %81 = tpu.matmul %79, %80, %cst_25 {dimension_numbers = #tpu.dot_dimension_numbers<[1], [1], [0], [0], [0, 0, 1, 0], [], []>} : vector<16x8xbf16>, vector<16x8xbf16>, vector<16x16xf32> -> vector<16x16xf32>
    %cst_26 = arith.constant 0.353553385 : f32
    %82 = vector.broadcast %cst_26 : f32 to vector<16x16xf32>
    %83 = arith.mulf %81, %82 : vector<16x16xf32>
    %cst_27 = arith.constant dense<0xFF800000> : vector<16xf32>
    %84 = vector.multi_reduction <maximumf>, %83, %cst_27 [1] : vector<16x16xf32> to vector<16xf32>
    %85 = vector.shape_cast %84 : vector<16xf32> to vector<16x1xf32>
    %86 = vector.broadcast %85 : vector<16x1xf32> to vector<16x16xf32>
    %87 = arith.subf %83, %86 : vector<16x16xf32>
    %88 = math.exp %87 : vector<16x16xf32>
    %cst_28 = arith.constant dense<0.000000e+00> : vector<16xf32>
    %89 = vector.multi_reduction <add>, %88, %cst_28 [1] : vector<16x16xf32> to vector<16xf32>
    %90 = vector.shape_cast %89 : vector<16xf32> to vector<16x1xf32>
    %91 = tpu.reciprocal %90 {approx = true} : vector<16x1xf32> -> vector<16x1xf32>
    %92 = vector.broadcast %91 : vector<16x1xf32> to vector<16x16xf32>
    %93 = arith.mulf %88, %92 : vector<16x16xf32>
    %94 = arith.truncf %93 : vector<16x16xf32> to vector<16x16xbf16>
    %95 = arith.truncf %78 : vector<16x8xf32> to vector<16x8xbf16>
    %cst_29 = arith.constant dense<0.000000e+00> : vector<16x8xf32>
    %96 = tpu.matmul %94, %95, %cst_29 {dimension_numbers = #tpu.dot_dimension_numbers<[1], [0], [0], [1], [0, 0, 1, 1], [], []>} : vector<16x16xbf16>, vector<16x8xbf16>, vector<16x8xf32> -> vector<16x8xf32>
    %97 = tpu.concatenate %33, %54, %75, %96 in 1 : vector<16x8xf32>, vector<16x8xf32>, vector<16x8xf32>, vector<16x8xf32> -> vector<16x32xf32>
    %98 = arith.truncf %97 : vector<16x32xf32> to vector<16x32xbf16>
    %c0_30 = arith.constant 0 : index
    %c0_31 = arith.constant 0 : index
    %c0_32 = arith.constant 0 : index
    %99 = vector.load %arg13[%c0_30, %c0_31, %c0_32] : memref<1x32x32xbf16, #tpu.memory_space<vmem>>, vector<1x32x32xbf16>
    %100 = vector.shape_cast %99 : vector<1x32x32xbf16> to vector<32x32xbf16>
    %cst_33 = arith.constant dense<0.000000e+00> : vector<16x32xf32>
    %101 = tpu.matmul %98, %100, %cst_33 {dimension_numbers = #tpu.dot_dimension_numbers<[1], [0], [0], [1], [0, 0, 1, 1], [], []>} : vector<16x32xbf16>, vector<32x32xbf16>, vector<16x32xf32> -> vector<16x32xf32>
    %c0_34 = arith.constant 0 : index
    %c0_35 = arith.constant 0 : index
    %c0_36 = arith.constant 0 : index
    %102 = vector.load %arg14[%c0_34, %c0_35, %c0_36] : memref<1x1x32xf32, #tpu.memory_space<vmem>>, vector<1x1x32xf32>
    %103 = vector.shape_cast %102 : vector<1x1x32xf32> to vector<1x32xf32>
    %104 = vector.broadcast %103 : vector<1x32xf32> to vector<16x32xf32>
    %105 = arith.addf %101, %104 : vector<16x32xf32>
    %106 = arith.addf %105, %3 : vector<16x32xf32>
    %c0_37 = arith.constant 0 : index
    %c0_38 = arith.constant 0 : index
    %c0_39 = arith.constant 0 : index
    %107 = vector.load %arg15[%c0_37, %c0_38, %c0_39] : memref<1x1x32xf32, #tpu.memory_space<vmem>>, vector<1x1x32xf32>
    %108 = vector.shape_cast %107 : vector<1x1x32xf32> to vector<1x32xf32>
    %c0_40 = arith.constant 0 : index
    %c0_41 = arith.constant 0 : index
    %c0_42 = arith.constant 0 : index
    %109 = vector.load %arg16[%c0_40, %c0_41, %c0_42] : memref<1x1x32xf32, #tpu.memory_space<vmem>>, vector<1x1x32xf32>
    %110 = vector.shape_cast %109 : vector<1x1x32xf32> to vector<1x32xf32>
    %cst_43 = arith.constant dense<0.000000e+00> : vector<16xf32>
    %111 = vector.multi_reduction <add>, %106, %cst_43 [1] : vector<16x32xf32> to vector<16xf32>
    %112 = vector.shape_cast %111 : vector<16xf32> to vector<16x1xf32>
    %cst_44 = arith.constant 3.200000e+01 : f32
    %113 = vector.broadcast %cst_44 : f32 to vector<16x1xf32>
    %114 = arith.divf %112, %113 : vector<16x1xf32>
    %115 = vector.broadcast %114 : vector<16x1xf32> to vector<16x32xf32>
    %116 = arith.subf %106, %115 : vector<16x32xf32>
    %117 = arith.mulf %116, %116 : vector<16x32xf32>
    %cst_45 = arith.constant dense<0.000000e+00> : vector<16xf32>
    %118 = vector.multi_reduction <add>, %117, %cst_45 [1] : vector<16x32xf32> to vector<16xf32>
    %119 = vector.shape_cast %118 : vector<16xf32> to vector<16x1xf32>
    %cst_46 = arith.constant 3.200000e+01 : f32
    %120 = vector.broadcast %cst_46 : f32 to vector<16x1xf32>
    %121 = arith.divf %119, %120 : vector<16x1xf32>
    %cst_47 = arith.constant 9.99999974E-6 : f32
    %122 = vector.broadcast %cst_47 : f32 to vector<16x1xf32>
    %123 = arith.addf %121, %122 : vector<16x1xf32>
    %124 = math.rsqrt %123 : vector<16x1xf32>
    %125 = vector.broadcast %124 : vector<16x1xf32> to vector<16x32xf32>
    %126 = arith.mulf %116, %125 : vector<16x32xf32>
    %127 = vector.broadcast %108 : vector<1x32xf32> to vector<16x32xf32>
    %128 = arith.mulf %126, %127 : vector<16x32xf32>
    %129 = vector.broadcast %110 : vector<1x32xf32> to vector<16x32xf32>
    %130 = arith.addf %128, %129 : vector<16x32xf32>
    %131 = arith.truncf %130 : vector<16x32xf32> to vector<16x32xbf16>
    %c0_48 = arith.constant 0 : index
    %c0_49 = arith.constant 0 : index
    %c0_50 = arith.constant 0 : index
    %132 = vector.load %arg17[%c0_48, %c0_49, %c0_50] : memref<1x32x32xbf16, #tpu.memory_space<vmem>>, vector<1x32x32xbf16>
    %133 = vector.shape_cast %132 : vector<1x32x32xbf16> to vector<32x32xbf16>
    %cst_51 = arith.constant dense<0.000000e+00> : vector<16x32xf32>
    %134 = tpu.matmul %131, %133, %cst_51 {dimension_numbers = #tpu.dot_dimension_numbers<[1], [0], [0], [1], [0, 0, 1, 1], [], []>} : vector<16x32xbf16>, vector<32x32xbf16>, vector<16x32xf32> -> vector<16x32xf32>
    %c0_52 = arith.constant 0 : index
    %c0_53 = arith.constant 0 : index
    %c0_54 = arith.constant 0 : index
    %135 = vector.load %arg18[%c0_52, %c0_53, %c0_54] : memref<1x1x32xf32, #tpu.memory_space<vmem>>, vector<1x1x32xf32>
    %136 = vector.shape_cast %135 : vector<1x1x32xf32> to vector<1x32xf32>
    %137 = vector.broadcast %136 : vector<1x32xf32> to vector<16x32xf32>
    %138 = arith.addf %134, %137 : vector<16x32xf32>
    %139 = arith.truncf %4 : vector<64x32xf32> to vector<64x32xbf16>
    %c0_55 = arith.constant 0 : index
    %c0_56 = arith.constant 0 : index
    %c0_57 = arith.constant 0 : index
    %140 = vector.load %arg19[%c0_55, %c0_56, %c0_57] : memref<1x32x64xbf16, #tpu.memory_space<vmem>>, vector<1x32x64xbf16>
    %141 = vector.shape_cast %140 : vector<1x32x64xbf16> to vector<32x64xbf16>
    %cst_58 = arith.constant dense<0.000000e+00> : vector<64x64xf32>
    %142 = tpu.matmul %139, %141, %cst_58 {dimension_numbers = #tpu.dot_dimension_numbers<[1], [0], [0], [1], [0, 0, 1, 1], [], []>} : vector<64x32xbf16>, vector<32x64xbf16>, vector<64x64xf32> -> vector<64x64xf32>
    %c0_59 = arith.constant 0 : index
    %c0_60 = arith.constant 0 : index
    %c0_61 = arith.constant 0 : index
    %143 = vector.load %arg20[%c0_59, %c0_60, %c0_61] : memref<1x1x64xf32, #tpu.memory_space<vmem>>, vector<1x1x64xf32>
    %144 = vector.shape_cast %143 : vector<1x1x64xf32> to vector<1x64xf32>
    %145 = vector.broadcast %144 : vector<1x64xf32> to vector<64x64xf32>
    %146 = arith.addf %142, %145 : vector<64x64xf32>
    %147 = vector.extract_strided_slice %138 {offsets = [0, 0], sizes = [16, 8], strides = [1, 1]} : vector<16x32xf32> to vector<16x8xf32>
    %148 = vector.extract_strided_slice %146 {offsets = [0, 0], sizes = [64, 8], strides = [1, 1]} : vector<64x64xf32> to vector<64x8xf32>
    %149 = vector.extract_strided_slice %146 {offsets = [0, 32], sizes = [64, 8], strides = [1, 1]} : vector<64x64xf32> to vector<64x8xf32>
    %150 = arith.truncf %147 : vector<16x8xf32> to vector<16x8xbf16>
    %151 = arith.truncf %148 : vector<64x8xf32> to vector<64x8xbf16>
    %cst_62 = arith.constant dense<0.000000e+00> : vector<16x64xf32>
    %152 = tpu.matmul %150, %151, %cst_62 {dimension_numbers = #tpu.dot_dimension_numbers<[1], [1], [0], [0], [0, 0, 1, 0], [], []>} : vector<16x8xbf16>, vector<64x8xbf16>, vector<16x64xf32> -> vector<16x64xf32>
    %cst_63 = arith.constant 0.353553385 : f32
    %153 = vector.broadcast %cst_63 : f32 to vector<16x64xf32>
    %154 = arith.mulf %152, %153 : vector<16x64xf32>
    %cst_64 = arith.constant dense<0xFF800000> : vector<16xf32>
    %155 = vector.multi_reduction <maximumf>, %154, %cst_64 [1] : vector<16x64xf32> to vector<16xf32>
    %156 = vector.shape_cast %155 : vector<16xf32> to vector<16x1xf32>
    %157 = vector.broadcast %156 : vector<16x1xf32> to vector<16x64xf32>
    %158 = arith.subf %154, %157 : vector<16x64xf32>
    %159 = math.exp %158 : vector<16x64xf32>
    %cst_65 = arith.constant dense<0.000000e+00> : vector<16xf32>
    %160 = vector.multi_reduction <add>, %159, %cst_65 [1] : vector<16x64xf32> to vector<16xf32>
    %161 = vector.shape_cast %160 : vector<16xf32> to vector<16x1xf32>
    %162 = tpu.reciprocal %161 {approx = true} : vector<16x1xf32> -> vector<16x1xf32>
    %163 = vector.broadcast %162 : vector<16x1xf32> to vector<16x64xf32>
    %164 = arith.mulf %159, %163 : vector<16x64xf32>
    %165 = arith.truncf %164 : vector<16x64xf32> to vector<16x64xbf16>
    %166 = arith.truncf %149 : vector<64x8xf32> to vector<64x8xbf16>
    %cst_66 = arith.constant dense<0.000000e+00> : vector<16x8xf32>
    %167 = tpu.matmul %165, %166, %cst_66 {dimension_numbers = #tpu.dot_dimension_numbers<[1], [0], [0], [1], [0, 0, 1, 1], [], []>} : vector<16x64xbf16>, vector<64x8xbf16>, vector<16x8xf32> -> vector<16x8xf32>
    %168 = vector.extract_strided_slice %138 {offsets = [0, 8], sizes = [16, 8], strides = [1, 1]} : vector<16x32xf32> to vector<16x8xf32>
    %169 = vector.extract_strided_slice %146 {offsets = [0, 8], sizes = [64, 8], strides = [1, 1]} : vector<64x64xf32> to vector<64x8xf32>
    %170 = vector.extract_strided_slice %146 {offsets = [0, 40], sizes = [64, 8], strides = [1, 1]} : vector<64x64xf32> to vector<64x8xf32>
    %171 = arith.truncf %168 : vector<16x8xf32> to vector<16x8xbf16>
    %172 = arith.truncf %169 : vector<64x8xf32> to vector<64x8xbf16>
    %cst_67 = arith.constant dense<0.000000e+00> : vector<16x64xf32>
    %173 = tpu.matmul %171, %172, %cst_67 {dimension_numbers = #tpu.dot_dimension_numbers<[1], [1], [0], [0], [0, 0, 1, 0], [], []>} : vector<16x8xbf16>, vector<64x8xbf16>, vector<16x64xf32> -> vector<16x64xf32>
    %cst_68 = arith.constant 0.353553385 : f32
    %174 = vector.broadcast %cst_68 : f32 to vector<16x64xf32>
    %175 = arith.mulf %173, %174 : vector<16x64xf32>
    %cst_69 = arith.constant dense<0xFF800000> : vector<16xf32>
    %176 = vector.multi_reduction <maximumf>, %175, %cst_69 [1] : vector<16x64xf32> to vector<16xf32>
    %177 = vector.shape_cast %176 : vector<16xf32> to vector<16x1xf32>
    %178 = vector.broadcast %177 : vector<16x1xf32> to vector<16x64xf32>
    %179 = arith.subf %175, %178 : vector<16x64xf32>
    %180 = math.exp %179 : vector<16x64xf32>
    %cst_70 = arith.constant dense<0.000000e+00> : vector<16xf32>
    %181 = vector.multi_reduction <add>, %180, %cst_70 [1] : vector<16x64xf32> to vector<16xf32>
    %182 = vector.shape_cast %181 : vector<16xf32> to vector<16x1xf32>
    %183 = tpu.reciprocal %182 {approx = true} : vector<16x1xf32> -> vector<16x1xf32>
    %184 = vector.broadcast %183 : vector<16x1xf32> to vector<16x64xf32>
    %185 = arith.mulf %180, %184 : vector<16x64xf32>
    %186 = arith.truncf %185 : vector<16x64xf32> to vector<16x64xbf16>
    %187 = arith.truncf %170 : vector<64x8xf32> to vector<64x8xbf16>
    %cst_71 = arith.constant dense<0.000000e+00> : vector<16x8xf32>
    %188 = tpu.matmul %186, %187, %cst_71 {dimension_numbers = #tpu.dot_dimension_numbers<[1], [0], [0], [1], [0, 0, 1, 1], [], []>} : vector<16x64xbf16>, vector<64x8xbf16>, vector<16x8xf32> -> vector<16x8xf32>
    %189 = vector.extract_strided_slice %138 {offsets = [0, 16], sizes = [16, 8], strides = [1, 1]} : vector<16x32xf32> to vector<16x8xf32>
    %190 = vector.extract_strided_slice %146 {offsets = [0, 16], sizes = [64, 8], strides = [1, 1]} : vector<64x64xf32> to vector<64x8xf32>
    %191 = vector.extract_strided_slice %146 {offsets = [0, 48], sizes = [64, 8], strides = [1, 1]} : vector<64x64xf32> to vector<64x8xf32>
    %192 = arith.truncf %189 : vector<16x8xf32> to vector<16x8xbf16>
    %193 = arith.truncf %190 : vector<64x8xf32> to vector<64x8xbf16>
    %cst_72 = arith.constant dense<0.000000e+00> : vector<16x64xf32>
    %194 = tpu.matmul %192, %193, %cst_72 {dimension_numbers = #tpu.dot_dimension_numbers<[1], [1], [0], [0], [0, 0, 1, 0], [], []>} : vector<16x8xbf16>, vector<64x8xbf16>, vector<16x64xf32> -> vector<16x64xf32>
    %cst_73 = arith.constant 0.353553385 : f32
    %195 = vector.broadcast %cst_73 : f32 to vector<16x64xf32>
    %196 = arith.mulf %194, %195 : vector<16x64xf32>
    %cst_74 = arith.constant dense<0xFF800000> : vector<16xf32>
    %197 = vector.multi_reduction <maximumf>, %196, %cst_74 [1] : vector<16x64xf32> to vector<16xf32>
    %198 = vector.shape_cast %197 : vector<16xf32> to vector<16x1xf32>
    %199 = vector.broadcast %198 : vector<16x1xf32> to vector<16x64xf32>
    %200 = arith.subf %196, %199 : vector<16x64xf32>
    %201 = math.exp %200 : vector<16x64xf32>
    %cst_75 = arith.constant dense<0.000000e+00> : vector<16xf32>
    %202 = vector.multi_reduction <add>, %201, %cst_75 [1] : vector<16x64xf32> to vector<16xf32>
    %203 = vector.shape_cast %202 : vector<16xf32> to vector<16x1xf32>
    %204 = tpu.reciprocal %203 {approx = true} : vector<16x1xf32> -> vector<16x1xf32>
    %205 = vector.broadcast %204 : vector<16x1xf32> to vector<16x64xf32>
    %206 = arith.mulf %201, %205 : vector<16x64xf32>
    %207 = arith.truncf %206 : vector<16x64xf32> to vector<16x64xbf16>
    %208 = arith.truncf %191 : vector<64x8xf32> to vector<64x8xbf16>
    %cst_76 = arith.constant dense<0.000000e+00> : vector<16x8xf32>
    %209 = tpu.matmul %207, %208, %cst_76 {dimension_numbers = #tpu.dot_dimension_numbers<[1], [0], [0], [1], [0, 0, 1, 1], [], []>} : vector<16x64xbf16>, vector<64x8xbf16>, vector<16x8xf32> -> vector<16x8xf32>
    %210 = vector.extract_strided_slice %138 {offsets = [0, 24], sizes = [16, 8], strides = [1, 1]} : vector<16x32xf32> to vector<16x8xf32>
    %211 = vector.extract_strided_slice %146 {offsets = [0, 24], sizes = [64, 8], strides = [1, 1]} : vector<64x64xf32> to vector<64x8xf32>
    %212 = vector.extract_strided_slice %146 {offsets = [0, 56], sizes = [64, 8], strides = [1, 1]} : vector<64x64xf32> to vector<64x8xf32>
    %213 = arith.truncf %210 : vector<16x8xf32> to vector<16x8xbf16>
    %214 = arith.truncf %211 : vector<64x8xf32> to vector<64x8xbf16>
    %cst_77 = arith.constant dense<0.000000e+00> : vector<16x64xf32>
    %215 = tpu.matmul %213, %214, %cst_77 {dimension_numbers = #tpu.dot_dimension_numbers<[1], [1], [0], [0], [0, 0, 1, 0], [], []>} : vector<16x8xbf16>, vector<64x8xbf16>, vector<16x64xf32> -> vector<16x64xf32>
    %cst_78 = arith.constant 0.353553385 : f32
    %216 = vector.broadcast %cst_78 : f32 to vector<16x64xf32>
    %217 = arith.mulf %215, %216 : vector<16x64xf32>
    %cst_79 = arith.constant dense<0xFF800000> : vector<16xf32>
    %218 = vector.multi_reduction <maximumf>, %217, %cst_79 [1] : vector<16x64xf32> to vector<16xf32>
    %219 = vector.shape_cast %218 : vector<16xf32> to vector<16x1xf32>
    %220 = vector.broadcast %219 : vector<16x1xf32> to vector<16x64xf32>
    %221 = arith.subf %217, %220 : vector<16x64xf32>
    %222 = math.exp %221 : vector<16x64xf32>
    %cst_80 = arith.constant dense<0.000000e+00> : vector<16xf32>
    %223 = vector.multi_reduction <add>, %222, %cst_80 [1] : vector<16x64xf32> to vector<16xf32>
    %224 = vector.shape_cast %223 : vector<16xf32> to vector<16x1xf32>
    %225 = tpu.reciprocal %224 {approx = true} : vector<16x1xf32> -> vector<16x1xf32>
    %226 = vector.broadcast %225 : vector<16x1xf32> to vector<16x64xf32>
    %227 = arith.mulf %222, %226 : vector<16x64xf32>
    %228 = arith.truncf %227 : vector<16x64xf32> to vector<16x64xbf16>
    %229 = arith.truncf %212 : vector<64x8xf32> to vector<64x8xbf16>
    %cst_81 = arith.constant dense<0.000000e+00> : vector<16x8xf32>
    %230 = tpu.matmul %228, %229, %cst_81 {dimension_numbers = #tpu.dot_dimension_numbers<[1], [0], [0], [1], [0, 0, 1, 1], [], []>} : vector<16x64xbf16>, vector<64x8xbf16>, vector<16x8xf32> -> vector<16x8xf32>
    %231 = tpu.concatenate %167, %188, %209, %230 in 1 : vector<16x8xf32>, vector<16x8xf32>, vector<16x8xf32>, vector<16x8xf32> -> vector<16x32xf32>
    %232 = arith.truncf %231 : vector<16x32xf32> to vector<16x32xbf16>
    %c0_82 = arith.constant 0 : index
    %c0_83 = arith.constant 0 : index
    %c0_84 = arith.constant 0 : index
    %233 = vector.load %arg21[%c0_82, %c0_83, %c0_84] : memref<1x32x32xbf16, #tpu.memory_space<vmem>>, vector<1x32x32xbf16>
    %234 = vector.shape_cast %233 : vector<1x32x32xbf16> to vector<32x32xbf16>
    %cst_85 = arith.constant dense<0.000000e+00> : vector<16x32xf32>
    %235 = tpu.matmul %232, %234, %cst_85 {dimension_numbers = #tpu.dot_dimension_numbers<[1], [0], [0], [1], [0, 0, 1, 1], [], []>} : vector<16x32xbf16>, vector<32x32xbf16>, vector<16x32xf32> -> vector<16x32xf32>
    %c0_86 = arith.constant 0 : index
    %c0_87 = arith.constant 0 : index
    %c0_88 = arith.constant 0 : index
    %236 = vector.load %arg22[%c0_86, %c0_87, %c0_88] : memref<1x1x32xf32, #tpu.memory_space<vmem>>, vector<1x1x32xf32>
    %237 = vector.shape_cast %236 : vector<1x1x32xf32> to vector<1x32xf32>
    %238 = vector.broadcast %237 : vector<1x32xf32> to vector<16x32xf32>
    %239 = arith.addf %235, %238 : vector<16x32xf32>
    %240 = arith.addf %239, %130 : vector<16x32xf32>
    %c0_89 = arith.constant 0 : index
    %c0_90 = arith.constant 0 : index
    %c0_91 = arith.constant 0 : index
    %241 = vector.load %arg23[%c0_89, %c0_90, %c0_91] : memref<1x1x32xf32, #tpu.memory_space<vmem>>, vector<1x1x32xf32>
    %242 = vector.shape_cast %241 : vector<1x1x32xf32> to vector<1x32xf32>
    %c0_92 = arith.constant 0 : index
    %c0_93 = arith.constant 0 : index
    %c0_94 = arith.constant 0 : index
    %243 = vector.load %arg24[%c0_92, %c0_93, %c0_94] : memref<1x1x32xf32, #tpu.memory_space<vmem>>, vector<1x1x32xf32>
    %244 = vector.shape_cast %243 : vector<1x1x32xf32> to vector<1x32xf32>
    %cst_95 = arith.constant dense<0.000000e+00> : vector<16xf32>
    %245 = vector.multi_reduction <add>, %240, %cst_95 [1] : vector<16x32xf32> to vector<16xf32>
    %246 = vector.shape_cast %245 : vector<16xf32> to vector<16x1xf32>
    %cst_96 = arith.constant 3.200000e+01 : f32
    %247 = vector.broadcast %cst_96 : f32 to vector<16x1xf32>
    %248 = arith.divf %246, %247 : vector<16x1xf32>
    %249 = vector.broadcast %248 : vector<16x1xf32> to vector<16x32xf32>
    %250 = arith.subf %240, %249 : vector<16x32xf32>
    %251 = arith.mulf %250, %250 : vector<16x32xf32>
    %cst_97 = arith.constant dense<0.000000e+00> : vector<16xf32>
    %252 = vector.multi_reduction <add>, %251, %cst_97 [1] : vector<16x32xf32> to vector<16xf32>
    %253 = vector.shape_cast %252 : vector<16xf32> to vector<16x1xf32>
    %cst_98 = arith.constant 3.200000e+01 : f32
    %254 = vector.broadcast %cst_98 : f32 to vector<16x1xf32>
    %255 = arith.divf %253, %254 : vector<16x1xf32>
    %cst_99 = arith.constant 9.99999974E-6 : f32
    %256 = vector.broadcast %cst_99 : f32 to vector<16x1xf32>
    %257 = arith.addf %255, %256 : vector<16x1xf32>
    %258 = math.rsqrt %257 : vector<16x1xf32>
    %259 = vector.broadcast %258 : vector<16x1xf32> to vector<16x32xf32>
    %260 = arith.mulf %250, %259 : vector<16x32xf32>
    %261 = vector.broadcast %242 : vector<1x32xf32> to vector<16x32xf32>
    %262 = arith.mulf %260, %261 : vector<16x32xf32>
    %263 = vector.broadcast %244 : vector<1x32xf32> to vector<16x32xf32>
    %264 = arith.addf %262, %263 : vector<16x32xf32>
    %265 = arith.truncf %264 : vector<16x32xf32> to vector<16x32xbf16>
    %c0_100 = arith.constant 0 : index
    %c0_101 = arith.constant 0 : index
    %c0_102 = arith.constant 0 : index
    %266 = vector.load %arg25[%c0_100, %c0_101, %c0_102] : memref<1x32x128xbf16, #tpu.memory_space<vmem>>, vector<1x32x128xbf16>
    %267 = vector.shape_cast %266 : vector<1x32x128xbf16> to vector<32x128xbf16>
    %cst_103 = arith.constant dense<0.000000e+00> : vector<16x128xf32>
    %268 = tpu.matmul %265, %267, %cst_103 {dimension_numbers = #tpu.dot_dimension_numbers<[1], [0], [0], [1], [0, 0, 1, 1], [], []>} : vector<16x32xbf16>, vector<32x128xbf16>, vector<16x128xf32> -> vector<16x128xf32>
    %c0_104 = arith.constant 0 : index
    %c0_105 = arith.constant 0 : index
    %c0_106 = arith.constant 0 : index
    %269 = vector.load %arg26[%c0_104, %c0_105, %c0_106] : memref<1x1x128xf32, #tpu.memory_space<vmem>>, vector<1x1x128xf32>
    %270 = vector.shape_cast %269 : vector<1x1x128xf32> to vector<1x128xf32>
    %271 = vector.broadcast %270 : vector<1x128xf32> to vector<16x128xf32>
    %272 = arith.addf %268, %271 : vector<16x128xf32>
    %cst_107 = arith.constant 0.000000e+00 : f32
    %273 = vector.broadcast %cst_107 : f32 to vector<16x128xf32>
    %274 = arith.maximumf %272, %273 : vector<16x128xf32>
    %275 = arith.truncf %274 : vector<16x128xf32> to vector<16x128xbf16>
    %c0_108 = arith.constant 0 : index
    %c0_109 = arith.constant 0 : index
    %c0_110 = arith.constant 0 : index
    %276 = vector.load %arg27[%c0_108, %c0_109, %c0_110] : memref<1x128x32xbf16, #tpu.memory_space<vmem>>, vector<1x128x32xbf16>
    %277 = vector.shape_cast %276 : vector<1x128x32xbf16> to vector<128x32xbf16>
    %cst_111 = arith.constant dense<0.000000e+00> : vector<16x32xf32>
    %278 = tpu.matmul %275, %277, %cst_111 {dimension_numbers = #tpu.dot_dimension_numbers<[1], [0], [0], [1], [0, 0, 1, 1], [], []>} : vector<16x128xbf16>, vector<128x32xbf16>, vector<16x32xf32> -> vector<16x32xf32>
    %c0_112 = arith.constant 0 : index
    %c0_113 = arith.constant 0 : index
    %c0_114 = arith.constant 0 : index
    %279 = vector.load %arg28[%c0_112, %c0_113, %c0_114] : memref<1x1x32xf32, #tpu.memory_space<vmem>>, vector<1x1x32xf32>
    %280 = vector.shape_cast %279 : vector<1x1x32xf32> to vector<1x32xf32>
    %281 = vector.broadcast %280 : vector<1x32xf32> to vector<16x32xf32>
    %282 = arith.addf %278, %281 : vector<16x32xf32>
    %283 = arith.addf %282, %264 : vector<16x32xf32>
    %c0_115 = arith.constant 0 : index
    %c0_116 = arith.constant 0 : index
    %c0_117 = arith.constant 0 : index
    %284 = vector.load %arg29[%c0_115, %c0_116, %c0_117] : memref<1x1x32xf32, #tpu.memory_space<vmem>>, vector<1x1x32xf32>
    %285 = vector.shape_cast %284 : vector<1x1x32xf32> to vector<1x32xf32>
    %c0_118 = arith.constant 0 : index
    %c0_119 = arith.constant 0 : index
    %c0_120 = arith.constant 0 : index
    %286 = vector.load %arg30[%c0_118, %c0_119, %c0_120] : memref<1x1x32xf32, #tpu.memory_space<vmem>>, vector<1x1x32xf32>
    %287 = vector.shape_cast %286 : vector<1x1x32xf32> to vector<1x32xf32>
    %cst_121 = arith.constant dense<0.000000e+00> : vector<16xf32>
    %288 = vector.multi_reduction <add>, %283, %cst_121 [1] : vector<16x32xf32> to vector<16xf32>
    %289 = vector.shape_cast %288 : vector<16xf32> to vector<16x1xf32>
    %cst_122 = arith.constant 3.200000e+01 : f32
    %290 = vector.broadcast %cst_122 : f32 to vector<16x1xf32>
    %291 = arith.divf %289, %290 : vector<16x1xf32>
    %292 = vector.broadcast %291 : vector<16x1xf32> to vector<16x32xf32>
    %293 = arith.subf %283, %292 : vector<16x32xf32>
    %294 = arith.mulf %293, %293 : vector<16x32xf32>
    %cst_123 = arith.constant dense<0.000000e+00> : vector<16xf32>
    %295 = vector.multi_reduction <add>, %294, %cst_123 [1] : vector<16x32xf32> to vector<16xf32>
    %296 = vector.shape_cast %295 : vector<16xf32> to vector<16x1xf32>
    %cst_124 = arith.constant 3.200000e+01 : f32
    %297 = vector.broadcast %cst_124 : f32 to vector<16x1xf32>
    %298 = arith.divf %296, %297 : vector<16x1xf32>
    %cst_125 = arith.constant 9.99999974E-6 : f32
    %299 = vector.broadcast %cst_125 : f32 to vector<16x1xf32>
    %300 = arith.addf %298, %299 : vector<16x1xf32>
    %301 = math.rsqrt %300 : vector<16x1xf32>
    %302 = vector.broadcast %301 : vector<16x1xf32> to vector<16x32xf32>
    %303 = arith.mulf %293, %302 : vector<16x32xf32>
    %304 = vector.broadcast %285 : vector<1x32xf32> to vector<16x32xf32>
    %305 = arith.mulf %303, %304 : vector<16x32xf32>
    %306 = vector.broadcast %287 : vector<1x32xf32> to vector<16x32xf32>
    %307 = arith.addf %305, %306 : vector<16x32xf32>
    %c0_126 = arith.constant 0 : index
    %c0_127 = arith.constant 0 : index
    %308 = vector.load %arg38[%c0_126, %c0_127] : memref<16x32xf32, #tpu.memory_space<vmem>>, vector<16x32xf32>
    tpu.vector_store %arg38[%c0_126, %c0_127], %307 {strides = array<i32>} : memref<16x32xf32, #tpu.memory_space<vmem>>, vector<16x32xf32>,
    %c2_i32 = arith.constant 2 : i32
    %309 = arith.cmpi eq, %arg1, %c2_i32 : i32
    %310 = arith.extui %309 : i1 to i32
    %c0_i32_128 = arith.constant 0 : i32
    %311 = arith.cmpi ne, %310, %c0_i32_128 : i32
    scf.if %311 {
      %312 = arith.truncf %307 : vector<16x32xf32> to vector<16x32xbf16>
      %c0_129 = arith.constant 0 : index
      %c0_130 = arith.constant 0 : index
      %313 = vector.load %arg32[%c0_129, %c0_130] : memref<1x128xf32, #tpu.memory_space<vmem>>, vector<1x128xf32>
      %314 = vector.extract_strided_slice %312 {offsets = [0, 0], sizes = [1, 32], strides = [1, 1]} : vector<16x32xbf16> to vector<1x32xbf16>
      %c0_131 = arith.constant 0 : index
      %c0_132 = arith.constant 0 : index
      %c0_133 = arith.constant 0 : index
      %315 = vector.load %arg31[%c0_131, %c0_132, %c0_133] : memref<16x32x128xbf16, #tpu.memory_space<vmem>>, vector<1x32x128xbf16>
      %316 = vector.shape_cast %315 : vector<1x32x128xbf16> to vector<32x128xbf16>
      %cst_134 = arith.constant dense<0.000000e+00> : vector<1x128xf32>
      %317 = tpu.matmul %314, %316, %cst_134 {dimension_numbers = #tpu.dot_dimension_numbers<[1], [0], [0], [1], [0, 0, 1, 1], [], []>} : vector<1x32xbf16>, vector<32x128xbf16>, vector<1x128xf32> -> vector<1x128xf32>
      %318 = arith.addf %313, %317 : vector<1x128xf32>
      %319 = vector.extract_strided_slice %312 {offsets = [1, 0], sizes = [1, 32], strides = [1, 1]} : vector<16x32xbf16> to vector<1x32xbf16>
      %c1 = arith.constant 1 : index
      %c0_135 = arith.constant 0 : index
      %c0_136 = arith.constant 0 : index
      %320 = vector.load %arg31[%c1, %c0_135, %c0_136] : memref<16x32x128xbf16, #tpu.memory_space<vmem>>, vector<1x32x128xbf16>
      %321 = vector.shape_cast %320 : vector<1x32x128xbf16> to vector<32x128xbf16>
      %cst_137 = arith.constant dense<0.000000e+00> : vector<1x128xf32>
      %322 = tpu.matmul %319, %321, %cst_137 {dimension_numbers = #tpu.dot_dimension_numbers<[1], [0], [0], [1], [0, 0, 1, 1], [], []>} : vector<1x32xbf16>, vector<32x128xbf16>, vector<1x128xf32> -> vector<1x128xf32>
      %323 = arith.addf %318, %322 : vector<1x128xf32>
      %324 = vector.extract_strided_slice %312 {offsets = [2, 0], sizes = [1, 32], strides = [1, 1]} : vector<16x32xbf16> to vector<1x32xbf16>
      %c2 = arith.constant 2 : index
      %c0_138 = arith.constant 0 : index
      %c0_139 = arith.constant 0 : index
      %325 = vector.load %arg31[%c2, %c0_138, %c0_139] : memref<16x32x128xbf16, #tpu.memory_space<vmem>>, vector<1x32x128xbf16>
      %326 = vector.shape_cast %325 : vector<1x32x128xbf16> to vector<32x128xbf16>
      %cst_140 = arith.constant dense<0.000000e+00> : vector<1x128xf32>
      %327 = tpu.matmul %324, %326, %cst_140 {dimension_numbers = #tpu.dot_dimension_numbers<[1], [0], [0], [1], [0, 0, 1, 1], [], []>} : vector<1x32xbf16>, vector<32x128xbf16>, vector<1x128xf32> -> vector<1x128xf32>
      %328 = arith.addf %323, %327 : vector<1x128xf32>
      %329 = vector.extract_strided_slice %312 {offsets = [3, 0], sizes = [1, 32], strides = [1, 1]} : vector<16x32xbf16> to vector<1x32xbf16>
      %c3 = arith.constant 3 : index
      %c0_141 = arith.constant 0 : index
      %c0_142 = arith.constant 0 : index
      %330 = vector.load %arg31[%c3, %c0_141, %c0_142] : memref<16x32x128xbf16, #tpu.memory_space<vmem>>, vector<1x32x128xbf16>
      %331 = vector.shape_cast %330 : vector<1x32x128xbf16> to vector<32x128xbf16>
      %cst_143 = arith.constant dense<0.000000e+00> : vector<1x128xf32>
      %332 = tpu.matmul %329, %331, %cst_143 {dimension_numbers = #tpu.dot_dimension_numbers<[1], [0], [0], [1], [0, 0, 1, 1], [], []>} : vector<1x32xbf16>, vector<32x128xbf16>, vector<1x128xf32> -> vector<1x128xf32>
      %333 = arith.addf %328, %332 : vector<1x128xf32>
      %334 = vector.extract_strided_slice %312 {offsets = [4, 0], sizes = [1, 32], strides = [1, 1]} : vector<16x32xbf16> to vector<1x32xbf16>
      %c4 = arith.constant 4 : index
      %c0_144 = arith.constant 0 : index
      %c0_145 = arith.constant 0 : index
      %335 = vector.load %arg31[%c4, %c0_144, %c0_145] : memref<16x32x128xbf16, #tpu.memory_space<vmem>>, vector<1x32x128xbf16>
      %336 = vector.shape_cast %335 : vector<1x32x128xbf16> to vector<32x128xbf16>
      %cst_146 = arith.constant dense<0.000000e+00> : vector<1x128xf32>
      %337 = tpu.matmul %334, %336, %cst_146 {dimension_numbers = #tpu.dot_dimension_numbers<[1], [0], [0], [1], [0, 0, 1, 1], [], []>} : vector<1x32xbf16>, vector<32x128xbf16>, vector<1x128xf32> -> vector<1x128xf32>
      %338 = arith.addf %333, %337 : vector<1x128xf32>
      %339 = vector.extract_strided_slice %312 {offsets = [5, 0], sizes = [1, 32], strides = [1, 1]} : vector<16x32xbf16> to vector<1x32xbf16>
      %c5 = arith.constant 5 : index
      %c0_147 = arith.constant 0 : index
      %c0_148 = arith.constant 0 : index
      %340 = vector.load %arg31[%c5, %c0_147, %c0_148] : memref<16x32x128xbf16, #tpu.memory_space<vmem>>, vector<1x32x128xbf16>
      %341 = vector.shape_cast %340 : vector<1x32x128xbf16> to vector<32x128xbf16>
      %cst_149 = arith.constant dense<0.000000e+00> : vector<1x128xf32>
      %342 = tpu.matmul %339, %341, %cst_149 {dimension_numbers = #tpu.dot_dimension_numbers<[1], [0], [0], [1], [0, 0, 1, 1], [], []>} : vector<1x32xbf16>, vector<32x128xbf16>, vector<1x128xf32> -> vector<1x128xf32>
      %343 = arith.addf %338, %342 : vector<1x128xf32>
      %344 = vector.extract_strided_slice %312 {offsets = [6, 0], sizes = [1, 32], strides = [1, 1]} : vector<16x32xbf16> to vector<1x32xbf16>
      %c6 = arith.constant 6 : index
      %c0_150 = arith.constant 0 : index
      %c0_151 = arith.constant 0 : index
      %345 = vector.load %arg31[%c6, %c0_150, %c0_151] : memref<16x32x128xbf16, #tpu.memory_space<vmem>>, vector<1x32x128xbf16>
      %346 = vector.shape_cast %345 : vector<1x32x128xbf16> to vector<32x128xbf16>
      %cst_152 = arith.constant dense<0.000000e+00> : vector<1x128xf32>
      %347 = tpu.matmul %344, %346, %cst_152 {dimension_numbers = #tpu.dot_dimension_numbers<[1], [0], [0], [1], [0, 0, 1, 1], [], []>} : vector<1x32xbf16>, vector<32x128xbf16>, vector<1x128xf32> -> vector<1x128xf32>
      %348 = arith.addf %343, %347 : vector<1x128xf32>
      %349 = vector.extract_strided_slice %312 {offsets = [7, 0], sizes = [1, 32], strides = [1, 1]} : vector<16x32xbf16> to vector<1x32xbf16>
      %c7 = arith.constant 7 : index
      %c0_153 = arith.constant 0 : index
      %c0_154 = arith.constant 0 : index
      %350 = vector.load %arg31[%c7, %c0_153, %c0_154] : memref<16x32x128xbf16, #tpu.memory_space<vmem>>, vector<1x32x128xbf16>
      %351 = vector.shape_cast %350 : vector<1x32x128xbf16> to vector<32x128xbf16>
      %cst_155 = arith.constant dense<0.000000e+00> : vector<1x128xf32>
      %352 = tpu.matmul %349, %351, %cst_155 {dimension_numbers = #tpu.dot_dimension_numbers<[1], [0], [0], [1], [0, 0, 1, 1], [], []>} : vector<1x32xbf16>, vector<32x128xbf16>, vector<1x128xf32> -> vector<1x128xf32>
      %353 = arith.addf %348, %352 : vector<1x128xf32>
      %354 = vector.extract_strided_slice %312 {offsets = [8, 0], sizes = [1, 32], strides = [1, 1]} : vector<16x32xbf16> to vector<1x32xbf16>
      %c8 = arith.constant 8 : index
      %c0_156 = arith.constant 0 : index
      %c0_157 = arith.constant 0 : index
      %355 = vector.load %arg31[%c8, %c0_156, %c0_157] : memref<16x32x128xbf16, #tpu.memory_space<vmem>>, vector<1x32x128xbf16>
      %356 = vector.shape_cast %355 : vector<1x32x128xbf16> to vector<32x128xbf16>
      %cst_158 = arith.constant dense<0.000000e+00> : vector<1x128xf32>
      %357 = tpu.matmul %354, %356, %cst_158 {dimension_numbers = #tpu.dot_dimension_numbers<[1], [0], [0], [1], [0, 0, 1, 1], [], []>} : vector<1x32xbf16>, vector<32x128xbf16>, vector<1x128xf32> -> vector<1x128xf32>
      %358 = arith.addf %353, %357 : vector<1x128xf32>
      %359 = vector.extract_strided_slice %312 {offsets = [9, 0], sizes = [1, 32], strides = [1, 1]} : vector<16x32xbf16> to vector<1x32xbf16>
      %c9 = arith.constant 9 : index
      %c0_159 = arith.constant 0 : index
      %c0_160 = arith.constant 0 : index
      %360 = vector.load %arg31[%c9, %c0_159, %c0_160] : memref<16x32x128xbf16, #tpu.memory_space<vmem>>, vector<1x32x128xbf16>
      %361 = vector.shape_cast %360 : vector<1x32x128xbf16> to vector<32x128xbf16>
      %cst_161 = arith.constant dense<0.000000e+00> : vector<1x128xf32>
      %362 = tpu.matmul %359, %361, %cst_161 {dimension_numbers = #tpu.dot_dimension_numbers<[1], [0], [0], [1], [0, 0, 1, 1], [], []>} : vector<1x32xbf16>, vector<32x128xbf16>, vector<1x128xf32> -> vector<1x128xf32>
      %363 = arith.addf %358, %362 : vector<1x128xf32>
      %364 = vector.extract_strided_slice %312 {offsets = [10, 0], sizes = [1, 32], strides = [1, 1]} : vector<16x32xbf16> to vector<1x32xbf16>
      %c10 = arith.constant 10 : index
      %c0_162 = arith.constant 0 : index
      %c0_163 = arith.constant 0 : index
      %365 = vector.load %arg31[%c10, %c0_162, %c0_163] : memref<16x32x128xbf16, #tpu.memory_space<vmem>>, vector<1x32x128xbf16>
      %366 = vector.shape_cast %365 : vector<1x32x128xbf16> to vector<32x128xbf16>
      %cst_164 = arith.constant dense<0.000000e+00> : vector<1x128xf32>
      %367 = tpu.matmul %364, %366, %cst_164 {dimension_numbers = #tpu.dot_dimension_numbers<[1], [0], [0], [1], [0, 0, 1, 1], [], []>} : vector<1x32xbf16>, vector<32x128xbf16>, vector<1x128xf32> -> vector<1x128xf32>
      %368 = arith.addf %363, %367 : vector<1x128xf32>
      %369 = vector.extract_strided_slice %312 {offsets = [11, 0], sizes = [1, 32], strides = [1, 1]} : vector<16x32xbf16> to vector<1x32xbf16>
      %c11 = arith.constant 11 : index
      %c0_165 = arith.constant 0 : index
      %c0_166 = arith.constant 0 : index
      %370 = vector.load %arg31[%c11, %c0_165, %c0_166] : memref<16x32x128xbf16, #tpu.memory_space<vmem>>, vector<1x32x128xbf16>
      %371 = vector.shape_cast %370 : vector<1x32x128xbf16> to vector<32x128xbf16>
      %cst_167 = arith.constant dense<0.000000e+00> : vector<1x128xf32>
      %372 = tpu.matmul %369, %371, %cst_167 {dimension_numbers = #tpu.dot_dimension_numbers<[1], [0], [0], [1], [0, 0, 1, 1], [], []>} : vector<1x32xbf16>, vector<32x128xbf16>, vector<1x128xf32> -> vector<1x128xf32>
      %373 = arith.addf %368, %372 : vector<1x128xf32>
      %374 = vector.extract_strided_slice %312 {offsets = [12, 0], sizes = [1, 32], strides = [1, 1]} : vector<16x32xbf16> to vector<1x32xbf16>
      %c12 = arith.constant 12 : index
      %c0_168 = arith.constant 0 : index
      %c0_169 = arith.constant 0 : index
      %375 = vector.load %arg31[%c12, %c0_168, %c0_169] : memref<16x32x128xbf16, #tpu.memory_space<vmem>>, vector<1x32x128xbf16>
      %376 = vector.shape_cast %375 : vector<1x32x128xbf16> to vector<32x128xbf16>
      %cst_170 = arith.constant dense<0.000000e+00> : vector<1x128xf32>
      %377 = tpu.matmul %374, %376, %cst_170 {dimension_numbers = #tpu.dot_dimension_numbers<[1], [0], [0], [1], [0, 0, 1, 1], [], []>} : vector<1x32xbf16>, vector<32x128xbf16>, vector<1x128xf32> -> vector<1x128xf32>
      %378 = arith.addf %373, %377 : vector<1x128xf32>
      %379 = vector.extract_strided_slice %312 {offsets = [13, 0], sizes = [1, 32], strides = [1, 1]} : vector<16x32xbf16> to vector<1x32xbf16>
      %c13 = arith.constant 13 : index
      %c0_171 = arith.constant 0 : index
      %c0_172 = arith.constant 0 : index
      %380 = vector.load %arg31[%c13, %c0_171, %c0_172] : memref<16x32x128xbf16, #tpu.memory_space<vmem>>, vector<1x32x128xbf16>
      %381 = vector.shape_cast %380 : vector<1x32x128xbf16> to vector<32x128xbf16>
      %cst_173 = arith.constant dense<0.000000e+00> : vector<1x128xf32>
      %382 = tpu.matmul %379, %381, %cst_173 {dimension_numbers = #tpu.dot_dimension_numbers<[1], [0], [0], [1], [0, 0, 1, 1], [], []>} : vector<1x32xbf16>, vector<32x128xbf16>, vector<1x128xf32> -> vector<1x128xf32>
      %383 = arith.addf %378, %382 : vector<1x128xf32>
      %384 = vector.extract_strided_slice %312 {offsets = [14, 0], sizes = [1, 32], strides = [1, 1]} : vector<16x32xbf16> to vector<1x32xbf16>
      %c14 = arith.constant 14 : index
      %c0_174 = arith.constant 0 : index
      %c0_175 = arith.constant 0 : index
      %385 = vector.load %arg31[%c14, %c0_174, %c0_175] : memref<16x32x128xbf16, #tpu.memory_space<vmem>>, vector<1x32x128xbf16>
      %386 = vector.shape_cast %385 : vector<1x32x128xbf16> to vector<32x128xbf16>
      %cst_176 = arith.constant dense<0.000000e+00> : vector<1x128xf32>
      %387 = tpu.matmul %384, %386, %cst_176 {dimension_numbers = #tpu.dot_dimension_numbers<[1], [0], [0], [1], [0, 0, 1, 1], [], []>} : vector<1x32xbf16>, vector<32x128xbf16>, vector<1x128xf32> -> vector<1x128xf32>
      %388 = arith.addf %383, %387 : vector<1x128xf32>
      %389 = vector.extract_strided_slice %312 {offsets = [15, 0], sizes = [1, 32], strides = [1, 1]} : vector<16x32xbf16> to vector<1x32xbf16>
      %c15 = arith.constant 15 : index
      %c0_177 = arith.constant 0 : index
      %c0_178 = arith.constant 0 : index
      %390 = vector.load %arg31[%c15, %c0_177, %c0_178] : memref<16x32x128xbf16, #tpu.memory_space<vmem>>, vector<1x32x128xbf16>
      %391 = vector.shape_cast %390 : vector<1x32x128xbf16> to vector<32x128xbf16>
      %cst_179 = arith.constant dense<0.000000e+00> : vector<1x128xf32>
      %392 = tpu.matmul %389, %391, %cst_179 {dimension_numbers = #tpu.dot_dimension_numbers<[1], [0], [0], [1], [0, 0, 1, 1], [], []>} : vector<1x32xbf16>, vector<32x128xbf16>, vector<1x128xf32> -> vector<1x128xf32>
      %393 = arith.addf %388, %392 : vector<1x128xf32>
      %cst_180 = arith.constant 0.000000e+00 : f32
      %394 = vector.broadcast %cst_180 : f32 to vector<1x128xf32>
      %395 = arith.maximumf %393, %394 : vector<1x128xf32>
      %396 = arith.truncf %395 : vector<1x128xf32> to vector<1x128xbf16>
      %c0_181 = arith.constant 0 : index
      %c0_182 = arith.constant 0 : index
      %397 = vector.load %arg33[%c0_181, %c0_182] : memref<128x128xbf16, #tpu.memory_space<vmem>>, vector<128x128xbf16>
      %cst_183 = arith.constant dense<0.000000e+00> : vector<1x128xf32>
      %398 = tpu.matmul %396, %397, %cst_183 {dimension_numbers = #tpu.dot_dimension_numbers<[1], [0], [0], [1], [0, 0, 1, 1], [], []>} : vector<1x128xbf16>, vector<128x128xbf16>, vector<1x128xf32> -> vector<1x128xf32>
      %c0_184 = arith.constant 0 : index
      %c0_185 = arith.constant 0 : index
      %399 = vector.load %arg34[%c0_184, %c0_185] : memref<1x128xf32, #tpu.memory_space<vmem>>, vector<1x128xf32>
      %400 = arith.addf %398, %399 : vector<1x128xf32>
      %cst_186 = arith.constant 0.000000e+00 : f32
      %401 = vector.broadcast %cst_186 : f32 to vector<1x128xf32>
      %402 = arith.maximumf %400, %401 : vector<1x128xf32>
      %403 = arith.truncf %402 : vector<1x128xf32> to vector<1x128xbf16>
      %c0_187 = arith.constant 0 : index
      %c0_188 = arith.constant 0 : index
      %404 = vector.load %arg35[%c0_187, %c0_188] : memref<128x24xbf16, #tpu.memory_space<vmem>>, vector<128x24xbf16>
      %cst_189 = arith.constant dense<0.000000e+00> : vector<1x24xf32>
      %405 = tpu.matmul %403, %404, %cst_189 {dimension_numbers = #tpu.dot_dimension_numbers<[1], [0], [0], [1], [0, 0, 1, 1], [], []>} : vector<1x128xbf16>, vector<128x24xbf16>, vector<1x24xf32> -> vector<1x24xf32>
      %c0_190 = arith.constant 0 : index
      %c0_191 = arith.constant 0 : index
      %406 = vector.load %arg36[%c0_190, %c0_191] : memref<1x24xf32, #tpu.memory_space<vmem>>, vector<1x24xf32>
      %407 = arith.addf %405, %406 : vector<1x24xf32>
      %c0_192 = arith.constant 0 : index
      %c0_193 = arith.constant 0 : index
      %c0_194 = arith.constant 0 : index
      %408 = vector.load %arg37[%c0_192, %c0_193, %c0_194] : memref<1x1x24xf32, #tpu.memory_space<vmem>>, vector<1x1x24xf32>
      %409 = vector.shape_cast %408 : vector<1x1x24xf32> to vector<1x24xf32>
      %410 = vector.shape_cast %407 : vector<1x24xf32> to vector<1x1x24xf32>
      tpu.vector_store %arg37[%c0_192, %c0_193, %c0_194], %410 {strides = array<i32>} : memref<1x1x24xf32, #tpu.memory_space<vmem>>, vector<1x1x24xf32>,
    } else {
    }
    return
  }
  func.func @transform_0(%arg0: i32, %arg1: i32) -> (i32, i32, i32) {
    %c0_i32 = arith.constant 0 : i32
    %c0_i32_0 = arith.constant 0 : i32
    %c0_i32_1 = arith.constant 0 : i32
    return %arg0, %c0_i32, %c0_i32_0 : i32, i32, i32
  }
  func.func @transform_1(%arg0: i32, %arg1: i32) -> (i32, i32) {
    %c0_i32 = arith.constant 0 : i32
    %c0_i32_0 = arith.constant 0 : i32
    %c0_i32_1 = arith.constant 0 : i32
    return %c0_i32, %c0_i32_0 : i32, i32
  }
  func.func @transform_2(%arg0: i32, %arg1: i32) -> (i32, i32) {
    %c0_i32 = arith.constant 0 : i32
    %c0_i32_0 = arith.constant 0 : i32
    %c0_i32_1 = arith.constant 0 : i32
    return %c0_i32, %c0_i32_0 : i32, i32
  }
  func.func @transform_3(%arg0: i32, %arg1: i32) -> (i32, i32) {
    %c0_i32 = arith.constant 0 : i32
    %c0_i32_0 = arith.constant 0 : i32
    %c0_i32_1 = arith.constant 0 : i32
    return %c0_i32, %c0_i32_0 : i32, i32
  }
  func.func @transform_4(%arg0: i32, %arg1: i32) -> (i32, i32) {
    %c0_i32 = arith.constant 0 : i32
    %c0_i32_0 = arith.constant 0 : i32
    %c0_i32_1 = arith.constant 0 : i32
    return %c0_i32, %c0_i32_0 : i32, i32
  }
  func.func @transform_5(%arg0: i32, %arg1: i32) -> (i32, i32) {
    %c0_i32 = arith.constant 0 : i32
    %c0_i32_0 = arith.constant 0 : i32
    %c0_i32_1 = arith.constant 0 : i32
    return %c0_i32, %c0_i32_0 : i32, i32
  }
  func.func @transform_6(%arg0: i32, %arg1: i32) -> (i32, i32) {
    %c0_i32 = arith.constant 0 : i32
    %c0_i32_0 = arith.constant 0 : i32
    %c0_i32_1 = arith.constant 0 : i32
    return %c0_i32, %c0_i32_0 : i32, i32
  }
  func.func @transform_7(%arg0: i32, %arg1: i32) -> (i32, i32) {
    %c0_i32 = arith.constant 0 : i32
    %c0_i32_0 = arith.constant 0 : i32
    %c0_i32_1 = arith.constant 0 : i32
    return %c0_i32, %c0_i32_0 : i32, i32
  }
  func.func @transform_8(%arg0: i32, %arg1: i32) -> (i32, i32) {
    %c0_i32 = arith.constant 0 : i32
    %c0_i32_0 = arith.constant 0 : i32
    return %arg0, %c0_i32 : i32, i32
  }
  func.func @transform_9(%arg0: i32, %arg1: i32) -> (i32, i32, i32) {
    %c0_i32 = arith.constant 0 : i32
    %c0_i32_0 = arith.constant 0 : i32
    %c0_i32_1 = arith.constant 0 : i32
    return %arg1, %c0_i32, %c0_i32_0 : i32, i32, i32
  }
  func.func @transform_10(%arg0: i32, %arg1: i32) -> (i32, i32, i32) {
    %c0_i32 = arith.constant 0 : i32
    %c0_i32_0 = arith.constant 0 : i32
    %c0_i32_1 = arith.constant 0 : i32
    return %arg1, %c0_i32, %c0_i32_0 : i32, i32, i32
  }
  func.func @transform_11(%arg0: i32, %arg1: i32) -> (i32, i32, i32) {
    %c0_i32 = arith.constant 0 : i32
    %c0_i32_0 = arith.constant 0 : i32
    %c0_i32_1 = arith.constant 0 : i32
    return %arg1, %c0_i32, %c0_i32_0 : i32, i32, i32
  }
  func.func @transform_12(%arg0: i32, %arg1: i32) -> (i32, i32, i32) {
    %c0_i32 = arith.constant 0 : i32
    %c0_i32_0 = arith.constant 0 : i32
    %c0_i32_1 = arith.constant 0 : i32
    return %arg1, %c0_i32, %c0_i32_0 : i32, i32, i32
  }
  func.func @transform_13(%arg0: i32, %arg1: i32) -> (i32, i32, i32) {
    %c0_i32 = arith.constant 0 : i32
    %c0_i32_0 = arith.constant 0 : i32
    %c0_i32_1 = arith.constant 0 : i32
    return %arg1, %c0_i32, %c0_i32_0 : i32, i32, i32
  }
  func.func @transform_14(%arg0: i32, %arg1: i32) -> (i32, i32, i32) {
    %c0_i32 = arith.constant 0 : i32
    %c0_i32_0 = arith.constant 0 : i32
    %c0_i32_1 = arith.constant 0 : i32
    return %arg1, %c0_i32, %c0_i32_0 : i32, i32, i32
  }
  func.func @transform_15(%arg0: i32, %arg1: i32) -> (i32, i32, i32) {
    %c0_i32 = arith.constant 0 : i32
    %c0_i32_0 = arith.constant 0 : i32
    %c0_i32_1 = arith.constant 0 : i32
    return %arg1, %c0_i32, %c0_i32_0 : i32, i32, i32
  }
  func.func @transform_16(%arg0: i32, %arg1: i32) -> (i32, i32, i32) {
    %c0_i32 = arith.constant 0 : i32
    %c0_i32_0 = arith.constant 0 : i32
    %c0_i32_1 = arith.constant 0 : i32
    return %arg1, %c0_i32, %c0_i32_0 : i32, i32, i32
  }
  func.func @transform_17(%arg0: i32, %arg1: i32) -> (i32, i32, i32) {
    %c0_i32 = arith.constant 0 : i32
    %c0_i32_0 = arith.constant 0 : i32
    %c0_i32_1 = arith.constant 0 : i32
    return %arg1, %c0_i32, %c0_i32_0 : i32, i32, i32
  }
  func.func @transform_18(%arg0: i32, %arg1: i32) -> (i32, i32, i32) {
    %c0_i32 = arith.constant 0 : i32
    %c0_i32_0 = arith.constant 0 : i32
    %c0_i32_1 = arith.constant 0 : i32
    return %arg1, %c0_i32, %c0_i32_0 : i32, i32, i32
  }
  func.func @transform_19(%arg0: i32, %arg1: i32) -> (i32, i32, i32) {
    %c0_i32 = arith.constant 0 : i32
    %c0_i32_0 = arith.constant 0 : i32
    %c0_i32_1 = arith.constant 0 : i32
    return %arg1, %c0_i32, %c0_i32_0 : i32, i32, i32
  }
  func.func @transform_20(%arg0: i32, %arg1: i32) -> (i32, i32, i32) {
    %c0_i32 = arith.constant 0 : i32
    %c0_i32_0 = arith.constant 0 : i32
    %c0_i32_1 = arith.constant 0 : i32
    return %arg1, %c0_i32, %c0_i32_0 : i32, i32, i32
  }
  func.func @transform_21(%arg0: i32, %arg1: i32) -> (i32, i32, i32) {
    %c0_i32 = arith.constant 0 : i32
    %c0_i32_0 = arith.constant 0 : i32
    %c0_i32_1 = arith.constant 0 : i32
    return %arg1, %c0_i32, %c0_i32_0 : i32, i32, i32
  }
  func.func @transform_22(%arg0: i32, %arg1: i32) -> (i32, i32, i32) {
    %c0_i32 = arith.constant 0 : i32
    %c0_i32_0 = arith.constant 0 : i32
    %c0_i32_1 = arith.constant 0 : i32
    return %arg1, %c0_i32, %c0_i32_0 : i32, i32, i32
  }
  func.func @transform_23(%arg0: i32, %arg1: i32) -> (i32, i32, i32) {
    %c0_i32 = arith.constant 0 : i32
    %c0_i32_0 = arith.constant 0 : i32
    %c0_i32_1 = arith.constant 0 : i32
    return %arg1, %c0_i32, %c0_i32_0 : i32, i32, i32
  }
  func.func @transform_24(%arg0: i32, %arg1: i32) -> (i32, i32, i32) {
    %c0_i32 = arith.constant 0 : i32
    %c0_i32_0 = arith.constant 0 : i32
    %c0_i32_1 = arith.constant 0 : i32
    return %arg1, %c0_i32, %c0_i32_0 : i32, i32, i32
  }
  func.func @transform_25(%arg0: i32, %arg1: i32) -> (i32, i32, i32) {
    %c0_i32 = arith.constant 0 : i32
    %c0_i32_0 = arith.constant 0 : i32
    %c0_i32_1 = arith.constant 0 : i32
    return %arg1, %c0_i32, %c0_i32_0 : i32, i32, i32
  }
  func.func @transform_26(%arg0: i32, %arg1: i32) -> (i32, i32, i32) {
    %c0_i32 = arith.constant 0 : i32
    %c0_i32_0 = arith.constant 0 : i32
    %c0_i32_1 = arith.constant 0 : i32
    return %arg1, %c0_i32, %c0_i32_0 : i32, i32, i32
  }
  func.func @transform_27(%arg0: i32, %arg1: i32) -> (i32, i32, i32) {
    %c0_i32 = arith.constant 0 : i32
    %c0_i32_0 = arith.constant 0 : i32
    %c0_i32_1 = arith.constant 0 : i32
    return %arg1, %c0_i32, %c0_i32_0 : i32, i32, i32
  }
  func.func @transform_28(%arg0: i32, %arg1: i32) -> (i32, i32, i32) {
    %c0_i32 = arith.constant 0 : i32
    %c0_i32_0 = arith.constant 0 : i32
    %c0_i32_1 = arith.constant 0 : i32
    return %arg1, %c0_i32, %c0_i32_0 : i32, i32, i32
  }
  func.func @transform_29(%arg0: i32, %arg1: i32) -> (i32, i32, i32) {
    %c0_i32 = arith.constant 0 : i32
    %c0_i32_0 = arith.constant 0 : i32
    %c0_i32_1 = arith.constant 0 : i32
    %c0_i32_2 = arith.constant 0 : i32
    return %c0_i32, %c0_i32_0, %c0_i32_1 : i32, i32, i32
  }
  func.func @transform_30(%arg0: i32, %arg1: i32) -> (i32, i32) {
    %c0_i32 = arith.constant 0 : i32
    %c0_i32_0 = arith.constant 0 : i32
    %c0_i32_1 = arith.constant 0 : i32
    return %c0_i32, %c0_i32_0 : i32, i32
  }
  func.func @transform_31(%arg0: i32, %arg1: i32) -> (i32, i32) {
    %c0_i32 = arith.constant 0 : i32
    %c0_i32_0 = arith.constant 0 : i32
    %c0_i32_1 = arith.constant 0 : i32
    return %c0_i32, %c0_i32_0 : i32, i32
  }
  func.func @transform_32(%arg0: i32, %arg1: i32) -> (i32, i32) {
    %c0_i32 = arith.constant 0 : i32
    %c0_i32_0 = arith.constant 0 : i32
    %c0_i32_1 = arith.constant 0 : i32
    return %c0_i32, %c0_i32_0 : i32, i32
  }
  func.func @transform_33(%arg0: i32, %arg1: i32) -> (i32, i32) {
    %c0_i32 = arith.constant 0 : i32
    %c0_i32_0 = arith.constant 0 : i32
    %c0_i32_1 = arith.constant 0 : i32
    return %c0_i32, %c0_i32_0 : i32, i32
  }
  func.func @transform_34(%arg0: i32, %arg1: i32) -> (i32, i32) {
    %c0_i32 = arith.constant 0 : i32
    %c0_i32_0 = arith.constant 0 : i32
    %c0_i32_1 = arith.constant 0 : i32
    return %c0_i32, %c0_i32_0 : i32, i32
  }
  func.func @transform_35(%arg0: i32, %arg1: i32) -> (i32, i32, i32) {
    %c0_i32 = arith.constant 0 : i32
    %c0_i32_0 = arith.constant 0 : i32
    %c0_i32_1 = arith.constant 0 : i32
    return %arg0, %c0_i32, %c0_i32_0 : i32, i32, i32
  }
}

</mosaic_0001>

<bundles_post_ra>
// kernel: _lambda_.3
= control target key start
LH: loop header
LB: loop body
LE: loop exit
PB: predicated region body
PF: predicated region fallthrough
CT: control target
= control target key end

     0   :  { %s6331_s6 = smov 1   ;;  %s6332_s10 = smov 2   ;;  %s7584_s0 = inlined_call_operand.smem [shape: u32[36], index: -1, kind: input, shape index: {}] }
   0x1   :  { %s6404_s5 = sld [smem:[%s7584_s0]]   ;;  %s6333_s14 = smov 3  }
   0x2   :  { %s6409_s9 = sld [smem:[%s7584_s0 + %s6331_s6]]   ;;  %s6334_s18 = smov 4  }
   0x3   :  { %s6414_s13 = sld [smem:[%s7584_s0 + %s6332_s10]]   ;;  %s6335_s22 = smov 5  }
   0x4   :  { %s6419_s17 = sld [smem:[%s7584_s0 + %s6333_s14]]   ;;  %s6336_s26 = smov 6  }
   0x5   :  { %s6424_s21 = sld [smem:[%s7584_s0 + %s6334_s18]]   ;;  %s6337_s30 = smov 7  }
   0x6   :  { %s6429_s25 = sld [smem:[%s7584_s0 + %s6335_s22]]   ;;  %s6338_s4 = smov 8  }
   0x7   :  { %7654 = sst [smem:[#allocation57_spill]] %s6404_s5  ;;  %s6339_s10 = smov 9  }
   0x8   :  { %7655 = sst [smem:[#allocation58_spill]] %s6409_s9  ;;  %s6340_s15 = smov 10  }
   0x9   :  { %7656 = sst [smem:[#allocation59_spill]] %s6414_s13  ;;  %s6341_s20 = smov 11  }
   0xa   :  { %7657 = sst [smem:[#allocation60_spill]] %s6419_s17  ;;  %s6343_s1 = smov 13  }
   0xb   :  { %s6434_s29 = sld [smem:[%s7584_s0 + %s6336_s26]]   ;;  %s6342_s26 = smov 12  }
   0xc   :  { %s6439_s3 = sld [smem:[%s7584_s0 + %s6337_s30]]   ;;  %s6344_s7 = smov 14  }
   0xd   :  { %s6444_s8 = sld [smem:[%s7584_s0 + %s6338_s4]]   ;;  %s6346_s22 = smov 16  }
   0xe   :  { %s6449_s14 = sld [smem:[%s7584_s0 + %s6339_s10]]   ;;  %s6347_s28 = smov 17  }
   0xf   :  { %s6454_s19 = sld [smem:[%s7584_s0 + %s6340_s15]]   ;;  %s6345_s15 = smov 15  }
  0x10   :  { %s6459_s24 = sld [smem:[%s7584_s0 + %s6341_s20]]  }
  0x11   :  { %s6464_s30 = sld [smem:[%s7584_s0 + %s6342_s26]]  }
  0x12   :  { %7658 = sst [smem:[#allocation61_spill]] %s6439_s3 }
  0x13   :  { %7659 = sst [smem:[#allocation62_spill]] %s6444_s8 }
  0x14   :  { %7660 = sst [smem:[#allocation63_spill]] %s6449_s14 }
  0x15   :  { %7661 = sst [smem:[#allocation64_spill]] %s6454_s19 }
  0x16   :  { %7662 = sst [smem:[#allocation65_spill]] %s6459_s24 }
  0x17   :  { %7663 = sst [smem:[#allocation66_spill]] %s6464_s30 }
  0x18   :  { %s6469_s6 = sld [smem:[%s7584_s0 + %s6343_s1]]  }
  0x19   :  { %s6474_s12 = sld [smem:[%s7584_s0 + %s6344_s7]]   ;;  %s6348_s7 = smov 18  }
  0x1a   :  { %s6479_s20 = sld [smem:[%s7584_s0 + %s6345_s15]]   ;;  %s6349_s15 = smov 19  }
  0x1b   :  { %s6484_s27 = sld [smem:[%s7584_s0 + %s6346_s22]]   ;;  %s6350_s22 = smov 20  }
  0x1c   :  { %s6489_s4 = sld [smem:[%s7584_s0 + %s6347_s28]]   ;;  %s6351_s28 = smov 21  }
  0x1d   :  { %s6494_s13 = sld [smem:[%s7584_s0 + %s6348_s7]]   ;;  %s6352_s7 = smov 22  }
  0x1e   :  { %7664 = sst [smem:[#allocation67_spill]] %s6469_s6 }
  0x1f   :  { %7665 = sst [smem:[#allocation68_spill]] %s6474_s12 }
  0x20   :  { %7666 = sst [smem:[#allocation69_spill]] %s6479_s20 }
  0x21   :  { %s6499_s8 = sld [smem:[%s7584_s0 + %s6349_s15]]   ;;  %s6353_s15 = smov 23  }
  0x22   :  { %7667 = sst [smem:[#allocation70_spill]] %s6489_s4 }
  0x23   :  { %7668 = sst [smem:[#allocation71_spill]] %s6494_s13 }
  0x24   :  { %s6504_s6 = sld [smem:[%s7584_s0 + %s6350_s22]]   ;;  %s6354_s22 = smov 24  }
  0x25   :  { %s6509_s30 = sld [smem:[%s7584_s0 + %s6351_s28]]   ;;  %s6355_s28 = smov 25  }
  0x26   :  { %s6514_s19 = sld [smem:[%s7584_s0 + %s6352_s7]]   ;;  %s6356_s7 = smov 26  }
  0x27   :  { %7669 = sst [smem:[#allocation72_spill]] %s6499_s8 }
  0x28   :  { %s6519_s8 = sld [smem:[%s7584_s0 + %s6353_s15]]   ;;  %s6357_s15 = smov 27  }
  0x29   :  { %s6524_s4 = sld [smem:[%s7584_s0 + %s6354_s22]]   ;;  %s6358_s22 = smov 28  }
  0x2a   :  { %7670 = sst [smem:[#allocation73_spill]] %s6504_s6 }
  0x2b   :  { %7671 = sst [smem:[#allocation74_spill]] %s6509_s30 }
  0x2c   :  { %7672 = sst [smem:[#allocation75_spill]] %s6514_s19 }
  0x2d   :  { %s6529_s30 = sld [smem:[%s7584_s0 + %s6355_s28]]   ;;  %s6359_s28 = smov 29  }
  0x2e   :  { %7673 = sst [smem:[#allocation76_spill]] %s6519_s8 }
  0x2f   :  { %7674 = sst [smem:[#allocation77_spill]] %s6524_s4 }
  0x30   :  { %s6534_s20 = sld [smem:[%s7584_s0 + %s6356_s7]]   ;;  %s6360_s7 = smov 30  }
  0x31   :  { %s6539_s8 = sld [smem:[%s7584_s0 + %s6357_s15]]   ;;  %s6361_s15 = smov 31  }
  0x32   :  { %s6544_s24 = sld [smem:[%s7584_s0 + %s6358_s22]]   ;;  %s6362_s22 = smov 32  }
  0x33   :  { %7675 = sst [smem:[#allocation78_spill]] %s6529_s30 }
  0x34   :  { %s6549_s30 = sld [smem:[%s7584_s0 + %s6359_s28]]   ;;  %s6363_s28 = smov 33  }
  0x35   :  { %s6559_s5 = sld [smem:[%s7584_s0 + %s6361_s15]]   ;;  %s6365_s15 = smov 35  }
  0x36   :  { %7676 = sst [smem:[#allocation79_spill]] %s6534_s20 }
  0x37   :  { %7677 = sst [smem:[#allocation80_spill]] %s6539_s8 }
  0x38   :  { %7678 = sst [smem:[#allocation81_spill]] %s6544_s24 }
  0x39   :  { %s6554_s20 = sld [smem:[%s7584_s0 + %s6360_s7]]   ;;  %s6364_s7 = smov 34  }
  0x3a   :  { %7679 = sst [smem:[#allocation82_spill]] %s6549_s30 }
  0x3b   :  { %7681 = sst [smem:[#allocation84_spill]] %s6559_s5 }
  0x3c   :  { %s6564_s24 = sld [smem:[%s7584_s0 + %s6362_s22]]  }
  0x3d   :  { %s6569_s30 = sld [smem:[%s7584_s0 + %s6363_s28]]  }
  0x3e   :  { %s6574_s8 = sld [smem:[%s7584_s0 + %s6364_s7]]  }
  0x3f   :  { %7680 = sst [smem:[#allocation83_spill]] %s6554_s20 }
  0x40   :  { %s6579_s5 = sld [smem:[%s7584_s0 + %s6365_s15]]  }
  0x43   :  { %7682 = sst [smem:[#allocation85_spill]] %s6569_s30 }
  0x44   :  { %7683 = sst [smem:[#allocation86_spill]] %s6574_s8 }
  0x46   :  { %7684 = sst [smem:[#allocation87_spill]] %s6579_s5 }
  0x47   :  { %76 = vsyncpa [#allocation4], 0 }
  0x48   :  { %78 = vsyncpa [#allocation4 + $0x1], 0 }
  0x49   :  { %79 = vsyncpa [#allocation6], 0 }
  0x4a   :  { %80 = vsyncpa [#allocation9], 0 }
  0x4b   :  { %81 = vsyncpa [#allocation12], 0 }
  0x4c   :  { %82 = vsyncpa [#allocation15], 0 }
  0x4d   :  { %84 = vsyncpa [#allocation15 + $0x1], 0 }
  0x4e   :  { %85 = vsyncpa [#allocation18], 0 }
  0x4f   :  { %87 = vsyncpa [#allocation18 + $0x1], 0 }
  0x50   :  { %88 = vsyncpa [#allocation21], 0 }
  0x51   :  { %90 = vsyncpa [#allocation21 + $0x1], 0 }
  0x52   :  { %91 = vsyncpa [#allocation24], 0 }
  0x53   :  { %93 = vsyncpa [#allocation24 + $0x1], 0 }
  0x54   :  { %94 = vsyncpa [#allocation27], 0 }
  0x55   :  { %96 = vsyncpa [#allocation27 + $0x1], 0 }
  0x56   :  { %97 = vsyncpa [#allocation30], 0 }
  0x57   :  { %99 = vsyncpa [#allocation30 + $0x1], 0 }
  0x58   :  { %100 = vsyncpa [#allocation33], 0 }
  0x59   :  { %102 = vsyncpa [#allocation33 + $0x1], 0 }
  0x5a   :  { %103 = vsyncpa [#allocation36], 0 }
  0x5b   :  { %105 = vsyncpa [#allocation36 + $0x1], 0 }
  0x5c   :  { %106 = vsyncpa [#allocation39], 0 }
  0x5d   :  { %107 = vsyncpa [#allocation42], 0  ;;  %s6581_s0 = smov 0   ;;  %s6583_s22 = smov 0  }
  0x5e   :  { %s6585_s23 = smov 0   ;;  %s6587_s26 = smov 0  }
  0x5f   :  { %s6589_s28 = smov 0   ;;  %s6591_s1 = smov 0  }
  0x60   :  { %s6593_s2 = smov 0   ;;  %s6595_s7 = smov 0  }
  0x61   :  { %s6597_s10 = smov 0   ;;  %s6599_s11 = smov 0  }
  0x62   :  { %s6601_s15 = smov 0  }
  0x63 LB: > { %s7685_s20 = sld [smem:[#allocation83_spill]]  ;;  %s7601_s16 = sadd.s32 4294967295, %s6329_s15   ;;  %s6317_s7 = sphi %s6595_s7, %s7802_s7   ;;  %s6313_s2 = sphi %s6593_s2, %s7807_s2   ;;  %s6309_s1 = sphi %s6591_s1, %s7801_s1   ;;  %s6305_s28 = sphi %s6589_s28, %s7800_s28   ;;  %s6301_s26 = sphi %s6587_s26, %s7799_s26   ;;  %s6297_s23 = sphi %s6585_s23, %s7806_s23   ;;  %s6293_s22 = sphi %s6583_s22, %s7805_s22   ;;  %s6289_s0 = sphi %s6581_s0, %s7797_s0   ;;  %s6329_s15 = sphi %s6601_s15, %s113_s15   ;;  %s6325_s11 = sphi %s6599_s11, %s7804_s11   ;;  %s6321_s10 = sphi %s6597_s10, %s7808_s10  }
  0x64   : > { %s7686_s17 = sld [smem:[#allocation60_spill]]  ;;  %s122_s18 = sadd.s32 1, %s6321_s10 }
  0x65   : > { %s7687_s14 = sld [smem:[#allocation63_spill]]  ;;  %p123_p0 = scmp.ge.s32.totalorder %s122_s18, 3 }
  0x66   : > { %s7688_s13 = sld [smem:[#allocation71_spill]]  ;;  %s125_s30 = sadd.s32 1, %s6325_s11 }
  0x67   : > { %s7689_s12 = sld [smem:[#allocation68_spill]]  ;;  %s132_s5 = sadd.s32 1, %s6309_s1 }
  0x68   : > { %s7690_s9 = sld [smem:[#allocation58_spill]]  ;;  %p139_p1 = scmp.ne.s32.totalorder %s6309_s1, %s6305_s28 }
  0x69   : > { %s7691_s8 = sld [smem:[#allocation86_spill]]  ;;  %s7810_s18 = smov (%p123_p0, %s122_s18), 0 }
  0x6a   : > { %s7692_s3 = sld [smem:[#allocation61_spill]]  ;;  %s7812_s30 = smov (!%p123_p0, %s125_s30), %s6325_s11 }
  0x6b   : > { %7693 = sst [smem:[#allocation88_spill]] %s6293_s22  ;;  %p140_p2 = scmp.eq.s32.totalorder %s6329_s15, 0 }
  0x6c   : > { %7694 = sst [smem:[#allocation89_spill]] %s6305_s28  ;;  %p145_p3 = scmp.ne.s32.totalorder %s6305_s28, %s6301_s26 }
  0x6d   : > { %7695 = sst [smem:[#allocation90_spill]] %s6309_s1  ;;  %p127_p4 = scmp.ge.s32.totalorder %s7812_s30, 2 }
  0x6e   : > { %7696 = sst [smem:[#allocation91_spill]] %s6313_s2  ;;  %p6647_p5 = scmp.eq.s32.totalorder %s7601_s16, 0 }
  0x6f   : > { %7697 = sst [smem:[#allocation92_spill]] %s6317_s7  ;;  %p6653_p6 = por %p140_p2, %p139_p1 }
  0x70   : > { %7698 = sst [smem:[#allocation93_spill]] %s6325_s11  ;;  %s328_s4 = ssub.s32 %s6321_s10, %s7810_s18 }
  0x71   : > { %7699 = sst [smem:[#allocation94_spill]] %s7810_s18  ;;  %s7814_s30 = smov (%p127_p4, %s7812_s30), 0 }
  0x72   : > { %s7700_s2 = scalar_select %p6647_p5, 1, 0 }
  0x73   : > { %s7702_s7 = scalar_select %p6653_p6, 1, 0 }
  0x74   : > { %7701 = sst [smem:[#allocation95_spill]] %s7700_s2  ;;  %p6663_p7 = por %p6647_p5, %p145_p3 }
  0x75   : > { %7703 = sst [smem:[#allocation96_spill]] %s7702_s7  ;;  %p329_p8 = scmp.eq.s32.totalorder %s328_s4, 0 }
  0x76   : > { %7704 = sst [smem:[#allocation97_spill]] %s7814_s30  ;;  %s129_s16 = ssub.s32 %s6325_s11, %s7814_s30 }
  0x77   : > { %s7705_s26 = scalar_select %p6663_p7, 1, 0 }
  0x78   : > { %s331_s28 = sadd.s32 1, %s6297_s23  ;;  %p130_p9 = scmp.eq.s32.totalorder %s129_s16, 0 }
  0x79   : > { %7706 = sst [smem:[#allocation98_spill]] %s7705_s26  ;;  %p338_p10 = scmp.ne.s32.totalorder %s6297_s23, %s6293_s22 }
  0x7a   : > { %s6673_s19 = scalar_select %p329_p8, %s6297_s23, %s331_s28  }
  0x7b   : > { %s6676_s7 = scalar_select %p130_p9, %s6309_s1, %s132_s5  }
  0x7c   : > { %7707 = sst [smem:[#allocation99_spill]] %s6673_s19  ;;  %p6680_p11 = por %p338_p10, %p140_p2 }
  0x7d   : > { %7708 = sst [smem:[#allocation100_spill]] %s6676_s7  ;;  %p344_p12 = scmp.ne.s32.totalorder %s6293_s22, %s6289_s0 }
  0x7e   : > { %p4527_p13 = scmp.ge.s32.totalorder %s6329_s15, 1  ;;  %p1001_p0 = scmp.lt.s32.totalorder %s6329_s15, 7 }
  0x7f   : > { %p6690_p1 = por %p344_p12, %p6647_p5  ;;  %s1012_s5 = sshll.u32 %s7690_s9, 4  ;;  %s1013_s5 = int_to_ptr.hbm [resolvable:$true] %s1012_s5 }
  0x80   : > { %p6694_p3 = pnand %p4527_p13, %p1001_p0  ;;  %s6366_s28 = smov [#allocation5]  }
  0x81   : > { %s7710_s4 = scalar_select %p6690_p1, 1, 0 }
  0x82   : > { %s7712_s16 = scalar_select %p6694_p3, 1, 0 }
  0x83   : > { %7711 = sst [smem:[#allocation101_spill]] %s7710_s4  ;;  %p5121_p2 = pneg %p6694_p3 }
  0x84   : > { %7713 = sst [smem:[#allocation102_spill]] %s7712_s16  ;;  %s1014_s0 = sshll.u32 %s6366_s28, 4  ;;  %s1015_s0 = int_to_ptr.vmem [resolvable:$true] %s1014_s0 }
  0x85   : > { %p6703_p4 = pnand %p5121_p2, %p6647_p5  ;;  %s1041_s7 = sshll.u32 %s6424_s21, 4  ;;  %s6708_s7 = int_to_ptr.hbm [resolvable:$true] %s1041_s7 }
  0x86   : > { %s5441_s19 = sshra.s32 %s1013_s5, 4  ;;  %s5448_s28 = scalar_lea.hbm %s7690_s9, 16  ;;  %s5442_s19 = int_to_ptr.hbm [resolvable:$true] %s5441_s19 }
  0x87   : > { %s5443_s4 = scalar_lea.hbm %s5442_s19, 16  ;;  %p6712_p9 = pneg %p6703_p4 }
  0x88   : > { %p5444_p8 = scmp.ne.s32.totalorder %s5442_s19, %s5443_s4  ;;  %p5449_p13 = scmp.lt.s32.totalorder %s5442_s19, %s7690_s9 }
  0x89   : > { %p5450_p0 = scmp.lt.s32.totalorder %s5448_s28, %s5443_s4 }
  0x8a   : > { %p5446_p10 = pnand %p6712_p9, %p5444_p8 }
  0x8b   : > { %p5451_p2 = por %p5450_p0, %p5449_p13 }
  0x8c   : > { %p5447_p12 = pneg %p5446_p10 }
  0x8e   : > { %p5452_p1 = pnand %p5451_p2, %p5447_p12 }
  0x90   : > { %5455 = shalt.err (!%p5452_p1)
}
  0x91   : > { %s6367_s2 = smov 128   ;;  %s6368_s26 = smov 8  }
  0x92   : > { %5124 = dma.hbm_to_vmem [thread:$0]  (!%p6703_p4), %s1013_s5, 256, %s1015_s0, [#allocation6], %s6367_s2, %s6367_s2, %s6368_s26  }
  0x93   : > { %s6369_s16 = smov [#allocation8]   ;;  %s5471_s1 = sshra.s32 %s6708_s7, 4  ;;  %s5472_s1 = int_to_ptr.hbm [resolvable:$true] %s5471_s1 }
  0x94   : > { %s1043_s11 = sshll.u32 %s6369_s16, 4  ;;  %s5473_s6 = scalar_lea.hbm %s5472_s1, 16  ;;  %s1044_s11 = int_to_ptr.vmem [resolvable:$true] %s1043_s11 }
  0x95   : > { %p5474_p8 = scmp.ne.s32.totalorder %s5472_s1, %s5473_s6  ;;  %s5478_s19 = scalar_lea.hbm %s6424_s21, 16 }
  0x96   : > { %p5479_p1 = scmp.lt.s32.totalorder %s5472_s1, %s6424_s21  ;;  %p5480_p13 = scmp.lt.s32.totalorder %s5478_s19, %s5473_s6 }
  0x97   : > { %p5476_p10 = pnand %p5474_p8, %p6712_p9 }
  0x98   : > { %p5481_p0 = por %p5480_p13, %p5479_p1 }
  0x99   : > { %p5477_p12 = pneg %p5476_p10 }
  0x9b   : > { %p5482_p2 = pnand %p5481_p0, %p5477_p12 }
  0x9d   : > { %5485 = shalt.err (!%p5482_p2)
}
  0x9e   : > { %s6370_s4 = smov 64   ;;  %s6371_s2 = smov 4  }
  0x9f   : > { %5130 = dma.hbm_to_vmem [thread:$0]  (!%p6703_p4), %s6708_s7, 256, %s1044_s11, [#allocation9], %s6370_s4, %s6370_s4, %s6371_s2  }
  0xa0   : > { %s1067_s26 = sshll.u32 %s6434_s29, 4  ;;  %s6372_s16 = smov [#allocation11]   ;;  %s1068_s26 = int_to_ptr.hbm [resolvable:$true] %s1067_s26 }
  0xa1   : > { %s1069_s5 = sshll.u32 %s6372_s16, 4  ;;  %s1097_s6 = sshll.u32 %s7685_s20, 4  ;;  %s1070_s5 = int_to_ptr.vmem [resolvable:$true] %s1069_s5  ;;  %s1098_s6 = int_to_ptr.hbm [resolvable:$true] %s1097_s6 }
  0xa2   : > { %s5501_s1 = sshra.s32 %s1068_s26, 4  ;;  %s5508_s28 = scalar_lea.hbm %s6434_s29, 16  ;;  %s5502_s1 = int_to_ptr.hbm [resolvable:$true] %s5501_s1 }
  0xa3   : > { %s5503_s0 = scalar_lea.hbm %s5502_s1, 16  ;;  %p5509_p1 = scmp.lt.s32.totalorder %s5502_s1, %s6434_s29 }
  0xa4   : > { %p5504_p8 = scmp.ne.s32.totalorder %s5502_s1, %s5503_s0  ;;  %p5510_p13 = scmp.lt.s32.totalorder %s5508_s28, %s5503_s0 }
  0xa6   : > { %p5506_p10 = pnand %p5504_p8, %p6712_p9  ;;  %p5511_p0 = por %p5510_p13, %p5509_p1 }
  0xa8   : > { %p5507_p12 = pneg %p5506_p10 }
  0xaa   : > { %p5512_p2 = pnand %p5511_p0, %p5507_p12 }
  0xac   : > { %5515 = shalt.err (!%p5512_p2)
}
  0xad   : > { %5136 = dma.hbm_to_vmem [thread:$0]  (!%p6703_p4), %s1068_s26, 256, %s1070_s5, [#allocation12], %s6370_s4, %s6370_s4, %s6371_s2  }
  0xae   : > { %s6373_s7 = smov [#allocation38]   ;;  %s1030_s19 = sshll.u32 %s7686_s17, 4  ;;  %s6739_s19 = int_to_ptr.hbm [resolvable:$true] %s1030_s19 }
  0xaf   : > { %s1099_s11 = sshll.u32 %s6373_s7, 4  ;;  %s5531_s16 = sshra.s32 %s1098_s6, 4  ;;  %s1100_s11 = int_to_ptr.vmem [resolvable:$true] %s1099_s11  ;;  %s5532_s16 = int_to_ptr.hbm [resolvable:$true] %s5531_s16 }
  0xb0   : > { %s5533_s1 = scalar_lea.hbm %s5532_s16, 1  ;;  %s5538_s0 = scalar_lea.hbm %s7685_s20, 1 }
  0xb1   : > { %p5534_p8 = scmp.ne.s32.totalorder %s5532_s16, %s5533_s1  ;;  %p5539_p1 = scmp.lt.s32.totalorder %s5532_s16, %s7685_s20 }
  0xb2   : > { %p5540_p13 = scmp.lt.s32.totalorder %s5538_s0, %s5533_s1 }
  0xb3   : > { %p5536_p10 = pnand %p5534_p8, %p6712_p9 }
  0xb4   : > { %p5541_p0 = por %p5540_p13, %p5539_p1 }
  0xb5   : > { %p5537_p12 = pneg %p5536_p10 }
  0xb7   : > { %p5542_p2 = pnand %p5541_p0, %p5537_p12 }
  0xb9   : > { %5545 = shalt.err (!%p5542_p2)
}
  0xba   : > { %5142 = dma.hbm_to_vmem [thread:$0]  (!%p6703_p4), %s1098_s6, 16, %s1100_s11, [#allocation39]  }
  0xbb   : > { %s1056_s4 = sshll.u32 %s6429_s25, 4  ;;  %s6374_s2 = smov [#allocation7]   ;;  %s6748_s4 = int_to_ptr.hbm [resolvable:$true] %s1056_s4 }
  0xbc   : > { %s1032_s26 = sshll.u32 %s6374_s2, 4  ;;  %s5561_s5 = sshra.s32 %s6739_s19, 4  ;;  %s1033_s26 = int_to_ptr.vmem [resolvable:$true] %s1032_s26  ;;  %s5562_s5 = int_to_ptr.hbm [resolvable:$true] %s5561_s5 }
  0xbd   : > { %s5563_s28 = scalar_lea.hbm %s5562_s5, 1  ;;  %s5568_s7 = scalar_lea.hbm %s7686_s17, 1 }
  0xbe   : > { %p5564_p8 = scmp.ne.s32.totalorder %s5562_s5, %s5563_s28  ;;  %p5569_p1 = scmp.lt.s32.totalorder %s5562_s5, %s7686_s17 }
  0xbf   : > { %p5570_p13 = scmp.lt.s32.totalorder %s5568_s7, %s5563_s28 }
  0xc0   : > { %p5566_p10 = pnand %p5564_p8, %p6712_p9 }
  0xc1   : > { %p5571_p0 = por %p5570_p13, %p5569_p1 }
  0xc2   : > { %p5567_p12 = pneg %p5566_p10 }
  0xc4   : > { %p5572_p2 = pnand %p5571_p0, %p5567_p12 }
  0xc6   : > { %5575 = shalt.err (!%p5572_p2)
}
  0xc7   : > { %5127 = dma.hbm_to_vmem [thread:$0]  (!%p6703_p4), %s6739_s19, 16, %s1033_s26, [#allocation6]  }
  0xc8   : > { %s6375_s6 = smov [#allocation10]   ;;  %s1082_s16 = sshll.u32 %s7692_s3, 4  ;;  %s6759_s16 = int_to_ptr.hbm [resolvable:$true] %s1082_s16 }
  0xc9   : > { %s1058_s11 = sshll.u32 %s6375_s6, 4  ;;  %s5591_s1 = sshra.s32 %s6748_s4, 4  ;;  %s1059_s11 = int_to_ptr.vmem [resolvable:$true] %s1058_s11  ;;  %s5592_s1 = int_to_ptr.hbm [resolvable:$true] %s5591_s1 }
  0xca   : > { %s5593_s0 = scalar_lea.hbm %s5592_s1, 1  ;;  %s5598_s2 = scalar_lea.hbm %s6429_s25, 1 }
  0xcb   : > { %p5594_p8 = scmp.ne.s32.totalorder %s5592_s1, %s5593_s0  ;;  %p5599_p1 = scmp.lt.s32.totalorder %s5592_s1, %s6429_s25 }
  0xcc   : > { %p5600_p13 = scmp.lt.s32.totalorder %s5598_s2, %s5593_s0 }
  0xcd   : > { %p5596_p10 = pnand %p5594_p8, %p6712_p9 }
  0xce   : > { %p5601_p0 = por %p5600_p13, %p5599_p1 }
  0xcf   : > { %p5597_p12 = pneg %p5596_p10 }
  0xd1   : > { %p5602_p2 = pnand %p5601_p0, %p5597_p12 }
  0xd3   : > { %5605 = shalt.err (!%p5602_p2)
}
  0xd4   : > { %5133 = dma.hbm_to_vmem [thread:$0]  (!%p6703_p4), %s6748_s4, 16, %s1059_s11, [#allocation9]  }
  0xd5   : > { %s1112_s19 = sshll.u32 %s6564_s24, 4  ;;  %s6376_s26 = smov [#allocation13]   ;;  %s6770_s19 = int_to_ptr.hbm [resolvable:$true] %s1112_s19 }
  0xd6   : > { %s1084_s5 = sshll.u32 %s6376_s26, 4  ;;  %s5621_s28 = sshra.s32 %s6759_s16, 4  ;;  %s1085_s5 = int_to_ptr.vmem [resolvable:$true] %s1084_s5  ;;  %s5622_s28 = int_to_ptr.hbm [resolvable:$true] %s5621_s28 }
  0xd7   : > { %s5623_s7 = scalar_lea.hbm %s5622_s28, 1  ;;  %s5628_s6 = scalar_lea.hbm %s7692_s3, 1 }
  0xd8   : > { %p5624_p8 = scmp.ne.s32.totalorder %s5622_s28, %s5623_s7  ;;  %p5629_p1 = scmp.lt.s32.totalorder %s5622_s28, %s7692_s3 }
  0xd9   : > { %p5630_p13 = scmp.lt.s32.totalorder %s5628_s6, %s5623_s7 }
  0xda   : > { %p5626_p10 = pnand %p5624_p8, %p6712_p9 }
  0xdb   : > { %p5631_p0 = por %p5630_p13, %p5629_p1 }
  0xdc   : > { %p5627_p12 = pneg %p5626_p10 }
  0xde   : > { %p5632_p2 = pnand %p5631_p0, %p5627_p12 }
  0xe0   : > { %5635 = shalt.err (!%p5632_p2)
}
  0xe1   : > { %5139 = dma.hbm_to_vmem [thread:$0]  (!%p6703_p4), %s6759_s16, 16, %s1085_s5, [#allocation12]  }
  0xe2   : > { %s6377_s4 = smov [#allocation40]   ;;  %s1127_s1 = sshll.u32 %s7691_s8, 4  ;;  %s1128_s1 = int_to_ptr.hbm [resolvable:$true] %s1127_s1 }
  0xe3   : > { %s1114_s11 = sshll.u32 %s6377_s4, 4  ;;  %s5651_s0 = sshra.s32 %s6770_s19, 4  ;;  %s1115_s11 = int_to_ptr.vmem [resolvable:$true] %s1114_s11  ;;  %s5652_s0 = int_to_ptr.hbm [resolvable:$true] %s5651_s0 }
  0xe4   : > { %s5653_s2 = scalar_lea.hbm %s5652_s0, 1  ;;  %s5658_s26 = scalar_lea.hbm %s6564_s24, 1 }
  0xe5   : > { %p5654_p8 = scmp.ne.s32.totalorder %s5652_s0, %s5653_s2  ;;  %p5659_p1 = scmp.lt.s32.totalorder %s5652_s0, %s6564_s24 }
  0xe6   : > { %p5660_p13 = scmp.lt.s32.totalorder %s5658_s26, %s5653_s2 }
  0xe7   : > { %p5656_p10 = pnand %p5654_p8, %p6712_p9 }
  0xe8   : > { %p5661_p0 = por %p5660_p13, %p5659_p1 }
  0xe9   : > { %p5657_p12 = pneg %p5656_p10 }
  0xeb   : > { %p5662_p2 = pnand %p5661_p0, %p5657_p12 }
  0xed   : > { %5665 = shalt.err (!%p5662_p2)
}
  0xee   : > { %5145 = dma.hbm_to_vmem [thread:$0]  (!%p6703_p4), %s6770_s19, 16, %s1115_s11, [#allocation39]  }
  0xef   : > { %s6378_s16 = smov [#allocation41]   ;;  %s5681_s28 = sshra.s32 %s1128_s1, 4  ;;  %s5682_s28 = int_to_ptr.hbm [resolvable:$true] %s5681_s28 }
  0xf0   : > { %s1129_s5 = sshll.u32 %s6378_s16, 4  ;;  %s5683_s7 = scalar_lea.hbm %s5682_s28, 1  ;;  %s1130_s5 = int_to_ptr.vmem [resolvable:$true] %s1129_s5 }
  0xf1   : > { %p5684_p8 = scmp.ne.s32.totalorder %s5682_s28, %s5683_s7  ;;  %s5688_s6 = scalar_lea.hbm %s7691_s8, 1 }
  0xf2   : > { %p5689_p12 = scmp.lt.s32.totalorder %s5682_s28, %s7691_s8  ;;  %p5690_p13 = scmp.lt.s32.totalorder %s5688_s6, %s5683_s7 }
  0xf3   : > { %p5686_p10 = pnand %p5684_p8, %p6712_p9 }
  0xf4   : > { %p5691_p0 = por %p5690_p13, %p5689_p12 }
  0xf5   : > { %p5687_p1 = pneg %p5686_p10 }
  0xf7   : > { %p5692_p2 = pnand %p5691_p0, %p5687_p1 }
  0xf9   : > { %5695 = shalt.err (!%p5692_p2)
}
  0xfa   : > { %5148 = dma.hbm_to_vmem [thread:$0]  (!%p6703_p4), %s1128_s1, 16, %s1130_s5, [#allocation42]  }
  0xfb   : > { %p4537_p5 = scmp.ge.s32.totalorder %s6329_s15, 6 }
  0xfc   : > { %s6797_s22 = sand.u32 (!%p4537_p5), 1, %s6329_s15   ;;  %s6800_s19 = sand.u32 (!%p4537_p5), 1, %s6297_s23  }
  0xfd   : > { %1136 = sbr.rel (%p4537_p5) target bundleno = 563 (0x233), region = 68  ;;  %s6803_s4 = sshll.u32 (!%p4537_p5), %s6800_s19, 4 }
  0xfe   : > { %s6806_s30 = sshll.u32 (!%p4537_p5), %s6321_s10, 4  ;;  %s1170_s1 = scalar_lea.vmem (!%p4537_p5), [#allocation14], %s6803_s4 }
  0xff   : > { %s1175_s11 = scalar_lea.hbm (!%p4537_p5), %s7687_s14, %s6806_s30  ;;  %s1178_s0 = sshll.u32 (!%p4537_p5), %s1170_s1, 4  ;;  %s1179_s0 = int_to_ptr.vmem [resolvable:$true] %s1178_s0 }
 0x100   : > { %s1176_s2 = sshll.u32 (!%p4537_p5), %s1175_s11, 4  ;;  %s7625_s26 = scalar_lea.sflag (!%p4537_p5), [#allocation15], %s6797_s22  ;;  %s1177_s2 = int_to_ptr.hbm [resolvable:$true] %s1176_s2 }
 0x101   : > { %s5711_s16 = sshra.s32 (!%p4537_p5), %s1177_s2, 4  ;;  %s5717_s28 = scalar_lea.hbm (!%p4537_p5), %s7687_s14, 48  ;;  %s5712_s16 = int_to_ptr.hbm [resolvable:$true] %s5711_s16 }
 0x102   : > { %s5713_s5 = scalar_lea.hbm %s5712_s16, 16  ;;  %p5718_p8 = scmp.lt.s32.totalorder %s5712_s16, %s7687_s14 }
 0x103   : > { %p5714_p5 = scmp.ne.s32.totalorder %s5712_s16, %s5713_s5  ;;  %p5719_p10 = scmp.lt.s32.totalorder %s5717_s28, %s5713_s5 }
 0x105   : > { %p5715_p4 = pnand %p5714_p5, %p6680_p11  ;;  %p5720_p1 = por %p5719_p10, %p5718_p8 }
 0x107   : > { %p5716_p9 = pneg %p5715_p4 }
 0x109   : > { %p5721_p12 = pnand %p5720_p1, %p5716_p9 }
 0x10b   : > { %5724 = shalt.err (!%p5721_p12)
}
 0x10c   : > { %s7628_s7 = smov 64   ;;  %s7630_s6 = smov 4  }
 0x10d   : > { %5070 = dma.hbm_to_vmem [thread:$0]  (%p6680_p11), %s1177_s2, 256, %s1179_s0, %s7625_s26, %s7628_s7, %s7628_s7, %s7630_s6  }
 0x10e   : > { %s1234_s11 = scalar_lea.hbm %s7689_s12, %s6321_s10  ;;  %s1231_s16 = scalar_lea.vmem [#allocation17], %s6800_s19 }
 0x10f   : > { %s1236_s1 = sshll.u32 %s1234_s11, 4  ;;  %s1238_s5 = sshll.u32 %s1231_s16, 4  ;;  %s1237_s1 = int_to_ptr.hbm [resolvable:$true] %s1236_s1  ;;  %s1239_s5 = int_to_ptr.vmem [resolvable:$true] %s1238_s5 }
 0x110   : > { %s7626_s28 = scalar_lea.sflag [#allocation18], %s6797_s22  ;;  %s5739_s3 = sshra.s32 %s1237_s1, 4  ;;  %s5740_s3 = int_to_ptr.hbm [resolvable:$true] %s5739_s3 }
 0x111   : > { %s5741_s8 = scalar_lea.hbm %s5740_s3, 1  ;;  %s5745_s9 = scalar_lea.hbm %s7689_s12, 3 }
 0x112   : > { %p5742_p13 = scmp.ne.s32.totalorder %s5740_s3, %s5741_s8  ;;  %p5746_p5 = scmp.lt.s32.totalorder %s5740_s3, %s7689_s12 }
 0x113   : > { %p5747_p4 = scmp.lt.s32.totalorder %s5745_s9, %s5741_s8 }
 0x114   : > { %p5743_p0 = pnand %p5742_p13, %p6680_p11 }
 0x115   : > { %p5748_p9 = por %p5747_p4, %p5746_p5 }
 0x116   : > { %p5744_p2 = pneg %p5743_p0 }
 0x118   : > { %p5749_p8 = pnand %p5748_p9, %p5744_p2 }
 0x11a   : > { %5752 = shalt.err (!%p5749_p8)
}
 0x11b   : > { %5072 = dma.hbm_to_vmem [thread:$0]  (%p6680_p11), %s1237_s1, 16, %s1239_s5, %s7626_s28  }
 0x11c   : > { %s1273_s0 = scalar_lea.hbm %s6484_s27, %s6321_s10  ;;  %s1270_s2 = scalar_lea.vmem [#allocation20], %s6800_s19 }
 0x11d   : > { %s1277_s11 = sshll.u32 %s1270_s2, 4  ;;  %s1275_s3 = sshll.u32 %s1273_s0, 4  ;;  %s1278_s11 = int_to_ptr.vmem [resolvable:$true] %s1277_s11  ;;  %s1276_s3 = int_to_ptr.hbm [resolvable:$true] %s1275_s3 }
 0x11e   : > { %s7627_s9 = scalar_lea.sflag [#allocation21], %s6797_s22  ;;  %s5767_s8 = sshra.s32 %s1276_s3, 4  ;;  %s5768_s8 = int_to_ptr.hbm [resolvable:$true] %s5767_s8 }
 0x11f   : > { %s5769_s16 = scalar_lea.hbm %s5768_s8, 1  ;;  %s5773_s26 = scalar_lea.hbm %s6484_s27, 3 }
 0x120   : > { %p5770_p10 = scmp.ne.s32.totalorder %s5768_s8, %s5769_s16  ;;  %p5774_p13 = scmp.lt.s32.totalorder %s5768_s8, %s6484_s27 }
 0x121   : > { %p5775_p0 = scmp.lt.s32.totalorder %s5773_s26, %s5769_s16 }
 0x122   : > { %p5771_p1 = pnand %p5770_p10, %p6680_p11 }
 0x123   : > { %p5776_p2 = por %p5775_p0, %p5774_p13 }
 0x124   : > { %p5772_p12 = pneg %p5771_p1 }
 0x126   : > { %p5777_p5 = pnand %p5776_p2, %p5772_p12 }
 0x128   : > { %5780 = shalt.err (!%p5777_p5)
}
 0x129   : > { %5074 = dma.hbm_to_vmem [thread:$0]  (%p6680_p11), %s1276_s3, 16, %s1278_s11, %s7627_s9  }
 0x12a   : > { %s1312_s1 = scalar_lea.hbm %s7688_s13, %s6321_s10  ;;  %s1309_s0 = scalar_lea.vmem [#allocation23], %s6800_s19 }
 0x12b   : > { %s1314_s5 = sshll.u32 %s1312_s1, 4  ;;  %s1316_s2 = sshll.u32 %s1309_s0, 4  ;;  %s1315_s5 = int_to_ptr.hbm [resolvable:$true] %s1314_s5  ;;  %s1317_s2 = int_to_ptr.vmem [resolvable:$true] %s1316_s2 }
 0x12c   : > { %s7632_s26 = scalar_lea.sflag [#allocation24], %s6797_s22  ;;  %s5795_s8 = sshra.s32 %s1315_s5, 4  ;;  %s5796_s8 = int_to_ptr.hbm [resolvable:$true] %s5795_s8 }
 0x12d   : > { %s5797_s16 = scalar_lea.hbm %s5796_s8, 1  ;;  %s5801_s28 = scalar_lea.hbm %s7688_s13, 3 }
 0x12e   : > { %p5798_p4 = scmp.ne.s32.totalorder %s5796_s8, %s5797_s16  ;;  %p5802_p10 = scmp.lt.s32.totalorder %s5796_s8, %s7688_s13 }
 0x12f   : > { %p5803_p1 = scmp.lt.s32.totalorder %s5801_s28, %s5797_s16 }
 0x130   : > { %p5799_p9 = pnand %p5798_p4, %p6680_p11 }
 0x131   : > { %p5804_p12 = por %p5803_p1, %p5802_p10 }
 0x132   : > { %p5800_p8 = pneg %p5799_p9 }
 0x134   : > { %p5805_p13 = pnand %p5804_p12, %p5800_p8 }
 0x136   : > { %5808 = shalt.err (!%p5805_p13)
}
 0x137   : > { %s7716_s11 = sld [smem:[#allocation73_spill]]  ;;  %s1348_s0 = scalar_lea.vmem [#allocation26], %s6800_s19 }
 0x138   : > { %5076 = dma.hbm_to_vmem [thread:$0]  (%p6680_p11), %s1315_s5, 16, %s1317_s2, %s7632_s26  }
 0x139   : > { %s1355_s9 = sshll.u32 %s1348_s0, 4  ;;  %s7633_s28 = scalar_lea.sflag [#allocation27], %s6797_s22  ;;  %s1356_s9 = int_to_ptr.vmem [resolvable:$true] %s1355_s9 }
 0x13d   : > { %s7717_s3 = smov %s7716_s11  ;;  %s1351_s1 = scalar_lea.hbm %s7716_s11, %s6321_s10 }
 0x13e   : > { %s1353_s8 = sshll.u32 %s1351_s1, 4  ;;  %s5829_s6 = scalar_lea.hbm %s7717_s3, 3  ;;  %s1354_s8 = int_to_ptr.hbm [resolvable:$true] %s1353_s8 }
 0x13f   : > { %s5823_s16 = sshra.s32 %s1354_s8, 4  ;;  %s5824_s16 = int_to_ptr.hbm [resolvable:$true] %s5823_s16 }
 0x140   : > { %s5825_s7 = scalar_lea.hbm %s5824_s16, 1  ;;  %p5830_p4 = scmp.lt.s32.totalorder %s5824_s16, %s7717_s3 }
 0x141   : > { %p5826_p0 = scmp.ne.s32.totalorder %s5824_s16, %s5825_s7  ;;  %p5831_p9 = scmp.lt.s32.totalorder %s5829_s6, %s5825_s7 }
 0x143   : > { %p5827_p2 = pnand %p5826_p0, %p6680_p11  ;;  %p5832_p8 = por %p5831_p9, %p5830_p4 }
 0x145   : > { %p5828_p5 = pneg %p5827_p2 }
 0x147   : > { %p5833_p10 = pnand %p5832_p8, %p5828_p5 }
 0x149   : > { %5836 = shalt.err (!%p5833_p10)
}
 0x14a   : > { %s7718_s5 = sld [smem:[#allocation75_spill]]  ;;  %s1382_s1 = scalar_lea.vmem [#allocation29], %s6800_s19 }
 0x14b   : > { %5078 = dma.hbm_to_vmem [thread:$0]  (%p6680_p11), %s1354_s8, 16, %s1356_s9, %s7633_s28  }
 0x14c   : > { %s1389_s0 = sshll.u32 %s1382_s1, 4  ;;  %s7635_s7 = scalar_lea.sflag [#allocation30], %s6797_s22  ;;  %s1390_s0 = int_to_ptr.vmem [resolvable:$true] %s1389_s0 }
 0x150   : > { %s1385_s2 = scalar_lea.hbm %s7718_s5, %s6321_s10  ;;  %s5857_s26 = scalar_lea.hbm %s7718_s5, 3 }
 0x151   : > { %s1387_s11 = sshll.u32 %s1385_s2, 4  ;;  %s1388_s11 = int_to_ptr.hbm [resolvable:$true] %s1387_s11 }
 0x152   : > { %s5851_s6 = sshra.s32 %s1388_s11, 4  ;;  %s5852_s6 = int_to_ptr.hbm [resolvable:$true] %s5851_s6 }
 0x153   : > { %s5853_s16 = scalar_lea.hbm %s5852_s6, 1  ;;  %p5858_p0 = scmp.lt.s32.totalorder %s5852_s6, %s7718_s5 }
 0x154   : > { %p5854_p1 = scmp.ne.s32.totalorder %s5852_s6, %s5853_s16  ;;  %p5859_p2 = scmp.lt.s32.totalorder %s5857_s26, %s5853_s16 }
 0x156   : > { %p5855_p12 = pnand %p5854_p1, %p6680_p11  ;;  %p5860_p5 = por %p5859_p2, %p5858_p0 }
 0x158   : > { %p5856_p13 = pneg %p5855_p12 }
 0x15a   : > { %p5861_p4 = pnand %p5860_p5, %p5856_p13 }
 0x15c   : > { %5864 = shalt.err (!%p5861_p4)
}
 0x15d   : > { %s7719_s9 = sld [smem:[#allocation77_spill]]  ;;  %s1421_s2 = scalar_lea.vmem [#allocation32], %s6800_s19 }
 0x15e   : > { %5080 = dma.hbm_to_vmem [thread:$0]  (%p6680_p11), %s1388_s11, 16, %s1390_s0, %s7635_s7  }
 0x15f   : > { %s1428_s1 = sshll.u32 %s1421_s2, 4  ;;  %s7638_s26 = scalar_lea.sflag [#allocation33], %s6797_s22  ;;  %s1429_s1 = int_to_ptr.vmem [resolvable:$true] %s1428_s1 }
 0x163   : > { %s1424_s8 = scalar_lea.hbm %s7719_s9, %s6321_s10  ;;  %s5885_s3 = scalar_lea.hbm %s7719_s9, 3 }
 0x164   : > { %s1426_s6 = sshll.u32 %s1424_s8, 4  ;;  %s1427_s6 = int_to_ptr.hbm [resolvable:$true] %s1426_s6 }
 0x165   : > { %s5879_s16 = sshra.s32 %s1427_s6, 4  ;;  %s5880_s16 = int_to_ptr.hbm [resolvable:$true] %s5879_s16 }
 0x166   : > { %s5881_s28 = scalar_lea.hbm %s5880_s16, 1  ;;  %p5886_p1 = scmp.lt.s32.totalorder %s5880_s16, %s7719_s9 }
 0x167   : > { %p5882_p9 = scmp.ne.s32.totalorder %s5880_s16, %s5881_s28  ;;  %p5887_p12 = scmp.lt.s32.totalorder %s5885_s3, %s5881_s28 }
 0x169   : > { %p5883_p8 = pnand %p5882_p9, %p6680_p11  ;;  %p5888_p13 = por %p5887_p12, %p5886_p1 }
 0x16b   : > { %p5884_p10 = pneg %p5883_p8 }
 0x16d   : > { %p5889_p0 = pnand %p5888_p13, %p5884_p10 }
 0x16f   : > { %5892 = shalt.err (!%p5889_p0)
}
 0x170   : > { %s7720_s11 = sld [smem:[#allocation80_spill]]  ;;  %s1463_s7 = scalar_lea.vmem [#allocation35], %s6800_s19 }
 0x171   : > { %5082 = dma.hbm_to_vmem [thread:$0]  (%p6680_p11), %s1427_s6, 16, %s1429_s1, %s7638_s26  }
 0x172   : > { %s1470_s16 = sshll.u32 %s1463_s7, 4  ;;  %s7643_s3 = scalar_lea.sflag [#allocation36], %s6797_s22  ;;  %s1471_s16 = int_to_ptr.vmem [resolvable:$true] %s1470_s16 }
 0x176   : > { %s7721_s8 = smov %s7720_s11  ;;  %s1466_s0 = scalar_lea.hbm %s7720_s11, %s6321_s10 }
 0x177   : > { %s1468_s2 = sshll.u32 %s1466_s0, 4  ;;  %s5913_s9 = scalar_lea.hbm %s7721_s8, 3  ;;  %s1469_s2 = int_to_ptr.hbm [resolvable:$true] %s1468_s2 }
 0x178   : > { %s5907_s28 = sshra.s32 %s1469_s2, 4  ;;  %s5908_s28 = int_to_ptr.hbm [resolvable:$true] %s5907_s28 }
 0x179   : > { %s5909_s5 = scalar_lea.hbm %s5908_s28, 1  ;;  %p5914_p9 = scmp.lt.s32.totalorder %s5908_s28, %s7721_s8 }
 0x17a   : > { %p5910_p2 = scmp.ne.s32.totalorder %s5908_s28, %s5909_s5  ;;  %p5915_p8 = scmp.lt.s32.totalorder %s5913_s9, %s5909_s5 }
 0x17c   : > { %p5911_p5 = pnand %p5910_p2, %p6680_p11  ;;  %p5916_p10 = por %p5915_p8, %p5914_p9 }
 0x17e   : > { %p5912_p4 = pneg %p5911_p5 }
 0x180   : > { %p5917_p1 = pnand %p5916_p10, %p5912_p4 }
 0x182   : > { %5920 = shalt.err (!%p5917_p1)
}
 0x183   : > { %s7722_s7 = sld [smem:[#allocation90_spill]] }
 0x184   : > { %s7723_s1 = sld [smem:[#allocation93_spill]] }
 0x185   : > { %s7724_s6 = sld [smem:[#allocation57_spill]] }
 0x186   : > { %5084 = dma.hbm_to_vmem [thread:$0]  (%p6680_p11), %s1469_s2, 16, %s1471_s16, %s7643_s3  }
 0x189   : > { %s1140_s0 = sand.u32 1, %s7722_s7  }
 0x18a   : > { %s1143_s13 = scalar_lea.vmem [#allocation3], %s1140_s0  ;;  %s1141_s5 = scalar_lea.sflag [#allocation4], %s1140_s0 }
 0x18b   : > { %s1146_s26 = scalar_lea.hbm %s7724_s6, %s7723_s1  ;;  %s1150_s28 = sshll.u32 %s1143_s13, 4  ;;  %s1151_s28 = int_to_ptr.vmem [resolvable:$true] %s1150_s28 }
 0x18c   : > { %s1148_s12 = sshll.u32 %s1146_s26, 4  ;;  %s5941_s14 = scalar_lea.hbm %s7724_s6, 2  ;;  %s1149_s12 = int_to_ptr.hbm [resolvable:$true] %s1148_s12 }
 0x18d   : > { %s5935_s9 = sshra.s32 %s1149_s12, 4  ;;  %s5936_s9 = int_to_ptr.hbm [resolvable:$true] %s5935_s9 }
 0x18e   : > { %s5937_s8 = scalar_lea.hbm %s5936_s9, 1  ;;  %p5942_p2 = scmp.lt.s32.totalorder %s5936_s9, %s7724_s6 }
 0x18f   : > { %p5938_p12 = scmp.ne.s32.totalorder %s5936_s9, %s5937_s8  ;;  %p5943_p5 = scmp.lt.s32.totalorder %s5941_s14, %s5937_s8 }
 0x191   : > { %p5939_p13 = pnand %p5938_p12, %p6653_p6  ;;  %p5944_p4 = por %p5943_p5, %p5942_p2 }
 0x193   : > { %p5940_p0 = pneg %p5939_p13 }
 0x195   : > { %p5945_p9 = pnand %p5944_p4, %p5940_p0 }
 0x197   : > { %5948 = shalt.err (!%p5945_p9)
}
 0x198   : > { %s7726_s13 = sld [smem:[#allocation65_spill]]  ;;  %s1198_s16 = scalar_lea.vmem [#allocation16], %s6803_s4 }
 0x199   : > { %5069 = dma.hbm_to_vmem [thread:$0]  (%p6653_p6), %s1149_s12, 16, %s1151_s28, %s1141_s5  }
 0x19a   : > { %s1206_s7 = sshll.u32 %s1198_s16, 4  ;;  %s1207_s7 = int_to_ptr.vmem [resolvable:$true] %s1206_s7 }
 0x19e   : > { %s1203_s26 = scalar_lea.hbm %s7726_s13, %s6806_s30  ;;  %s5969_s8 = scalar_lea.hbm %s7726_s13, 48 }
 0x19f   : > { %s1204_s2 = sshll.u32 %s1203_s26, 4  ;;  %s1205_s2 = int_to_ptr.hbm [resolvable:$true] %s1204_s2 }
 0x1a0   : > { %s5963_s1 = sshra.s32 %s1205_s2, 4  ;;  %s5964_s1 = int_to_ptr.hbm [resolvable:$true] %s5963_s1 }
 0x1a1   : > { %s5965_s14 = scalar_lea.hbm %s5964_s1, 16  ;;  %p5970_p12 = scmp.lt.s32.totalorder %s5964_s1, %s7726_s13 }
 0x1a2   : > { %p5966_p8 = scmp.ne.s32.totalorder %s5964_s1, %s5965_s14  ;;  %p5971_p13 = scmp.lt.s32.totalorder %s5969_s8, %s5965_s14 }
 0x1a4   : > { %p5967_p10 = pnand %p5966_p8, %p6680_p11  ;;  %p5972_p0 = por %p5971_p13, %p5970_p12 }
 0x1a6   : > { %p5968_p1 = pneg %p5967_p10 }
 0x1a8   : > { %p5973_p2 = pnand %p5972_p0, %p5968_p1 }
 0x1aa   : > { %5976 = shalt.err (!%p5973_p2)
}
 0x1ab   : > { %s7727_s12 = smov 4   ;;  %s7728_s11 = smov 64  }
 0x1ac   : > { %s7729_s0 = scalar_lea.sflag [#allocation15], %s6797_s22  ;;  %s7730_s28 = sld [smem:[#allocation69_spill]] }
 0x1ad   : > { %5071 = dma.hbm_to_vmem [thread:$0]  (%p6680_p11), %s1205_s2, 256, %s1207_s7, %s7729_s0, %s7728_s11, %s7728_s11, %s7727_s12  }
 0x1ae   : > { %s1249_s16 = scalar_lea.vmem [#allocation19], %s6803_s4 }
 0x1af   : > { %s1257_s1 = sshll.u32 %s1249_s16, 4  ;;  %s1258_s1 = int_to_ptr.vmem [resolvable:$true] %s1257_s1 }
 0x1b2   : > { %s7731_s5 = smov %s7730_s28  ;;  %s1254_s9 = scalar_lea.hbm %s7730_s28, %s6806_s30 }
 0x1b3   : > { %s1255_s26 = sshll.u32 %s1254_s9, 4  ;;  %s5997_s3 = scalar_lea.hbm %s7731_s5, 48  ;;  %s1256_s26 = int_to_ptr.hbm [resolvable:$true] %s1255_s26 }
 0x1b4   : > { %s5991_s14 = sshra.s32 %s1256_s26, 4  ;;  %s5992_s14 = int_to_ptr.hbm [resolvable:$true] %s5991_s14 }
 0x1b5   : > { %s5993_s8 = scalar_lea.hbm %s5992_s14, 16  ;;  %p5998_p9 = scmp.lt.s32.totalorder %s5992_s14, %s7731_s5 }
 0x1b6   : > { %p5994_p6 = scmp.ne.s32.totalorder %s5992_s14, %s5993_s8  ;;  %p5999_p8 = scmp.lt.s32.totalorder %s5997_s3, %s5993_s8 }
 0x1b8   : > { %p5995_p5 = pnand %p5994_p6, %p6680_p11  ;;  %p6000_p10 = por %p5999_p8, %p5998_p9 }
 0x1ba   : > { %p5996_p4 = pneg %p5995_p5 }
 0x1bc   : > { %p6001_p1 = pnand %p6000_p10, %p5996_p4 }
 0x1be   : > { %6004 = shalt.err (!%p6001_p1)
}
 0x1bf   : > { %s7732_s2 = scalar_lea.sflag [#allocation18], %s6797_s22  ;;  %s7733_s7 = sld [smem:[#allocation70_spill]] }
 0x1c0   : > { %5073 = dma.hbm_to_vmem [thread:$0]  (%p6680_p11), %s1256_s26, 256, %s1258_s1, %s7732_s2, %s7728_s11, %s7728_s11, %s7727_s12  }
 0x1c1   : > { %s1288_s3 = scalar_lea.vmem [#allocation22], %s6803_s4 }
 0x1c2   : > { %s1296_s16 = sshll.u32 %s1288_s3, 4  ;;  %s1297_s16 = int_to_ptr.vmem [resolvable:$true] %s1296_s16 }
 0x1c5   : > { %s7734_s9 = smov %s7733_s7  ;;  %s1293_s0 = scalar_lea.hbm %s7733_s7, %s6806_s30 }
 0x1c6   : > { %s1294_s28 = sshll.u32 %s1293_s0, 4  ;;  %s6025_s5 = scalar_lea.hbm %s7734_s9, 48  ;;  %s1295_s28 = int_to_ptr.hbm [resolvable:$true] %s1294_s28 }
 0x1c7   : > { %s6019_s14 = sshra.s32 %s1295_s28, 4  ;;  %s6020_s14 = int_to_ptr.hbm [resolvable:$true] %s6019_s14 }
 0x1c8   : > { %s6021_s8 = scalar_lea.hbm %s6020_s14, 16  ;;  %p6026_p2 = scmp.lt.s32.totalorder %s6020_s14, %s7734_s9 }
 0x1c9   : > { %p6022_p12 = scmp.ne.s32.totalorder %s6020_s14, %s6021_s8  ;;  %p6027_p6 = scmp.lt.s32.totalorder %s6025_s5, %s6021_s8 }
 0x1cb   : > { %p6023_p13 = pnand %p6022_p12, %p6680_p11  ;;  %p6028_p5 = por %p6027_p6, %p6026_p2 }
 0x1cd   : > { %p6024_p0 = pneg %p6023_p13 }
 0x1cf   : > { %p6029_p4 = pnand %p6028_p5, %p6024_p0 }
 0x1d1   : > { %6032 = shalt.err (!%p6029_p4)
}
 0x1d2   : > { %s7735_s26 = scalar_lea.sflag [#allocation21], %s6797_s22  ;;  %s7736_s1 = sld [smem:[#allocation72_spill]] }
 0x1d3   : > { %5075 = dma.hbm_to_vmem [thread:$0]  (%p6680_p11), %s1295_s28, 256, %s1297_s16, %s7735_s26, %s7728_s11, %s7728_s11, %s7727_s12  }
 0x1d4   : > { %s1327_s5 = scalar_lea.vmem [#allocation25], %s6803_s4 }
 0x1d5   : > { %s1335_s0 = sshll.u32 %s1327_s5, 4  ;;  %s1336_s0 = int_to_ptr.vmem [resolvable:$true] %s1335_s0 }
 0x1d8   : > { %s7737_s3 = smov %s7736_s1  ;;  %s1332_s2 = scalar_lea.hbm %s7736_s1, %s6806_s30 }
 0x1d9   : > { %s1333_s7 = sshll.u32 %s1332_s2, 4  ;;  %s6053_s6 = scalar_lea.hbm %s7737_s3, 48  ;;  %s1334_s7 = int_to_ptr.hbm [resolvable:$true] %s1333_s7 }
 0x1da   : > { %s6047_s14 = sshra.s32 %s1334_s7, 4  ;;  %s6048_s14 = int_to_ptr.hbm [resolvable:$true] %s6047_s14 }
 0x1db   : > { %s6049_s8 = scalar_lea.hbm %s6048_s14, 16  ;;  %p6054_p1 = scmp.lt.s32.totalorder %s6048_s14, %s7737_s3 }
 0x1dc   : > { %p6050_p9 = scmp.ne.s32.totalorder %s6048_s14, %s6049_s8  ;;  %p6055_p12 = scmp.lt.s32.totalorder %s6053_s6, %s6049_s8 }
 0x1de   : > { %p6051_p8 = pnand %p6050_p9, %p6680_p11  ;;  %p6056_p13 = por %p6055_p12, %p6054_p1 }
 0x1e0   : > { %p6052_p10 = pneg %p6051_p8 }
 0x1e2   : > { %p6057_p0 = pnand %p6056_p13, %p6052_p10 }
 0x1e4   : > { %6060 = shalt.err (!%p6057_p0)
}
 0x1e5   : > { %s7738_s28 = scalar_lea.sflag [#allocation24], %s6797_s22  ;;  %s7739_s16 = sld [smem:[#allocation74_spill]] }
 0x1e6   : > { %5077 = dma.hbm_to_vmem [thread:$0]  (%p6680_p11), %s1334_s7, 256, %s1336_s0, %s7738_s28, %s7728_s11, %s7728_s11, %s7727_s12  }
 0x1e7   : > { %s1365_s6 = scalar_lea.vmem [#allocation28], %s6800_s19 }
 0x1e8   : > { %s1372_s2 = sshll.u32 %s1365_s6, 4  ;;  %s1373_s2 = int_to_ptr.vmem [resolvable:$true] %s1372_s2 }
 0x1eb   : > { %s1368_s26 = scalar_lea.hbm %s7739_s16, %s6321_s10  ;;  %s6081_s8 = scalar_lea.hbm %s7739_s16, 3 }
 0x1ec   : > { %s1370_s1 = sshll.u32 %s1368_s26, 4  ;;  %s1371_s1 = int_to_ptr.hbm [resolvable:$true] %s1370_s1 }
 0x1ed   : > { %s6075_s5 = sshra.s32 %s1371_s1, 4  ;;  %s6076_s5 = int_to_ptr.hbm [resolvable:$true] %s6075_s5 }
 0x1ee   : > { %s6077_s14 = scalar_lea.hbm %s6076_s5, 1  ;;  %p6082_p4 = scmp.lt.s32.totalorder %s6076_s5, %s7739_s16 }
 0x1ef   : > { %p6078_p2 = scmp.ne.s32.totalorder %s6076_s5, %s6077_s14  ;;  %p6083_p9 = scmp.lt.s32.totalorder %s6081_s8, %s6077_s14 }
 0x1f1   : > { %p6079_p6 = pnand %p6078_p2, %p6680_p11  ;;  %p6084_p8 = por %p6083_p9, %p6082_p4 }
 0x1f3   : > { %p6080_p5 = pneg %p6079_p6 }
 0x1f5   : > { %p6085_p10 = pnand %p6084_p8, %p6080_p5 }
 0x1f7   : > { %6088 = shalt.err (!%p6085_p10)
}
 0x1f8   : > { %s7740_s7 = scalar_lea.sflag [#allocation27], %s6797_s22  ;;  %s7741_s0 = sld [smem:[#allocation76_spill]] }
 0x1f9   : > { %5079 = dma.hbm_to_vmem [thread:$0]  (%p6680_p11), %s1371_s1, 16, %s1373_s2, %s7740_s7  }
 0x1fa   : > { %s1400_s3 = scalar_lea.vmem [#allocation31], %s6803_s4 }
 0x1fb   : > { %s1408_s9 = sshll.u32 %s1400_s3, 4  ;;  %s1409_s9 = int_to_ptr.vmem [resolvable:$true] %s1408_s9 }
 0x1fe   : > { %s7742_s6 = smov %s7741_s0  ;;  %s1405_s28 = scalar_lea.hbm %s7741_s0, %s6806_s30 }
 0x1ff   : > { %s1406_s26 = sshll.u32 %s1405_s28, 4  ;;  %s6109_s8 = scalar_lea.hbm %s7742_s6, 48  ;;  %s1407_s26 = int_to_ptr.hbm [resolvable:$true] %s1406_s26 }
 0x200   : > { %s6103_s5 = sshra.s32 %s1407_s26, 4  ;;  %s6104_s5 = int_to_ptr.hbm [resolvable:$true] %s6103_s5 }
 0x201   : > { %s6105_s14 = scalar_lea.hbm %s6104_s5, 16  ;;  %p6110_p0 = scmp.lt.s32.totalorder %s6104_s5, %s7742_s6 }
 0x202   : > { %p6106_p1 = scmp.ne.s32.totalorder %s6104_s5, %s6105_s14  ;;  %p6111_p2 = scmp.lt.s32.totalorder %s6109_s8, %s6105_s14 }
 0x204   : > { %p6107_p12 = pnand %p6106_p1, %p6680_p11  ;;  %p6112_p6 = por %p6111_p2, %p6110_p0 }
 0x206   : > { %p6108_p13 = pneg %p6107_p12 }
 0x208   : > { %p6113_p5 = pnand %p6112_p6, %p6108_p13 }
 0x20a   : > { %6116 = shalt.err (!%p6113_p5)
}
 0x20b   : > { %s7743_s4 = scalar_lea.sflag [#allocation30], %s6797_s22  ;;  %s7744_s30 = sld [smem:[#allocation79_spill]] }
 0x20c   : > { %5081 = dma.hbm_to_vmem [thread:$0]  (%p6680_p11), %s1407_s26, 256, %s1409_s9, %s7743_s4, %s7728_s11, %s7728_s11, %s7727_s12  }
 0x20d   : > { %s1446_s2 = scalar_lea.vmem [#allocation34], %s6800_s19 }
 0x20e   : > { %s1453_s7 = sshll.u32 %s1446_s2, 4  ;;  %s1454_s7 = int_to_ptr.vmem [resolvable:$true] %s1453_s7 }
 0x211   : > { %s1449_s3 = scalar_lea.hbm %s7744_s30, %s6321_s10  ;;  %s6137_s5 = scalar_lea.hbm %s7744_s30, 3 }
 0x212   : > { %s1451_s1 = sshll.u32 %s1449_s3, 4  ;;  %s1452_s1 = int_to_ptr.hbm [resolvable:$true] %s1451_s1 }
 0x213   : > { %s6131_s0 = sshra.s32 %s1452_s1, 4  ;;  %s6132_s0 = int_to_ptr.hbm [resolvable:$true] %s6131_s0 }
 0x214   : > { %s6133_s28 = scalar_lea.hbm %s6132_s0, 1  ;;  %p6138_p10 = scmp.lt.s32.totalorder %s6132_s0, %s7744_s30 }
 0x215   : > { %p6134_p4 = scmp.ne.s32.totalorder %s6132_s0, %s6133_s28  ;;  %p6139_p1 = scmp.lt.s32.totalorder %s6137_s5, %s6133_s28 }
 0x217   : > { %p6135_p9 = pnand %p6134_p4, %p6680_p11  ;;  %p6140_p12 = por %p6139_p1, %p6138_p10 }
 0x219   : > { %p6136_p8 = pneg %p6135_p9 }
 0x21b   : > { %p6141_p13 = pnand %p6140_p12, %p6136_p8 }
 0x21d   : > { %6144 = shalt.err (!%p6141_p13)
}
 0x21e   : > { %s7745_s12 = scalar_lea.sflag [#allocation33], %s6797_s22  ;;  %s7746_s11 = sld [smem:[#allocation81_spill]] }
 0x21f   : > { %5083 = dma.hbm_to_vmem [thread:$0]  (%p6680_p11), %s1452_s1, 16, %s1454_s7, %s7745_s12  }
 0x220   : > { %s1480_s8 = scalar_lea.vmem [#allocation37], %s6800_s19 }
 0x221   : > { %s1487_s4 = sshll.u32 %s1480_s8, 4  ;;  %s1488_s4 = int_to_ptr.vmem [resolvable:$true] %s1487_s4 }
 0x224   : > { %s7747_s9 = smov %s7746_s11  ;;  %s1483_s26 = scalar_lea.hbm %s7746_s11, %s6321_s10 }
 0x225   : > { %s1485_s14 = sshll.u32 %s1483_s26, 4  ;;  %s6165_s0 = scalar_lea.hbm %s7747_s9, 3  ;;  %s1486_s14 = int_to_ptr.hbm [resolvable:$true] %s1485_s14 }
 0x226   : > { %s6159_s3 = sshra.s32 %s1486_s14, 4  ;;  %s6160_s3 = int_to_ptr.hbm [resolvable:$true] %s6159_s3 }
 0x227   : > { %s6161_s2 = scalar_lea.hbm %s6160_s3, 1  ;;  %p6166_p5 = scmp.lt.s32.totalorder %s6160_s3, %s7747_s9 }
 0x228   : > { %p6162_p0 = scmp.ne.s32.totalorder %s6160_s3, %s6161_s2  ;;  %p6167_p4 = scmp.lt.s32.totalorder %s6165_s0, %s6161_s2 }
 0x22a   : > { %p6163_p2 = pnand %p6162_p0, %p6680_p11  ;;  %p6168_p9 = por %p6167_p4, %p6166_p5 }
 0x22c   : > { %p6164_p6 = pneg %p6163_p2 }
 0x22e   : > { %p6169_p8 = pnand %p6168_p9, %p6164_p6 }
 0x230   : > { %6172 = shalt.err (!%p6169_p8)
}
 0x231   : > { %s7748_s19 = scalar_lea.sflag [#allocation36], %s6797_s22 }
 0x232   : > { %5085 = dma.hbm_to_vmem [thread:$0]  (%p6680_p11), %s1486_s14, 16, %s1488_s4, %s7748_s19  }
 0x233 PF: > { %1496 = sbr.rel (%p6694_p3) target bundleno = 4824 (0x12d8), region = 160  ;;  %s7750_s7 = sld [smem:[#allocation89_spill]] (!%p6694_p3) }
 0x239   : > { %s1498_s5 = sand.u32 1, %s7750_s7  }
 0x23a   : > { %s1499_s12 = scalar_lea.sflag [#allocation4], %s1498_s5  ;;  %s7022_s11 = scalar_lea.vmem [#allocation3], %s1498_s5 }
 0x23b   : > { %6232 = dma.done.wait (%p6663_p7), %s1499_s12, 16  }
 0x23c   : > { %6234 = vsyncadd (%p6663_p7), %s1499_s12, 4294967280  ;;  %s7752_s26 = sld [smem:[#allocation95_spill]] }
 0x242   : > { %p7753_p10 = scmp.ne.s32.totalorder %s7752_s26, 0 }
 0x244   : > { %6236 = dma.done.wait (%p7753_p10), [#allocation6], 272  }
 0x245   : > { %6238 = vsyncadd (%p7753_p10), [#allocation6], 4294967024 }
 0x246   : > { %6240 = dma.done.wait (%p7753_p10), [#allocation9], 272  }
 0x247   : > { %6242 = vsyncadd (%p7753_p10), [#allocation9], 4294967024 }
 0x248   : > { %6244 = dma.done.wait (%p7753_p10), [#allocation12], 272  }
 0x249   : > { %6246 = vsyncadd (%p7753_p10), [#allocation12], 4294967024  ;;  %s7754_s18 = sadd.s32 4294967295, %s6329_s15   ;;  %s7755_s22 = sld [smem:[#allocation88_spill]] }
 0x24a   : > { %s7756_s14 = sld [smem:[#allocation101_spill]]  ;;  %s7042_s8 = sand.u32 1, %s7754_s18  }
 0x24b   : > { %s1538_s2 = scalar_lea.sflag [#allocation15], %s7042_s8 }
 0x24f   : > { %s7045_s4 = sand.u32 1, %s7755_s22  }
 0x250   : > { %s7048_s3 = sshll.u32 %s7045_s4, 4  ;;  %p7757_p7 = scmp.ne.s32.totalorder %s7756_s14, 0 }
 0x252   : > { %6248 = dma.done.wait (%p7757_p7), %s1538_s2, 512  }
 0x253   : > { %6250 = vsyncadd (%p7757_p7), %s1538_s2, 4294966784  ;;  %s1558_s1 = scalar_lea.sflag [#allocation18], %s7042_s8 }
 0x254   : > { %6252 = dma.done.wait (%p7757_p7), %s1558_s1, 272  }
 0x255   : > { %6254 = vsyncadd (%p7757_p7), %s1558_s1, 4294967024  ;;  %s1577_s5 = scalar_lea.sflag [#allocation21], %s7042_s8 }
 0x256   : > { %6256 = dma.done.wait (%p7757_p7), %s1577_s5, 272  }
 0x257   : > { %6258 = vsyncadd (%p7757_p7), %s1577_s5, 4294967024  ;;  %s1596_s22 = scalar_lea.sflag [#allocation24], %s7042_s8 }
 0x258   : > { %6260 = dma.done.wait (%p7757_p7), %s1596_s22, 272  }
 0x259   : > { %6262 = vsyncadd (%p7757_p7), %s1596_s22, 4294967024  ;;  %s1615_s12 = scalar_lea.sflag [#allocation27], %s7042_s8 }
 0x25a   : > { %6264 = dma.done.wait (%p7757_p7), %s1615_s12, 32  }
 0x25b   : > { %6266 = vsyncadd (%p7757_p7), %s1615_s12, 4294967264  ;;  %s1633_s28 = scalar_lea.sflag [#allocation30], %s7042_s8 }
 0x25c   : > { %6268 = dma.done.wait (%p7757_p7), %s1633_s28, 272  }
 0x25d   : > { %6270 = vsyncadd (%p7757_p7), %s1633_s28, 4294967024  ;;  %s1652_s7 = scalar_lea.sflag [#allocation33], %s7042_s8 }
 0x25e   : > { %6272 = dma.done.wait (%p7757_p7), %s1652_s7, 32  }
 0x25f   : > { %6274 = vsyncadd (%p7757_p7), %s1652_s7, 4294967264  ;;  %s1670_s2 = scalar_lea.sflag [#allocation36], %s7042_s8 }
 0x260   : > { %6276 = dma.done.wait (%p7757_p7), %s1670_s2, 32  }
 0x261   : > { %6278 = vsyncadd (%p7757_p7), %s1670_s2, 4294967264 }
 0x262   : > { %6280 = dma.done.wait (%p7753_p10), [#allocation39], 32  }
 0x263   : > { %6282 = vsyncadd (%p7753_p10), [#allocation39], 4294967264 }
 0x264   : > { %6284 = dma.done.wait (%p7753_p10), [#allocation42], 16  }
 0x265   : > { %6286 = vsyncadd (%p7753_p10), [#allocation42], 4294967280  ;;  %s7758_s8 = sld [smem:[#allocation92_spill]] }
 0x266   : > { %s7759_s7 = sld [smem:[#allocation91_spill]] }
 0x267   : > { %s7760_s14 = sld [smem:[#allocation64_spill]] }
 0x268   : > { %s7761_s2 = sld [smem:[#allocation66_spill]] }
 0x269   : > { %s7762_s5 = sld [smem:[#allocation67_spill]] }
 0x26a   : > { %s7763_s12 = sld [smem:[#allocation62_spill]] }
 0x26b   : > { %s7764_s28 = sld [smem:[#allocation78_spill]]  ;;  %s4572_s22 = sshll.u32 %s7758_s8, 3 }
 0x26c   : > { %s7765_s1 = sld [smem:[#allocation87_spill]]  ;;  %p1876_p11 = scmp.lt.s32.totalorder %s7759_s7, 2 }
 0x26d   : > { %p1871_p3 = scmp.lt.s32.totalorder %s4572_s22, 15  ;;  %p1890_p1 = scmp.lt.s32.totalorder %s7758_s8, 1 }
 0x26e   : > { %s7118_s18 = scalar_select %p1876_p11, %s7759_s7, 2 }
 0x26f   : > { %s7816_s22 = smov (!%p1871_p3, %s4572_s22), 15  ;;  %s7818_s8 = smov (!%p1890_p1, %s7758_s8), 1 }
 0x270   : > { %s1878_s26 = scalar_lea.vmem %s7760_s14, %s7118_s18  ;;  %s1881_s19 = scalar_lea.vmem %s7761_s2, %s7118_s18 }
 0x271   : > { %s4573_s0 = sshll.u32 %s7816_s22, 3  ;;  %s1884_s6 = scalar_lea.vmem %s7762_s5, %s7118_s18 }
 0x272   : > { %s7127_s9 = scalar_lea.vmem %s7763_s12, %s4573_s0  ;;  %s4978_s13 = sshll.u32 %s7118_s18, 6 }
 0x273   : > { %s7131_s16 = scalar_lea.vmem %s7764_s28, %s4978_s13  ;;  %s1892_s17 = scalar_lea.vmem %s7765_s1, %s7818_s8 }
 0x274   : > { %p4576_p12 = scmp.ne.s32.totalorder %s7759_s7, 0 }
 0x275   : > { %s7766_s20 = sld [smem:[#allocation59_spill]] (!%p4576_p12) }
 0x276   : > { %1897 = sbr.rel (%p4576_p12) target bundleno = 1044 (0x414), region = 268 }
 0x27b   : > { %v1900_v0 = vld [vmem:[%s7766_s20] sm:$0x7]  ;;  %vm1906_vm0 = vcmask 1042432   ;;  %vm1902_vm1 = vcmask 48128   ;;  %v4980_v4 = vld [vmem:[#allocation8 + $0x8] sm:$0xff]  ;;  %v4979_v5 = vld [vmem:[#allocation8] sm:$0xff] }
 0x27c   : > { %v1898_v1 = vld [vmem:[%s7022_s11] sm:$0x1]  ;;  %v1908_v2 = vsel %vm1906_vm0, %v1900_v0, 0  ;;  %1952 = vmatpush.bf16.msra.mxu1 %v4980_v4  ;;  %v1901_v6 = vld [vmem:[#allocation7] sm:$0x1]  ;;  %vm1942_vm2 = vcmask 261120  }
 0x27d   : > { %v1899_v3 = vpack.c.bf16 %v1898_v1, %v1898_v1  ;;  %1917 = vmatpush.bf16.msra.mxu0 %v1908_v2  ;;  %v4982_v12 = vld [vmem:[#allocation11 + $0x8] sm:$0xff]  ;;  %v4981_v13 = vld [vmem:[#allocation11] sm:$0xff]  ;;  %v1929_v14 = vld [vmem:[#allocation10] sm:$0x1] }
 0x27e   : > { %1987 = vmatpush.bf16.msra.mxu2 %v4982_v12  ;;  %v1965_v20 = vld [vmem:[#allocation13] sm:$0x1]  ;;  %v1994_v23 = vld [vmem:[#allocation5] sm:$0xff]  ;;  %v1995_v24 = vld [vmem:[#allocation5 + $0x8] sm:$0xff] }
 0x280   : > { %4577 = vmatmul.msk.bf16.vlgmr.msra.gmra.mxu0 %vm1902_vm1, %v1899_v3  ;;  %1953 = vmatpush.bf16.msra.mxu1 %v4979_v5 }
 0x282   : > { %1988 = vmatpush.bf16.msra.mxu2 %v4981_v13 }
 0x2fd   : > { %v1919_v7 = vpop.f32.mrf.mxu0 }
 0x2fe   : > { %v1920_v8 = vadd.f32 %v1919_v7, %v1901_v6 }
 0x300   : > { %v1923_v9 = vmax.f32 %v1920_v8, 0.0 }
 0x302   : > { %v1924_v10 = vpack.c.bf16 %v1923_v9, %v1923_v9 }
 0x304   : > { %4586 = vmatmul.msk.bf16.vlgmr.msra.gmra.mxu1 %vm1942_vm2, %v1924_v10 }
 0x305   : > { %v1921_v11 = vpop.f32.mrf.mxu0 }
 0x381   : > { %v1955_v15 = vpop.f32.mrf.mxu1 }
 0x382   : > { %v1956_v16 = vadd.f32 %v1955_v15, %v1929_v14 }
 0x384   : > { %v1959_v17 = vmax.f32 %v1956_v16, 0.0 }
 0x386   : > { %v1960_v18 = vpack.c.bf16 %v1959_v17, %v1959_v17 }
 0x388   : > { %4595 = vmatmul.msk.bf16.vlgmr.msra.gmra.mxu2 %vm1942_vm2, %v1960_v18 }
 0x389   : > { %v1957_v19 = vpop.f32.mrf.mxu1 }
 0x40b   : > { %v1990_v21 = vpop.f32.mrf.mxu2 }
 0x40c   : > { %v1991_v22 = vadd.f32 %v1990_v21, %v1965_v20 }
 0x40e   : > { %v1996_v25 = vperm.slane %v1991_v22, 0 }
 0x410   : > { %v1997_v26 = vadd.f32 %v1996_v25, %v1994_v23  ;;  %v1998_v27 = vadd.f32 %v1996_v25, %v1995_v24 }
 0x412   : > { %1999 = vst.msk [vmem:[#allocation2] sm:$0xff] %vm1942_vm2, %v1997_v26 }
 0x413   : > { %2000 = vst.msk [vmem:[#allocation2 + $0x8] sm:$0xff] %vm1942_vm2, %v1998_v27  ;;  %v1992_v28 = vpop.f32.mrf.mxu2 }
 0x414 PF: > { %s7767_s20 = scalar_lea.vmem [#allocation14], %s7048_s3  ;;  %vm2032_vm3 = vcmask 261120   ;;  %v5350_v35 = vld [vmem:[%s1878_s26] ss:$0 sm:$0xff]  ;;  %s6381_s0 = smov 104   ;;  %vm2054_vm4 = vcmask 64512  }
 0x415   : > { %v4984_v29 = vld [vmem:[%s7767_s20 + $0x8] sm:$0xff]  ;;  %s7769_s11 = smov %s7767_s20  ;;  %s6382_s1 = smov 120   ;;  %vm2077_vm5 = vcmask 130048   ;;  %vm2356_vm6 = vcmask 195584   ;;  %vm2601_vm14 = vcmask 523264  }
 0x416   : > { %v4983_v30 = vld [vmem:[%s7769_s11] sm:$0xff]  ;;  %2042 = vmatpush.bf16.msra.mxu1 %v4984_v29  ;;  %s6383_s5 = smov 96   ;;  %s6384_s22 = smov 80  }
 0x417   : > { %s6385_s12 = smov 72   ;;  %s6386_s28 = smov 88  }
 0x418   : > { %s6387_s7 = smov 112   ;;  %s6388_s14 = smov 64  }
 0x419   : > { %v7149_v31 = vld [vmem:[#allocation2] sm:$0xff]  ;;  %s6389_s2 = smov 56   ;;  %s6390_s26 = smov 40  }
 0x41a   : > { %v7151_v32 = vld [vmem:[#allocation2 + $0x8] sm:$0xff]  ;;  %2043 = vmatpush.bf16.msra.mxu1 %v4983_v30  ;;  %s6391_s20 = smov 48   ;;  %s6392_s13 = smov 8  }
 0x41b   : > { %v2011_v33 = vpack.c.bf16 %v7151_v32, %v7149_v31  ;;  %s6393_s11 = smov 24   ;;  %s7781_s18 = scalar_lea.vmem [#allocation25], %s7048_s3 }
 0x41d   : > { %4604 = vmatmul.msk.bf16.vlgmr.msra.gmra.mxu1 %vm2032_vm3, %v2011_v33 }
 0x49a   : > { %v2045_v34 = vpop.f32.mrf.mxu1 }
 0x49b   : > { %v2046_v37 = vadd.f32 %v5350_v35, %v2045_v34 }
 0x4a2   : > { %v2047_v36 = vpop.f32.mrf.mxu1 }
 0x4a3   : > { %v2048_v38 = vadd.f32 %v5350_v35, %v2047_v36 }
 0x4a5   : > { %v7159_v39 = vpack.c.bf16 %v2048_v38, %v2046_v37 }
 0x4a7   : > { %2259 = vrot.lane.b32.xlu2 %v7159_v39, %s6381_s0  ;;  %2121 = vrot.lane.b32.xlu1 %v7159_v39, %s6382_s1 }
 0x4a8   : > { %2052 = vrot.lane.b32.xlu0 %v7159_v39, %s6383_s5 }
 0x4af   : > { %2192 = vrot.lane.b32.xlu2 %v7159_v39, %s6384_s22  ;;  %2261 = vrot.lane.b32.xlu1 %v7159_v39, %s6385_s12 }
 0x4b0   : > { %2123 = vrot.lane.b32.xlu0 %v7159_v39, %s6386_s28 }
 0x4b8   : > { %2190 = vrot.lane.b32.xlu0 %v7159_v39, %s6387_s7 }
 0x501   : > { %v2260_v40 = vpop.permute.xlu2 %2259 }
 0x509   : > { %v2193_v41 = vpop.permute.xlu2 %2192 }
 0x50a   : > { %v2198_v42 = vsel %vm2054_vm4, %v2193_v41, 0 }
 0x50b   : > { %2207 = vmatpush.bf16.xpose.msra.mxu0 %v2198_v42 }
 0x519   : > { %v2122_v43 = vpop.permute.xlu1 %2121 }
 0x51a   : > { %v2053_v44 = vpop.permute.xlu0 %2052 }
 0x51b   : > { %v2059_v45 = vsel %vm2054_vm4, %v2053_v44, 0 }
 0x51c   : > { %2068 = vmatpush.bf16.xpose.msrb.mxu1 %v2059_v45 }
 0x521   : > { %v2262_v46 = vpop.permute.xlu1 %2261 }
 0x522   : > { %v2124_v47 = vpop.permute.xlu0 %2123  ;;  %v2267_v48 = vsel %vm2054_vm4, %v2262_v46, 0 }
 0x523   : > { %4605 = vmatmul.msk.bf16.vlgmr.msrb.gmra.mxu1 %vm2054_vm4, %v7159_v39  ;;  %v2129_v49 = vsel %vm2054_vm4, %v2124_v47, 0 }
 0x524   : > { %2138 = vmatpush.bf16.xpose.msra.mxu3 %v2129_v49 }
 0x52a   : > { %v2191_v50 = vpop.permute.xlu0 %2190 }
 0x52b   : > { %4607 = vmatmul.msk.bf16.vlgmr.msra.gmra.mxu3 %vm2054_vm4, %v2122_v43  ;;  %4609 = vmatmul.msk.bf16.vlgmr.msra.gmra.mxu0 %vm2054_vm4, %v2191_v50 }
 0x52c   : > { %2276 = vmatpush.bf16.xpose.msrb.mxu3 %v2267_v48 }
 0x53b   : > { %4611 = vmatmul.msk.bf16.vlgmr.msrb.gmra.mxu3 %vm2054_vm4, %v2260_v40 }
 0x5a0   : > { %v2070_v51 = vpop.f32.mrf.mxu1 }
 0x5a1   : > { %v2075_v52 = vmul.f32 0.35355338, %v2070_v51 }
 0x5a3   : > { %v2078_v53 = vsel %vm2077_vm5, %v2075_v52, -inf }
 0x5a4   : > { %2079 = vmax.xlane.f32.xlu1 %v2078_v53 }
 0x5a8   : > { %v2072_v54 = vpop.f32.mrf.mxu1  ;;  %v2209_v55 = vpop.f32.mrf.mxu0 }
 0x5a9   : > { %v2076_v56 = vmul.f32 0.35355338, %v2072_v54  ;;  %v2214_v57 = vmul.f32 0.35355338, %v2209_v55 }
 0x5ab   : > { %v2081_v58 = vsel %vm2077_vm5, %v2076_v56, -inf  ;;  %v2216_v59 = vsel %vm2077_vm5, %v2214_v57, -inf }
 0x5ac   : > { %2082 = vmax.xlane.f32.xlu2 %v2081_v58  ;;  %2217 = vmax.xlane.f32.xlu0 %v2216_v59 }
 0x5ae   : > { %v2140_v60 = vpop.f32.mrf.mxu3 }
 0x5af   : > { %v2145_v61 = vmul.f32 0.35355338, %v2140_v60 }
 0x5b0   : > { %v2211_v62 = vpop.f32.mrf.mxu0 }
 0x5b1   : > { %v2215_v63 = vmul.f32 0.35355338, %v2211_v62  ;;  %v2147_v0 = vsel %vm2077_vm5, %v2145_v61, -inf }
 0x5b3   : > { %v2219_v1 = vsel %vm2077_vm5, %v2215_v63, -inf }
 0x5b4   : > { %2148 = vmax.xlane.f32.xlu0 %v2147_v0  ;;  %2220 = vmax.xlane.f32.xlu1 %v2219_v1 }
 0x5b6   : > { %v2142_v2 = vpop.f32.mrf.mxu3 }
 0x5b7   : > { %v2146_v3 = vmul.f32 0.35355338, %v2142_v2 }
 0x5b9   : > { %v2150_v4 = vsel %vm2077_vm5, %v2146_v3, -inf }
 0x5ba   : > { %2151 = vmax.xlane.f32.xlu2 %v2150_v4 }
 0x5be   : > { %v2278_v5 = vpop.f32.mrf.mxu3 }
 0x5bf   : > { %v2283_v6 = vmul.f32 0.35355338, %v2278_v5 }
 0x5c1   : > { %v2285_v7 = vsel %vm2077_vm5, %v2283_v6, -inf }
 0x5c2   : > { %2286 = vmax.xlane.f32.xlu1 %v2285_v7 }
 0x5c6   : > { %v2280_v8 = vpop.f32.mrf.mxu3 }
 0x5c7   : > { %v2284_v9 = vmul.f32 0.35355338, %v2280_v8 }
 0x5c9   : > { %v2288_v10 = vsel %vm2077_vm5, %v2284_v9, -inf }
 0x5ca   : > { %2289 = vmax.xlane.f32.xlu2 %v2288_v10 }
 0x5db   : > { %2101 = vrot.lane.b32.xlu1 %v7159_v39, %s6388_s14  ;;  %s6394_s14 = smov 16  }
 0x5e2   : > { %2170 = vrot.lane.b32.xlu2 %v7159_v39, %s6389_s2  ;;  %s7770_s2 = scalar_lea.vmem [#allocation16], %s7048_s3 }
 0x617   : > { %v2080_v11 = vpop.xlane.xlu1 %2079 }
 0x618   : > { %v2084_v12 = vsub.f32 %v2075_v52, %v2080_v11 }
 0x61a   : > { %v2086_v13 = vmul.f32 1.442695, %v2084_v12 }
 0x61c   : > { %5363 = vpow2.f32 %v2086_v13 }
 0x61f   : > { %v2083_v14 = vpop.xlane.xlu2 %2082  ;;  %v2218_v15 = vpop.xlane.xlu0 %2217 }
 0x620   : > { %v2085_v16 = vsub.f32 %v2076_v56, %v2083_v14  ;;  %v2222_v17 = vsub.f32 %v2214_v57, %v2218_v15 }
 0x622   : > { %v7194_v18 = vpop.eup %5363  ;;  %v2088_v19 = vmul.f32 1.442695, %v2085_v16  ;;  %v2224_v20 = vmul.f32 1.442695, %v2222_v17 }
 0x623   : > { %v2090_v21 = vsel %vm2077_vm5, %v7194_v18, 0.0 }
 0x624   : > { %5365 = vpow2.f32 %v2088_v19  ;;  %2091 = vadd.xlane.f32.xlu2 %v2090_v21 }
 0x625   : > { %5367 = vpow2.f32 %v2224_v20 }
 0x627   : > { %v2149_v22 = vpop.xlane.xlu0 %2148  ;;  %v2221_v23 = vpop.xlane.xlu1 %2220 }
 0x628   : > { %v2153_v24 = vsub.f32 %v2145_v61, %v2149_v22  ;;  %v2223_v25 = vsub.f32 %v2215_v63, %v2221_v23 }
 0x62a   : > { %v5366_v26 = vpop.eup %5365  ;;  %v2155_v27 = vmul.f32 1.442695, %v2153_v24  ;;  %v2226_v28 = vmul.f32 1.442695, %v2223_v25 }
 0x62b   : > { %v7198_v29 = vpop.eup %5367  ;;  %v2093_v30 = vsel %vm2077_vm5, %v5366_v26, 0.0 }
 0x62c   : > { %5369 = vpow2.f32 %v2155_v27  ;;  %2094 = vadd.xlane.f32.xlu0 %v2093_v30  ;;  %v2228_v33 = vsel %vm2077_vm5, %v7198_v29, 0.0 }
 0x62d   : > { %5371 = vpow2.f32 %v2226_v28  ;;  %2229 = vadd.xlane.f32.xlu1 %v2228_v33  ;;  %v2152_v34 = vpop.xlane.xlu2 %2151 }
 0x62e   : > { %v2154_v35 = vsub.f32 %v2146_v3, %v2152_v34  ;;  %v4986_v34 = vld [vmem:[%s7770_s2 + $0x8] sm:$0xff] }
 0x62f   : > { %2389 = vmatpush.bf16.msrb.mxu0 %v4986_v34 }
 0x630   : > { %v2157_v36 = vmul.f32 1.442695, %v2154_v35 }
 0x632   : > { %v5370_v37 = vpop.eup %5369  ;;  %5373 = vpow2.f32 %v2157_v36 }
 0x633   : > { %v7203_v38 = vpop.eup %5371  ;;  %v2159_v40 = vsel %vm2077_vm5, %v5370_v37, 0.0 }
 0x634   : > { %2160 = vadd.xlane.f32.xlu2 %v2159_v40  ;;  %v2231_v41 = vsel %vm2077_vm5, %v7203_v38, 0.0 }
 0x635   : > { %2232 = vadd.xlane.f32.xlu0 %v2231_v41  ;;  %v2287_v42 = vpop.xlane.xlu1 %2286 }
 0x636   : > { %v2291_v43 = vsub.f32 %v2283_v6, %v2287_v42 }
 0x638   : > { %v2293_v44 = vmul.f32 1.442695, %v2291_v43  ;;  %v5374_v45 = vpop.eup %5373 }
 0x639   : > { %v2162_v46 = vsel %vm2077_vm5, %v5374_v45, 0.0 }
 0x63a   : > { %5375 = vpow2.f32 %v2293_v44 }
 0x63d   : > { %2163 = vadd.xlane.f32.xlu0 %v2162_v46  ;;  %v2290_v47 = vpop.xlane.xlu2 %2289 }
 0x63e   : > { %v2292_v48 = vsub.f32 %v2284_v9, %v2290_v47 }
 0x640   : > { %v2295_v49 = vmul.f32 1.442695, %v2292_v48  ;;  %v5376_v50 = vpop.eup %5375 }
 0x641   : > { %v2297_v51 = vsel %vm2077_vm5, %v5376_v50, 0.0 }
 0x642   : > { %5377 = vpow2.f32 %v2295_v49 }
 0x645   : > { %2298 = vadd.xlane.f32.xlu0 %v2297_v51  ;;  %v2171_v55 = vpop.permute.xlu2 %2170 }
 0x648   : > { %v5378_v52 = vpop.eup %5377 }
 0x649   : > { %v2300_v53 = vsel %vm2077_vm5, %v5378_v52, 0.0 }
 0x64c   : > { %2308 = vrot.lane.b32.xlu2 %v7159_v39, %s6390_s26  ;;  %s7771_s26 = smov %s7770_s2  ;;  %s7773_s2 = scalar_lea.vmem [#allocation22], %s7048_s3 }
 0x64d   : > { %2301 = vadd.xlane.f32.xlu0 %v2300_v53  ;;  %v2102_v54 = vpop.permute.xlu1 %2101  ;;  %v4985_v35 = vld [vmem:[%s7771_s26] sm:$0xff]  ;;  %s7774_s26 = smov %s7773_s2 }
 0x64e   : > { %2114 = vmatpush.bf16.msra.mxu2 %v2102_v54  ;;  %2390 = vmatpush.bf16.msrb.mxu0 %v4985_v35  ;;  %v4990_v53 = vld [vmem:[%s7773_s2 + $0x8] sm:$0xff] }
 0x64f   : > { %2542 = vmatpush.bf16.msra.mxu3 %v4990_v53  ;;  %v4989_v54 = vld [vmem:[%s7774_s26] sm:$0xff]  ;;  %s7779_s26 = scalar_lea.vmem [#allocation17], %s7045_s4 }
 0x652   : > { %2183 = vmatpush.bf16.msrb.mxu2 %v2171_v55  ;;  %v2003_v55 = vld [vmem:[%s7127_s9] sm:$0xff] }
 0x653   : > { %2543 = vmatpush.bf16.msra.mxu3 %v4989_v54 }
 0x661   : > { %2239 = vrot.lane.b32.xlu0 %v7159_v39, %s6391_s20 }
 0x697   : > { %v2092_v56 = vpop.xlane.xlu2 %2091 }
 0x698   : > { %5379 = vrcp.f32 %v2092_v56  ;;  %v2004_v56 = vld [vmem:[%s7127_s9 + $0x8] sm:$0xff] }
 0x69e   : > { %v5380_v58 = vpop.eup %5379 }
 0x69f   : > { %v2095_v57 = vpop.xlane.xlu0 %2094  ;;  %v2098_v61 = vmul.f32 %v5380_v58, %v7194_v18  ;;  %v5351_v58 = vld [vmem:[%s1881_s19] ss:$0 sm:$0xff]  ;;  %s7776_s19 = scalar_lea.vmem [#allocation19], %s7048_s3 }
 0x6a0   : > { %5381 = vrcp.f32 %v2095_v57  ;;  %v2230_v11 = vpop.xlane.xlu1 %2229  ;;  %v2500_v57 = vpack.c.bf16 %v2004_v56, %v2003_v55  ;;  %s7777_s20 = smov %s7776_s19 }
 0x6a2   : > { %4639 = vmatmul.msk.bf16.vlgmr.msra.gmra.mxu3 %vm2032_vm3, %v2500_v57 }
 0x6a6   : > { %v5382_v59 = vpop.eup %5381 }
 0x6a7   : > { %v2161_v60 = vpop.xlane.xlu2 %2160  ;;  %v2099_v62 = vmul.f32 %v5382_v59, %v5366_v26 }
 0x6a8   : > { %v2233_v63 = vpop.xlane.xlu0 %2232  ;;  %5383 = vrcp.f32 %v2161_v60  ;;  %v2005_v60 = vld [vmem:[%s7127_s9 + $0x10] sm:$0xff] }
 0x6a9   : > { %v2100_v0 = vpack.c.bf16 %v2099_v62, %v2098_v61  ;;  %v2006_v61 = vld [vmem:[%s7127_s9 + $0x18] sm:$0xff] }
 0x6ab   : > { %4606 = vmatmul.msk.bf16.vlgmr.msra.gmra.mxu2 %vm2077_vm5, %v2100_v0  ;;  %v2501_v0 = vpack.c.bf16 %v2006_v61, %v2005_v60 }
 0x6ae   : > { %v5384_v39 = vpop.eup %5383 }
 0x6af   : > { %v2309_v1 = vpop.permute.xlu2 %2308  ;;  %v2167_v4 = vmul.f32 %v5384_v39, %v5370_v37 }
 0x6b0   : > { %v2164_v2 = vpop.xlane.xlu0 %2163  ;;  %2321 = vmatpush.bf16.msra.mxu2 %v2309_v1 }
 0x6b1   : > { %5385 = vrcp.f32 %v2164_v2 }
 0x6b2   : > { %4640 = vmatmul.msk.bf16.gmra.mxu3 %vm2032_vm3, %v2501_v0 }
 0x6b7   : > { %v5386_v3 = vpop.eup %5385 }
 0x6b8   : > { %v2168_v5 = vmul.f32 %v5386_v3, %v5374_v45  ;;  %v2299_v6 = vpop.xlane.xlu0 %2298 }
 0x6b9   : > { %5387 = vrcp.f32 %v2299_v6  ;;  %v2008_v6 = vld [vmem:[%s7127_s9 + $0x28] sm:$0xff] }
 0x6ba   : > { %v2169_v7 = vpack.c.bf16 %v2168_v5, %v2167_v4  ;;  %v2007_v5 = vld [vmem:[%s7127_s9 + $0x20] sm:$0xff] }
 0x6bc   : > { %4608 = vmatmul.msk.bf16.vlgmr.msrb.gmra.mxu2 %vm2077_vm5, %v2169_v7  ;;  %v2502_v7 = vpack.c.bf16 %v2008_v6, %v2007_v5 }
 0x6bf   : > { %v5388_v9 = vpop.eup %5387 }
 0x6c0   : > { %v2302_v8 = vpop.xlane.xlu0 %2301  ;;  %v2305_v12 = vmul.f32 %v5388_v9, %v5376_v50 }
 0x6c1   : > { %5389 = vrcp.f32 %v2302_v8  ;;  %v2009_v8 = vld [vmem:[%s7127_s9 + $0x30] sm:$0xff] }
 0x6c2   : > { %5391 = vrcp.f32 %v2233_v63  ;;  %4641 = vmatmul.msk.bf16.gmra.mxu3 %vm2032_vm3, %v2502_v7 }
 0x6c3   : > { %5393 = vrcp.f32 %v2230_v11 }
 0x6c7   : > { %v5390_v10 = vpop.eup %5389 }
 0x6c8   : > { %v2306_v13 = vmul.f32 %v5390_v10, %v5378_v52  ;;  %v5392_v15 = vpop.eup %5391  ;;  %v6395_v10 = vmov 32.0  }
 0x6c9   : > { %v5394_v16 = vpop.eup %5393  ;;  %v2237_v17 = vmul.f32 %v5392_v15, %v7203_v38  ;;  %5395 = vrcp.f32 %v6395_v10 }
 0x6ca   : > { %v2307_v14 = vpack.c.bf16 %v2306_v13, %v2305_v12  ;;  %v2236_v18 = vmul.f32 %v5394_v16, %v7198_v29 }
 0x6cc   : > { %4612 = vmatmul.msk.bf16.vlgmr.msra.gmra.mxu2 %vm2077_vm5, %v2307_v14  ;;  %v2238_v20 = vpack.c.bf16 %v2237_v17, %v2236_v18 }
 0x6cf   : > { %v5396_v11 = vpop.eup %5395 }
 0x6d0   : > { %v2408_v12 = vmul.f32 32.0, %v5396_v11  ;;  %vm2412_vm7 = vweird.f32 %v5396_v11 }
 0x6d2   : > { %v2409_v13 = vsub.f32 1.0, %v2408_v12  ;;  %v5354_v12 = vld [vmem:[%s7779_s26] ss:$0 sm:$0xff] }
 0x6d3   : > { %v2240_v19 = vpop.permute.xlu0 %2239 }
 0x6d4   : > { %2252 = vmatpush.bf16.msra.mxu1 %v2240_v19 }
 0x6d7   : > { %4610 = vmatmul.msk.bf16.vlgmr.msra.gmra.mxu1 %vm2077_vm5, %v2238_v20 }
 0x725   : > { %v2545_v18 = vpop.f32.mrf.mxu3 }
 0x72e   : > { %v2116_v21 = vpop.f32.mrf.mxu2 }
 0x736   : > { %v2118_v22 = vpop.f32.mrf.mxu2 }
 0x73f   : > { %v2185_v23 = vpop.f32.mrf.mxu2 }
 0x747   : > { %v2187_v24 = vpop.f32.mrf.mxu2 }
 0x748   : > { %v5320_v25 = vpack.i.bf16 %v2187_v24, %v2185_v23 }
 0x74a   : > { %5321 = vrot.lane.b32.xlu2 %v5320_v25, %s6392_s13 }
 0x74f   : > { %v2323_v26 = vpop.f32.mrf.mxu2 }
 0x754   : > { %v2254_v27 = vpop.f32.mrf.mxu1 }
 0x757   : > { %v2325_v28 = vpop.f32.mrf.mxu2 }
 0x758   : > { %v5330_v30 = vpack.i.bf16 %v2325_v28, %v2323_v26  ;;  %v2547_v26 = vpop.f32.mrf.mxu3 }
 0x75a   : > { %5331 = vrot.lane.b32.xlu0 %v5330_v30, %s6393_s11 }
 0x75c   : > { %v2256_v29 = vpop.f32.mrf.mxu1 }
 0x75d   : > { %v5325_v33 = vpack.i.bf16 %v2256_v29, %v2254_v27 }
 0x75f   : > { %5326 = vrot.lane.b32.xlu2 %v5325_v33, %s6394_s14 }
 0x760   : > { %v2550_v34 = vpop.f32.mrf.mxu3 }
 0x7a4   : > { %v5322_v36 = vpop.permute.xlu2 %5321 }
 0x7a5   : > { %v5324_v38 = vunpack.i.h.bf16 %v5322_v36  ;;  %v5323_v40 = vunpack.i.l.bf16 %v5322_v36  ;;  %v2552_v36 = vpop.f32.mrf.mxu3 }
 0x7a7   : > { %v2353_v44 = vsel %vm2054_vm4, %v2118_v22, %v5324_v38  ;;  %v2352_v45 = vsel %vm2054_vm4, %v2116_v21, %v5323_v40 }
 0x7ad   : > { %v2555_v40 = vpop.f32.mrf.mxu3 }
 0x7b9   : > { %v5327_v37 = vpop.permute.xlu2 %5326 }
 0x7ba   : > { %v5329_v41 = vunpack.i.h.bf16 %v5327_v37  ;;  %v5328_v42 = vunpack.i.l.bf16 %v5327_v37 }
 0x7bc   : > { %v2355_v48 = vsel %vm2077_vm5, %v2353_v44, %v5329_v41  ;;  %v2354_v49 = vsel %vm2077_vm5, %v2352_v45, %v5328_v42  ;;  %v2557_v41 = vpop.f32.mrf.mxu3 }
 0x7cc   : > { %v5332_v43 = vpop.permute.xlu0 %5331 }
 0x7cd   : > { %v5334_v46 = vunpack.i.h.bf16 %v5332_v43  ;;  %v5333_v47 = vunpack.i.l.bf16 %v5332_v43 }
 0x7cf   : > { %v2357_v50 = vsel %vm2356_vm6, %v2354_v49, %v5333_v47  ;;  %v2358_v51 = vsel %vm2356_vm6, %v2355_v48, %v5334_v46  ;;  %v4988_v47 = vld [vmem:[%s7776_s19 + $0x8] sm:$0xff] }
 0x7d0   : > { %v2359_v52 = vpack.c.bf16 %v2358_v51, %v2357_v50  ;;  %2492 = vmatpush.bf16.msrb.mxu1 %v4988_v47  ;;  %v4987_v51 = vld [vmem:[%s7777_s20] sm:$0xff] }
 0x7d2   : > { %4621 = vmatmul.msk.bf16.vlgmr.msrb.gmra.mxu0 %vm2032_vm3, %v2359_v52 }
 0x7d4   : > { %2493 = vmatpush.bf16.msrb.mxu1 %v4987_v51 }
 0x84f   : > { %v2392_v59 = vpop.f32.mrf.mxu0 }
 0x850   : > { %v2393_v62 = vadd.f32 %v5351_v58, %v2392_v59 }
 0x852   : > { %v2397_v63 = vadd.f32 %v2393_v62, %v7149_v31  ;;  %v2010_v31 = vld [vmem:[%s7127_s9 + $0x38] sm:$0xff]  ;;  %s7775_s9 = scalar_lea.vmem [#allocation23], %s7045_s4 }
 0x853   : > { %v2503_v9 = vpack.c.bf16 %v2010_v31, %v2009_v8  ;;  %v5352_v21 = vld [vmem:[%s7775_s9] ss:$0 sm:$0xff] }
 0x854   : > { %v2401_v1 = vsel %vm2032_vm3, %v2397_v63, 0.0  ;;  %v2546_v24 = vadd.f32 %v5352_v21, %v2545_v18  ;;  %v2548_v27 = vadd.f32 %v5352_v21, %v2547_v26  ;;  %v2551_v35 = vadd.f32 %v5352_v21, %v2550_v34  ;;  %v5353_v8 = vld [vmem:[%s1884_s6] ss:$0 sm:$0xff]  ;;  %s7780_s6 = scalar_lea.vmem [#allocation20], %s7045_s4 }
 0x855   : > { %2402 = vadd.xlane.f32.xlu2 %v2401_v1  ;;  %4642 = vmatmul.msk.bf16.gmra.mxu3 %vm2032_vm3, %v2503_v9  ;;  %v2553_v37 = vadd.f32 %v5352_v21, %v2552_v36  ;;  %v2556_v50 = vadd.f32 %v5352_v21, %v2555_v40  ;;  %v2558_v53 = vadd.f32 %v5352_v21, %v2557_v41  ;;  %v5355_v41 = vld [vmem:[%s7780_s6] ss:$0 sm:$0xff] }
 0x856   : > { %v7270_v30 = vpack.c.bf16 %v2548_v27, %v2546_v24 }
 0x857   : > { %v2394_v2 = vpop.f32.mrf.mxu0  ;;  %v7275_v38 = vpack.c.bf16 %v2553_v37, %v2551_v35  ;;  %v7290_v54 = vpack.c.bf16 %v2558_v53, %v2556_v50 }
 0x858   : > { %v2395_v39 = vadd.f32 %v5351_v58, %v2394_v2  ;;  %v2574_v10 = vsel %vm2054_vm4, %v7270_v30, 0 }
 0x859   : > { %v2580_v61 = vsel %vm2054_vm4, %v7290_v54, 0 }
 0x85a   : > { %v2398_v3 = vadd.f32 %v2395_v39, %v7151_v32  ;;  %v2410_v32 = vmul.f32 %v5396_v11, %v2409_v13 }
 0x85c   : > { %v2404_v4 = vsel %vm2032_vm3, %v2398_v3, 0.0  ;;  %v2411_v14 = vadd.f32 %v5396_v11, %v2410_v32 }
 0x85d   : > { %2405 = vadd.xlane.f32.xlu1 %v2404_v4 }
 0x85e   : > { %v7257_v15 = vsel %vm2412_vm7, %v5396_v11, %v2411_v14 }
 0x86d   : > { %2665 = vrot.lane.b32.xlu2 %v7290_v54, %s6382_s1 }
 0x875   : > { %2756 = vrot.lane.b32.xlu2 %v7275_v38, %s6387_s7 }
 0x87d   : > { %2754 = vrot.lane.b32.xlu2 %v7270_v30, %s6387_s7 }
 0x885   : > { %2849 = vrot.lane.b32.xlu2 %v7275_v38, %s6381_s0 }
 0x88d   : > { %2633 = vrot.lane.b32.xlu2 %v7290_v54, %s6383_s5 }
 0x8c8   : > { %v2403_v16 = vpop.xlane.xlu2 %2402 }
 0x8c9   : > { %v2414_v17 = vmul.f32 %v7257_v15, %v2403_v16 }
 0x8cb   : > { %v7260_v19 = vsub.f32 %v2397_v63, %v2414_v17 }
 0x8cd   : > { %v2418_v20 = vmul.f32 %v7260_v19, %v7260_v19 }
 0x8cf   : > { %v2420_v22 = vsel %vm2032_vm3, %v2418_v20, 0.0 }
 0x8d0   : > { %v2406_v23 = vpop.xlane.xlu1 %2405  ;;  %2421 = vadd.xlane.f32.xlu0 %v2420_v22  ;;  %v2666_v24 = vpop.permute.xlu2 %2665 }
 0x8d1   : > { %v2415_v25 = vmul.f32 %v7257_v15, %v2406_v23 }
 0x8d3   : > { %v7268_v28 = vsub.f32 %v2398_v3, %v2415_v25  ;;  %v2577_v3 = vsel %vm2054_vm4, %v7275_v38, 0 }
 0x8d5   : > { %v2419_v29 = vmul.f32 %v7268_v28, %v7268_v28 }
 0x8d7   : > { %v2423_v33 = vsel %vm2032_vm3, %v2419_v29, 0.0 }
 0x8d8   : > { %2424 = vadd.xlane.f32.xlu1 %v2423_v33  ;;  %v2560_v42 = vpop.f32.mrf.mxu3  ;;  %v2757_v26 = vpop.permute.xlu2 %2756 }
 0x8d9   : > { %v2561_v44 = vadd.f32 %v5352_v21, %v2560_v42  ;;  %v2769_v27 = vsel %vm2054_vm4, %v2757_v26, 0 }
 0x8e0   : > { %v2562_v43 = vpop.f32.mrf.mxu3  ;;  %v2755_v29 = vpop.permute.xlu2 %2754 }
 0x8e1   : > { %v2563_v45 = vadd.f32 %v5352_v21, %v2562_v43  ;;  %v2766_v33 = vsel %vm2054_vm4, %v2755_v29, 0 }
 0x8e3   : > { %v7279_v46 = vpack.c.bf16 %v2563_v45, %v2561_v44 }
 0x8e4   : > { %2663 = vrot.lane.b32.xlu0 %v7275_v38, %s6382_s1 }
 0x8e5   : > { %v2583_v55 = vsel %vm2054_vm4, %v7279_v46, 0 }
 0x8e6   : > { %2589 = vmatpush.bf16.xpose.msrb.mxu2 %v2583_v55 }
 0x8e8   : > { %v2850_v55 = vpop.permute.xlu2 %2849 }
 0x8ee   : > { %2590 = vmatpush.bf16.xpose.msrb.mxu2 %v2580_v61 }
 0x8f0   : > { %v2634_v61 = vpop.permute.xlu2 %2633 }
 0x8f1   : > { %2667 = vrot.lane.b32.xlu1 %v7279_v46, %s6382_s1 }
 0x8f6   : > { %2591 = vmatpush.bf16.xpose.msrb.mxu2 %v2577_v3 }
 0x8f9   : > { %2760 = vrot.lane.b32.xlu1 %v7279_v46, %s6387_s7 }
 0x8fe   : > { %2592 = vmatpush.bf16.xpose.msrb.mxu2 %v2574_v10 }
 0x901   : > { %2758 = vrot.lane.b32.xlu1 %v7290_v54, %s6387_s7 }
 0x909   : > { %2661 = vrot.lane.b32.xlu1 %v7270_v30, %s6382_s1 }
 0x911   : > { %2853 = vrot.lane.b32.xlu1 %v7279_v46, %s6381_s0 }
 0x943   : > { %v2422_v48 = vpop.xlane.xlu0 %2421 }
 0x944   : > { %v2426_v49 = vmul.f32 %v2422_v48, %v7257_v15 }
 0x946   : > { %v2428_v52 = vadd.f32 1e-05, %v2426_v49 }
 0x948   : > { %5397 = vrsqrt.f32 %v2428_v52  ;;  %vm2436_vm9 = vweird.f32 %v2428_v52 }
 0x94b   : > { %v2425_v56 = vpop.xlane.xlu1 %2424 }
 0x94c   : > { %v2427_v57 = vmul.f32 %v2425_v56, %v7257_v15 }
 0x94e   : > { %v5398_v58 = vpop.eup %5397  ;;  %v2429_v59 = vadd.f32 1e-05, %v2427_v57 }
 0x94f   : > { %v2431_v60 = vmul.f32 %v5398_v58, %v2428_v52  ;;  %vm2437_vm8 = vweird.f32 %v5398_v58 }
 0x950   : > { %5399 = vrsqrt.f32 %v2429_v59  ;;  %vm2438_vm10 = vmor %vm2436_vm9, %vm2437_vm8  ;;  %vm2446_vm12 = vweird.f32 %v2429_v59 }
 0x951   : > { %v2432_v62 = vmul.f32 %v5398_v58, %v2431_v60 }
 0x953   : > { %v2433_v63 = vmul.f32 0.5, %v2432_v62 }
 0x955   : > { %v2434_v0 = vsub.f32 1.5, %v2433_v63 }
 0x956   : > { %v5400_v1 = vpop.eup %5399  ;;  %v2664_v34 = vpop.permute.xlu0 %2663 }
 0x957   : > { %v2435_v2 = vmul.f32 %v5398_v58, %v2434_v0  ;;  %v2441_v39 = vmul.f32 %v5400_v1, %v2429_v59  ;;  %vm2447_vm11 = vweird.f32 %v5400_v1  ;;  %v2676_v35 = vsel %vm2054_vm4, %v2664_v34, 0 }
 0x958   : > { %vm2448_vm13 = vmor %vm2446_vm12, %vm2447_vm11 }
 0x959   : > { %v2442_v4 = vmul.f32 %v5400_v1, %v2441_v39  ;;  %v2439_v5 = vsel %vm2438_vm10, %v5398_v58, %v2435_v2  ;;  %v2862_v58 = vsel %vm2054_vm4, %v2850_v55, 0 }
 0x95a   : > { %v2450_v31 = vmul.f32 %v2439_v5, %v7260_v19 }
 0x95b   : > { %v2443_v6 = vmul.f32 0.5, %v2442_v4 }
 0x95c   : > { %v2455_v13 = vmul.f32 %v5353_v8, %v2450_v31 }
 0x95d   : > { %v2444_v7 = vsub.f32 1.5, %v2443_v6 }
 0x95e   : > { %v7322_v16 = vadd.f32 %v5354_v12, %v2455_v13 }
 0x95f   : > { %v2445_v9 = vmul.f32 %v5400_v1, %v2444_v7 }
 0x961   : > { %v2449_v11 = vsel %vm2448_vm13, %v5400_v1, %v2445_v9 }
 0x962   : > { %v2451_v32 = vmul.f32 %v2449_v11, %v7268_v28  ;;  %v2679_v28 = vsel %vm2054_vm4, %v2666_v24, 0 }
 0x963   : > { %v2668_v19 = vpop.permute.xlu1 %2667 }
 0x964   : > { %v2456_v14 = vmul.f32 %v5353_v8, %v2451_v32  ;;  %v2682_v20 = vsel %vm2054_vm4, %v2668_v19, 0 }
 0x965   : > { %2688 = vmatpush.bf16.xpose.msra.mxu1 %v2682_v20 }
 0x966   : > { %v7324_v17 = vadd.f32 %v5354_v12, %v2456_v14 }
 0x968   : > { %v2462_v18 = vpack.c.bf16 %v7324_v17, %v7322_v16 }
 0x96a   : > { %4630 = vmatmul.msk.bf16.vlgmr.msrb.gmra.mxu1 %vm2032_vm3, %v2462_v18 }
 0x96b   : > { %v2761_v21 = vpop.permute.xlu1 %2760 }
 0x96c   : > { %v2775_v22 = vsel %vm2054_vm4, %v2761_v21, 0 }
 0x96d   : > { %2781 = vmatpush.bf16.xpose.msra.mxu2 %v2775_v22  ;;  %2689 = vmatpush.bf16.xpose.msra.mxu1 %v2679_v28 }
 0x973   : > { %v2759_v23 = vpop.permute.xlu1 %2758 }
 0x974   : > { %v2772_v25 = vsel %vm2054_vm4, %v2759_v23, 0 }
 0x975   : > { %2782 = vmatpush.bf16.xpose.msra.mxu2 %v2772_v25  ;;  %2690 = vmatpush.bf16.xpose.msra.mxu1 %v2676_v35 }
 0x97b   : > { %v2662_v37 = vpop.permute.xlu1 %2661 }
 0x97c   : > { %v2673_v40 = vsel %vm2054_vm4, %v2662_v37, 0 }
 0x97d   : > { %2783 = vmatpush.bf16.xpose.msra.mxu2 %v2769_v27  ;;  %2691 = vmatpush.bf16.xpose.msra.mxu1 %v2673_v40 }
 0x983   : > { %v2854_v47 = vpop.permute.xlu1 %2853 }
 0x984   : > { %v2868_v48 = vsel %vm2054_vm4, %v2854_v47, 0 }
 0x985   : > { %2784 = vmatpush.bf16.xpose.msra.mxu2 %v2766_v33  ;;  %2874 = vmatpush.bf16.xpose.msrb.mxu1 %v2868_v48 }
 0x9e7   : > { %v2495_v36 = vpop.f32.mrf.mxu1 }
 0x9e8   : > { %v2496_v43 = vadd.f32 %v5355_v41, %v2495_v36 }
 0x9ef   : > { %v2497_v42 = vpop.f32.mrf.mxu1 }
 0x9f0   : > { %v2498_v44 = vadd.f32 %v5355_v41, %v2497_v42 }
 0x9f2   : > { %v2565_v45 = vpack.c.bf16 %v2498_v44, %v2496_v43 }
 0x9f4   : > { %2752 = vrot.lane.b32.xlu1 %v2565_v45, %s6387_s7  ;;  %2659 = vrot.lane.b32.xlu0 %v2565_v45, %s6382_s1  ;;  %s7783_s1 = scalar_lea.vmem [#allocation26], %s7045_s4  ;;  %s7789_s7 = scalar_lea.vmem [#allocation34], %s7045_s4 }
 0x9f5   : > { %4643 = vmatmul.msk.bf16.vlgmr.msrb.gmra.mxu2 %vm2054_vm4, %v2565_v45 }
 0x9fc   : > { %2845 = vrot.lane.b32.xlu1 %v2565_v45, %s6381_s0  ;;  %2851 = vrot.lane.b32.xlu0 %v7290_v54, %s6381_s0 }
 0xa04   : > { %2635 = vrot.lane.b32.xlu1 %v7279_v46, %s6383_s5  ;;  %2847 = vrot.lane.b32.xlu0 %v7270_v30, %s6381_s0  ;;  %s7782_s0 = smov %s7781_s18 }
 0xa0c   : > { %2629 = vrot.lane.b32.xlu1 %v7270_v30, %s6383_s5  ;;  %2631 = vrot.lane.b32.xlu0 %v7275_v38, %s6383_s5  ;;  %s7784_s5 = scalar_lea.vmem [#allocation31], %s7048_s3  ;;  %s7786_s3 = scalar_lea.vmem [#allocation28], %s7045_s4 }
 0xa14   : > { %2729 = vrot.lane.b32.xlu1 %v7279_v46, %s6386_s28 }
 0xa1c   : > { %2727 = vrot.lane.b32.xlu1 %v7290_v54, %s6386_s28 }
 0xa24   : > { %2725 = vrot.lane.b32.xlu1 %v7275_v38, %s6386_s28 }
 0xa2c   : > { %2723 = vrot.lane.b32.xlu1 %v7270_v30, %s6386_s28  ;;  %s7788_s28 = scalar_lea.vmem [#allocation32], %s7045_s4 }
 0xa66   : > { %v2753_v49 = vpop.permute.xlu1 %2752  ;;  %v2660_v50 = vpop.permute.xlu0 %2659 }
 0xa67   : > { %4645 = vmatmul.msk.bf16.vlgmr.msra.gmra.mxu1 %vm2054_vm4, %v2660_v50  ;;  %4647 = vmatmul.msk.bf16.vlgmr.msra.gmra.mxu2 %vm2054_vm4, %v2753_v49 }
 0xa6e   : > { %v2846_v51 = vpop.permute.xlu1 %2845  ;;  %v2852_v52 = vpop.permute.xlu0 %2851 }
 0xa6f   : > { %v2865_v53 = vsel %vm2054_vm4, %v2852_v52, 0 }
 0xa70   : > { %2875 = vmatpush.bf16.xpose.msrb.mxu1 %v2865_v53 }
 0xa76   : > { %v2636_v56 = vpop.permute.xlu1 %2635  ;;  %v2848_v57 = vpop.permute.xlu0 %2847 }
 0xa77   : > { %2648 = vmatpush.bf16.msra.mxu0 %v2636_v56  ;;  %v2859_v1 = vsel %vm2054_vm4, %v2848_v57, 0 }
 0xa78   : > { %v2594_v59 = vpop.f32.mrf.mxu2  ;;  %2876 = vmatpush.bf16.xpose.msrb.mxu1 %v2862_v58 }
 0xa79   : > { %v2599_v60 = vmul.f32 0.35355338, %v2594_v59 }
 0xa7b   : > { %v2602_v62 = vsel %vm2601_vm14, %v2599_v60, -inf  ;;  %2649 = vmatpush.bf16.msra.mxu0 %v2634_v61 }
 0xa7c   : > { %2603 = vmax.xlane.f32.xlu2 %v2602_v62 }
 0xa7e   : > { %v2630_v63 = vpop.permute.xlu1 %2629  ;;  %v2632_v0 = vpop.permute.xlu0 %2631 }
 0xa7f   : > { %2650 = vmatpush.bf16.msra.mxu0 %v2632_v0 }
 0xa80   : > { %v2596_v2 = vpop.f32.mrf.mxu2  ;;  %2877 = vmatpush.bf16.xpose.msrb.mxu1 %v2859_v1 }
 0xa81   : > { %v2600_v39 = vmul.f32 0.35355338, %v2596_v2 }
 0xa83   : > { %v2605_v3 = vsel %vm2601_vm14, %v2600_v39, -inf  ;;  %2651 = vmatpush.bf16.msra.mxu0 %v2630_v63 }
 0xa84   : > { %2606 = vmax.xlane.f32.xlu0 %v2605_v3 }
 0xa86   : > { %v2730_v4 = vpop.permute.xlu1 %2729 }
 0xa87   : > { %2742 = vmatpush.bf16.msrb.mxu0 %v2730_v4  ;;  %4649 = vmatmul.msk.bf16.vlgmr.msrb.gmra.mxu1 %vm2054_vm4, %v2846_v51 }
 0xa8e   : > { %v2728_v5 = vpop.permute.xlu1 %2727 }
 0xa8f   : > { %2743 = vmatpush.bf16.msrb.mxu0 %v2728_v5 }
 0xa96   : > { %v2726_v6 = vpop.permute.xlu1 %2725 }
 0xa97   : > { %2744 = vmatpush.bf16.msrb.mxu0 %v2726_v6 }
 0xa9e   : > { %v2724_v7 = vpop.permute.xlu1 %2723 }
 0xa9f   : > { %2745 = vmatpush.bf16.msrb.mxu0 %v2724_v7 }
 0xae4   : > { %v2693_v8 = vpop.f32.mrf.mxu1 }
 0xae5   : > { %v2698_v31 = vmul.f32 0.35355338, %v2693_v8 }
 0xae7   : > { %v2700_v9 = vsel %vm2601_vm14, %v2698_v31, -inf }
 0xae8   : > { %2701 = vmax.xlane.f32.xlu1 %v2700_v9 }
 0xaea   : > { %v2786_v10 = vpop.f32.mrf.mxu2 }
 0xaeb   : > { %v2791_v11 = vmul.f32 0.35355338, %v2786_v10 }
 0xaec   : > { %v2695_v12 = vpop.f32.mrf.mxu1 }
 0xaed   : > { %v2699_v13 = vmul.f32 0.35355338, %v2695_v12  ;;  %v2793_v32 = vsel %vm2601_vm14, %v2791_v11, -inf }
 0xaee   : > { %2794 = vmax.xlane.f32.xlu0 %v2793_v32 }
 0xaef   : > { %v2703_v14 = vsel %vm2601_vm14, %v2699_v13, -inf  ;;  %v2604_v24 = vpop.xlane.xlu2 %2603 }
 0xaf0   : > { %2704 = vmax.xlane.f32.xlu2 %v2703_v14  ;;  %v2608_v27 = vsub.f32 %v2599_v60, %v2604_v24 }
 0xaf2   : > { %v2788_v18 = vpop.f32.mrf.mxu2  ;;  %v2610_v29 = vmul.f32 1.442695, %v2608_v27 }
 0xaf3   : > { %v2792_v19 = vmul.f32 0.35355338, %v2788_v18 }
 0xaf5   : > { %v2796_v20 = vsel %vm2601_vm14, %v2792_v19, -inf }
 0xaf6   : > { %2797 = vmax.xlane.f32.xlu1 %v2796_v20 }
 0xaf7   : > { %v2607_v22 = vpop.xlane.xlu0 %2606 }
 0xaf8   : > { %v2609_v23 = vsub.f32 %v2600_v39, %v2607_v22 }
 0xafa   : > { %v2612_v26 = vmul.f32 1.442695, %v2609_v23 }
 0xafc   : > { %5401 = vpow2.f32 %v2612_v26 }
 0xafd   : > { %5403 = vpow2.f32 %v2610_v29 }
 0xb02   : > { %2818 = vrot.lane.b32.xlu0 %v7275_v38, %s6384_s22  ;;  %v5402_v35 = vpop.eup %5401 }
 0xb03   : > { %v2617_v37 = vsel %vm2601_vm14, %v5402_v35, 0.0  ;;  %v5404_v40 = vpop.eup %5403 }
 0xb04   : > { %v2879_v21 = vpop.f32.mrf.mxu1  ;;  %v2614_v41 = vsel %vm2601_vm14, %v5404_v40, 0.0 }
 0xb05   : > { %v2884_v34 = vmul.f32 0.35355338, %v2879_v21 }
 0xb07   : > { %v2886_v36 = vsel %vm2601_vm14, %v2884_v34, -inf }
 0xb08   : > { %2820 = vrot.lane.b32.xlu2 %v7290_v54, %s6384_s22 }
 0xb0c   : > { %v2881_v25 = vpop.f32.mrf.mxu1 }
 0xb0d   : > { %v2885_v28 = vmul.f32 0.35355338, %v2881_v25 }
 0xb0f   : > { %2822 = vrot.lane.b32.xlu1 %v7279_v46, %s6384_s22  ;;  %v2889_v33 = vsel %vm2601_vm14, %v2885_v28, -inf }
 0xb2c   : > { %2890 = vmax.xlane.f32.xlu0 %v2889_v33 }
 0xb31   : > { %2887 = vmax.xlane.f32.xlu2 %v2886_v36 }
 0xb34   : > { %2618 = vadd.xlane.f32.xlu0 %v2617_v37 }
 0xb39   : > { %2615 = vadd.xlane.f32.xlu2 %v2614_v41 }
 0xb5b   : > { %v2702_v42 = vpop.xlane.xlu1 %2701 }
 0xb5c   : > { %v2706_v43 = vsub.f32 %v2698_v31, %v2702_v42 }
 0xb5e   : > { %v2708_v44 = vmul.f32 1.442695, %v2706_v43 }
 0xb60   : > { %5405 = vpow2.f32 %v2708_v44 }
 0xb61   : > { %v2795_v45 = vpop.xlane.xlu0 %2794 }
 0xb62   : > { %v2799_v47 = vsub.f32 %v2791_v11, %v2795_v45 }
 0xb63   : > { %v2705_v48 = vpop.xlane.xlu2 %2704 }
 0xb64   : > { %v2801_v49 = vmul.f32 1.442695, %v2799_v47  ;;  %v2707_v50 = vsub.f32 %v2699_v13, %v2705_v48 }
 0xb66   : > { %v5406_v51 = vpop.eup %5405  ;;  %5407 = vpow2.f32 %v2801_v49  ;;  %v2710_v52 = vmul.f32 1.442695, %v2707_v50 }
 0xb67   : > { %v2712_v53 = vsel %vm2601_vm14, %v5406_v51, 0.0 }
 0xb68   : > { %5409 = vpow2.f32 %v2710_v52  ;;  %2713 = vadd.xlane.f32.xlu0 %v2712_v53 }
 0xb69   : > { %v2798_v55 = vpop.xlane.xlu1 %2797 }
 0xb6a   : > { %v2800_v56 = vsub.f32 %v2792_v19, %v2798_v55 }
 0xb6b   : > { %v2821_v1 = vpop.permute.xlu2 %2820 }
 0xb6c   : > { %v7387_v57 = vpop.eup %5407  ;;  %v2803_v58 = vmul.f32 1.442695, %v2800_v56 }
 0xb6d   : > { %v2805_v59 = vsel %vm2601_vm14, %v7387_v57, 0.0 }
 0xb6e   : > { %v5410_v60 = vpop.eup %5409  ;;  %5411 = vpow2.f32 %v2803_v58  ;;  %2806 = vadd.xlane.f32.xlu1 %v2805_v59 }
 0xb6f   : > { %v2715_v61 = vsel %vm2601_vm14, %v5410_v60, 0.0 }
 0xb70   : > { %2716 = vadd.xlane.f32.xlu2 %v2715_v61  ;;  %v4991_v61 = vld [vmem:[%s7782_s0] sm:$0xff] }
 0xb74   : > { %v5412_v62 = vpop.eup %5411  ;;  %v2819_v0 = vpop.permute.xlu0 %2818 }
 0xb75   : > { %v2808_v63 = vsel %vm2601_vm14, %v5412_v62, 0.0 }
 0xb76   : > { %2809 = vadd.xlane.f32.xlu0 %v2808_v63 }
 0xb81   : > { %v2823_v13 = vpop.permute.xlu1 %2822 }
 0xb87   : > { %2913 = vrot.lane.b32.xlu1 %v7290_v54, %s6385_s12 }
 0xb88   : > { %2816 = vrot.lane.b32.xlu2 %v7270_v30, %s6384_s22  ;;  %s7785_s22 = smov %s7784_s5 }
 0xb8a   : > { %2915 = vrot.lane.b32.xlu0 %v7279_v46, %s6385_s12 }
 0xb8f   : > { %2911 = vrot.lane.b32.xlu1 %v7275_v38, %s6385_s12 }
 0xb97   : > { %2909 = vrot.lane.b32.xlu1 %v7270_v30, %s6385_s12  ;;  %s7787_s12 = scalar_lea.vmem [#allocation29], %s7045_s4 }
 0xb9f   : > { %v2891_v2 = vpop.xlane.xlu0 %2890 }
 0xba0   : > { %v2893_v39 = vsub.f32 %v2885_v28, %v2891_v2 }
 0xba2   : > { %v2896_v5 = vmul.f32 1.442695, %v2893_v39 }
 0xba4   : > { %v2888_v3 = vpop.xlane.xlu2 %2887 }
 0xba5   : > { %v2892_v4 = vsub.f32 %v2884_v34, %v2888_v3 }
 0xba7   : > { %v2894_v54 = vmul.f32 1.442695, %v2892_v4  ;;  %v2619_v6 = vpop.xlane.xlu0 %2618 }
 0xba9   : > { %5413 = vpow2.f32 %v2894_v54 }
 0xbaa   : > { %5415 = vpow2.f32 %v2896_v5 }
 0xbab   : > { %5417 = vrcp.f32 %v2619_v6 }
 0xbac   : > { %v2616_v7 = vpop.xlane.xlu2 %2615 }
 0xbad   : > { %5419 = vrcp.f32 %v2616_v7 }
 0xbaf   : > { %v5414_v46 = vpop.eup %5413 }
 0xbb0   : > { %v5416_v8 = vpop.eup %5415  ;;  %v2898_v38 = vsel %vm2601_vm14, %v5414_v46, 0.0 }
 0xbb1   : > { %v5418_v31 = vpop.eup %5417  ;;  %2899 = vadd.xlane.f32.xlu2 %v2898_v38  ;;  %v2901_v9 = vsel %vm2601_vm14, %v5416_v8, 0.0 }
 0xbb2   : > { %v2623_v10 = vmul.f32 %v5418_v31, %v5402_v35 }
 0xbb3   : > { %v5420_v30 = vpop.eup %5419 }
 0xbb4   : > { %v2622_v11 = vmul.f32 %v5420_v30, %v5404_v40  ;;  %2902 = vadd.xlane.f32.xlu0 %v2901_v9  ;;  %v5356_v30 = vld [vmem:[%s7783_s1] ss:$0 sm:$0xff] }
 0xbb6   : > { %v2624_v12 = vpack.c.bf16 %v2623_v10, %v2622_v11 }
 0xbb8   : > { %4644 = vmatmul.msk.bf16.vlgmr.msra.gmra.mxu0 %vm2601_vm14, %v2624_v12 }
 0xbb9   : > { %2835 = vmatpush.bf16.msra.mxu0 %v2823_v13 }
 0xbbd   : > { %2836 = vmatpush.bf16.msra.mxu0 %v2821_v1 }
 0xbc1   : > { %2837 = vmatpush.bf16.msra.mxu0 %v2819_v0 }
 0xbdb   : > { %v2714_v32 = vpop.xlane.xlu0 %2713 }
 0xbdc   : > { %5421 = vrcp.f32 %v2714_v32 }
 0xbe1   : > { %v2807_v25 = vpop.xlane.xlu1 %2806 }
 0xbe2   : > { %v5422_v18 = vpop.eup %5421 }
 0xbe3   : > { %v2717_v14 = vpop.xlane.xlu2 %2716  ;;  %v2720_v20 = vmul.f32 %v5422_v18, %v5406_v51 }
 0xbe4   : > { %5423 = vrcp.f32 %v2717_v14 }
 0xbe9   : > { %v2810_v24 = vpop.xlane.xlu0 %2809 }
 0xbea   : > { %v5424_v19 = vpop.eup %5423  ;;  %5425 = vrcp.f32 %v2810_v24 }
 0xbeb   : > { %v2721_v21 = vmul.f32 %v5424_v19, %v5410_v60  ;;  %v2817_v22 = vpop.permute.xlu2 %2816  ;;  %5427 = vrcp.f32 %v2807_v25  ;;  %v4992_v60 = vld [vmem:[%s7781_s18 + $0x8] sm:$0xff] }
 0xbec   : > { %2838 = vmatpush.bf16.msra.mxu0 %v2817_v22  ;;  %2998 = vmatpush.bf16.msrb.mxu3 %v4992_v60 }
 0xbed   : > { %v2722_v23 = vpack.c.bf16 %v2721_v21, %v2720_v20 }
 0xbef   : > { %4646 = vmatmul.msk.bf16.vlgmr.msrb.gmra.mxu0 %vm2601_vm14, %v2722_v23 }
 0xbf0   : > { %v5426_v26 = vpop.eup %5425  ;;  %2999 = vmatpush.bf16.msrb.mxu3 %v4991_v61 }
 0xbf1   : > { %v5428_v27 = vpop.eup %5427  ;;  %v2814_v28 = vmul.f32 %v5426_v26, %v5412_v62 }
 0xbf2   : > { %v2813_v33 = vmul.f32 %v5428_v27, %v7387_v57  ;;  %v4994_v27 = vld [vmem:[%s7784_s5 + $0x8] sm:$0xff] }
 0xbf3   : > { %3094 = vmatpush.bf16.msrb.mxu2 %v4994_v27 }
 0xbf4   : > { %v2815_v35 = vpack.c.bf16 %v2814_v28, %v2813_v33 }
 0xbf9   : > { %v2914_v29 = vpop.permute.xlu1 %2913 }
 0xbfc   : > { %v2916_v34 = vpop.permute.xlu0 %2915 }
 0xbfd   : > { %2928 = vmatpush.bf16.msrb.mxu0 %v2916_v34  ;;  %v4993_v34 = vld [vmem:[%s7785_s22] sm:$0xff] }
 0xbfe   : > { %3095 = vmatpush.bf16.msrb.mxu2 %v4993_v34 }
 0xbff   : > { %4648 = vmatmul.msk.bf16.vlgmr.msra.gmra.mxu0 %vm2601_vm14, %v2815_v35  ;;  %v5002_v35 = vld [vmem:[%s7131_s16 + $0x38] sm:$0xff] }
 0xc01   : > { %v2912_v36 = vpop.permute.xlu1 %2911  ;;  %2929 = vmatpush.bf16.msrb.mxu0 %v2914_v29 }
 0xc05   : > { %2930 = vmatpush.bf16.msrb.mxu0 %v2912_v36 }
 0xc09   : > { %v2910_v37 = vpop.permute.xlu1 %2909 }
 0xc0a   : > { %2931 = vmatpush.bf16.msrb.mxu0 %v2910_v37 }
 0xc0e   : > { %3173 = vmatpush.bf16.msra.mxu0 %v5002_v35 }
 0xc24   : > { %v2900_v40 = vpop.xlane.xlu2 %2899 }
 0xc25   : > { %5429 = vrcp.f32 %v2900_v40  ;;  %v5001_v40 = vld [vmem:[%s7131_s16 + $0x30] sm:$0xff] }
 0xc26   : > { %3174 = vmatpush.bf16.msra.mxu0 %v5001_v40 }
 0xc27   : > { %v2903_v41 = vpop.xlane.xlu0 %2902 }
 0xc28   : > { %5431 = vrcp.f32 %v2903_v41 }
 0xc2b   : > { %v5430_v42 = vpop.eup %5429 }
 0xc2c   : > { %v2906_v44 = vmul.f32 %v5430_v42, %v5414_v46 }
 0xc2e   : > { %v5432_v43 = vpop.eup %5431 }
 0xc2f   : > { %v2907_v45 = vmul.f32 %v5432_v43, %v5416_v8 }
 0xc31   : > { %v2908_v47 = vpack.c.bf16 %v2907_v45, %v2906_v44  ;;  %v5000_v44 = vld [vmem:[%s7131_s16 + $0x28] sm:$0xff] }
 0xc32   : > { %3175 = vmatpush.bf16.msra.mxu0 %v5000_v44 }
 0xc33   : > { %4650 = vmatmul.msk.bf16.vlgmr.msrb.gmra.mxu0 %vm2601_vm14, %v2908_v47 }
 0xc35   : > { %v2653_v48 = vpop.f32.mrf.mxu0 }
 0xc3d   : > { %v2655_v49 = vpop.f32.mrf.mxu0 }
 0xc6c   : > { %v2747_v50 = vpop.f32.mrf.mxu0 }
 0xc74   : > { %v2749_v51 = vpop.f32.mrf.mxu0 }
 0xc75   : > { %v5335_v52 = vpack.i.bf16 %v2749_v51, %v2747_v50 }
 0xc77   : > { %5336 = vrot.lane.b32.xlu2 %v5335_v52, %s6392_s13  ;;  %s7791_s13 = scalar_lea.vmem [#allocation37], %s7045_s4 }
 0xc7c   : > { %v2840_v53 = vpop.f32.mrf.mxu0 }
 0xc84   : > { %v2842_v55 = vpop.f32.mrf.mxu0 }
 0xc85   : > { %v5340_v56 = vpack.i.bf16 %v2842_v55, %v2840_v53 }
 0xc87   : > { %5341 = vrot.lane.b32.xlu0 %v5340_v56, %s6394_s14 }
 0xcb0   : > { %v2933_v57 = vpop.f32.mrf.mxu0 }
 0xcb8   : > { %v2935_v58 = vpop.f32.mrf.mxu0 }
 0xcb9   : > { %v5345_v59 = vpack.i.bf16 %v2935_v58, %v2933_v57  ;;  %v5357_v58 = vld [vmem:[%s7786_s3] ss:$0 sm:$0xff] }
 0xcbb   : > { %5346 = vrot.lane.b32.xlu1 %v5345_v59, %s6393_s11  ;;  %s7792_s11 = sld [smem:[#allocation91_spill]] }
 0xcc1   : > { %p4701_p13 = scmp.ne.s32.totalorder %s7792_s11, 2 }
 0xcc2   : > { %s7794_s14 = sld [smem:[#allocation84_spill]] (!%p4701_p13) }
 0xcc3   : > { %s7795_s9 = sld [smem:[#allocation85_spill]] (!%p4701_p13) }
 0xcd1   : > { %v5337_v62 = vpop.permute.xlu2 %5336 }
 0xcd2   : > { %v5339_v0 = vunpack.i.h.bf16 %v5337_v62  ;;  %v5338_v1 = vunpack.i.l.bf16 %v5337_v62  ;;  %v5358_v62 = vld [vmem:[%s7787_s12] ss:$0 sm:$0xff] }
 0xcd4   : > { %v2963_v4 = vsel %vm2054_vm4, %v2655_v49, %v5339_v0  ;;  %v2962_v5 = vsel %vm2054_vm4, %v2653_v48, %v5338_v1  ;;  %v4999_v48 = vld [vmem:[%s7131_s16 + $0x20] sm:$0xff] }
 0xcd5   : > { %3176 = vmatpush.bf16.msra.mxu0 %v4999_v48 }
 0xcf9   : > { %v5342_v63 = vpop.permute.xlu0 %5341 }
 0xcfa   : > { %v5344_v2 = vunpack.i.h.bf16 %v5342_v63  ;;  %v5343_v39 = vunpack.i.l.bf16 %v5342_v63 }
 0xcfc   : > { %v2964_v7 = vsel %vm2077_vm5, %v2962_v5, %v5343_v39  ;;  %v2965_v46 = vsel %vm2077_vm5, %v2963_v4, %v5344_v2  ;;  %v4998_v4 = vld [vmem:[%s7131_s16 + $0x18] sm:$0xff]  ;;  %v4997_v5 = vld [vmem:[%s7131_s16 + $0x10] sm:$0xff] }
 0xcfd   : > { %3177 = vmatpush.bf16.msra.mxu0 %v4998_v4 }
 0xd01   : > { %3178 = vmatpush.bf16.msra.mxu0 %v4997_v5 }
 0xd2d   : > { %v5347_v3 = vpop.permute.xlu1 %5346 }
 0xd2e   : > { %v5349_v54 = vunpack.i.h.bf16 %v5347_v3  ;;  %v5348_v6 = vunpack.i.l.bf16 %v5347_v3 }
 0xd30   : > { %v2966_v8 = vsel %vm2356_vm6, %v2964_v7, %v5348_v6  ;;  %v2967_v38 = vsel %vm2356_vm6, %v2965_v46, %v5349_v54  ;;  %v4996_v54 = vld [vmem:[%s7131_s16 + $0x8] sm:$0xff]  ;;  %v4995_v6 = vld [vmem:[%s7131_s16] sm:$0xff]  ;;  %s7790_s16 = scalar_lea.vmem [#allocation35], %s7045_s4  ;;  %s7793_s4 = sld [smem:[#allocation82_spill]] (!%p4701_p13) }
 0xd31   : > { %v2968_v31 = vpack.c.bf16 %v2967_v38, %v2966_v8  ;;  %3179 = vmatpush.bf16.msra.mxu0 %v4996_v54  ;;  %v5359_v46 = vld [vmem:[%s7788_s28] ss:$0 sm:$0xff] }
 0xd33   : > { %4659 = vmatmul.msk.bf16.vlgmr.msrb.gmra.mxu3 %vm2032_vm3, %v2968_v31 }
 0xd35   : > { %3180 = vmatpush.bf16.msra.mxu0 %v4995_v6 }
 0xdb6   : > { %v3001_v9 = vpop.f32.mrf.mxu3 }
 0xdb7   : > { %v3002_v10 = vadd.f32 %v5356_v30, %v3001_v9 }
 0xdb9   : > { %v3006_v11 = vadd.f32 %v3002_v10, %v7322_v16 }
 0xdbb   : > { %v3010_v12 = vsel %vm2032_vm3, %v3006_v11, 0.0 }
 0xdbc   : > { %3011 = vadd.xlane.f32.xlu1 %v3010_v12 }
 0xdbe   : > { %v3003_v13 = vpop.f32.mrf.mxu3 }
 0xdbf   : > { %v3004_v32 = vadd.f32 %v5356_v30, %v3003_v13 }
 0xdc1   : > { %v3007_v14 = vadd.f32 %v3004_v32, %v7324_v17 }
 0xdc3   : > { %v3013_v18 = vsel %vm2032_vm3, %v3007_v14, 0.0 }
 0xdc4   : > { %3014 = vadd.xlane.f32.xlu2 %v3013_v18 }
 0xe2f   : > { %v3012_v19 = vpop.xlane.xlu1 %3011 }
 0xe30   : > { %v3016_v20 = vmul.f32 %v3012_v19, %v7257_v15 }
 0xe32   : > { %v3018_v21 = vsub.f32 %v3006_v11, %v3016_v20  ;;  %v5360_v11 = vld [vmem:[%s7789_s7] ss:$0 sm:$0xff] }
 0xe34   : > { %v3020_v22 = vmul.f32 %v3018_v21, %v3018_v21 }
 0xe36   : > { %v3022_v23 = vsel %vm2032_vm3, %v3020_v22, 0.0 }
 0xe37   : > { %v3015_v16 = vpop.xlane.xlu2 %3014  ;;  %3023 = vadd.xlane.f32.xlu0 %v3022_v23 }
 0xe38   : > { %v3017_v24 = vmul.f32 %v3015_v16, %v7257_v15 }
 0xe3a   : > { %v3019_v25 = vsub.f32 %v3007_v14, %v3017_v24 }
 0xe3c   : > { %v3021_v26 = vmul.f32 %v3019_v25, %v3019_v25 }
 0xe3e   : > { %v3025_v17 = vsel %vm2032_vm3, %v3021_v26, 0.0 }
 0xe3f   : > { %3026 = vadd.xlane.f32.xlu1 %v3025_v17 }
 0xeaa   : > { %v3024_v28 = vpop.xlane.xlu0 %3023 }
 0xeab   : > { %v3028_v29 = vmul.f32 %v3024_v28, %v7257_v15 }
 0xead   : > { %v3030_v33 = vadd.f32 1e-05, %v3028_v29 }
 0xeaf   : > { %5433 = vrsqrt.f32 %v3030_v33  ;;  %vm3038_vm0 = vweird.f32 %v3030_v33 }
 0xeb2   : > { %v3027_v36 = vpop.xlane.xlu1 %3026 }
 0xeb3   : > { %v3029_v37 = vmul.f32 %v3027_v36, %v7257_v15 }
 0xeb5   : > { %v5434_v41 = vpop.eup %5433  ;;  %v3031_v42 = vadd.f32 1e-05, %v3029_v37 }
 0xeb6   : > { %v3033_v43 = vmul.f32 %v5434_v41, %v3030_v33  ;;  %vm3039_vm15 = vweird.f32 %v5434_v41 }
 0xeb7   : > { %5435 = vrsqrt.f32 %v3031_v42  ;;  %vm3040_vm1 = vmor %vm3038_vm0, %vm3039_vm15  ;;  %vm3048_vm4 = vweird.f32 %v3031_v42 }
 0xeb8   : > { %v3034_v45 = vmul.f32 %v5434_v41, %v3033_v43 }
 0xeba   : > { %v3035_v47 = vmul.f32 0.5, %v3034_v45 }
 0xebc   : > { %v3036_v49 = vsub.f32 1.5, %v3035_v47 }
 0xebd   : > { %v5436_v50 = vpop.eup %5435 }
 0xebe   : > { %v3037_v51 = vmul.f32 %v5434_v41, %v3036_v49  ;;  %v3043_v52 = vmul.f32 %v5436_v50, %v3031_v42  ;;  %vm3049_vm2 = vweird.f32 %v5436_v50 }
 0xebf   : > { %vm3050_vm5 = vmor %vm3048_vm4, %vm3049_vm2 }
 0xec0   : > { %v3044_v53 = vmul.f32 %v5436_v50, %v3043_v52  ;;  %v3041_v55 = vsel %vm3040_vm1, %v5434_v41, %v3037_v51 }
 0xec1   : > { %v3052_v59 = vmul.f32 %v3041_v55, %v3018_v21 }
 0xec2   : > { %v3045_v56 = vmul.f32 0.5, %v3044_v53 }
 0xec3   : > { %v3057_v63 = vmul.f32 %v5357_v58, %v3052_v59 }
 0xec4   : > { %v3046_v57 = vsub.f32 1.5, %v3045_v56 }
 0xec5   : > { %v3062_v2 = vadd.f32 %v5358_v62, %v3057_v63 }
 0xec6   : > { %v3047_v60 = vmul.f32 %v5436_v50, %v3046_v57 }
 0xec8   : > { %v3051_v61 = vsel %vm3050_vm5, %v5436_v50, %v3047_v60  ;;  %v5361_v50 = vld [vmem:[%s7790_s16] ss:$0 sm:$0xff] }
 0xec9   : > { %v3053_v0 = vmul.f32 %v3051_v61, %v3019_v25 }
 0xecb   : > { %v3058_v1 = vmul.f32 %v5357_v58, %v3053_v0 }
 0xecd   : > { %v3063_v39 = vadd.f32 %v5358_v62, %v3058_v1 }
 0xecf   : > { %v3064_v3 = vpack.c.bf16 %v3063_v39, %v3062_v2 }
 0xed1   : > { %4668 = vmatmul.msk.bf16.vlgmr.msrb.gmra.mxu2 %vm2032_vm3, %v3064_v3 }
 0xf54   : > { %v3097_v7 = vpop.f32.mrf.mxu2 }
 0xf55   : > { %v3098_v8 = vadd.f32 %v5359_v46, %v3097_v7 }
 0xf57   : > { %v3102_v30 = vmax.f32 %v3098_v8, 0.0 }
 0xf5c   : > { %v3099_v38 = vpop.f32.mrf.mxu2 }
 0xf5d   : > { %v3100_v31 = vadd.f32 %v5359_v46, %v3099_v38 }
 0xf5f   : > { %v3103_v9 = vmax.f32 %v3100_v31, 0.0 }
 0xf61   : > { %v3104_v10 = vpack.c.bf16 %v3103_v9, %v3102_v30 }
 0xf63   : > { %3181 = vmatmul.bf16.vlgmr.msra.gmra.mxu0 %v3104_v10 }
 0xfe0   : > { %v3182_v12 = vpop.f32.mrf.mxu0 }
 0xfe1   : > { %v3183_v13 = vadd.f32 %v5360_v11, %v3182_v12 }
 0xfe3   : > { %v3187_v32 = vadd.f32 %v3183_v13, %v3062_v2 }
 0xfe5   : > { %v3191_v14 = vsel %vm2032_vm3, %v3187_v32, 0.0 }
 0xfe6   : > { %3192 = vadd.xlane.f32.xlu1 %v3191_v14 }
 0xfe8   : > { %v3184_v18 = vpop.f32.mrf.mxu0 }
 0xfe9   : > { %v3185_v19 = vadd.f32 %v5360_v11, %v3184_v18 }
 0xfeb   : > { %v3188_v20 = vadd.f32 %v3185_v19, %v3063_v39 }
 0xfed   : > { %v3194_v21 = vsel %vm2032_vm3, %v3188_v20, 0.0 }
 0xfee   : > { %3195 = vadd.xlane.f32.xlu2 %v3194_v21 }
0x1059   : > { %v3193_v22 = vpop.xlane.xlu1 %3192 }
0x105a   : > { %v3197_v23 = vmul.f32 %v3193_v22, %v7257_v15 }
0x105c   : > { %v3199_v16 = vsub.f32 %v3187_v32, %v3197_v23 }
0x105e   : > { %v3201_v24 = vmul.f32 %v3199_v16, %v3199_v16 }
0x1060   : > { %v3203_v25 = vsel %vm2032_vm3, %v3201_v24, 0.0 }
0x1061   : > { %v3196_v26 = vpop.xlane.xlu2 %3195  ;;  %3204 = vadd.xlane.f32.xlu0 %v3203_v25 }
0x1062   : > { %v3198_v17 = vmul.f32 %v3196_v26, %v7257_v15 }
0x1064   : > { %v3200_v27 = vsub.f32 %v3188_v20, %v3198_v17 }
0x1066   : > { %v3202_v28 = vmul.f32 %v3200_v27, %v3200_v27 }
0x1068   : > { %v3206_v29 = vsel %vm2032_vm3, %v3202_v28, 0.0 }
0x1069   : > { %3207 = vadd.xlane.f32.xlu1 %v3206_v29 }
0x10d4   : > { %v3205_v33 = vpop.xlane.xlu0 %3204 }
0x10d5   : > { %v3209_v34 = vmul.f32 %v3205_v33, %v7257_v15 }
0x10d7   : > { %v3211_v35 = vadd.f32 1e-05, %v3209_v34 }
0x10d9   : > { %5437 = vrsqrt.f32 %v3211_v35  ;;  %vm3219_vm7 = vweird.f32 %v3211_v35 }
0x10dc   : > { %v3208_v36 = vpop.xlane.xlu1 %3207 }
0x10dd   : > { %v3210_v37 = vmul.f32 %v3208_v36, %v7257_v15  ;;  %v5362_v15 = vld [vmem:[%s7791_s13] ss:$0 sm:$0xff] }
0x10df   : > { %v5438_v40 = vpop.eup %5437  ;;  %v3212_v41 = vadd.f32 1e-05, %v3210_v37 }
0x10e0   : > { %v3214_v42 = vmul.f32 %v5438_v40, %v3211_v35  ;;  %vm3220_vm6 = vweird.f32 %v5438_v40 }
0x10e1   : > { %5439 = vrsqrt.f32 %v3212_v41  ;;  %vm3221_vm8 = vmor %vm3219_vm7, %vm3220_vm6  ;;  %vm3229_vm10 = vweird.f32 %v3212_v41 }
0x10e2   : > { %v3215_v43 = vmul.f32 %v5438_v40, %v3214_v42 }
0x10e4   : > { %v3216_v44 = vmul.f32 0.5, %v3215_v43 }
0x10e6   : > { %v3217_v45 = vsub.f32 1.5, %v3216_v44 }
0x10e7   : > { %v5440_v47 = vpop.eup %5439 }
0x10e8   : > { %v3218_v48 = vmul.f32 %v5438_v40, %v3217_v45  ;;  %v3224_v49 = vmul.f32 %v5440_v47, %v3212_v41  ;;  %vm3230_vm9 = vweird.f32 %v5440_v47 }
0x10e9   : > { %vm3231_vm11 = vmor %vm3229_vm10, %vm3230_vm9 }
0x10ea   : > { %v3222_v51 = vsel %vm3221_vm8, %v5438_v40, %v3218_v48  ;;  %v3225_v52 = vmul.f32 %v5440_v47, %v3224_v49 }
0x10eb   : > { %v3233_v53 = vmul.f32 %v3222_v51, %v3199_v16 }
0x10ec   : > { %v3226_v55 = vmul.f32 0.5, %v3225_v52 }
0x10ed   : > { %v3238_v56 = vmul.f32 %v5361_v50, %v3233_v53 }
0x10ee   : > { %v3227_v57 = vsub.f32 1.5, %v3226_v55 }
0x10ef   : > { %v3243_v58 = vadd.f32 %v5362_v15, %v3238_v56 }
0x10f0   : > { %v3228_v59 = vmul.f32 %v5440_v47, %v3227_v57 }
0x10f1   : > { %3245 = vst.msk [vmem:[#allocation2] sm:$0xff] %vm2032_vm3, %v3243_v58 }
0x10f2   : > { %v3232_v60 = vsel %vm3231_vm11, %v5440_v47, %v3228_v59 }
0x10f3   : > { %v3234_v61 = vmul.f32 %v3232_v60, %v3200_v27 }
0x10f5   : > { %v3239_v62 = vmul.f32 %v5361_v50, %v3234_v61  ;;  %3250 = sbr.rel (%p4701_p13) target bundleno = 4824 (0x12d8), region = 272 }
0x10f7   : > { %v3244_v63 = vadd.f32 %v5362_v15, %v3239_v62 }
0x10f9   : > { %3246 = vst.msk [vmem:[#allocation2 + $0x8] sm:$0xff] %vm2032_vm3, %v3244_v63 }
0x10fa   : > { %v5004_v0 = vld [vmem:[%s7793_s4 + $0x8] sm:$0xff]  ;;  %v5006_v1 = vld [vmem:[%s7793_s4 + $0x18] sm:$0xff]  ;;  %v3251_v2 = vpack.c.bf16 %v3243_v58, %v3243_v58  ;;  %v5003_v39 = vld [vmem:[%s7793_s4] sm:$0xff]  ;;  %v3252_v20 = vpack.c.bf16 %v3244_v63, %v3244_v63 }
0x10fb   : > { %3279 = vmatpush.bf16.msra.mxu2 %v5004_v0  ;;  %3319 = vmatpush.bf16.msra.mxu3 %v5006_v1  ;;  %v5005_v3 = vld [vmem:[%s7793_s4 + $0x10] sm:$0xff]  ;;  %v5008_v5 = vld [vmem:[%s7793_s4 + $0x28] sm:$0xff]  ;;  %v5010_v54 = vld [vmem:[%s7793_s4 + $0x38] sm:$0xff] }
0x10fc   : > { %v3293_v4 = vunpack.c.l.b16 %v3251_v2  ;;  %v5012_v6 = vld [vmem:[%s7793_s4 + $0x48] sm:$0xff]  ;;  %v5014_v7 = vld [vmem:[%s7793_s4 + $0x58] sm:$0xff]  ;;  %v5011_v38 = vld [vmem:[%s7793_s4 + $0x40] sm:$0xff]  ;;  %v3577_v23 = vunpack.c.l.b16 %v3252_v20 }
0x10fd   : > { %3424 = vmatpush.bf16.msra.mxu0 %v5012_v6  ;;  %3459 = vmatpush.bf16.msra.mxu1 %v5014_v7  ;;  %v5013_v31 = vld [vmem:[%s7793_s4 + $0x50] sm:$0xff]  ;;  %v5007_v30 = vld [vmem:[%s7793_s4 + $0x20] sm:$0xff]  ;;  %v5016_v10 = vld [vmem:[%s7793_s4 + $0x68] sm:$0xff] }
0x10fe   : > { %v7480_v46 = vpack.c.b16 %v3293_v4, %v3293_v4  ;;  %v5009_v9 = vld [vmem:[%s7793_s4 + $0x30] sm:$0xff]  ;;  %v5018_v11 = vld [vmem:[%s7793_s4 + $0x78] sm:$0xff]  ;;  %v5020_v32 = vld [vmem:[%s7793_s4 + $0x88] sm:$0xff]  ;;  %v3578_v25 = vpack.c.b16 %v3577_v23, %v3577_v23 }
0x10ff   : > { %3280 = vmatpush.bf16.msra.mxu2 %v5003_v39  ;;  %3320 = vmatpush.bf16.msra.mxu3 %v5005_v3  ;;  %v5022_v14 = vld [vmem:[%s7793_s4 + $0x98] sm:$0xff]  ;;  %v5015_v18 = vld [vmem:[%s7793_s4 + $0x60] sm:$0xff]  ;;  %v5017_v19 = vld [vmem:[%s7793_s4 + $0x70] sm:$0xff] }
0x1100   : > { %v7483_v8 = vshrl.u32 %v7480_v46, 16  ;;  %v3402_v12 = vrot.slane %v7480_v46, 2  ;;  %v5019_v21 = vld [vmem:[%s7793_s4 + $0x80] sm:$0xff]  ;;  %v5021_v22 = vld [vmem:[%s7793_s4 + $0x90] sm:$0xff]  ;;  %v3332_v16 = vrot.slane %v7480_v46, 1  ;;  %v5024_v26 = vld [vmem:[%s7793_s4 + $0xa8] sm:$0xff] }
0x1101   : > { %3425 = vmatpush.bf16.msra.mxu0 %v5011_v38  ;;  %3460 = vmatpush.bf16.msra.mxu1 %v5013_v31  ;;  %v5026_v17 = vld [vmem:[%s7793_s4 + $0xb8] sm:$0xff]  ;;  %v3580_v27 = vshrl.u32 %v3578_v25, 16  ;;  %v5028_v28 = vld [vmem:[%s7793_s4 + $0xc8] sm:$0xff]  ;;  %v5023_v29 = vld [vmem:[%s7793_s4 + $0xa0] sm:$0xff]  ;;  %v3472_v37 = vrot.slane %v7480_v46, 3  ;;  %v3686_v43 = vrot.slane %v3578_v25, 2 }
0x1102   : > { %4710 = vmatmul.msk.bf16.vlgmr.msra.gmra.mxu2 %vm2032_vm3, %v3251_v2  ;;  %4723 = vmatmul.msk.bf16.vlgmr.msra.gmra.mxu3 %vm2032_vm3, %v7483_v8  ;;  %v3437_v13 = vrot.slane %v7483_v8, 2  ;;  %v3367_v24 = vrot.slane %v7483_v8, 1  ;;  %v5025_v33 = vld [vmem:[%s7793_s4 + $0xb0] sm:$0xff]  ;;  %v5030_v34 = vld [vmem:[%s7793_s4 + $0xd8] sm:$0xff]  ;;  %v5027_v35 = vld [vmem:[%s7793_s4 + $0xc0] sm:$0xff]  ;;  %v3507_v40 = vrot.slane %v7483_v8, 3 }
0x1103   : > { %3354 = vmatpush.bf16.msrb.mxu2 %v5008_v5  ;;  %3389 = vmatpush.bf16.msrb.mxu3 %v5010_v54  ;;  %v5029_v36 = vld [vmem:[%s7793_s4 + $0xd0] sm:$0xff]  ;;  %v5032_v41 = vld [vmem:[%s7793_s4 + $0xe8] sm:$0xff]  ;;  %v5034_v42 = vld [vmem:[%s7793_s4 + $0xf8] sm:$0xff]  ;;  %v3721_v44 = vrot.slane %v3580_v27, 2  ;;  %v3616_v48 = vrot.slane %v3578_v25, 1  ;;  %v3651_v49 = vrot.slane %v3580_v27, 1 }
0x1104   : > { %4762 = vmatmul.msk.bf16.vlgmr.msra.gmra.mxu0 %vm2032_vm3, %v3402_v12  ;;  %4775 = vmatmul.msk.bf16.vlgmr.msra.gmra.mxu1 %vm2032_vm3, %v3437_v13  ;;  %v5031_v45 = vld [vmem:[%s7793_s4 + $0xe0] sm:$0xff]  ;;  %v5033_v47 = vld [vmem:[%s7793_s4 + $0xf0] sm:$0xff]  ;;  %v3756_v50 = vrot.slane %v3578_v25, 3  ;;  %v3791_v51 = vrot.slane %v3580_v27, 3  ;;  %v5042_v60 = vld [vmem:[%s7794_s14 + $0x38] sm:$0xff] }
0x1105   : > { %3563 = vmatpush.bf16.msrb.mxu0 %v5020_v32  ;;  %3603 = vmatpush.bf16.msrb.mxu1 %v5022_v14  ;;  %v5041_v61 = vld [vmem:[%s7794_s14 + $0x30] sm:$0xff]  ;;  %v3253_v62 = vld [vmem:[#allocation38] sm:$0x1]  ;;  %v5040_v39 = vld [vmem:[%s7794_s14 + $0x28] sm:$0xff] }
0x1106   : > { %v5039_v4 = vld [vmem:[%s7794_s14 + $0x20] sm:$0xff]  ;;  %v5038_v38 = vld [vmem:[%s7794_s14 + $0x18] sm:$0xff]  ;;  %v5037_v31 = vld [vmem:[%s7794_s14 + $0x10] sm:$0xff] }
0x1107   : > { %3355 = vmatpush.bf16.msrb.mxu2 %v5007_v30  ;;  %3390 = vmatpush.bf16.msrb.mxu3 %v5009_v9  ;;  %v5036_v32 = vld [vmem:[%s7794_s14 + $0x8] sm:$0xff]  ;;  %v5049_v25 = vld [vmem:[%s7795_s9 + $0x30] sm:$0xff] }
0x1109   : > { %3564 = vmatpush.bf16.msrb.mxu0 %v5019_v21  ;;  %3604 = vmatpush.bf16.msrb.mxu1 %v5021_v22 }
0x110b   : > { %3494 = vmatpush.bf16.msra.mxu2 %v5016_v10  ;;  %3529 = vmatpush.bf16.msra.mxu3 %v5018_v11 }
0x110d   : > { %3708 = vmatpush.bf16.msra.mxu0 %v5028_v28  ;;  %3743 = vmatpush.bf16.msra.mxu1 %v5030_v34  ;;  %v5047_v34 = vld [vmem:[%s7795_s9 + $0x20] sm:$0xff] }
0x110f   : > { %3495 = vmatpush.bf16.msra.mxu2 %v5015_v18  ;;  %3530 = vmatpush.bf16.msra.mxu3 %v5017_v19  ;;  %v5035_v18 = vld [vmem:[%s7794_s14] sm:$0xff] }
0x1111   : > { %3709 = vmatpush.bf16.msra.mxu0 %v5027_v35  ;;  %3744 = vmatpush.bf16.msra.mxu1 %v5029_v36  ;;  %v5046_v36 = vld [vmem:[%s7795_s9 + $0x18] sm:$0xff] }
0x1112   : > { %4736 = vmatmul.msk.bf16.vlgmr.msrb.gmra.mxu2 %vm2032_vm3, %v3332_v16  ;;  %4749 = vmatmul.msk.bf16.vlgmr.msrb.gmra.mxu3 %vm2032_vm3, %v3367_v24  ;;  %v5050_v24 = vld [vmem:[%s7795_s9 + $0x38] sm:$0xff] }
0x1113   : > { %3638 = vmatpush.bf16.msrb.mxu2 %v5024_v26  ;;  %3673 = vmatpush.bf16.msrb.mxu3 %v5026_v17  ;;  %v5048_v17 = vld [vmem:[%s7795_s9 + $0x28] sm:$0xff] }
0x1114   : > { %4814 = vmatmul.msk.bf16.vlgmr.msrb.gmra.mxu0 %vm2032_vm3, %v3252_v20  ;;  %4827 = vmatmul.msk.bf16.vlgmr.msrb.gmra.mxu1 %vm2032_vm3, %v3580_v27 }
0x1115   : > { %3888 = vmatpush.bf16.msrb.mxu0 %v5042_v60  ;;  %3968 = vmatpush.bf16.msrb.mxu1 %v5050_v24 }
0x1117   : > { %3639 = vmatpush.bf16.msrb.mxu2 %v5023_v29  ;;  %3674 = vmatpush.bf16.msrb.mxu3 %v5025_v33 }
0x1119   : > { %3889 = vmatpush.bf16.msrb.mxu0 %v5041_v61  ;;  %3969 = vmatpush.bf16.msrb.mxu1 %v5049_v25  ;;  %v3919_v61 = vld [vmem:[#allocation41] sm:$0x1] }
0x111d   : > { %3890 = vmatpush.bf16.msrb.mxu0 %v5040_v39  ;;  %3970 = vmatpush.bf16.msrb.mxu1 %v5048_v17 }
0x1121   : > { %3891 = vmatpush.bf16.msrb.mxu0 %v5039_v4  ;;  %3971 = vmatpush.bf16.msrb.mxu1 %v5047_v34 }
0x1122   : > { %4788 = vmatmul.msk.bf16.vlgmr.msra.gmra.mxu2 %vm2032_vm3, %v3472_v37  ;;  %4801 = vmatmul.msk.bf16.vlgmr.msra.gmra.mxu3 %vm2032_vm3, %v3507_v40 }
0x1123   : > { %3778 = vmatpush.bf16.msra.mxu2 %v5032_v41  ;;  %3813 = vmatpush.bf16.msra.mxu3 %v5034_v42  ;;  %v5045_v42 = vld [vmem:[%s7795_s9 + $0x10] sm:$0xff] }
0x1124   : > { %4866 = vmatmul.msk.bf16.vlgmr.msra.gmra.mxu0 %vm2032_vm3, %v3686_v43  ;;  %4879 = vmatmul.msk.bf16.vlgmr.msra.gmra.mxu1 %vm2032_vm3, %v3721_v44 }
0x1125   : > { %3892 = vmatpush.bf16.msrb.mxu0 %v5038_v38  ;;  %3972 = vmatpush.bf16.msrb.mxu1 %v5046_v36 }
0x1127   : > { %3779 = vmatpush.bf16.msra.mxu2 %v5031_v45  ;;  %3814 = vmatpush.bf16.msra.mxu3 %v5033_v47 }
0x1129   : > { %3893 = vmatpush.bf16.msrb.mxu0 %v5037_v31  ;;  %3973 = vmatpush.bf16.msrb.mxu1 %v5045_v42 }
0x112d   : > { %3894 = vmatpush.bf16.msrb.mxu0 %v5036_v32 }
0x1131   : > { %3895 = vmatpush.bf16.msrb.mxu0 %v5035_v18 }
0x1132   : > { %4840 = vmatmul.msk.bf16.vlgmr.msrb.gmra.mxu2 %vm2032_vm3, %v3616_v48  ;;  %4853 = vmatmul.msk.bf16.vlgmr.msrb.gmra.mxu3 %vm2032_vm3, %v3651_v49 }
0x1142   : > { %4892 = vmatmul.msk.bf16.vlgmr.msra.gmra.mxu2 %vm2032_vm3, %v3756_v50  ;;  %4905 = vmatmul.msk.bf16.vlgmr.msra.gmra.mxu3 %vm2032_vm3, %v3791_v51  ;;  %vm3981_vm3 = vcmask 188416  }
0x1181   : > { %v3427_v52 = vpop.f32.mrf.mxu0  ;;  %v3462_v15 = vpop.f32.mrf.mxu1 }
0x1185   : > { %v3282_v53 = vpop.f32.mrf.mxu2  ;;  %v3322_v55 = vpop.f32.mrf.mxu3 }
0x1186   : > { %v3286_v3 = vadd.f32 %v3282_v53, %v3253_v62  ;;  %v5043_v53 = vld [vmem:[%s7795_s9] sm:$0xff] }
0x1188   : > { %v3326_v5 = vadd.f32 %v3322_v55, %v3286_v3  ;;  %v3839_v55 = vld [vmem:[#allocation40] sm:$0x1] }
0x1189   : > { %v3429_v56 = vpop.f32.mrf.mxu0  ;;  %v3464_v57 = vpop.f32.mrf.mxu1 }
0x118d   : > { %v3284_v58 = vpop.f32.mrf.mxu2  ;;  %v3324_v59 = vpop.f32.mrf.mxu3 }
0x1191   : > { %v3566_v63 = vpop.f32.mrf.mxu0  ;;  %v3606_v0 = vpop.f32.mrf.mxu1 }
0x1195   : > { %v3357_v1 = vpop.f32.mrf.mxu2  ;;  %v3392_v2 = vpop.f32.mrf.mxu3 }
0x1196   : > { %v3361_v7 = vadd.f32 %v3357_v1, %v3326_v5 }
0x1198   : > { %v3396_v30 = vadd.f32 %v3392_v2, %v3361_v7 }
0x1199   : > { %v3568_v54 = vpop.f32.mrf.mxu0  ;;  %v3608_v6 = vpop.f32.mrf.mxu1 }
0x119a   : > { %v3431_v11 = vadd.f32 %v3427_v52, %v3396_v30 }
0x119c   : > { %v3466_v14 = vadd.f32 %v3462_v15, %v3431_v11  ;;  %v5044_v15 = vld [vmem:[%s7795_s9 + $0x8] sm:$0xff] }
0x119d   : > { %v3359_v46 = vpop.f32.mrf.mxu2  ;;  %v3394_v8 = vpop.f32.mrf.mxu3  ;;  %3974 = vmatpush.bf16.msrb.mxu1 %v5044_v15 }
0x11a1   : > { %v3711_v9 = vpop.f32.mrf.mxu0  ;;  %v3746_v10 = vpop.f32.mrf.mxu1  ;;  %3975 = vmatpush.bf16.msrb.mxu1 %v5043_v53 }
0x11a5   : > { %v3497_v12 = vpop.f32.mrf.mxu2  ;;  %v3532_v13 = vpop.f32.mrf.mxu3 }
0x11a6   : > { %v3501_v19 = vadd.f32 %v3497_v12, %v3466_v14 }
0x11a8   : > { %v3536_v16 = vadd.f32 %v3532_v13, %v3501_v19 }
0x11a9   : > { %v3713_v20 = vpop.f32.mrf.mxu0  ;;  %v3748_v21 = vpop.f32.mrf.mxu1 }
0x11aa   : > { %v3570_v26 = vadd.f32 %v3566_v63, %v3536_v16 }
0x11ac   : > { %v3610_v29 = vadd.f32 %v3606_v0, %v3570_v26 }
0x11ad   : > { %v3499_v22 = vpop.f32.mrf.mxu2  ;;  %v3534_v23 = vpop.f32.mrf.mxu3 }
0x11b5   : > { %v3641_v27 = vpop.f32.mrf.mxu2  ;;  %v3676_v28 = vpop.f32.mrf.mxu3 }
0x11b6   : > { %v3645_v33 = vadd.f32 %v3641_v27, %v3610_v29 }
0x11b8   : > { %v3680_v35 = vadd.f32 %v3676_v28, %v3645_v33 }
0x11ba   : > { %v3715_v41 = vadd.f32 %v3711_v9, %v3680_v35 }
0x11bc   : > { %v3750_v43 = vadd.f32 %v3746_v10, %v3715_v41 }
0x11bd   : > { %v3643_v37 = vpop.f32.mrf.mxu2  ;;  %v3678_v40 = vpop.f32.mrf.mxu3 }
0x11c5   : > { %v3781_v44 = vpop.f32.mrf.mxu2  ;;  %v3816_v45 = vpop.f32.mrf.mxu3 }
0x11c6   : > { %v3785_v47 = vadd.f32 %v3781_v44, %v3750_v43 }
0x11c8   : > { %v3820_v48 = vadd.f32 %v3816_v45, %v3785_v47 }
0x11ca   : > { %v3821_v49 = vmax.f32 %v3820_v48, 0.0 }
0x11cc   : > { %v3822_v50 = vpack.c.bf16 %v3821_v49, %v3821_v49 }
0x11cd   : > { %v3783_v51 = vpop.f32.mrf.mxu2  ;;  %v3818_v52 = vpop.f32.mrf.mxu3 }
0x11ce   : > { %3896 = vmatmul.bf16.vlgmr.msrb.gmra.mxu0 %v3822_v50 }
0x124b   : > { %v3897_v56 = vpop.f32.mrf.mxu0 }
0x124c   : > { %v3898_v57 = vadd.f32 %v3897_v56, %v3839_v55 }
0x124e   : > { %v3901_v58 = vmax.f32 %v3898_v57, 0.0 }
0x1250   : > { %v3902_v59 = vpack.c.bf16 %v3901_v58, %v3901_v58 }
0x1252   : > { %3976 = vmatmul.bf16.vlgmr.msrb.gmra.mxu1 %v3902_v59 }
0x1253   : > { %v3899_v60 = vpop.f32.mrf.mxu0 }
0x12cf   : > { %v3977_v62 = vpop.f32.mrf.mxu1 }
0x12d0   : > { %v3978_v63 = vadd.f32 %v3977_v62, %v3919_v61 }
0x12d2   : > { %3982 = vst.msk [vmem:[%s1892_s17] sm:$0x1] %vm3981_vm3, %v3978_v63 }
0x12d7   : > { %v3979_v0 = vpop.f32.mrf.mxu1 }
0x12d8 PF: > { %s113_s15 = sadd.s32 1, %s6329_s15   ;;  %s7797_s0 = sld [smem:[#allocation88_spill]] }
0x12d9   : > { %p110_p0 = scmp.ge.s32.totalorder %s113_s15, 8   ;;  %s7798_s20 = sld [smem:[#allocation99_spill]] }
0x12da   : > { %s7799_s26 = sld [smem:[#allocation89_spill]]  ;;  %s7805_s22 = smov %s6297_s23 }
0x12db   : > { %s7800_s28 = sld [smem:[#allocation90_spill]]  ;;  %s7807_s2 = smov %s6321_s10 }
0x12dc   : > { %s7801_s1 = sld [smem:[#allocation100_spill]] }
0x12dd   : > { %s7802_s7 = sld [smem:[#allocation93_spill]] }
0x12de   : > { %s7803_s6 = sld [smem:[#allocation94_spill]] }
0x12df   : > { %s7804_s11 = sld [smem:[#allocation97_spill]]  ;;  %s7806_s23 = smov %s7798_s20 }
0x12e0   :  { %112 = sbr.rel (!%p110_p0) target bundleno = 99 (0x63), region = 501 }
0x12e4   : > { %s7808_s10 = smov %s7803_s6 }
0x12e5   :  { %4000 = vsyncpa [#allocation4], 1 }
0x12e6   :  { %4002 = vsyncpa [#allocation4 + $0x1], 1 }
0x12e7   :  { %4003 = vsyncpa [#allocation6], 1 }
0x12e8   :  { %4004 = vsyncpa [#allocation9], 1 }
0x12e9   :  { %4005 = vsyncpa [#allocation12], 1 }
0x12ea   :  { %4006 = vsyncpa [#allocation15], 1 }
0x12eb   :  { %4008 = vsyncpa [#allocation15 + $0x1], 1 }
0x12ec   :  { %4009 = vsyncpa [#allocation18], 1 }
0x12ed   :  { %4011 = vsyncpa [#allocation18 + $0x1], 1 }
0x12ee   :  { %4012 = vsyncpa [#allocation21], 1 }
0x12ef   :  { %4014 = vsyncpa [#allocation21 + $0x1], 1 }
0x12f0   :  { %4015 = vsyncpa [#allocation24], 1 }
0x12f1   :  { %4017 = vsyncpa [#allocation24 + $0x1], 1 }
0x12f2   :  { %4018 = vsyncpa [#allocation27], 1 }
0x12f3   :  { %4020 = vsyncpa [#allocation27 + $0x1], 1 }
0x12f4   :  { %4021 = vsyncpa [#allocation30], 1 }
0x12f5   :  { %4023 = vsyncpa [#allocation30 + $0x1], 1 }
0x12f6   :  { %4024 = vsyncpa [#allocation33], 1 }
0x12f7   :  { %4026 = vsyncpa [#allocation33 + $0x1], 1 }
0x12f8   :  { %4027 = vsyncpa [#allocation36], 1 }
0x12f9   :  { %4029 = vsyncpa [#allocation36 + $0x1], 1 }
0x12fa   :  { %4030 = vsyncpa [#allocation39], 1 }
0x12fb   :  { %4031 = vsyncpa [#allocation42], 1 }

// kernel: _lambda_.2
= control target key start
LH: loop header
LB: loop body
LE: loop exit
PB: predicated region body
PF: predicated region fallthrough
CT: control target
= control target key end

     0   :  { %s6673_s0 = inlined_call_operand.hbm [shape: f32[128,16], index: 0, kind: input, shape index: {}]   ;;  %s6674_s1 = inlined_call_operand.hbm [shape: f32[64,32], index: 1, kind: input, shape index: {}]   ;;  %s6675_s2 = inlined_call_operand.hbm [shape: bf16[4,16,16], index: 2, kind: input, shape index: {}]   ;;  %s6676_s3 = inlined_call_operand.hbm [shape: f32[4,1,16], index: 3, kind: input, shape index: {}]   ;;  %s6677_s4 = inlined_call_operand.hbm [shape: bf16[4,9,16,16], index: 4, kind: input, shape index: {}]   ;;  %s6678_s5 = inlined_call_operand.hbm [shape: f32[4,1,16], index: 5, kind: input, shape index: {}]   ;;  %s6679_s6 = inlined_call_operand.hbm [shape: bf16[4,16,16], index: 6, kind: input, shape index: {}]   ;;  %s6680_s7 = inlined_call_operand.hbm [shape: f32[4,1,16], index: 7, kind: input, shape index: {}]   ;;  %s6681_s8 = inlined_call_operand.vmem [shape: bf16[16,32], index: 8, kind: input, shape index: {}]   ;;  %s6682_s9 = inlined_call_operand.vmem [shape: f32[1,32], index: 9, kind: input, shape index: {}]   ;;  %s6683_s10 = inlined_call_operand.vmem [shape: f32[128,32], index: 10, kind: output, shape index: {}]  }
   0x1   :  { %6745 = sst [smem:[#allocation31_spill]] %s6674_s1 }
   0x2   :  { %6746 = sst [smem:[#allocation32_spill]] %s6676_s3 }
   0x3   :  { %15 = vsyncpa [#allocation4], 0 }
   0x4   :  { %17 = vsyncpa [#allocation4 + $0x1], 0 }
   0x5   :  { %18 = vsyncpa [#allocation6], 0 }
   0x6   :  { %19 = vsyncpa [#allocation9], 0 }
   0x7   :  { %20 = vsyncpa [#allocation12], 0 }
   0x8   :  { %21 = vsyncpa [#allocation15], 0  ;;  %s5104_s13 = smov 0   ;;  %s5106_s14 = smov 0  }
   0x9   :  { %s5108_s15 = smov 0   ;;  %s5110_s16 = smov 0  }
   0xa LB: > { %s6747_s1 = sld [smem:[#allocation31_spill]]  ;;  %s6684_s20 = sadd.s32 4294967295, %s5033_s16   ;;  %s5033_s16 = sphi %s5110_s16, %s6822_s16   ;;  %s5029_s15 = sphi %s5108_s15, %s6821_s15   ;;  %s5025_s14 = sphi %s5106_s14, %s6820_s14   ;;  %s5021_s13 = sphi %s5104_s13, %s6819_s13  }
   0xb   : > { %p4163_p0 = scmp.ge.s32.totalorder %s5033_s16, 1  ;;  %p5131_p1 = scmp.eq.s32.totalorder %s6684_s20, 0 }
   0xc   : > { %p273_p2 = scmp.lt.s32.totalorder %s5033_s16, 3  ;;  %s5035_s23 = smov [#allocation5]  }
   0xd   : > { %s286_s24 = sshll.u32 %s5035_s23, 4  ;;  %s6750_s3 = sld [smem:[#allocation32_spill]]  ;;  %s287_s24 = int_to_ptr.vmem [resolvable:$true] %s286_s24 }
   0xe   : > { %p5136_p3 = pnand %p4163_p0, %p273_p2  ;;  %s5036_s29 = smov [#allocation8]  }
   0xf   : > { %s314_s30 = sshll.u32 %s5036_s29, 4  ;;  %s6685_s11 = smov 128   ;;  %s315_s30 = int_to_ptr.vmem [resolvable:$true] %s314_s30 }
  0x10   : > { %s284_s19 = sshll.u32 %s6747_s1, 4  ;;  %p4643_p4 = pneg %p5136_p3  ;;  %s285_s19 = int_to_ptr.hbm [resolvable:$true] %s284_s19 }
  0x11   : > { %s5038_s12 = smov 8   ;;  %s5039_s17 = smov 16  }
  0x12   : > { %p5147_p5 = pnand %p4643_p4, %p5131_p1  ;;  %s5040_s18 = smov 1  }
  0x13   : > { %s312_s27 = sshll.u32 %s6750_s3, 4  ;;  %s340_s26 = sshll.u32 %s6678_s5, 4  ;;  %s313_s27 = int_to_ptr.hbm [resolvable:$true] %s312_s27  ;;  %s341_s26 = int_to_ptr.hbm [resolvable:$true] %s340_s26 }
  0x14   : > { %4646 = dma.hbm_to_vmem [thread:$0]  (!%p5147_p5), %s285_s19, 1024, %s287_s24, [#allocation6], %s6685_s11, %s6685_s11, %s5038_s12  }
  0x15   : > { %4652 = dma.hbm_to_vmem [thread:$0]  (!%p5147_p5), %s313_s27, 64, %s315_s30, [#allocation9], %s5039_s17, %s5039_s17, %s5040_s18  }
  0x16   : > { %s5041_s29 = smov [#allocation11]   ;;  %s298_s19 = sshll.u32 %s6675_s2, 4  ;;  %s299_s19 = int_to_ptr.hbm [resolvable:$true] %s298_s19 }
  0x17   : > { %s342_s20 = sshll.u32 %s5041_s29, 4  ;;  %s5042_s24 = smov [#allocation7]   ;;  %s343_s20 = int_to_ptr.vmem [resolvable:$true] %s342_s20 }
  0x18   : > { %4658 = dma.hbm_to_vmem [thread:$0]  (!%p5147_p5), %s341_s26, 64, %s343_s20, [#allocation12], %s5039_s17, %s5039_s17, %s5040_s18  }
  0x19   : > { %s300_s27 = sshll.u32 %s5042_s24, 4  ;;  %s5043_s30 = smov 64   ;;  %s301_s27 = int_to_ptr.vmem [resolvable:$true] %s300_s27 }
  0x1a   : > { %s5044_s23 = smov 4   ;;  %s326_s1 = sshll.u32 %s6677_s4, 4  ;;  %s327_s1 = int_to_ptr.hbm [resolvable:$true] %s326_s1 }
  0x1b   : > { %4649 = dma.hbm_to_vmem [thread:$0]  (!%p5147_p5), %s299_s19, 512, %s301_s27, [#allocation6], %s5043_s30, %s5043_s30, %s5044_s23  }
  0x1c   : > { %s5045_s3 = smov [#allocation10]   ;;  %s354_s24 = sshll.u32 %s6679_s6, 4  ;;  %s355_s24 = int_to_ptr.hbm [resolvable:$true] %s354_s24 }
  0x1d   : > { %s328_s11 = sshll.u32 %s5045_s3, 4  ;;  %s5046_s19 = smov [#allocation13]   ;;  %s329_s11 = int_to_ptr.vmem [resolvable:$true] %s328_s11 }
  0x1e   : > { %4655 = dma.hbm_to_vmem [thread:$0]  (!%p5147_p5), %s327_s1, 4608, %s329_s11, [#allocation9], %s5043_s30, %s5043_s30, %s5044_s23  }
  0x1f   : > { %s356_s27 = sshll.u32 %s5046_s19, 4  ;;  %s368_s3 = sshll.u32 %s6680_s7, 4  ;;  %s357_s27 = int_to_ptr.vmem [resolvable:$true] %s356_s27  ;;  %s369_s3 = int_to_ptr.hbm [resolvable:$true] %s368_s3 }
  0x20   : > { %4661 = dma.hbm_to_vmem [thread:$0]  (!%p5147_p5), %s355_s24, 512, %s357_s27, [#allocation12], %s5043_s30, %s5043_s30, %s5044_s23  }
  0x21   : > { %s5047_s11 = smov [#allocation14]   ;;  %s5193_s20 = sadd.s32 1, %s5033_s16  }
  0x22   : > { %s370_s1 = sshll.u32 %s5047_s11, 4  ;;  %s31_s26 = ssub.s32 %s5033_s16, %s5193_s20  ;;  %s371_s1 = int_to_ptr.vmem [resolvable:$true] %s370_s1 }
  0x23   : > { %4664 = dma.hbm_to_vmem [thread:$0]  (!%p5147_p5), %s369_s3, 64, %s371_s1, [#allocation15], %s5039_s17, %s5039_s17, %s5040_s18  }
  0x24   : > { %s34_s19 = sadd.s32 1, %s5029_s15  ;;  %p32_p6 = scmp.eq.s32.totalorder %s31_s26, 0 }
  0x25   : > { %p41_p7 = scmp.ne.s32.totalorder %s5029_s15, %s5025_s14  ;;  %p42_p8 = scmp.eq.s32.totalorder %s5033_s16, 0 }
  0x26   : > { %p47_p9 = scmp.ne.s32.totalorder %s5025_s14, %s5021_s13  ;;  %p4676_p12 = scmp.lt.s32.totalorder %s5033_s16, 2 }
  0x27   : > { %s5204_s30 = scalar_select %p32_p6, %s5029_s15, %s34_s19  }
  0x28   : > { %p43_p10 = por %p42_p8, %p41_p7  ;;  %p5208_p11 = por %p5131_p1, %p47_p9 }
  0x29   : > { %s390_s28 = sand.u32 1, %s5029_s15   ;;  %s4564_s18 = sshll.u32 %s5033_s16, 6 }
  0x2a   : > { %s4172_s17 = sshll.u32 %s390_s28, 6  ;;  %s399_s25 = scalar_lea.hbm %s6673_s0, %s4564_s18 }
  0x2b   : > { %s394_s29 = scalar_lea.vmem [#allocation3], %s4172_s17  ;;  %s400_s11 = sshll.u32 %s399_s25, 4  ;;  %s401_s11 = int_to_ptr.hbm [resolvable:$true] %s400_s11 }
  0x2c   : > { %s402_s3 = sshll.u32 %s394_s29, 4  ;;  %p5218_p13 = pnand %p4676_p12, %p43_p10  ;;  %s403_s3 = int_to_ptr.vmem [resolvable:$true] %s402_s3 }
  0x2d   : > { %s391_s1 = scalar_lea.sflag [#allocation4], %s390_s28  ;;  %s4953_s26 = sshra.s32 %s401_s11, 4  ;;  %s4954_s26 = int_to_ptr.hbm [resolvable:$true] %s4953_s26 }
  0x2e   : > { %s4955_s19 = scalar_lea.hbm %s4954_s26, 64  ;;  %p4957_p2 = pneg %p5218_p13 }
  0x2f   : > { %p4956_p0 = scmp.ne.s32.totalorder %s4954_s26, %s4955_s19  ;;  %s4960_s24 = scalar_lea.hbm %s6673_s0, 128 }
  0x30   : > { %p4961_p6 = scmp.lt.s32.totalorder %s4954_s26, %s6673_s0  ;;  %p4962_p7 = scmp.lt.s32.totalorder %s4960_s24, %s4955_s19 }
  0x31   : > { %p4958_p4 = pnand %p4957_p2, %p4956_p0 }
  0x32   : > { %p4963_p8 = por %p4962_p7, %p4961_p6 }
  0x33   : > { %p4959_p5 = pneg %p4958_p4 }
  0x35   : > { %p4964_p9 = pnand %p4963_p8, %p4959_p5 }
  0x37   : > { %4967 = shalt.err (!%p4964_p9)
}
  0x38   : > { %s6754_s28 = smov 128   ;;  %414 = sbr.rel (%p5136_p3) target bundleno = 2512 (0x9d0), region = 60 }
  0x39   : > { %4668 = dma.hbm_to_vmem [thread:$0]  (!%p5218_p13), %s401_s11, 1024, %s403_s3, %s391_s1, %s6754_s28, %s6754_s28, %s5038_s12  }
  0x3d   : > { %s416_s29 = sand.u32 1, %s5025_s14  }
  0x3e   : > { %s4176_s18 = sshll.u32 %s416_s29, 6  ;;  %s417_s17 = scalar_lea.sflag [#allocation4], %s416_s29 }
  0x3f   : > { %s5238_s27 = scalar_lea.vmem [#allocation3], %s4176_s18 }
  0x40   : > { %5000 = dma.done.wait (%p5208_p11), %s417_s17, 1024  }
  0x41   : > { %5002 = vsyncadd (%p5208_p11), %s417_s17, 4294966272 }
  0x42   : > { %5004 = dma.done.wait (%p5131_p1), [#allocation6], 1536  }
  0x43   : > { %5006 = vsyncadd (%p5131_p1), [#allocation6], 4294965760 }
  0x44   : > { %5008 = dma.done.wait (%p5131_p1), [#allocation9], 4672  }
  0x45   : > { %5010 = vsyncadd (%p5131_p1), [#allocation9], 4294962624 }
  0x46   : > { %5012 = dma.done.wait (%p5131_p1), [#allocation12], 576  }
  0x47   : > { %5014 = vsyncadd (%p5131_p1), [#allocation12], 4294966720 }
  0x48   : > { %5016 = dma.done.wait (%p5131_p1), [#allocation15], 64  }
  0x49   : > { %5018 = vsyncadd (%p5131_p1), [#allocation15], 4294967232  ;;  %vm574_vm0 = vcmask 130048   ;;  %v5048_v0 = vmov 0.0   ;;  %v4565_v1 = vld [vmem:[#allocation7] sm:$0xff]  ;;  %v5276_v3 = vld [vmem:[%s5238_s27 + $0x8] sm:$0xff]  ;;  %v509_v19 = vlaneseq }
  0x4a   : > { %577 = vst.msk [vmem:[#allocation2 + $0x10] sm:$0xff] %vm574_vm0, %v5048_v0  ;;  %v5273_v2 = vld [vmem:[%s5238_s27] sm:$0xff]  ;;  %v5283_v5 = vld [vmem:[%s5238_s27 + $0x10] sm:$0xff]  ;;  %v5286_v6 = vld [vmem:[%s5238_s27 + $0x18] sm:$0xff]  ;;  %622 = vmatpush.bf16.msra.mxu0 %v4565_v1  ;;  %4610 = vmatpush.bf16.msra.mxu1 %v4565_v1  ;;  %s6818_s12 = sadd.s32 4294967295, %s5033_s16  }
  0x4b   : > { %575 = vst.msk [vmem:[#allocation2] sm:$0xff] %vm574_vm0, %v5048_v0  ;;  %v587_v4 = vpack.c.bf16 %v5276_v3, %v5273_v2  ;;  %v5289_v7 = vld [vmem:[%s5238_s27 + $0x20] sm:$0xff]  ;;  %v588_v8 = vpack.c.bf16 %v5286_v6, %v5283_v5  ;;  %v5296_v9 = vld [vmem:[%s5238_s27 + $0x28] sm:$0xff]  ;;  %v5299_v10 = vld [vmem:[%s5238_s27 + $0x30] sm:$0xff]  ;;  %4611 = vmatpush.bf16.msra.mxu2 %v4565_v1  ;;  %4612 = vmatpush.bf16.msra.mxu3 %v4565_v1  ;;  %v5320_v20 = vshrl.u32 %v509_v19, 7  ;;  %s4184_s23 = sshll.u32 %s6818_s12, 3 }
  0x4c   : > { %576 = vst.msk [vmem:[#allocation2 + $0x8] sm:$0xff] %vm574_vm0, %v5048_v0  ;;  %v5302_v11 = vld [vmem:[%s5238_s27 + $0x38] sm:$0xff]  ;;  %v589_v12 = vpack.c.bf16 %v5296_v9, %v5289_v7  ;;  %v4566_v14 = vld [vmem:[#allocation10] sm:$0xff]  ;;  %v4567_v15 = vld [vmem:[#allocation10 + $0x8] sm:$0xff]  ;;  %p495_p1 = scmp.lt.s32.totalorder %s4184_s23, 15 }
  0x4d   : > { %578 = vst.msk [vmem:[#allocation2 + $0x18] sm:$0xff] %vm574_vm0, %v5048_v0  ;;  %v590_v13 = vpack.c.bf16 %v5302_v11, %v5299_v10  ;;  %4206 = vmatmul.msk.bf16.vlgmr.msra.gmra.mxu0 %vm574_vm0, %v587_v4  ;;  %4207 = vmatmul.msk.bf16.vlgmr.msra.gmra.mxu1 %vm574_vm0, %v588_v8  ;;  %v4570_v16 = vld [vmem:[#allocation10 + $0x20] sm:$0xff]  ;;  %v4568_v17 = vld [vmem:[#allocation10 + $0x10] sm:$0xff]  ;;  %v4569_v18 = vld [vmem:[#allocation10 + $0x18] sm:$0xff]  ;;  %v511_v22 = vadd.s32 8, %v5320_v20  ;;  %v518_v27 = vand.u32 7, %v5320_v20 }
  0x4e   : > { %579 = vst.msk [vmem:[#allocation2 + $0x20] sm:$0xff] %vm574_vm0, %v5048_v0  ;;  %4208 = vmatmul.msk.bf16.vlgmr.msra.gmra.mxu2 %vm574_vm0, %v589_v12  ;;  %708 = vmatpush.bf16.msrb.mxu1 %v4566_v14  ;;  %v4730_v21 = vld [vmem:[#allocation8] ss:$0 sm:$0xff]  ;;  %v512_v50 = vadd.s32 16, %v5320_v20  ;;  %v513_v51 = vadd.s32 24, %v5320_v20  ;;  %s6824_s23 = smov (!%p495_p1, %s4184_s23), 15 }
  0x4f   : > { %580 = vst.msk [vmem:[#allocation2 + $0x28] sm:$0xff] %vm574_vm0, %v5048_v0  ;;  %4209 = vmatmul.msk.bf16.vlgmr.msra.gmra.mxu3 %vm574_vm0, %v590_v13  ;;  %781 = vmatpush.bf16.msrb.mxu2 %v4567_v15  ;;  %v519_v30 = vand.u32 7, %v511_v22  ;;  %vm526_vm1 = vcmp.ge.s32.totalorder %v518_v27, 1  ;;  %vm550_vm3 = vcmp.le.s32.totalorder %v518_v27, 6  ;;  %s4185_s13 = sshll.u32 %s6824_s23, 3 }
  0x50   : > { %581 = vst.msk [vmem:[#allocation2 + $0x30] sm:$0xff] %vm574_vm0, %v5048_v0  ;;  %859 = vmatpush.bf16.msrb.mxu3 %v4568_v17  ;;  %937 = vmatpush.bf16.msrb.mxu0 %v4569_v18  ;;  %v5327_v36 = vsel %vm526_vm1, 1.0, %v5048_v0  ;;  %v520_v59 = vand.u32 7, %v512_v50  ;;  %v521_v60 = vand.u32 7, %v513_v51  ;;  %v5349_v62 = vsel %vm550_vm3, 1.0, %v5048_v0  ;;  %s6642_s19 = scalar_lea.vmem %s6683_s10, %s4185_s13 }
  0x51   : > { %582 = vst.msk [vmem:[#allocation2 + $0x38] sm:$0xff] %vm574_vm0, %v5048_v0  ;;  %vm527_vm2 = vcmp.ge.s32.totalorder %v519_v30, 1  ;;  %vm551_vm4 = vcmp.le.s32.totalorder %v519_v30, 6 }
  0x52   : > { %583 = vst.msk [vmem:[#allocation2 + $0x40] sm:$0xff] %vm574_vm0, %v5048_v0  ;;  %1007 = vmatpush.bf16.msra.mxu1 %v4570_v16  ;;  %v5330_v43 = vsel %vm527_vm2, 1.0, %v5048_v0  ;;  %v5352_v63 = vsel %vm551_vm4, 1.0, %v5048_v0  ;;  %vm528_vm5 = vcmp.ge.s32.totalorder %v520_v59, 1  ;;  %vm529_vm6 = vcmp.ge.s32.totalorder %v521_v60, 1 }
  0x53   : > { %584 = vst.msk [vmem:[#allocation2 + $0x48] sm:$0xff] %vm574_vm0, %v5048_v0  ;;  %v661_v37 = vld [vmem:[#allocation2 + $0x7] sm:$0xff]  ;;  %v5367_v19 = vsel %vm528_vm5, 1.0, %v5048_v0  ;;  %vm552_vm7 = vcmp.le.s32.totalorder %v520_v59, 6  ;;  %vm553_vm8 = vcmp.le.s32.totalorder %v521_v60, 6  ;;  %v517_v59 = vadd.s32 56, %v5320_v20 }
  0x54   : > { %585 = vst.msk [vmem:[#allocation2 + $0x50] sm:$0xff] %vm574_vm0, %v5048_v0  ;;  %v741_v42 = vld [vmem:[#allocation2 + $0x8] sm:$0xff]  ;;  %v5333_v46 = vmul.f32 %v5327_v36, %v661_v37 }
  0x55   : > { %586 = vst.msk [vmem:[#allocation2 + $0x58] sm:$0xff] %vm574_vm0, %v5048_v0 }
  0xca   : > { %v624_v23 = vpop.f32.mrf.mxu0  ;;  %v629_v24 = vpop.f32.mrf.mxu1 }
  0xcb   : > { %v625_v25 = vadd.f32 %v4730_v21, %v624_v23  ;;  %v630_v26 = vadd.f32 %v4730_v21, %v629_v24 }
  0xcd   : > { %v644_v28 = vmax.f32 %v625_v25, 0.0  ;;  %v646_v29 = vmax.f32 %v630_v26, 0.0 }
  0xcf   : > { %652 = vst.msk [vmem:[#allocation2 + $0x10] sm:$0xff] %vm574_vm0, %v644_v28  ;;  %v514_v28 = vadd.s32 32, %v5320_v20 }
  0xd0   : > { %654 = vst.msk [vmem:[#allocation2 + $0x20] sm:$0xff] %vm574_vm0, %v646_v29  ;;  %v515_v29 = vadd.s32 40, %v5320_v20 }
  0xd1   : > { %v634_v31 = vpop.f32.mrf.mxu2  ;;  %v522_v37 = vand.u32 7, %v514_v28 }
  0xd2   : > { %v639_v32 = vpop.f32.mrf.mxu3  ;;  %v626_v33 = vpop.f32.mrf.mxu0  ;;  %v635_v35 = vadd.f32 %v4730_v21, %v634_v31  ;;  %v5393_v31 = vsel %vm552_vm7, 1.0, %v5048_v0 }
  0xd3   : > { %v631_v34 = vpop.f32.mrf.mxu1  ;;  %v640_v38 = vadd.f32 %v4730_v21, %v639_v32  ;;  %v627_v39 = vadd.f32 %v4730_v21, %v626_v33  ;;  %v5398_v33 = vsel %vm553_vm8, 1.0, %v5048_v0  ;;  %vm530_vm9 = vcmp.ge.s32.totalorder %v522_v37, 1 }
  0xd4   : > { %v632_v40 = vadd.f32 %v4730_v21, %v631_v34  ;;  %v648_v41 = vmax.f32 %v635_v35, 0.0  ;;  %v5414_v50 = vsel %vm530_vm9, 1.0, %v5048_v0  ;;  %vm554_vm11 = vcmp.le.s32.totalorder %v522_v37, 6 }
  0xd5   : > { %v645_v44 = vmax.f32 %v627_v39, 0.0  ;;  %v650_v47 = vmax.f32 %v640_v38, 0.0  ;;  %v523_v38 = vand.u32 7, %v515_v29  ;;  %v4571_v39 = vld [vmem:[#allocation10 + $0x28] sm:$0xff]  ;;  %6755 = vst [vmem:[#allocation21_spill] sm:$0xff] %v5414_v50 }
  0xd6   : > { %v647_v45 = vmax.f32 %v632_v40, 0.0  ;;  %656 = vst.msk [vmem:[#allocation2 + $0x30] sm:$0xff] %vm574_vm0, %v648_v41  ;;  %v5336_v48 = vld [vmem:[#allocation2 + $0x10] sm:$0xff]  ;;  %1085 = vmatpush.bf16.msra.mxu2 %v4571_v39 }
  0xd7   : > { %v662_v49 = vld [vmem:[#allocation2 + $0xf] sm:$0xff]  ;;  %653 = vst.msk [vmem:[#allocation2 + $0x18] sm:$0xff] %vm574_vm0, %v645_v44  ;;  %v749_v52 = vpack.c.bf16 %v5336_v48, %v741_v42  ;;  %v5378_v24 = vld [vmem:[#allocation2 + $0x20] sm:$0xff]  ;;  %vm531_vm10 = vcmp.ge.s32.totalorder %v523_v38, 1  ;;  %vm555_vm12 = vcmp.le.s32.totalorder %v523_v38, 6 }
  0xd8   : > { %v670_v53 = vmul.f32 %v5330_v43, %v662_v49  ;;  %655 = vst.msk [vmem:[#allocation2 + $0x28] sm:$0xff] %vm574_vm0, %v647_v45  ;;  %v811_v1 = vld [vmem:[#allocation2 + $0x9] sm:$0xff]  ;;  %v897_v15 = vmul.f32 %v5327_v36, %v662_v49  ;;  %v4572_v40 = vld [vmem:[#allocation10 + $0x30] sm:$0xff]  ;;  %v5417_v51 = vsel %vm531_vm10, 1.0, %v5048_v0 }
  0xd9   : > { %4222 = vmatmul.msk.bf16.vlgmr.msrb.gmra.mxu2 %vm574_vm0, %v749_v52  ;;  %v636_v54 = vpop.f32.mrf.mxu2  ;;  %658 = vst.msk [vmem:[#allocation2 + $0x40] sm:$0xff] %vm574_vm0, %v650_v47  ;;  %v819_v13 = vmul.f32 %v5349_v62, %v811_v1  ;;  %1163 = vmatpush.bf16.msra.mxu3 %v4572_v40  ;;  %v5440_v1 = vsel %vm554_vm11, 1.0, %v5048_v0 }
  0xda   : > { %v677_v55 = vpack.c.bf16 %v670_v53, %v5333_v46  ;;  %v641_v56 = vpop.f32.mrf.mxu3  ;;  %v637_v57 = vadd.f32 %v4730_v21, %v636_v54  ;;  %6756 = vst [vmem:[#allocation22_spill] sm:$0xff] %v5417_v51 }
  0xdb   : > { %v642_v58 = vadd.f32 %v4730_v21, %v641_v56  ;;  %v5370_v21 = vsel %vm529_vm6, 1.0, %v5048_v0  ;;  %6757 = vst [vmem:[#allocation23_spill] sm:$0xff] %v5440_v1 }
  0xdc   : > { %4214 = vmatmul.msk.bf16.vlgmr.msrb.gmra.mxu1 %vm574_vm0, %v677_v55  ;;  %v649_v61 = vmax.f32 %v637_v57, 0.0 }
  0xdd   : > { %v651_v4 = vmax.f32 %v642_v58, 0.0  ;;  %v5425_v54 = vld [vmem:[#allocation2 + $0x30] sm:$0xff]  ;;  %v516_v58 = vadd.s32 48, %v5320_v20 }
  0xde   : > { %657 = vst.msk [vmem:[#allocation2 + $0x38] sm:$0xff] %vm574_vm0, %v649_v61  ;;  %v5355_v8 = vld [vmem:[#allocation2 + $0x11] sm:$0xff]  ;;  %v5372_v22 = vld [vmem:[#allocation2 + $0x1f] sm:$0xff] }
  0xdf   : > { %v5357_v12 = vld [vmem:[#allocation2 + $0x17] sm:$0xff]  ;;  %v820_v14 = vmul.f32 %v5352_v63, %v5355_v8  ;;  %659 = vst.msk [vmem:[#allocation2 + $0x48] sm:$0xff] %vm574_vm0, %v651_v4  ;;  %v672_v26 = vmul.f32 %v5370_v21, %v5372_v22  ;;  %v5400_v34 = vld [vmem:[#allocation2 + $0x21] sm:$0xff]  ;;  %v899_v44 = vmul.f32 %v5367_v19, %v5372_v22  ;;  %v5419_v52 = vld [vmem:[#allocation2 + $0x2f] sm:$0xff]  ;;  %v5443_v4 = vsel %vm555_vm12, 1.0, %v5048_v0 }
  0xe0   : > { %v898_v16 = vmul.f32 %v5330_v43, %v5357_v12  ;;  %v5376_v23 = vld [vmem:[#allocation2 + $0x18] sm:$0xff]  ;;  %v671_v25 = vmul.f32 %v5367_v19, %v5357_v12  ;;  %v5402_v35 = vld [vmem:[#allocation2 + $0x27] sm:$0xff]  ;;  %v822_v42 = vmul.f32 %v5398_v33, %v5400_v34  ;;  %v674_v56 = vmul.f32 %v5417_v51, %v5419_v52  ;;  %6758 = vst [vmem:[#allocation24_spill] sm:$0xff] %v5443_v4 }
  0xe1   : > { %v827_v17 = vpack.c.bf16 %v820_v14, %v819_v13  ;;  %v5386_v27 = vpack.c.bf16 %v5378_v24, %v5376_v23  ;;  %v5395_v32 = vld [vmem:[#allocation2 + $0x19] sm:$0xff]  ;;  %v900_v45 = vmul.f32 %v5370_v21, %v5402_v35  ;;  %v5423_v53 = vld [vmem:[#allocation2 + $0x28] sm:$0xff]  ;;  %v673_v55 = vmul.f32 %v5414_v50, %v5402_v35 }
  0xe2   : > { %v905_v18 = vpack.c.bf16 %v898_v16, %v897_v15  ;;  %v678_v30 = vpack.c.bf16 %v672_v26, %v671_v25  ;;  %v821_v41 = vmul.f32 %v5393_v31, %v5395_v32  ;;  %v5433_v57 = vpack.c.bf16 %v5425_v54, %v5423_v53  ;;  %v4573_v61 = vld [vmem:[#allocation10 + $0x38] sm:$0xff]  ;;  %v5445_v13 = vld [vmem:[#allocation2 + $0x29] sm:$0xff] }
  0xe3   : > { %4230 = vmatmul.msk.bf16.vlgmr.msrb.gmra.mxu3 %vm574_vm0, %v827_v17  ;;  %v906_v49 = vpack.c.bf16 %v900_v45, %v899_v44  ;;  %v679_v60 = vpack.c.bf16 %v674_v56, %v673_v55  ;;  %v524_v20 = vand.u32 7, %v516_v58  ;;  %v525_v16 = vand.u32 7, %v517_v59  ;;  %1233 = vmatpush.bf16.msra.mxu0 %v4573_v61  ;;  %v4574_v17 = vld [vmem:[#allocation10 + $0x40] sm:$0xff] }
  0xe4   : > { %4238 = vmatmul.msk.bf16.vlgmr.msrb.gmra.mxu0 %vm574_vm0, %v905_v18  ;;  %v828_v47 = vpack.c.bf16 %v822_v42, %v821_v41  ;;  %v823_v18 = vmul.f32 %v5440_v1, %v5445_v13  ;;  %v901_v26 = vmul.f32 %v5414_v50, %v5419_v52  ;;  %1311 = vmatpush.bf16.msrb.mxu1 %v4574_v17  ;;  %v5468_v41 = vld [vmem:[#allocation2 + $0x40] sm:$0xff] }
  0xe5   : > { %v5447_v14 = vld [vmem:[#allocation2 + $0x31] sm:$0xff]  ;;  %vm532_vm13 = vcmp.ge.s32.totalorder %v524_v20, 1  ;;  %vm533_vm14 = vcmp.ge.s32.totalorder %v525_v16, 1  ;;  %v668_v39 = vld [vmem:[#allocation2 + $0x3f] sm:$0xff]  ;;  %vm556_vm15 = vcmp.le.s32.totalorder %v524_v20, 6  ;;  %vm557_vm1 = vcmp.le.s32.totalorder %v525_v16, 6 }
  0xe6   : > { %v5449_v15 = vld [vmem:[#allocation2 + $0x37] sm:$0xff]  ;;  %v824_v25 = vmul.f32 %v5443_v4, %v5447_v14  ;;  %v5461_v37 = vsel %vm532_vm13, 1.0, %v5048_v0  ;;  %v5464_v38 = vsel %vm533_vm14, 1.0, %v5048_v0  ;;  %v5479_v55 = vsel %vm557_vm1, 1.0, %v5048_v0  ;;  %v5483_v58 = vld [vmem:[#allocation2 + $0x41] sm:$0xff] }
  0xe7   : > { %v902_v28 = vmul.f32 %v5417_v51, %v5449_v15  ;;  %6759 = vst [vmem:[#allocation25_spill] sm:$0xff] %v5461_v37  ;;  %v747_v40 = vld [vmem:[#allocation2 + $0x38] sm:$0xff]  ;;  %v675_v42 = vmul.f32 %v5461_v37, %v5449_v15  ;;  %v676_v44 = vmul.f32 %v5464_v38, %v668_v39  ;;  %v896_v59 = vld [vmem:[#allocation2 + $0x47] sm:$0xff]  ;;  %v826_v61 = vmul.f32 %v5479_v55, %v5483_v58 }
  0xe8   : > { %v829_v29 = vpack.c.bf16 %v824_v25, %v823_v18  ;;  %6760 = vst [vmem:[#allocation26_spill] sm:$0xff] %v5464_v38  ;;  %v752_v45 = vpack.c.bf16 %v5468_v41, %v747_v40  ;;  %v5481_v56 = vld [vmem:[#allocation2 + $0x39] sm:$0xff]  ;;  %v903_v20 = vmul.f32 %v5461_v37, %v668_v39  ;;  %v904_v16 = vmul.f32 %v5464_v38, %v896_v59 }
  0xe9   : > { %4223 = vmatmul.msk.bf16.gmra.mxu2 %vm574_vm0, %v5386_v27  ;;  %6762 = vst [vmem:[#allocation28_spill] sm:$0xff] %v5479_v55  ;;  %v1045_v18 = vmul.f32 %v5349_v62, %v5355_v8  ;;  %v1046_v25 = vmul.f32 %v5352_v63, %v5395_v32  ;;  %v1047_v8 = vmul.f32 %v5393_v31, %v5400_v34 }
  0xec   : > { %4215 = vmatmul.msk.bf16.gmra.mxu1 %vm574_vm0, %v678_v30  ;;  %v907_v30 = vpack.c.bf16 %v902_v28, %v901_v26  ;;  %v1053_v26 = vpack.c.bf16 %v1046_v25, %v1045_v18  ;;  %v975_v28 = vpack.c.bf16 %v5376_v23, %v5336_v48  ;;  %v1048_v48 = vmul.f32 %v5398_v33, %v5445_v13 }
  0xee   : > { %v1054_v23 = vpack.c.bf16 %v1048_v48, %v1047_v8 }
  0xf3   : > { %4231 = vmatmul.msk.bf16.gmra.mxu3 %vm574_vm0, %v828_v47  ;;  %v680_v47 = vpack.c.bf16 %v676_v44, %v675_v42 }
  0xf4   : > { %4239 = vmatmul.msk.bf16.gmra.mxu0 %vm574_vm0, %v906_v49  ;;  %v5476_v49 = vsel %vm556_vm15, 1.0, %v5048_v0  ;;  %v908_v0 = vpack.c.bf16 %v904_v16, %v903_v20 }
  0xf5   : > { %6761 = vst [vmem:[#allocation27_spill] sm:$0xff] %v5476_v49  ;;  %v1051_v20 = vmul.f32 %v5476_v49, %v5483_v58 }
  0xf9   : > { %4224 = vmatmul.msk.bf16.gmra.mxu2 %vm574_vm0, %v5433_v57 }
  0xfc   : > { %4216 = vmatmul.msk.bf16.gmra.mxu1 %vm574_vm0, %v679_v60  ;;  %v825_v60 = vmul.f32 %v5476_v49, %v5481_v56 }
  0xfe   : > { %v830_v17 = vpack.c.bf16 %v826_v61, %v825_v60  ;;  %v1128_v60 = vmul.f32 %v5417_v51, %v668_v39  ;;  %v5534_v61 = vld [vmem:[#allocation2 + $0x49] sm:$0xff] }
  0xff   : > { %v1122_v39 = vld [vmem:[#allocation2 + $0x4f] sm:$0xff] }
 0x103   : > { %4232 = vmatmul.msk.bf16.gmra.mxu3 %vm574_vm0, %v829_v29  ;;  %v1123_v29 = vmul.f32 %v5327_v36, %v5357_v12  ;;  %v976_v12 = vpack.c.bf16 %v5423_v53, %v5378_v24  ;;  %v1050_v24 = vmul.f32 %v5443_v4, %v5481_v56 }
 0x104   : > { %4240 = vmatmul.msk.bf16.gmra.mxu0 %vm574_vm0, %v907_v30  ;;  %v1124_v30 = vmul.f32 %v5330_v43, %v5372_v22  ;;  %v1125_v22 = vmul.f32 %v5367_v19, %v5402_v35  ;;  %v977_v35 = vpack.c.bf16 %v747_v40, %v5425_v54  ;;  %v1052_v54 = vmul.f32 %v5479_v55, %v5534_v61  ;;  %v974_v40 = vld [vmem:[#allocation2 + $0x48] sm:$0xff] }
 0x106   : > { %v1131_v42 = vpack.c.bf16 %v1124_v30, %v1123_v29  ;;  %v1056_v16 = vpack.c.bf16 %v1052_v54, %v1051_v20 }
 0x109   : > { %4225 = vmatmul.msk.bf16.gmra.mxu2 %vm574_vm0, %v752_v45 }
 0x10c   : > { %4217 = vmatmul.msk.bf16.gmra.mxu1 %vm574_vm0, %v680_v47  ;;  %v1049_v47 = vmul.f32 %v5440_v1, %v5447_v14 }
 0x10e   : > { %v1055_v53 = vpack.c.bf16 %v1050_v24, %v1049_v47 }
 0x113   : > { %4233 = vmatmul.msk.bf16.gmra.mxu3 %vm574_vm0, %v830_v17  ;;  %v1129_v17 = vmul.f32 %v5461_v37, %v896_v59 }
 0x114   : > { %4241 = vmatmul.msk.bf16.gmra.mxu0 %vm574_vm0, %v908_v0  ;;  %v1130_v0 = vmul.f32 %v5464_v38, %v1122_v39 }
 0x116   : > { %v1134_v18 = vpack.c.bf16 %v1130_v0, %v1129_v17 }
 0x119   : > { %4254 = vmatmul.msk.bf16.vlgmr.msra.gmra.mxu2 %vm574_vm0, %v1053_v26  ;;  %v1271_v26 = vmul.f32 %v5349_v62, %v5395_v32  ;;  %v1273_v32 = vmul.f32 %v5393_v31, %v5445_v13 }
 0x11c   : > { %4246 = vmatmul.msk.bf16.vlgmr.msra.gmra.mxu1 %vm574_vm0, %v975_v28  ;;  %v5556_v28 = vld [vmem:[#allocation11] ss:$0 sm:$0xff] }
 0x123   : > { %4262 = vmatmul.msk.bf16.vlgmr.msra.gmra.mxu3 %vm574_vm0, %v1131_v42 }
 0x124   : > { %4270 = vmatmul.msk.bf16.vlgmr.msra.gmra.mxu0 %vm574_vm0, %v5386_v27  ;;  %v1126_v27 = vmul.f32 %v5370_v21, %v5419_v52  ;;  %v1127_v52 = vmul.f32 %v5414_v50, %v5449_v15  ;;  %v978_v15 = vpack.c.bf16 %v974_v40, %v5468_v41  ;;  %v1272_v41 = vmul.f32 %v5352_v63, %v5400_v34 }
 0x125   : > { %v1274_v34 = vmul.f32 %v5398_v33, %v5447_v14  ;;  %v1275_v14 = vmul.f32 %v5440_v1, %v5481_v56  ;;  %v1270_v56 = vld [vmem:[#allocation2 + $0x51] sm:$0xff] }
 0x126   : > { %v1132_v44 = vpack.c.bf16 %v1126_v27, %v1125_v22  ;;  %v1279_v29 = vpack.c.bf16 %v1272_v41, %v1271_v26 }
 0x127   : > { %v1280_v24 = vpack.c.bf16 %v1274_v34, %v1273_v32  ;;  %v4575_v34 = vld [vmem:[#allocation13] sm:$0xff] }
 0x128   : > { %1384 = vmatpush.bf16.msrb.mxu2 %v4575_v34 }
 0x129   : > { %4255 = vmatmul.msk.bf16.gmra.mxu2 %vm574_vm0, %v1054_v23 }
 0x12c   : > { %4247 = vmatmul.msk.bf16.gmra.mxu1 %vm574_vm0, %v976_v12 }
 0x133   : > { %4263 = vmatmul.msk.bf16.gmra.mxu3 %vm574_vm0, %v1132_v44 }
 0x134   : > { %4271 = vmatmul.msk.bf16.gmra.mxu0 %vm574_vm0, %v5433_v57  ;;  %v1133_v57 = vpack.c.bf16 %v1128_v60, %v1127_v52 }
 0x139   : > { %4256 = vmatmul.msk.bf16.gmra.mxu2 %vm574_vm0, %v1055_v53 }
 0x13c   : > { %4248 = vmatmul.msk.bf16.gmra.mxu1 %vm574_vm0, %v977_v35 }
 0x143   : > { %4264 = vmatmul.msk.bf16.gmra.mxu3 %vm574_vm0, %v1133_v57 }
 0x144   : > { %4272 = vmatmul.msk.bf16.gmra.mxu0 %vm574_vm0, %v752_v45  ;;  %v5547_v45 = vld [vmem:[#allocation2 + $0x50] sm:$0xff] }
 0x145   : > { %6763 = vst [vmem:[#allocation29_spill] sm:$0xff] %v5547_v45  ;;  %v1204_v25 = vpack.c.bf16 %v5547_v45, %v974_v40  ;;  %v1276_v40 = vmul.f32 %v5443_v4, %v5483_v58 }
 0x147   : > { %v1281_v17 = vpack.c.bf16 %v1276_v40, %v1275_v14 }
 0x149   : > { %4257 = vmatmul.msk.bf16.gmra.mxu2 %vm574_vm0, %v1056_v16 }
 0x14c   : > { %4249 = vmatmul.msk.bf16.gmra.mxu1 %vm574_vm0, %v978_v15 }
 0x153   : > { %4265 = vmatmul.msk.bf16.gmra.mxu3 %vm574_vm0, %v1134_v18 }
 0x154   : > { %4273 = vmatmul.msk.bf16.gmra.mxu0 %vm574_vm0, %v1204_v25 }
 0x159   : > { %v710_v59 = vpop.f32.mrf.mxu1 }
 0x15a   : > { %v733_v30 = vadd.f32 %v5556_v28, %v710_v59 }
 0x15c   : > { %4278 = vmatmul.msk.bf16.vlgmr.msrb.gmra.mxu1 %vm574_vm0, %v1279_v29  ;;  %v783_v42 = vpop.f32.mrf.mxu2 }
 0x15d   : > { %v803_v8 = vadd.f32 %v783_v42, %v733_v30  ;;  %v1277_v42 = vmul.f32 %v5476_v49, %v5534_v61 }
 0x161   : > { %v5560_v48 = vpop.f32.mrf.mxu1  ;;  %v939_v23 = vpop.f32.mrf.mxu0 }
 0x164   : > { %v5562_v12 = vpop.f32.mrf.mxu2 }
 0x166   : > { %v861_v22 = vpop.f32.mrf.mxu3 }
 0x167   : > { %v881_v27 = vadd.f32 %v861_v22, %v803_v8  ;;  %v5595_v8 = vmul.f32 %v5479_v55, %v1270_v56 }
 0x169   : > { %v715_v44 = vpop.f32.mrf.mxu1  ;;  %v5568_v47 = vpop.f32.mrf.mxu0  ;;  %v959_v53 = vadd.f32 %v939_v23, %v881_v27  ;;  %6764 = vst [vmem:[#allocation30_spill] sm:$0xff] %v5595_v8  ;;  %v1282_v27 = vpack.c.bf16 %v5595_v8, %v1277_v42 }
 0x16a   : > { %v735_v35 = vadd.f32 %v5556_v28, %v715_v44 }
 0x16c   : > { %4279 = vmatmul.msk.bf16.gmra.mxu1 %vm574_vm0, %v1280_v24  ;;  %v788_v52 = vpop.f32.mrf.mxu2 }
 0x16d   : > { %v805_v60 = vadd.f32 %v788_v52, %v735_v35 }
 0x16e   : > { %v5572_v57 = vpop.f32.mrf.mxu3 }
 0x171   : > { %v5574_v20 = vpop.f32.mrf.mxu1  ;;  %v944_v13 = vpop.f32.mrf.mxu0 }
 0x174   : > { %v5576_v54 = vpop.f32.mrf.mxu2 }
 0x176   : > { %v866_v16 = vpop.f32.mrf.mxu3 }
 0x177   : > { %v883_v15 = vadd.f32 %v866_v16, %v805_v60 }
 0x179   : > { %v720_v39 = vpop.f32.mrf.mxu1  ;;  %v961_v0 = vadd.f32 %v944_v13, %v883_v15  ;;  %v5582_v18 = vpop.f32.mrf.mxu0 }
 0x17a   : > { %v737_v25 = vadd.f32 %v5556_v28, %v720_v39 }
 0x17c   : > { %4280 = vmatmul.msk.bf16.gmra.mxu1 %vm574_vm0, %v1281_v17  ;;  %v793_v26 = vpop.f32.mrf.mxu2 }
 0x17d   : > { %v807_v41 = vadd.f32 %v793_v26, %v737_v25 }
 0x17e   : > { %v5586_v59 = vpop.f32.mrf.mxu3 }
 0x181   : > { %v5588_v29 = vpop.f32.mrf.mxu1  ;;  %v949_v30 = vpop.f32.mrf.mxu0 }
 0x184   : > { %v5590_v58 = vpop.f32.mrf.mxu2 }
 0x186   : > { %v871_v23 = vpop.f32.mrf.mxu3 }
 0x187   : > { %v885_v32 = vadd.f32 %v871_v23, %v807_v41 }
 0x189   : > { %v725_v22 = vpop.f32.mrf.mxu1  ;;  %v963_v44 = vadd.f32 %v949_v30, %v885_v32  ;;  %v5600_v60 = vpop.f32.mrf.mxu0 }
 0x18a   : > { %v739_v24 = vadd.f32 %v5556_v28, %v725_v22 }
 0x18c   : > { %4281 = vmatmul.msk.bf16.gmra.mxu1 %vm574_vm0, %v1282_v27  ;;  %v798_v35 = vpop.f32.mrf.mxu2 }
 0x18d   : > { %v809_v52 = vadd.f32 %v798_v35, %v739_v24 }
 0x18e   : > { %v5602_v61 = vpop.f32.mrf.mxu3 }
 0x191   : > { %v5604_v13 = vpop.f32.mrf.mxu1  ;;  %v954_v16 = vpop.f32.mrf.mxu0 }
 0x194   : > { %v5606_v30 = vpop.f32.mrf.mxu2 }
 0x196   : > { %v876_v14 = vpop.f32.mrf.mxu3 }
 0x197   : > { %v887_v40 = vadd.f32 %v876_v14, %v809_v52 }
 0x199   : > { %v1009_v15 = vpop.f32.mrf.mxu1  ;;  %v965_v17 = vadd.f32 %v954_v16, %v887_v40  ;;  %v5612_v34 = vpop.f32.mrf.mxu0 }
 0x19a   : > { %v1029_v39 = vadd.f32 %v1009_v15, %v959_v53 }
 0x19c   : > { %v1087_v22 = vpop.f32.mrf.mxu2 }
 0x19d   : > { %v1107_v55 = vadd.f32 %v1087_v22, %v1029_v39 }
 0x19e   : > { %v5608_v42 = vpop.f32.mrf.mxu3 }
 0x1a1   : > { %v1011_v25 = vpop.f32.mrf.mxu1  ;;  %v1235_v35 = vpop.f32.mrf.mxu0 }
 0x1a4   : > { %v1089_v14 = vpop.f32.mrf.mxu2 }
 0x1a6   : > { %v1165_v24 = vpop.f32.mrf.mxu3 }
 0x1a7   : > { %v1185_v38 = vadd.f32 %v1165_v24, %v1107_v55 }
 0x1a9   : > { %v1014_v26 = vpop.f32.mrf.mxu1 }
 0x1aa   : > { %v1031_v41 = vadd.f32 %v1014_v26, %v961_v0  ;;  %v734_v0 = vadd.f32 %v5556_v28, %v5560_v48  ;;  %v1237_v26 = vpop.f32.mrf.mxu0  ;;  %v736_v48 = vadd.f32 %v5556_v28, %v5574_v20 }
 0x1ac   : > { %v804_v16 = vadd.f32 %v5562_v12, %v734_v0  ;;  %v1255_v12 = vadd.f32 %v1235_v35, %v1185_v38  ;;  %v806_v1 = vadd.f32 %v5576_v54, %v736_v48 }
 0x1ae   : > { %v1167_v40 = vpop.f32.mrf.mxu3 }
 0x1b1   : > { %v1016_v56 = vpop.f32.mrf.mxu1 }
 0x1b2   : > { %v1240_v4 = vpop.f32.mrf.mxu0 }
 0x1b6   : > { %v1170_v45 = vpop.f32.mrf.mxu3 }
 0x1b9   : > { %v1019_v23 = vpop.f32.mrf.mxu1 }
 0x1ba   : > { %v5610_v32 = vadd.f32 %v1019_v23, %v963_v44  ;;  %v882_v44 = vadd.f32 %v5572_v57, %v804_v16  ;;  %v1092_v23 = vpop.f32.mrf.mxu2  ;;  %v1242_v22 = vpop.f32.mrf.mxu0 }
 0x1bb   : > { %v1109_v24 = vadd.f32 %v1092_v23, %v1031_v41 }
 0x1bc   : > { %v960_v8 = vadd.f32 %v5568_v47, %v882_v44  ;;  %v884_v47 = vadd.f32 %v5586_v59, %v806_v1  ;;  %v738_v1 = vadd.f32 %v5556_v28, %v5588_v29 }
 0x1bd   : > { %v1187_v35 = vadd.f32 %v1170_v45, %v1109_v24 }
 0x1be   : > { %v1030_v49 = vadd.f32 %v1011_v25, %v960_v8  ;;  %v1172_v51 = vpop.f32.mrf.mxu3  ;;  %v808_v59 = vadd.f32 %v5590_v58, %v738_v1 }
 0x1c0   : > { %v886_v41 = vadd.f32 %v5602_v61, %v808_v59 }
 0x1c1   : > { %v1021_v27 = vpop.f32.mrf.mxu1 }
 0x1c2   : > { %v1094_v0 = vpop.f32.mrf.mxu2  ;;  %v964_v45 = vadd.f32 %v5600_v60, %v886_v41 }
 0x1c4   : > { %v1034_v29 = vadd.f32 %v1021_v27, %v964_v45 }
 0x1c9   : > { %v1024_v52 = vpop.f32.mrf.mxu1 }
 0x1ca   : > { %v5614_v53 = vadd.f32 %v1024_v52, %v965_v17  ;;  %v1108_v52 = vadd.f32 %v1089_v14, %v1030_v49  ;;  %v962_v49 = vadd.f32 %v5582_v18, %v884_v47  ;;  %v1097_v38 = vpop.f32.mrf.mxu2 }
 0x1cc   : > { %v1186_v37 = vadd.f32 %v1167_v40, %v1108_v52  ;;  %v1032_v14 = vadd.f32 %v1016_v56, %v962_v49 }
 0x1ce   : > { %v1256_v16 = vadd.f32 %v1237_v26, %v1186_v37  ;;  %v1110_v54 = vadd.f32 %v1094_v0, %v1032_v14  ;;  %v1175_v37 = vpop.f32.mrf.mxu3  ;;  %v1245_v26 = vpop.f32.mrf.mxu0  ;;  %v1111_v0 = vadd.f32 %v1097_v38, %v5610_v32 }
 0x1d0   : > { %v1188_v40 = vadd.f32 %v1172_v51, %v1110_v54 }
 0x1d1   : > { %v5619_v15 = vpop.f32.mrf.mxu1 }
 0x1d2   : > { %v1258_v18 = vadd.f32 %v1242_v22, %v1188_v40  ;;  %v1099_v23 = vpop.f32.mrf.mxu2 }
 0x1d6   : > { %v1247_v47 = vpop.f32.mrf.mxu0 }
 0x1d9   : > { %v1313_v17 = vpop.f32.mrf.mxu1 }
 0x1da   : > { %v1333_v57 = vadd.f32 %v1313_v17, %v1255_v12  ;;  %v1177_v12 = vpop.f32.mrf.mxu3 }
 0x1dc   : > { %v1341_v8 = vmax.f32 %v1333_v57, 0.0  ;;  %v1112_v57 = vadd.f32 %v1099_v23, %v1034_v29 }
 0x1de   : > { %v1190_v61 = vadd.f32 %v1177_v12, %v1112_v57 }
 0x1e0   : > { %v1260_v32 = vadd.f32 %v1247_v47, %v1190_v61 }
 0x1e1   : > { %v1315_v50 = vpop.f32.mrf.mxu1 }
 0x1e2   : > { %v1334_v39 = vadd.f32 %v1315_v50, %v1256_v16  ;;  %v1257_v50 = vadd.f32 %v1240_v4, %v1187_v35  ;;  %v4576_v4 = vld [vmem:[#allocation7 + $0x8] sm:$0xff]  ;;  %v1189_v16 = vadd.f32 %v1175_v37, %v1111_v0  ;;  %v1180_v49 = vpop.f32.mrf.mxu3 }
 0x1e3   : > { %1459 = vmatpush.bf16.msrb.mxu3 %v4576_v4 }
 0x1e4   : > { %v1342_v25 = vmax.f32 %v1334_v39, 0.0  ;;  %v1102_v39 = vpop.f32.mrf.mxu2 }
 0x1e5   : > { %v1113_v40 = vadd.f32 %v1102_v39, %v5614_v53 }
 0x1e6   : > { %v1349_v55 = vpack.c.bf16 %v1342_v25, %v1341_v8  ;;  %v740_v8 = vadd.f32 %v5556_v28, %v5604_v13  ;;  %v1259_v25 = vadd.f32 %v1245_v26, %v1189_v16 }
 0x1e8   : > { %4286 = vmatmul.msk.bf16.vlgmr.msrb.gmra.mxu2 %vm574_vm0, %v1349_v55  ;;  %v810_v60 = vadd.f32 %v5606_v30, %v740_v8 }
 0x1e9   : > { %v1318_v20 = vpop.f32.mrf.mxu1 }
 0x1ea   : > { %v1335_v44 = vadd.f32 %v1318_v20, %v1257_v50  ;;  %v888_v22 = vadd.f32 %v5608_v42, %v810_v60  ;;  %v1250_v20 = vpop.f32.mrf.mxu0  ;;  %v1182_v13 = vpop.f32.mrf.mxu3  ;;  %v1191_v50 = vadd.f32 %v1180_v49, %v1113_v40  ;;  %v4577_v49 = vld [vmem:[#allocation10 + $0x48] sm:$0xff] }
 0x1eb   : > { %1547 = vmatpush.bf16.msrb.mxu0 %v4577_v49 }
 0x1ec   : > { %v1343_v52 = vmax.f32 %v1335_v44, 0.0  ;;  %v966_v54 = vadd.f32 %v5612_v34, %v888_v22  ;;  %v1104_v37 = vpop.f32.mrf.mxu2  ;;  %v1261_v42 = vadd.f32 %v1250_v20, %v1191_v50 }
 0x1ee   : > { %v1036_v28 = vadd.f32 %v5619_v15, %v966_v54  ;;  %v4732_v15 = vld [vmem:[#allocation14] ss:$0 sm:$0xff] }
 0x1f0   : > { %v1114_v1 = vadd.f32 %v1104_v37, %v1036_v28  ;;  %v4579_v28 = vld [vmem:[#allocation10 + $0x58] sm:$0xff] }
 0x1f1   : > { %v1320_v17 = vpop.f32.mrf.mxu1  ;;  %1698 = vmatpush.bf16.msra.mxu2 %v4579_v28 }
 0x1f2   : > { %v1336_v56 = vadd.f32 %v1320_v17, %v1258_v18  ;;  %v1192_v59 = vadd.f32 %v1182_v13, %v1114_v1  ;;  %v1252_v44 = vpop.f32.mrf.mxu0  ;;  %v4580_v13 = vld [vmem:[#allocation10 + $0x60] sm:$0xff] }
 0x1f3   : > { %1776 = vmatpush.bf16.msra.mxu3 %v4580_v13  ;;  %v4583_v13 = vld [vmem:[#allocation10 + $0x78] sm:$0xff] }
 0x1f4   : > { %v1344_v48 = vmax.f32 %v1336_v56, 0.0  ;;  %v1262_v26 = vadd.f32 %v1252_v44, %v1192_v59 }
 0x1f5   : > { %2002 = vmatpush.bf16.msrb.mxu2 %v4583_v13 }
 0x1f6   : > { %v1350_v51 = vpack.c.bf16 %v1344_v48, %v1343_v52 }
 0x1f8   : > { %4287 = vmatmul.msk.bf16.gmra.mxu2 %vm574_vm0, %v1350_v51 }
 0x1f9   : > { %v1323_v58 = vpop.f32.mrf.mxu1 }
 0x1fa   : > { %v1337_v55 = vadd.f32 %v1323_v58, %v1259_v25 }
 0x1fc   : > { %v1345_v14 = vmax.f32 %v1337_v55, 0.0 }
 0x201   : > { %v1325_v27 = vpop.f32.mrf.mxu1 }
 0x202   : > { %v1338_v24 = vadd.f32 %v1325_v27, %v1260_v32 }
 0x204   : > { %v1346_v38 = vmax.f32 %v1338_v24, 0.0 }
 0x206   : > { %v1351_v35 = vpack.c.bf16 %v1346_v38, %v1345_v14 }
 0x208   : > { %4288 = vmatmul.msk.bf16.gmra.mxu2 %vm574_vm0, %v1351_v35 }
 0x209   : > { %v1328_v30 = vpop.f32.mrf.mxu1 }
 0x20a   : > { %v1339_v18 = vadd.f32 %v1328_v30, %v1261_v42  ;;  %v4581_v30 = vld [vmem:[#allocation10 + $0x68] sm:$0xff] }
 0x20b   : > { %1846 = vmatpush.bf16.msra.mxu0 %v4581_v30 }
 0x20c   : > { %v1347_v34 = vmax.f32 %v1339_v18, 0.0  ;;  %v5702_v18 = vld [vmem:[#allocation2 + $0x8] sm:$0xff] }
 0x211   : > { %v1330_v17 = vpop.f32.mrf.mxu1 }
 0x212   : > { %v1340_v41 = vadd.f32 %v1330_v17, %v1262_v26 }
 0x214   : > { %v1348_v56 = vmax.f32 %v1340_v41, 0.0 }
 0x216   : > { %v1352_v23 = vpack.c.bf16 %v1348_v56, %v1347_v34 }
 0x218   : > { %4289 = vmatmul.msk.bf16.gmra.mxu2 %vm574_vm0, %v1352_v23 }
 0x26b   : > { %v1386_v53 = vpop.f32.mrf.mxu2 }
 0x26c   : > { %v1387_v52 = vadd.f32 %v4732_v15, %v1386_v53 }
 0x26e   : > { %v5646_v12 = vadd.f32 %v1387_v52, %v5273_v2 }
 0x270   : > { %v6711_v0 = vmax.f32 %v5646_v12, 0.0 }
 0x273   : > { %v1388_v48 = vpop.f32.mrf.mxu2 }
 0x274   : > { %v1389_v45 = vadd.f32 %v4732_v15, %v1388_v48 }
 0x276   : > { %v5649_v51 = vadd.f32 %v1389_v45, %v5276_v3 }
 0x278   : > { %v6710_v29 = vmax.f32 %v5649_v51, 0.0 }
 0x27a   : > { %v1422_v4 = vpack.c.bf16 %v6710_v29, %v6711_v0 }
 0x27b   : > { %v1391_v58 = vpop.f32.mrf.mxu2 }
 0x27c   : > { %4294 = vmatmul.msk.bf16.vlgmr.msrb.gmra.mxu3 %vm574_vm0, %v1422_v4  ;;  %v1392_v57 = vadd.f32 %v4732_v15, %v1391_v58 }
 0x27e   : > { %v5659_v2 = vadd.f32 %v1392_v57, %v5283_v5 }
 0x280   : > { %v6709_v61 = vmax.f32 %v5659_v2, 0.0 }
 0x283   : > { %v1393_v16 = vpop.f32.mrf.mxu2 }
 0x284   : > { %v1394_v47 = vadd.f32 %v4732_v15, %v1393_v16 }
 0x286   : > { %v5662_v3 = vadd.f32 %v1394_v47, %v5286_v6 }
 0x288   : > { %v6708_v39 = vmax.f32 %v5662_v3, 0.0 }
 0x28a   : > { %v1423_v8 = vpack.c.bf16 %v6708_v39, %v6709_v61 }
 0x28b   : > { %v1396_v25 = vpop.f32.mrf.mxu2 }
 0x28c   : > { %4295 = vmatmul.msk.bf16.gmra.mxu3 %vm574_vm0, %v1423_v8  ;;  %v1397_v5 = vadd.f32 %v4732_v15, %v1396_v25 }
 0x28e   : > { %v5672_v55 = vadd.f32 %v1397_v5, %v5289_v7 }
 0x290   : > { %v6707_v27 = vmax.f32 %v5672_v55, 0.0 }
 0x293   : > { %v1398_v60 = vpop.f32.mrf.mxu2 }
 0x294   : > { %v1399_v6 = vadd.f32 %v4732_v15, %v1398_v60 }
 0x296   : > { %v5675_v32 = vadd.f32 %v1399_v6, %v5296_v9 }
 0x298   : > { %v6706_v22 = vmax.f32 %v5675_v32, 0.0 }
 0x29a   : > { %v1424_v24 = vpack.c.bf16 %v6706_v22, %v6707_v27 }
 0x29b   : > { %v1401_v14 = vpop.f32.mrf.mxu2 }
 0x29c   : > { %4296 = vmatmul.msk.bf16.gmra.mxu3 %vm574_vm0, %v1424_v24  ;;  %v1402_v38 = vadd.f32 %v4732_v15, %v1401_v14 }
 0x29e   : > { %v5685_v7 = vadd.f32 %v1402_v38, %v5299_v10  ;;  %v4578_v10 = vld [vmem:[#allocation10 + $0x50] sm:$0xff] }
 0x29f   : > { %1620 = vmatpush.bf16.msra.mxu1 %v4578_v10 }
 0x2a0   : > { %v6705_v35 = vmax.f32 %v5685_v7, 0.0 }
 0x2a3   : > { %v1403_v20 = vpop.f32.mrf.mxu2 }
 0x2a4   : > { %v1404_v54 = vadd.f32 %v4732_v15, %v1403_v20 }
 0x2a6   : > { %v5688_v9 = vadd.f32 %v1404_v54, %v5302_v11  ;;  %v5697_v11 = vld [vmem:[#allocation8 + $0x1] ss:$0 sm:$0xff] }
 0x2a8   : > { %v6704_v37 = vmax.f32 %v5688_v9, 0.0 }
 0x2aa   : > { %v1425_v40 = vpack.c.bf16 %v6704_v37, %v6705_v35 }
 0x2ac   : > { %4297 = vmatmul.msk.bf16.gmra.mxu3 %vm574_vm0, %v1425_v40 }
 0x2ff   : > { %v1461_v1 = vpop.f32.mrf.mxu3 }
 0x300   : > { %v1462_v50 = vadd.f32 %v5697_v11, %v1461_v1 }
 0x302   : > { %v1481_v59 = vmax.f32 %v1462_v50, 0.0 }
 0x304   : > { %1489 = vst.msk [vmem:[#allocation2 + $0x10] sm:$0xff] %vm574_vm0, %v1481_v59 }
 0x307   : > { %v1463_v42 = vpop.f32.mrf.mxu3 }
 0x308   : > { %v1464_v44 = vadd.f32 %v5697_v11, %v1463_v42 }
 0x30a   : > { %v1482_v26 = vmax.f32 %v1464_v44, 0.0 }
 0x30b   : > { %v5704_v17 = vld [vmem:[#allocation2 + $0x10] sm:$0xff] }
 0x30c   : > { %v1500_v41 = vld [vmem:[#allocation2 + $0xf] sm:$0xff]  ;;  %1490 = vst.msk [vmem:[#allocation2 + $0x18] sm:$0xff] %vm574_vm0, %v1482_v26  ;;  %v1588_v34 = vpack.c.bf16 %v5704_v17, %v5702_v18 }
 0x30d   : > { %v1508_v56 = vmul.f32 %v5330_v43, %v1500_v41  ;;  %v1650_v52 = vld [vmem:[#allocation2 + $0x9] sm:$0xff] }
 0x30e   : > { %4310 = vmatmul.msk.bf16.vlgmr.msra.gmra.mxu1 %vm574_vm0, %v1588_v34  ;;  %v1658_v58 = vmul.f32 %v5349_v62, %v1650_v52 }
 0x30f   : > { %v1515_v23 = vpack.c.bf16 %v1508_v56, %v5333_v46  ;;  %v1466_v53 = vpop.f32.mrf.mxu3  ;;  %v1736_v46 = vmul.f32 %v5327_v36, %v1500_v41 }
 0x310   : > { %v1467_v15 = vadd.f32 %v5697_v11, %v1466_v53  ;;  %v4584_v53 = vld [vmem:[#allocation10 + $0x80] sm:$0xff] }
 0x311   : > { %4302 = vmatmul.msk.bf16.vlgmr.msrb.gmra.mxu0 %vm574_vm0, %v1515_v23  ;;  %2072 = vmatpush.bf16.msrb.mxu3 %v4584_v53 }
 0x312   : > { %v1483_v48 = vmax.f32 %v1467_v15, 0.0  ;;  %v4582_v15 = vld [vmem:[#allocation10 + $0x70] sm:$0xff] }
 0x313   : > { %v5714_v45 = vld [vmem:[#allocation2 + $0x11] sm:$0xff]  ;;  %1924 = vmatpush.bf16.msrb.mxu1 %v4582_v15 }
 0x314   : > { %v5716_v4 = vld [vmem:[#allocation2 + $0x17] sm:$0xff]  ;;  %1491 = vst.msk [vmem:[#allocation2 + $0x20] sm:$0xff] %vm574_vm0, %v1483_v48  ;;  %v1659_v57 = vmul.f32 %v5352_v63, %v5714_v45 }
 0x315   : > { %v1737_v16 = vmul.f32 %v5330_v43, %v5716_v4  ;;  %v5728_v60 = vld [vmem:[#allocation2 + $0x18] sm:$0xff]  ;;  %v1509_v38 = vmul.f32 %v5367_v19, %v5716_v4 }
 0x316   : > { %v1666_v47 = vpack.c.bf16 %v1659_v57, %v1658_v58  ;;  %v1814_v22 = vpack.c.bf16 %v5728_v60, %v5704_v17 }
 0x317   : > { %v1744_v8 = vpack.c.bf16 %v1737_v16, %v1736_v46  ;;  %v1468_v25 = vpop.f32.mrf.mxu3  ;;  %v6765_v16 = vld [vmem:[#allocation21_spill] sm:$0xff] }
 0x318   : > { %v1469_v49 = vadd.f32 %v5697_v11, %v1468_v25  ;;  %4318 = vmatmul.msk.bf16.vlgmr.msra.gmra.mxu2 %vm574_vm0, %v1666_v47 }
 0x319   : > { %4326 = vmatmul.msk.bf16.vlgmr.msra.gmra.mxu3 %vm574_vm0, %v1744_v8  ;;  %v6766_v8 = vld [vmem:[#allocation22_spill] sm:$0xff] }
 0x31a   : > { %v1484_v5 = vmax.f32 %v1469_v49, 0.0 }
 0x31b   : > { %v5730_v6 = vld [vmem:[#allocation2 + $0x20] sm:$0xff] }
 0x31c   : > { %v5732_v24 = vld [vmem:[#allocation2 + $0x1f] sm:$0xff]  ;;  %1492 = vst.msk [vmem:[#allocation2 + $0x28] sm:$0xff] %vm574_vm0, %v1484_v5  ;;  %v5737_v14 = vpack.c.bf16 %v5730_v6, %v5728_v60 }
 0x31d   : > { %v1510_v20 = vmul.f32 %v5370_v21, %v5732_v24  ;;  %v5747_v10 = vld [vmem:[#allocation2 + $0x19] sm:$0xff]  ;;  %v1738_v44 = vmul.f32 %v5367_v19, %v5732_v24 }
 0x31e   : > { %4311 = vmatmul.msk.bf16.gmra.mxu1 %vm574_vm0, %v5737_v14  ;;  %v1660_v59 = vmul.f32 %v5393_v31, %v5747_v10 }
 0x31f   : > { %v1516_v54 = vpack.c.bf16 %v1510_v20, %v1509_v38  ;;  %v1471_v40 = vpop.f32.mrf.mxu3  ;;  %v4585_v20 = vld [vmem:[#allocation10 + $0x88] sm:$0xff] }
 0x320   : > { %v1472_v28 = vadd.f32 %v5697_v11, %v1471_v40  ;;  %2150 = vmatpush.bf16.msrb.mxu0 %v4585_v20  ;;  %v6770_v20 = vld [vmem:[#allocation26_spill] sm:$0xff] }
 0x321   : > { %4303 = vmatmul.msk.bf16.gmra.mxu0 %vm574_vm0, %v1516_v54 }
 0x322   : > { %v1485_v30 = vmax.f32 %v1472_v28, 0.0 }
 0x323   : > { %v5749_v1 = vld [vmem:[#allocation2 + $0x21] sm:$0xff] }
 0x324   : > { %v5751_v50 = vld [vmem:[#allocation2 + $0x27] sm:$0xff]  ;;  %1493 = vst.msk [vmem:[#allocation2 + $0x30] sm:$0xff] %vm574_vm0, %v1485_v30  ;;  %v1661_v42 = vmul.f32 %v5398_v33, %v5749_v1  ;;  %v6767_v30 = vld [vmem:[#allocation23_spill] sm:$0xff]  ;;  %v1886_v17 = vmul.f32 %v5393_v31, %v5749_v1 }
 0x325   : > { %v1739_v26 = vmul.f32 %v5370_v21, %v5751_v50  ;;  %v5765_v48 = vld [vmem:[#allocation2 + $0x28] sm:$0xff]  ;;  %v1511_v47 = vmul.f32 %v6765_v16, %v5751_v50 }
 0x326   : > { %v1667_v41 = vpack.c.bf16 %v1661_v42, %v1660_v59  ;;  %v6768_v42 = vld [vmem:[#allocation24_spill] sm:$0xff] }
 0x327   : > { %v1745_v34 = vpack.c.bf16 %v1739_v26, %v1738_v44  ;;  %v1473_v56 = vpop.f32.mrf.mxu3 }
 0x328   : > { %v1474_v23 = vadd.f32 %v5697_v11, %v1473_v56  ;;  %4319 = vmatmul.msk.bf16.gmra.mxu2 %vm574_vm0, %v1667_v41 }
 0x329   : > { %4327 = vmatmul.msk.bf16.gmra.mxu3 %vm574_vm0, %v1745_v34 }
 0x32a   : > { %v1486_v52 = vmax.f32 %v1474_v23, 0.0 }
 0x32b   : > { %v5767_v58 = vld [vmem:[#allocation2 + $0x30] sm:$0xff] }
 0x32c   : > { %v5769_v57 = vld [vmem:[#allocation2 + $0x2f] sm:$0xff]  ;;  %1494 = vst.msk [vmem:[#allocation2 + $0x38] sm:$0xff] %vm574_vm0, %v1486_v52  ;;  %v5774_v46 = vpack.c.bf16 %v5767_v58, %v5765_v48 }
 0x32d   : > { %v1512_v25 = vmul.f32 %v6766_v8, %v5769_v57  ;;  %v5784_v54 = vld [vmem:[#allocation2 + $0x29] sm:$0xff]  ;;  %v1740_v26 = vmul.f32 %v6765_v16, %v5769_v57 }
 0x32e   : > { %4312 = vmatmul.msk.bf16.gmra.mxu1 %vm574_vm0, %v5774_v46  ;;  %v1662_v59 = vmul.f32 %v6767_v30, %v5784_v54 }
 0x32f   : > { %v1517_v49 = vpack.c.bf16 %v1512_v25, %v1511_v47  ;;  %v1476_v5 = vpop.f32.mrf.mxu3 }
 0x330   : > { %v1477_v38 = vadd.f32 %v5697_v11, %v1476_v5  ;;  %v6769_v5 = vld [vmem:[#allocation25_spill] sm:$0xff] }
 0x331   : > { %4304 = vmatmul.msk.bf16.gmra.mxu0 %vm574_vm0, %v1517_v49 }
 0x332   : > { %v1487_v40 = vmax.f32 %v1477_v38, 0.0 }
 0x333   : > { %v5786_v28 = vld [vmem:[#allocation2 + $0x31] sm:$0xff] }
 0x334   : > { %v5788_v13 = vld [vmem:[#allocation2 + $0x37] sm:$0xff]  ;;  %1495 = vst.msk [vmem:[#allocation2 + $0x40] sm:$0xff] %vm574_vm0, %v1487_v40  ;;  %v1663_v44 = vmul.f32 %v6768_v42, %v5786_v28 }
 0x335   : > { %v1741_v41 = vmul.f32 %v6766_v8, %v5788_v13  ;;  %v1586_v52 = vld [vmem:[#allocation2 + $0x38] sm:$0xff]  ;;  %v1513_v38 = vmul.f32 %v6769_v5, %v5788_v13 }
 0x336   : > { %v1668_v34 = vpack.c.bf16 %v1663_v44, %v1662_v59 }
 0x337   : > { %v1746_v56 = vpack.c.bf16 %v1741_v41, %v1740_v26  ;;  %v1478_v23 = vpop.f32.mrf.mxu3  ;;  %v6771_v41 = vld [vmem:[#allocation27_spill] sm:$0xff] }
 0x338   : > { %v1479_v53 = vadd.f32 %v5697_v11, %v1478_v23  ;;  %4320 = vmatmul.msk.bf16.gmra.mxu2 %vm574_vm0, %v1668_v34 }
 0x339   : > { %4328 = vmatmul.msk.bf16.gmra.mxu3 %vm574_vm0, %v1746_v56  ;;  %v6772_v56 = vld [vmem:[#allocation28_spill] sm:$0xff] }
 0x33a   : > { %v1488_v15 = vmax.f32 %v1479_v53, 0.0 }
 0x33b   : > { %v1587_v47 = vld [vmem:[#allocation2 + $0x40] sm:$0xff] }
 0x33c   : > { %v1506_v25 = vld [vmem:[#allocation2 + $0x3f] sm:$0xff]  ;;  %1496 = vst.msk [vmem:[#allocation2 + $0x48] sm:$0xff] %vm574_vm0, %v1488_v15  ;;  %v1591_v49 = vpack.c.bf16 %v1587_v47, %v1586_v52 }
 0x33d   : > { %v1514_v40 = vmul.f32 %v6770_v20, %v1506_v25  ;;  %v5808_v11 = vld [vmem:[#allocation2 + $0x39] sm:$0xff]  ;;  %v1742_v53 = vmul.f32 %v6769_v5, %v1506_v25 }
 0x33e   : > { %4313 = vmatmul.msk.bf16.gmra.mxu1 %vm574_vm0, %v1591_v49  ;;  %v1664_v34 = vmul.f32 %v6771_v41, %v5808_v11 }
 0x33f   : > { %v1518_v59 = vpack.c.bf16 %v1514_v40, %v1513_v38  ;;  %v1885_v38 = vmul.f32 %v5352_v63, %v5747_v10  ;;  %v1884_v40 = vmul.f32 %v5349_v62, %v5714_v45  ;;  %v1887_v45 = vmul.f32 %v5398_v33, %v5784_v54 }
 0x341   : > { %4305 = vmatmul.msk.bf16.gmra.mxu0 %vm574_vm0, %v1518_v59  ;;  %v1892_v59 = vpack.c.bf16 %v1885_v38, %v1884_v40  ;;  %v1893_v60 = vpack.c.bf16 %v1887_v45, %v1886_v17  ;;  %v5872_v45 = vld [vmem:[#allocation11 + $0x1] ss:$0 sm:$0xff]  ;;  %v2111_v17 = vmul.f32 %v5352_v63, %v5749_v1 }
 0x343   : > { %v5810_v44 = vld [vmem:[#allocation2 + $0x41] sm:$0xff] }
 0x344   : > { %v1735_v26 = vld [vmem:[#allocation2 + $0x47] sm:$0xff]  ;;  %v1665_v23 = vmul.f32 %v6772_v56, %v5810_v44  ;;  %v1890_v38 = vmul.f32 %v6771_v41, %v5810_v44 }
 0x345   : > { %v1743_v15 = vmul.f32 %v6770_v20, %v1735_v26 }
 0x346   : > { %v1669_v37 = vpack.c.bf16 %v1665_v23, %v1664_v34  ;;  %v1963_v34 = vmul.f32 %v5330_v43, %v5732_v24  ;;  %v1964_v24 = vmul.f32 %v5367_v19, %v5751_v50  ;;  %v1889_v23 = vmul.f32 %v6768_v42, %v5808_v11 }
 0x347   : > { %v1747_v35 = vpack.c.bf16 %v1743_v15, %v1742_v53  ;;  %v1967_v50 = vmul.f32 %v6766_v8, %v1506_v25  ;;  %v1966_v53 = vmul.f32 %v6765_v16, %v5788_v13  ;;  %v1883_v15 = vld [vmem:[#allocation2 + $0x49] sm:$0xff]  ;;  %v1968_v13 = vmul.f32 %v6769_v5, %v1735_v26 }
 0x348   : > { %4321 = vmatmul.msk.bf16.gmra.mxu2 %vm574_vm0, %v1669_v37  ;;  %v1891_v40 = vmul.f32 %v6772_v56, %v1883_v15  ;;  %v1961_v25 = vld [vmem:[#allocation2 + $0x4f] sm:$0xff] }
 0x349   : > { %4329 = vmatmul.msk.bf16.gmra.mxu3 %vm574_vm0, %v1747_v35  ;;  %v1962_v35 = vmul.f32 %v5327_v36, %v5716_v4  ;;  %v1965_v4 = vmul.f32 %v5370_v21, %v5769_v57  ;;  %v1816_v57 = vpack.c.bf16 %v1586_v52, %v5767_v58 }
 0x34a   : > { %v1895_v58 = vpack.c.bf16 %v1891_v40, %v1890_v38 }
 0x34b   : > { %v1970_v37 = vpack.c.bf16 %v1963_v34, %v1962_v35  ;;  %v1969_v34 = vmul.f32 %v6770_v20, %v1961_v25 }
 0x34d   : > { %v1973_v35 = vpack.c.bf16 %v1969_v34, %v1968_v13  ;;  %v2115_v13 = vmul.f32 %v6768_v42, %v5810_v44 }
 0x34e   : > { %4342 = vmatmul.msk.bf16.vlgmr.msrb.gmra.mxu1 %vm574_vm0, %v1892_v59  ;;  %v1813_v59 = vld [vmem:[#allocation2 + $0x48] sm:$0xff] }
 0x34f   : > { %v1817_v52 = vpack.c.bf16 %v1813_v59, %v1587_v47 }
 0x351   : > { %4334 = vmatmul.msk.bf16.vlgmr.msra.gmra.mxu0 %vm574_vm0, %v1814_v22  ;;  %v1815_v22 = vpack.c.bf16 %v5765_v48, %v5730_v6  ;;  %v1888_v6 = vmul.f32 %v6767_v30, %v5786_v28 }
 0x353   : > { %v1894_v48 = vpack.c.bf16 %v1889_v23, %v1888_v6  ;;  %v2113_v6 = vmul.f32 %v5398_v33, %v5786_v28 }
 0x358   : > { %4350 = vmatmul.msk.bf16.vlgmr.msrb.gmra.mxu2 %vm574_vm0, %v1970_v37  ;;  %v6773_v37 = vld [vmem:[#allocation29_spill] sm:$0xff] }
 0x359   : > { %4358 = vmatmul.msk.bf16.vlgmr.msrb.gmra.mxu3 %vm574_vm0, %v5737_v14  ;;  %v1971_v14 = vpack.c.bf16 %v1965_v4, %v1964_v24 }
 0x35e   : > { %4343 = vmatmul.msk.bf16.gmra.mxu1 %vm574_vm0, %v1893_v60  ;;  %v2110_v60 = vmul.f32 %v5349_v62, %v5747_v10  ;;  %v2112_v10 = vmul.f32 %v5393_v31, %v5784_v54 }
 0x360   : > { %v2118_v4 = vpack.c.bf16 %v2111_v17, %v2110_v60  ;;  %v2119_v40 = vpack.c.bf16 %v2113_v6, %v2112_v10 }
 0x361   : > { %4335 = vmatmul.msk.bf16.gmra.mxu0 %vm574_vm0, %v1815_v22 }
 0x368   : > { %4351 = vmatmul.msk.bf16.gmra.mxu2 %vm574_vm0, %v1971_v14 }
 0x369   : > { %4359 = vmatmul.msk.bf16.gmra.mxu3 %vm574_vm0, %v5774_v46  ;;  %v1972_v46 = vpack.c.bf16 %v1967_v50, %v1966_v53 }
 0x36e   : > { %4344 = vmatmul.msk.bf16.gmra.mxu1 %vm574_vm0, %v1894_v48 }
 0x371   : > { %4336 = vmatmul.msk.bf16.gmra.mxu0 %vm574_vm0, %v1816_v57 }
 0x378   : > { %4352 = vmatmul.msk.bf16.gmra.mxu2 %vm574_vm0, %v1972_v46 }
 0x379   : > { %4360 = vmatmul.msk.bf16.gmra.mxu3 %vm574_vm0, %v1591_v49  ;;  %v2043_v49 = vpack.c.bf16 %v6773_v37, %v1813_v59 }
 0x37e   : > { %4345 = vmatmul.msk.bf16.gmra.mxu1 %vm574_vm0, %v1895_v58 }
 0x381   : > { %4337 = vmatmul.msk.bf16.gmra.mxu0 %vm574_vm0, %v1817_v52 }
 0x388   : > { %4353 = vmatmul.msk.bf16.gmra.mxu2 %vm574_vm0, %v1973_v35 }
 0x389   : > { %4361 = vmatmul.msk.bf16.gmra.mxu3 %vm574_vm0, %v2043_v49  ;;  %v2114_v49 = vmul.f32 %v6767_v30, %v5808_v11 }
 0x38b   : > { %v1622_v47 = vpop.f32.mrf.mxu1 }
 0x38e   : > { %v1549_v22 = vpop.f32.mrf.mxu0 }
 0x38f   : > { %v1572_v26 = vadd.f32 %v5872_v45, %v1549_v22  ;;  %v2120_v22 = vpack.c.bf16 %v2115_v13, %v2114_v49 }
 0x391   : > { %4366 = vmatmul.msk.bf16.vlgmr.msrb.gmra.mxu0 %vm574_vm0, %v2118_v4  ;;  %v1642_v24 = vadd.f32 %v1622_v47, %v1572_v26 }
 0x393   : > { %v5880_v14 = vpop.f32.mrf.mxu1 }
 0x396   : > { %v5882_v23 = vpop.f32.mrf.mxu0 }
 0x39b   : > { %v1627_v48 = vpop.f32.mrf.mxu1  ;;  %v1700_v1 = vpop.f32.mrf.mxu2 }
 0x39c   : > { %v1720_v57 = vadd.f32 %v1700_v1, %v1642_v24  ;;  %v1778_v50 = vpop.f32.mrf.mxu3 }
 0x39e   : > { %v1554_v53 = vpop.f32.mrf.mxu0  ;;  %v1798_v46 = vadd.f32 %v1778_v50, %v1720_v57 }
 0x39f   : > { %v1574_v38 = vadd.f32 %v5872_v45, %v1554_v53 }
 0x3a1   : > { %4367 = vmatmul.msk.bf16.gmra.mxu0 %vm574_vm0, %v2119_v40  ;;  %v1644_v59 = vadd.f32 %v1627_v48, %v1574_v38  ;;  %v2116_v48 = vmul.f32 %v6771_v41, %v1883_v15  ;;  %v6774_v38 = vld [vmem:[#allocation30_spill] sm:$0xff] }
 0x3a3   : > { %v5890_v58 = vpop.f32.mrf.mxu1  ;;  %v1702_v52 = vpop.f32.mrf.mxu2  ;;  %v2121_v40 = vpack.c.bf16 %v6774_v38, %v2116_v48 }
 0x3a4   : > { %v1780_v25 = vpop.f32.mrf.mxu3 }
 0x3a6   : > { %v5892_v28 = vpop.f32.mrf.mxu0 }
 0x3a7   : > { %v1575_v5 = vadd.f32 %v5872_v45, %v5892_v28 }
 0x3a9   : > { %v1645_v30 = vadd.f32 %v5890_v58, %v1575_v5 }
 0x3ab   : > { %v1632_v34 = vpop.f32.mrf.mxu1  ;;  %v1705_v35 = vpop.f32.mrf.mxu2 }
 0x3ac   : > { %v1722_v54 = vadd.f32 %v1705_v35, %v1644_v59  ;;  %v1783_v37 = vpop.f32.mrf.mxu3  ;;  %v4586_v59 = vld [vmem:[#allocation13 + $0x8] sm:$0xff] }
 0x3ad   : > { %2225 = vmatpush.bf16.msra.mxu1 %v4586_v59 }
 0x3ae   : > { %v1559_v17 = vpop.f32.mrf.mxu0  ;;  %v1800_v47 = vadd.f32 %v1783_v37, %v1722_v54 }
 0x3af   : > { %v1576_v60 = vadd.f32 %v5872_v45, %v1559_v17 }
 0x3b1   : > { %4368 = vmatmul.msk.bf16.gmra.mxu0 %vm574_vm0, %v2120_v22  ;;  %v1646_v26 = vadd.f32 %v1632_v34, %v1576_v60 }
 0x3b3   : > { %v1707_v4 = vpop.f32.mrf.mxu2  ;;  %v5902_v6 = vpop.f32.mrf.mxu1 }
 0x3b4   : > { %v5900_v24 = vpop.f32.mrf.mxu3 }
 0x3b6   : > { %v5904_v44 = vpop.f32.mrf.mxu0 }
 0x3bb   : > { %v1710_v1 = vpop.f32.mrf.mxu2  ;;  %v1637_v13 = vpop.f32.mrf.mxu1 }
 0x3bc   : > { %v1724_v57 = vadd.f32 %v1710_v1, %v1646_v26  ;;  %v1788_v11 = vpop.f32.mrf.mxu3 }
 0x3be   : > { %v1564_v50 = vpop.f32.mrf.mxu0  ;;  %v1802_v10 = vadd.f32 %v1788_v11, %v1724_v57 }
 0x3bf   : > { %v1578_v53 = vadd.f32 %v5872_v45, %v1564_v50 }
 0x3c1   : > { %4369 = vmatmul.msk.bf16.gmra.mxu0 %vm574_vm0, %v2121_v40  ;;  %v1648_v34 = vadd.f32 %v1637_v13, %v1578_v53 }
 0x3c3   : > { %v5910_v35 = vpop.f32.mrf.mxu2  ;;  %v5916_v50 = vpop.f32.mrf.mxu1 }
 0x3c4   : > { %v5912_v54 = vpop.f32.mrf.mxu3 }
 0x3c6   : > { %v5914_v15 = vpop.f32.mrf.mxu0 }
 0x3cb   : > { %v1715_v37 = vpop.f32.mrf.mxu2  ;;  %v1926_v27 = vpop.f32.mrf.mxu1 }
 0x3cc   : > { %v1726_v49 = vadd.f32 %v1715_v37, %v1648_v34  ;;  %v1793_v17 = vpop.f32.mrf.mxu3 }
 0x3ce   : > { %v1848_v60 = vpop.f32.mrf.mxu0  ;;  %v1804_v22 = vadd.f32 %v1793_v17, %v1726_v49 }
 0x3cf   : > { %v1868_v26 = vadd.f32 %v1848_v60, %v1798_v46  ;;  %v1573_v46 = vadd.f32 %v5872_v45, %v5882_v23 }
 0x3d1   : > { %v1643_v60 = vadd.f32 %v5880_v14, %v1573_v46  ;;  %v1946_v41 = vadd.f32 %v1926_v27, %v1868_v26 }
 0x3d3   : > { %v5918_v53 = vpop.f32.mrf.mxu2 }
 0x3d4   : > { %v5922_v59 = vpop.f32.mrf.mxu3 }
 0x3d6   : > { %v1850_v1 = vpop.f32.mrf.mxu0 }
 0x3db   : > { %v2004_v34 = vpop.f32.mrf.mxu2 }
 0x3dc   : > { %v2074_v37 = vpop.f32.mrf.mxu3  ;;  %v2024_v23 = vadd.f32 %v2004_v34, %v1946_v41 }
 0x3de   : > { %v1853_v48 = vpop.f32.mrf.mxu0  ;;  %v2094_v14 = vadd.f32 %v2074_v37, %v2024_v23 }
 0x3df   : > { %v1870_v57 = vadd.f32 %v1853_v48, %v1800_v47  ;;  %v1928_v47 = vpop.f32.mrf.mxu1  ;;  %v1721_v48 = vadd.f32 %v1702_v52, %v1643_v60  ;;  %v1723_v52 = vadd.f32 %v1707_v4, %v1645_v30  ;;  %v1577_v30 = vadd.f32 %v5872_v45, %v5904_v44 }
 0x3e1   : > { %v1801_v27 = vadd.f32 %v5900_v24, %v1723_v52 }
 0x3e3   : > { %v2006_v17 = vpop.f32.mrf.mxu2 }
 0x3e6   : > { %v1855_v11 = vpop.f32.mrf.mxu0 }
 0x3e7   : > { %v1931_v0 = vpop.f32.mrf.mxu1  ;;  %v1871_v16 = vadd.f32 %v1855_v11, %v1801_v27 }
 0x3eb   : > { %v2009_v56 = vpop.f32.mrf.mxu2 }
 0x3ee   : > { %v1858_v38 = vpop.f32.mrf.mxu0 }
 0x3ef   : > { %v5920_v40 = vadd.f32 %v1858_v38, %v1802_v10  ;;  %v2076_v10 = vpop.f32.mrf.mxu3  ;;  %v1799_v38 = vadd.f32 %v1780_v25, %v1721_v48  ;;  %v1933_v46 = vpop.f32.mrf.mxu1 }
 0x3f1   : > { %v1869_v29 = vadd.f32 %v1850_v1, %v1799_v38 }
 0x3f3   : > { %v2011_v25 = vpop.f32.mrf.mxu2 }
 0x3f6   : > { %v1860_v13 = vpop.f32.mrf.mxu0 }
 0x3f7   : > { %v2079_v42 = vpop.f32.mrf.mxu3  ;;  %v1936_v5 = vpop.f32.mrf.mxu1 }
 0x3f8   : > { %v1950_v52 = vadd.f32 %v1936_v5, %v5920_v40 }
 0x3fb   : > { %v2014_v4 = vpop.f32.mrf.mxu2 }
 0x3fe   : > { %v1863_v39 = vpop.f32.mrf.mxu0 }
 0x3ff   : > { %v5926_v49 = vadd.f32 %v1863_v39, %v1804_v22  ;;  %v1947_v39 = vadd.f32 %v1928_v47, %v1869_v29  ;;  %v2081_v41 = vpop.f32.mrf.mxu3  ;;  %v1948_v29 = vadd.f32 %v1931_v0, %v1870_v57  ;;  %v1647_v47 = vadd.f32 %v5902_v6, %v1577_v30 }
 0x401   : > { %v2025_v22 = vadd.f32 %v2006_v17, %v1947_v39  ;;  %v2026_v58 = vadd.f32 %v2009_v56, %v1948_v29  ;;  %v1938_v39 = vpop.f32.mrf.mxu1 }
 0x403   : > { %v2095_v60 = vadd.f32 %v2076_v10, %v2025_v22  ;;  %v2096_v24 = vadd.f32 %v2079_v42, %v2026_v58  ;;  %v4587_v42 = vld [vmem:[#allocation7 + $0x10] sm:$0xff] }
 0x404   : > { %2300 = vmatpush.bf16.msra.mxu2 %v4587_v42 }
 0x406   : > { %v5929_v61 = vpop.f32.mrf.mxu0 }
 0x407   : > { %v2084_v10 = vpop.f32.mrf.mxu3 }
 0x40e   : > { %v2152_v20 = vpop.f32.mrf.mxu0 }
 0x40f   : > { %v2172_v8 = vadd.f32 %v2152_v20, %v2094_v14  ;;  %v1949_v20 = vadd.f32 %v1933_v46, %v1871_v16  ;;  %v2016_v14 = vpop.f32.mrf.mxu2  ;;  %v2028_v46 = vadd.f32 %v2014_v4, %v1950_v52 }
 0x411   : > { %v2180_v26 = vmax.f32 %v2172_v8, 0.0  ;;  %v2027_v37 = vadd.f32 %v2011_v25, %v1949_v20  ;;  %v1725_v8 = vadd.f32 %v5910_v35, %v1647_v47  ;;  %v1579_v35 = vadd.f32 %v5872_v45, %v5914_v15  ;;  %v2086_v25 = vpop.f32.mrf.mxu3 }
 0x412   : > { %v2098_v27 = vadd.f32 %v2084_v10, %v2028_v46 }
 0x413   : > { %v2097_v11 = vadd.f32 %v2081_v41, %v2027_v37  ;;  %v1803_v23 = vadd.f32 %v5912_v54, %v1725_v8 }
 0x415   : > { %v1873_v56 = vadd.f32 %v1860_v13, %v1803_v23 }
 0x416   : > { %v2154_v1 = vpop.f32.mrf.mxu0 }
 0x417   : > { %v2173_v48 = vadd.f32 %v2154_v1, %v2095_v60  ;;  %v1951_v60 = vadd.f32 %v1938_v39, %v1873_v56  ;;  %v1649_v1 = vadd.f32 %v5916_v50, %v1579_v35  ;;  %v2019_v13 = vpop.f32.mrf.mxu2 }
 0x419   : > { %v2181_v38 = vmax.f32 %v2173_v48, 0.0  ;;  %v2029_v54 = vadd.f32 %v2016_v14, %v1951_v60  ;;  %v1941_v48 = vpop.f32.mrf.mxu1  ;;  %v2089_v15 = vpop.f32.mrf.mxu3 }
 0x41a   : > { %v1952_v50 = vadd.f32 %v1941_v48, %v5926_v49  ;;  %v4735_v49 = vld [vmem:[#allocation14 + $0x1] ss:$0 sm:$0xff] }
 0x41b   : > { %v2188_v28 = vpack.c.bf16 %v2181_v38, %v2180_v26  ;;  %v1727_v26 = vadd.f32 %v5918_v53, %v1649_v1  ;;  %v2099_v40 = vadd.f32 %v2086_v25, %v2029_v54  ;;  %v6777_v25 = vmax.f32 %v5659_v2, 0.0  ;;  %v4588_v2 = vld [vmem:[#allocation10 + $0x90] sm:$0xff] }
 0x41c   : > { %v2030_v53 = vadd.f32 %v2019_v13, %v1952_v50  ;;  %v6778_v1 = vmax.f32 %v5662_v3, 0.0  ;;  %2388 = vmatpush.bf16.msra.mxu3 %v4588_v2  ;;  %v6779_v3 = vmax.f32 %v5672_v55, 0.0 }
 0x41d   : > { %4374 = vmatmul.msk.bf16.vlgmr.msra.gmra.mxu1 %vm574_vm0, %v2188_v28  ;;  %v1805_v29 = vadd.f32 %v5922_v59, %v1727_v26 }
 0x41e   : > { %v2157_v34 = vpop.f32.mrf.mxu0 }
 0x41f   : > { %v2174_v17 = vadd.f32 %v2157_v34, %v2096_v24  ;;  %v1875_v30 = vadd.f32 %v5929_v61, %v1805_v29  ;;  %v2021_v20 = vpop.f32.mrf.mxu2  ;;  %v2100_v24 = vadd.f32 %v2089_v15, %v2030_v53  ;;  %v6782_v53 = vmax.f32 %v5688_v9, 0.0  ;;  %v6012_v9 = vld [vmem:[#allocation8 + $0x2] ss:$0 sm:$0xff] }
 0x421   : > { %v2182_v22 = vmax.f32 %v2174_v17, 0.0  ;;  %v1943_v58 = vpop.f32.mrf.mxu1  ;;  %v2091_v8 = vpop.f32.mrf.mxu3 }
 0x422   : > { %v1953_v37 = vadd.f32 %v1943_v58, %v1875_v30 }
 0x424   : > { %v2031_v47 = vadd.f32 %v2021_v20, %v1953_v37  ;;  %v6781_v20 = vmax.f32 %v5685_v7, 0.0  ;;  %v4591_v7 = vld [vmem:[#allocation10 + $0xa8] sm:$0xff] }
 0x425   : > { %2617 = vmatpush.bf16.msrb.mxu2 %v4591_v7 }
 0x426   : > { %v2159_v0 = vpop.f32.mrf.mxu0 }
 0x427   : > { %v2175_v57 = vadd.f32 %v2159_v0, %v2097_v11  ;;  %v2101_v11 = vadd.f32 %v2091_v8, %v2031_v47 }
 0x429   : > { %v2183_v44 = vmax.f32 %v2175_v57, 0.0 }
 0x42b   : > { %v2189_v16 = vpack.c.bf16 %v2183_v44, %v2182_v22  ;;  %v6775_v44 = vmax.f32 %v5646_v12, 0.0 }
 0x42d   : > { %4375 = vmatmul.msk.bf16.gmra.mxu1 %vm574_vm0, %v2189_v16  ;;  %v6776_v16 = vmax.f32 %v5649_v51, 0.0 }
 0x42e   : > { %v2162_v6 = vpop.f32.mrf.mxu0 }
 0x42f   : > { %v2176_v38 = vadd.f32 %v2162_v6, %v2098_v27 }
 0x431   : > { %v2184_v34 = vmax.f32 %v2176_v38, 0.0 }
 0x436   : > { %v2164_v28 = vpop.f32.mrf.mxu0 }
 0x437   : > { %v2177_v41 = vadd.f32 %v2164_v28, %v2099_v40 }
 0x439   : > { %v2185_v45 = vmax.f32 %v2177_v41, 0.0 }
 0x43b   : > { %v2190_v5 = vpack.c.bf16 %v2185_v45, %v2184_v34  ;;  %v6780_v34 = vmax.f32 %v5675_v32, 0.0 }
 0x43d   : > { %4376 = vmatmul.msk.bf16.gmra.mxu1 %vm574_vm0, %v2190_v5 }
 0x43e   : > { %v2167_v4 = vpop.f32.mrf.mxu0 }
 0x43f   : > { %v2178_v59 = vadd.f32 %v2167_v4, %v2100_v24 }
 0x441   : > { %v2186_v0 = vmax.f32 %v2178_v59, 0.0  ;;  %v4592_v59 = vld [vmem:[#allocation10 + $0xb0] sm:$0xff] }
 0x442   : > { %2687 = vmatpush.bf16.msrb.mxu3 %v4592_v59 }
 0x446   : > { %v2169_v17 = vpop.f32.mrf.mxu0 }
 0x447   : > { %v2179_v10 = vadd.f32 %v2169_v17, %v2101_v11  ;;  %v4589_v11 = vld [vmem:[#allocation10 + $0x98] sm:$0xff]  ;;  %v4590_v17 = vld [vmem:[#allocation10 + $0xa0] sm:$0xff] }
 0x448   : > { %2461 = vmatpush.bf16.msra.mxu0 %v4589_v11  ;;  %2539 = vmatpush.bf16.msrb.mxu1 %v4590_v17 }
 0x449   : > { %v2187_v57 = vmax.f32 %v2179_v10, 0.0 }
 0x44b   : > { %v2191_v61 = vpack.c.bf16 %v2187_v57, %v2186_v0 }
 0x44d   : > { %4377 = vmatmul.msk.bf16.gmra.mxu1 %vm574_vm0, %v2191_v61 }
 0x49a   : > { %v2227_v23 = vpop.f32.mrf.mxu1 }
 0x49b   : > { %v2228_v39 = vadd.f32 %v4735_v49, %v2227_v23  ;;  %v2340_v23 = vld [vmem:[#allocation2 + $0x7] sm:$0xff] }
 0x49d   : > { %v5954_v14 = vadd.f32 %v2228_v39, %v6775_v44 }
 0x49f   : > { %v6727_v42 = vmax.f32 %v5954_v14, 0.0 }
 0x4a2   : > { %v2229_v22 = vpop.f32.mrf.mxu1 }
 0x4a3   : > { %v2230_v56 = vadd.f32 %v4735_v49, %v2229_v22  ;;  %v6018_v22 = vmul.f32 %v5327_v36, %v2340_v23 }
 0x4a5   : > { %v5958_v52 = vadd.f32 %v2230_v56, %v6776_v16 }
 0x4a7   : > { %v6726_v6 = vmax.f32 %v5958_v52, 0.0 }
 0x4a9   : > { %v2263_v35 = vpack.c.bf16 %v6726_v6, %v6727_v42 }
 0x4aa   : > { %v2232_v46 = vpop.f32.mrf.mxu1 }
 0x4ab   : > { %4382 = vmatmul.msk.bf16.vlgmr.msra.gmra.mxu2 %vm574_vm0, %v2263_v35  ;;  %v2233_v12 = vadd.f32 %v4735_v49, %v2232_v46 }
 0x4ad   : > { %v5969_v54 = vadd.f32 %v2233_v12, %v6777_v25 }
 0x4af   : > { %v6725_v27 = vmax.f32 %v5969_v54, 0.0 }
 0x4b2   : > { %v2234_v60 = vpop.f32.mrf.mxu1 }
 0x4b3   : > { %v2235_v51 = vadd.f32 %v4735_v49, %v2234_v60 }
 0x4b5   : > { %v5973_v48 = vadd.f32 %v2235_v51, %v6778_v1 }
 0x4b7   : > { %v6724_v13 = vmax.f32 %v5973_v48, 0.0 }
 0x4b9   : > { %v2264_v26 = vpack.c.bf16 %v6724_v13, %v6725_v27 }
 0x4ba   : > { %v2237_v40 = vpop.f32.mrf.mxu1 }
 0x4bb   : > { %4383 = vmatmul.msk.bf16.gmra.mxu2 %vm574_vm0, %v2264_v26  ;;  %v2238_v38 = vadd.f32 %v4735_v49, %v2237_v40 }
 0x4bd   : > { %v5984_v41 = vadd.f32 %v2238_v38, %v6779_v3 }
 0x4bf   : > { %v6723_v15 = vmax.f32 %v5984_v41, 0.0 }
 0x4c2   : > { %v2239_v28 = vpop.f32.mrf.mxu1 }
 0x4c3   : > { %v2240_v29 = vadd.f32 %v4735_v49, %v2239_v28 }
 0x4c5   : > { %v5988_v45 = vadd.f32 %v2240_v29, %v6780_v34 }
 0x4c7   : > { %v6722_v30 = vmax.f32 %v5988_v45, 0.0 }
 0x4c9   : > { %v2265_v5 = vpack.c.bf16 %v6722_v30, %v6723_v15 }
 0x4ca   : > { %v2242_v58 = vpop.f32.mrf.mxu1 }
 0x4cb   : > { %4384 = vmatmul.msk.bf16.gmra.mxu2 %vm574_vm0, %v2265_v5  ;;  %v2243_v55 = vadd.f32 %v4735_v49, %v2242_v58 }
 0x4cd   : > { %v5999_v4 = vadd.f32 %v2243_v55, %v6781_v20 }
 0x4cf   : > { %v6721_v47 = vmax.f32 %v5999_v4, 0.0 }
 0x4d2   : > { %v2244_v50 = vpop.f32.mrf.mxu1 }
 0x4d3   : > { %v2245_v32 = vadd.f32 %v4735_v49, %v2244_v50 }
 0x4d5   : > { %v6003_v37 = vadd.f32 %v2245_v32, %v6782_v53 }
 0x4d7   : > { %v6720_v24 = vmax.f32 %v6003_v37, 0.0 }
 0x4d9   : > { %v2266_v8 = vpack.c.bf16 %v6720_v24, %v6721_v47 }
 0x4db   : > { %4385 = vmatmul.msk.bf16.gmra.mxu2 %vm574_vm0, %v2266_v8 }
 0x52e   : > { %v2302_v10 = vpop.f32.mrf.mxu2 }
 0x52f   : > { %v2303_v0 = vadd.f32 %v6012_v9, %v2302_v10 }
 0x531   : > { %v2322_v57 = vmax.f32 %v2303_v0, 0.0 }
 0x533   : > { %2330 = vst.msk [vmem:[#allocation2 + $0x10] sm:$0xff] %vm574_vm0, %v2322_v57 }
 0x536   : > { %v2304_v61 = vpop.f32.mrf.mxu2 }
 0x537   : > { %v2305_v49 = vadd.f32 %v6012_v9, %v2304_v61 }
 0x539   : > { %v2323_v39 = vmax.f32 %v2305_v49, 0.0 }
 0x53a   : > { %v6020_v44 = vld [vmem:[#allocation2 + $0x10] sm:$0xff] }
 0x53b   : > { %v2341_v56 = vld [vmem:[#allocation2 + $0xf] sm:$0xff]  ;;  %2331 = vst.msk [vmem:[#allocation2 + $0x18] sm:$0xff] %vm574_vm0, %v2323_v39  ;;  %v2429_v16 = vpack.c.bf16 %v6020_v44, %v5702_v18 }
 0x53c   : > { %v2349_v35 = vmul.f32 %v5330_v43, %v2341_v56  ;;  %v2491_v25 = vld [vmem:[#allocation2 + $0x9] sm:$0xff]  ;;  %v2577_v2 = vmul.f32 %v5327_v36, %v2341_v56 }
 0x53d   : > { %4398 = vmatmul.msk.bf16.vlgmr.msra.gmra.mxu0 %vm574_vm0, %v2429_v16  ;;  %v2499_v18 = vmul.f32 %v5349_v62, %v2491_v25 }
 0x53e   : > { %v2356_v46 = vpack.c.bf16 %v2349_v35, %v6018_v22  ;;  %v2307_v12 = vpop.f32.mrf.mxu2 }
 0x53f   : > { %v2308_v60 = vadd.f32 %v6012_v9, %v2307_v12 }
 0x540   : > { %4390 = vmatmul.msk.bf16.vlgmr.msra.gmra.mxu3 %vm574_vm0, %v2356_v46  ;;  %v4593_v46 = vld [vmem:[#allocation10 + $0xb8] sm:$0xff] }
 0x541   : > { %v2324_v51 = vmax.f32 %v2308_v60, 0.0  ;;  %2765 = vmatpush.bf16.msrb.mxu0 %v4593_v46 }
 0x542   : > { %v6030_v1 = vld [vmem:[#allocation2 + $0x11] sm:$0xff] }
 0x543   : > { %v6032_v26 = vld [vmem:[#allocation2 + $0x17] sm:$0xff]  ;;  %2332 = vst.msk [vmem:[#allocation2 + $0x20] sm:$0xff] %vm574_vm0, %v2324_v51  ;;  %v2500_v40 = vmul.f32 %v5352_v63, %v6030_v1 }
 0x544   : > { %v2578_v38 = vmul.f32 %v5330_v43, %v6032_v26  ;;  %v6044_v58 = vld [vmem:[#allocation2 + $0x18] sm:$0xff]  ;;  %v2350_v32 = vmul.f32 %v5367_v19, %v6032_v26 }
 0x545   : > { %v2507_v28 = vpack.c.bf16 %v2500_v40, %v2499_v18  ;;  %v6783_v40 = vld [vmem:[#allocation21_spill] sm:$0xff]  ;;  %v2655_v30 = vpack.c.bf16 %v6044_v58, %v6020_v44 }
 0x546   : > { %v2585_v3 = vpack.c.bf16 %v2578_v38, %v2577_v2  ;;  %v2309_v29 = vpop.f32.mrf.mxu2  ;;  %v6784_v38 = vld [vmem:[#allocation22_spill] sm:$0xff] }
 0x547   : > { %v2310_v34 = vadd.f32 %v6012_v9, %v2309_v29  ;;  %4406 = vmatmul.msk.bf16.vlgmr.msrb.gmra.mxu1 %vm574_vm0, %v2507_v28  ;;  %v4595_v29 = vld [vmem:[#allocation10 + $0xc8] sm:$0xff] }
 0x548   : > { %4414 = vmatmul.msk.bf16.vlgmr.msrb.gmra.mxu2 %vm574_vm0, %v2585_v3 }
 0x549   : > { %v2325_v5 = vmax.f32 %v2310_v34, 0.0  ;;  %2913 = vmatpush.bf16.msra.mxu2 %v4595_v29 }
 0x54a   : > { %v6046_v55 = vld [vmem:[#allocation2 + $0x20] sm:$0xff] }
 0x54b   : > { %v6048_v50 = vld [vmem:[#allocation2 + $0x1f] sm:$0xff]  ;;  %2333 = vst.msk [vmem:[#allocation2 + $0x28] sm:$0xff] %vm574_vm0, %v2325_v5  ;;  %v6053_v20 = vpack.c.bf16 %v6046_v55, %v6044_v58 }
 0x54c   : > { %v2351_v53 = vmul.f32 %v5370_v21, %v6048_v50  ;;  %v6063_v59 = vld [vmem:[#allocation2 + $0x19] sm:$0xff]  ;;  %v2579_v23 = vmul.f32 %v5367_v19, %v6048_v50 }
 0x54d   : > { %4399 = vmatmul.msk.bf16.gmra.mxu0 %vm574_vm0, %v6053_v20  ;;  %v2501_v57 = vmul.f32 %v5393_v31, %v6063_v59 }
 0x54e   : > { %v2357_v8 = vpack.c.bf16 %v2351_v53, %v2350_v32  ;;  %v2312_v11 = vpop.f32.mrf.mxu2  ;;  %v4596_v32 = vld [vmem:[#allocation10 + $0xd0] sm:$0xff]  ;;  %v4594_v53 = vld [vmem:[#allocation10 + $0xc0] sm:$0xff] }
 0x54f   : > { %v2313_v7 = vadd.f32 %v6012_v9, %v2312_v11  ;;  %2991 = vmatpush.bf16.msra.mxu3 %v4596_v32  ;;  %2843 = vmatpush.bf16.msra.mxu1 %v4594_v53  ;;  %v6788_v53 = vld [vmem:[#allocation26_spill] sm:$0xff] }
 0x550   : > { %4391 = vmatmul.msk.bf16.gmra.mxu3 %vm574_vm0, %v2357_v8 }
 0x551   : > { %v2326_v17 = vmax.f32 %v2313_v7, 0.0 }
 0x552   : > { %v6065_v10 = vld [vmem:[#allocation2 + $0x21] sm:$0xff] }
 0x553   : > { %v6067_v0 = vld [vmem:[#allocation2 + $0x27] sm:$0xff]  ;;  %2334 = vst.msk [vmem:[#allocation2 + $0x30] sm:$0xff] %vm574_vm0, %v2326_v17  ;;  %v2502_v61 = vmul.f32 %v5398_v33, %v6065_v10  ;;  %v2727_v44 = vmul.f32 %v5393_v31, %v6065_v10 }
 0x554   : > { %v2580_v49 = vmul.f32 %v5370_v21, %v6067_v0  ;;  %v6081_v60 = vld [vmem:[#allocation2 + $0x28] sm:$0xff]  ;;  %v2352_v2 = vmul.f32 %v6783_v40, %v6067_v0 }
 0x555   : > { %v2508_v39 = vpack.c.bf16 %v2502_v61, %v2501_v57  ;;  %v6785_v57 = vld [vmem:[#allocation23_spill] sm:$0xff] }
 0x556   : > { %v2586_v56 = vpack.c.bf16 %v2580_v49, %v2579_v23  ;;  %v2314_v16 = vpop.f32.mrf.mxu2  ;;  %v6786_v23 = vld [vmem:[#allocation24_spill] sm:$0xff] }
 0x557   : > { %v2315_v35 = vadd.f32 %v6012_v9, %v2314_v16  ;;  %4407 = vmatmul.msk.bf16.gmra.mxu1 %vm574_vm0, %v2508_v39 }
 0x558   : > { %4415 = vmatmul.msk.bf16.gmra.mxu2 %vm574_vm0, %v2586_v56 }
 0x559   : > { %v2327_v12 = vmax.f32 %v2315_v35, 0.0 }
 0x55a   : > { %v6083_v25 = vld [vmem:[#allocation2 + $0x30] sm:$0xff] }
 0x55b   : > { %v6085_v51 = vld [vmem:[#allocation2 + $0x2f] sm:$0xff]  ;;  %2335 = vst.msk [vmem:[#allocation2 + $0x38] sm:$0xff] %vm574_vm0, %v2327_v12  ;;  %v6090_v18 = vpack.c.bf16 %v6083_v25, %v6081_v60 }
 0x55c   : > { %v2353_v28 = vmul.f32 %v6784_v38, %v6085_v51  ;;  %v6100_v8 = vld [vmem:[#allocation2 + $0x29] sm:$0xff]  ;;  %v2581_v39 = vmul.f32 %v6783_v40, %v6085_v51 }
 0x55d   : > { %4400 = vmatmul.msk.bf16.gmra.mxu0 %vm574_vm0, %v6090_v18  ;;  %v2503_v61 = vmul.f32 %v6785_v57, %v6100_v8 }
 0x55e   : > { %v2358_v3 = vpack.c.bf16 %v2353_v28, %v2352_v2  ;;  %v2317_v34 = vpop.f32.mrf.mxu2 }
 0x55f   : > { %v2318_v5 = vadd.f32 %v6012_v9, %v2317_v34 }
 0x560   : > { %4392 = vmatmul.msk.bf16.gmra.mxu3 %vm574_vm0, %v2358_v3 }
 0x561   : > { %v2328_v11 = vmax.f32 %v2318_v5, 0.0  ;;  %v6787_v5 = vld [vmem:[#allocation25_spill] sm:$0xff] }
 0x562   : > { %v6102_v7 = vld [vmem:[#allocation2 + $0x31] sm:$0xff] }
 0x563   : > { %v6104_v17 = vld [vmem:[#allocation2 + $0x37] sm:$0xff]  ;;  %2336 = vst.msk [vmem:[#allocation2 + $0x40] sm:$0xff] %vm574_vm0, %v2328_v11  ;;  %v2504_v49 = vmul.f32 %v6786_v23, %v6102_v7 }
 0x564   : > { %v2582_v56 = vmul.f32 %v6784_v38, %v6104_v17  ;;  %v2427_v28 = vld [vmem:[#allocation2 + $0x38] sm:$0xff]  ;;  %v2354_v32 = vmul.f32 %v6787_v5, %v6104_v17 }
 0x565   : > { %v2509_v16 = vpack.c.bf16 %v2504_v49, %v2503_v61 }
 0x566   : > { %v2587_v35 = vpack.c.bf16 %v2582_v56, %v2581_v39  ;;  %v2319_v46 = vpop.f32.mrf.mxu2  ;;  %v6789_v56 = vld [vmem:[#allocation27_spill] sm:$0xff] }
 0x567   : > { %v2320_v12 = vadd.f32 %v6012_v9, %v2319_v46  ;;  %4408 = vmatmul.msk.bf16.gmra.mxu1 %vm574_vm0, %v2509_v16 }
 0x568   : > { %4416 = vmatmul.msk.bf16.gmra.mxu2 %vm574_vm0, %v2587_v35  ;;  %v6790_v35 = vld [vmem:[#allocation28_spill] sm:$0xff] }
 0x569   : > { %v2329_v2 = vmax.f32 %v2320_v12, 0.0 }
 0x56a   : > { %v2428_v3 = vld [vmem:[#allocation2 + $0x40] sm:$0xff] }
 0x56b   : > { %v2347_v29 = vld [vmem:[#allocation2 + $0x3f] sm:$0xff]  ;;  %2337 = vst.msk [vmem:[#allocation2 + $0x48] sm:$0xff] %vm574_vm0, %v2329_v2  ;;  %v2432_v34 = vpack.c.bf16 %v2428_v3, %v2427_v28 }
 0x56c   : > { %v2355_v11 = vmul.f32 %v6788_v53, %v2347_v29  ;;  %v6124_v9 = vld [vmem:[#allocation2 + $0x39] sm:$0xff]  ;;  %v2583_v12 = vmul.f32 %v6787_v5, %v2347_v29 }
 0x56d   : > { %4401 = vmatmul.msk.bf16.gmra.mxu0 %vm574_vm0, %v2432_v34  ;;  %v2505_v16 = vmul.f32 %v6789_v56, %v6124_v9 }
 0x56e   : > { %v2359_v61 = vpack.c.bf16 %v2355_v11, %v2354_v32  ;;  %v2726_v32 = vmul.f32 %v5352_v63, %v6063_v59  ;;  %v2725_v11 = vmul.f32 %v5349_v62, %v6030_v1  ;;  %v2728_v1 = vmul.f32 %v5398_v33, %v6100_v8 }
 0x570   : > { %4393 = vmatmul.msk.bf16.gmra.mxu3 %vm574_vm0, %v2359_v61  ;;  %v2733_v61 = vpack.c.bf16 %v2726_v32, %v2725_v11  ;;  %v2734_v58 = vpack.c.bf16 %v2728_v1, %v2727_v44  ;;  %v2952_v1 = vmul.f32 %v5352_v63, %v6065_v10  ;;  %v2951_v44 = vmul.f32 %v5349_v62, %v6063_v59 }
 0x571   : > { %v2954_v10 = vmul.f32 %v5398_v33, %v6102_v7  ;;  %v2953_v59 = vmul.f32 %v5393_v31, %v6100_v8 }
 0x572   : > { %v6126_v49 = vld [vmem:[#allocation2 + $0x41] sm:$0xff] }
 0x573   : > { %v2576_v39 = vld [vmem:[#allocation2 + $0x47] sm:$0xff]  ;;  %v2506_v46 = vmul.f32 %v6790_v35, %v6126_v49  ;;  %v2731_v32 = vmul.f32 %v6789_v56, %v6126_v49  ;;  %v2956_v8 = vmul.f32 %v6786_v23, %v6126_v49 }
 0x574   : > { %v2584_v2 = vmul.f32 %v6788_v53, %v2576_v39 }
 0x575   : > { %v2510_v24 = vpack.c.bf16 %v2506_v46, %v2505_v16  ;;  %v2804_v16 = vmul.f32 %v5330_v43, %v6048_v50  ;;  %v2805_v50 = vmul.f32 %v5367_v19, %v6067_v0  ;;  %v2730_v46 = vmul.f32 %v6786_v23, %v6124_v9 }
 0x576   : > { %v2588_v47 = vpack.c.bf16 %v2584_v2, %v2583_v12  ;;  %v2808_v0 = vmul.f32 %v6784_v38, %v2347_v29  ;;  %v2807_v12 = vmul.f32 %v6783_v40, %v6104_v17  ;;  %v6176_v2 = vld [vmem:[#allocation2 + $0x49] sm:$0xff]  ;;  %v2809_v17 = vmul.f32 %v6787_v5, %v2576_v39  ;;  %v6198_v39 = vld [vmem:[#allocation11 + $0x2] ss:$0 sm:$0xff] }
 0x577   : > { %4409 = vmatmul.msk.bf16.gmra.mxu1 %vm574_vm0, %v2510_v24 }
 0x578   : > { %4417 = vmatmul.msk.bf16.gmra.mxu2 %vm574_vm0, %v2588_v47  ;;  %v2803_v47 = vmul.f32 %v5327_v36, %v6032_v26  ;;  %v2806_v26 = vmul.f32 %v5370_v21, %v6085_v51  ;;  %v2657_v51 = vpack.c.bf16 %v2427_v28, %v6083_v25  ;;  %v2732_v25 = vmul.f32 %v6790_v35, %v6176_v2  ;;  %v2654_v28 = vld [vmem:[#allocation2 + $0x48] sm:$0xff] }
 0x579   : > { %v2658_v29 = vpack.c.bf16 %v2654_v28, %v2428_v3 }
 0x57a   : > { %v2811_v24 = vpack.c.bf16 %v2804_v16, %v2803_v47  ;;  %v2736_v11 = vpack.c.bf16 %v2732_v25, %v2731_v32  ;;  %v6188_v47 = vld [vmem:[#allocation2 + $0x50] sm:$0xff]  ;;  %v2960_v32 = vpack.c.bf16 %v2954_v10, %v2953_v59 }
 0x57b   : > { %6791 = vst [vmem:[#allocation29_spill] sm:$0xff] %v6188_v47 }
 0x57d   : > { %4430 = vmatmul.msk.bf16.vlgmr.msrb.gmra.mxu0 %vm574_vm0, %v2733_v61  ;;  %v2802_v61 = vld [vmem:[#allocation2 + $0x4f] sm:$0xff] }
 0x57e   : > { %v2810_v16 = vmul.f32 %v6788_v53, %v2802_v61 }
 0x580   : > { %4422 = vmatmul.msk.bf16.vlgmr.msrb.gmra.mxu3 %vm574_vm0, %v2655_v30  ;;  %v2656_v30 = vpack.c.bf16 %v6081_v60, %v6046_v55  ;;  %v2729_v55 = vmul.f32 %v6785_v57, %v6102_v7 }
 0x582   : > { %v2735_v60 = vpack.c.bf16 %v2730_v46, %v2729_v55 }
 0x587   : > { %4438 = vmatmul.msk.bf16.vlgmr.msra.gmra.mxu1 %vm574_vm0, %v2811_v24  ;;  %v2884_v24 = vpack.c.bf16 %v6188_v47, %v2654_v28 }
 0x588   : > { %4446 = vmatmul.msk.bf16.vlgmr.msra.gmra.mxu2 %vm574_vm0, %v6053_v20  ;;  %v2812_v20 = vpack.c.bf16 %v2806_v26, %v2805_v50 }
 0x58d   : > { %4431 = vmatmul.msk.bf16.gmra.mxu0 %vm574_vm0, %v2734_v58  ;;  %v2959_v58 = vpack.c.bf16 %v2952_v1, %v2951_v44 }
 0x590   : > { %4423 = vmatmul.msk.bf16.gmra.mxu3 %vm574_vm0, %v2656_v30 }
 0x597   : > { %4439 = vmatmul.msk.bf16.gmra.mxu1 %vm574_vm0, %v2812_v20 }
 0x598   : > { %4447 = vmatmul.msk.bf16.gmra.mxu2 %vm574_vm0, %v6090_v18  ;;  %v2813_v18 = vpack.c.bf16 %v2808_v0, %v2807_v12 }
 0x59d   : > { %4432 = vmatmul.msk.bf16.gmra.mxu0 %vm574_vm0, %v2735_v60 }
 0x5a0   : > { %4424 = vmatmul.msk.bf16.gmra.mxu3 %vm574_vm0, %v2657_v51 }
 0x5a7   : > { %4440 = vmatmul.msk.bf16.gmra.mxu1 %vm574_vm0, %v2813_v18 }
 0x5a8   : > { %4448 = vmatmul.msk.bf16.gmra.mxu2 %vm574_vm0, %v2432_v34  ;;  %v2814_v34 = vpack.c.bf16 %v2810_v16, %v2809_v17 }
 0x5ad   : > { %4433 = vmatmul.msk.bf16.gmra.mxu0 %vm574_vm0, %v2736_v11 }
 0x5b0   : > { %4425 = vmatmul.msk.bf16.gmra.mxu3 %vm574_vm0, %v2658_v29 }
 0x5b7   : > { %4441 = vmatmul.msk.bf16.gmra.mxu1 %vm574_vm0, %v2814_v34 }
 0x5b8   : > { %4449 = vmatmul.msk.bf16.gmra.mxu2 %vm574_vm0, %v2884_v24  ;;  %v2955_v24 = vmul.f32 %v6785_v57, %v6124_v9 }
 0x5ba   : > { %v2463_v3 = vpop.f32.mrf.mxu0  ;;  %v2961_v44 = vpack.c.bf16 %v2956_v8, %v2955_v24 }
 0x5c0   : > { %4454 = vmatmul.msk.bf16.vlgmr.msra.gmra.mxu3 %vm574_vm0, %v2959_v58 }
 0x5c2   : > { %v6200_v26 = vpop.f32.mrf.mxu0 }
 0x5c3   : > { %v2390_v30 = vpop.f32.mrf.mxu3 }
 0x5c4   : > { %v2413_v50 = vadd.f32 %v6198_v39, %v2390_v30  ;;  %v2541_v20 = vpop.f32.mrf.mxu1 }
 0x5c6   : > { %v2483_v46 = vadd.f32 %v2463_v3, %v2413_v50 }
 0x5c8   : > { %v2561_v55 = vadd.f32 %v2541_v20, %v2483_v46 }
 0x5ca   : > { %v2468_v0 = vpop.f32.mrf.mxu0 }
 0x5cb   : > { %v6205_v60 = vpop.f32.mrf.mxu3  ;;  %v2619_v51 = vpop.f32.mrf.mxu2 }
 0x5cc   : > { %v2639_v12 = vadd.f32 %v2619_v51, %v2561_v55  ;;  %v6209_v18 = vpop.f32.mrf.mxu1  ;;  %v2950_v55 = vld [vmem:[#allocation2 + $0x51] sm:$0xff]  ;;  %v2957_v51 = vmul.f32 %v6789_v56, %v6176_v2 }
 0x5cd   : > { %v6232_v9 = vmul.f32 %v6790_v35, %v2950_v55 }
 0x5cf   : > { %6792 = vst [vmem:[#allocation30_spill] sm:$0xff] %v6232_v9 }
 0x5d0   : > { %4455 = vmatmul.msk.bf16.gmra.mxu3 %vm574_vm0, %v2960_v32 }
 0x5d2   : > { %v6215_v61 = vpop.f32.mrf.mxu0 }
 0x5d3   : > { %v2395_v25 = vpop.f32.mrf.mxu3  ;;  %v6213_v11 = vpop.f32.mrf.mxu2 }
 0x5d4   : > { %v2415_v28 = vadd.f32 %v6198_v39, %v2395_v25  ;;  %v2546_v29 = vpop.f32.mrf.mxu1 }
 0x5d6   : > { %v2485_v7 = vadd.f32 %v2468_v0, %v2415_v28 }
 0x5d8   : > { %v2563_v17 = vadd.f32 %v2546_v29, %v2485_v7  ;;  %v2962_v29 = vpack.c.bf16 %v6232_v9, %v2957_v51  ;;  %v4597_v7 = vld [vmem:[#allocation13 + $0x10] sm:$0xff] }
 0x5d9   : > { %3066 = vmatpush.bf16.msra.mxu0 %v4597_v7 }
 0x5da   : > { %v2473_v58 = vpop.f32.mrf.mxu0 }
 0x5db   : > { %v6219_v16 = vpop.f32.mrf.mxu3  ;;  %v2624_v34 = vpop.f32.mrf.mxu2 }
 0x5dc   : > { %v2641_v1 = vadd.f32 %v2624_v34, %v2563_v17  ;;  %v6223_v3 = vpop.f32.mrf.mxu1 }
 0x5e0   : > { %4456 = vmatmul.msk.bf16.gmra.mxu3 %vm574_vm0, %v2961_v44 }
 0x5e2   : > { %v6234_v59 = vpop.f32.mrf.mxu0 }
 0x5e3   : > { %v2400_v30 = vpop.f32.mrf.mxu3  ;;  %v6227_v20 = vpop.f32.mrf.mxu2 }
 0x5e4   : > { %v2417_v50 = vadd.f32 %v6198_v39, %v2400_v30  ;;  %v2551_v46 = vpop.f32.mrf.mxu1 }
 0x5e6   : > { %v2487_v49 = vadd.f32 %v2473_v58, %v2417_v50 }
 0x5e8   : > { %v2565_v10 = vadd.f32 %v2551_v46, %v2487_v49 }
 0x5ea   : > { %v2478_v34 = vpop.f32.mrf.mxu0 }
 0x5eb   : > { %v6236_v0 = vpop.f32.mrf.mxu3  ;;  %v2629_v32 = vpop.f32.mrf.mxu2 }
 0x5ec   : > { %v2643_v25 = vadd.f32 %v2629_v32, %v2565_v10  ;;  %v6238_v28 = vpop.f32.mrf.mxu1 }
 0x5f0   : > { %4457 = vmatmul.msk.bf16.gmra.mxu3 %vm574_vm0, %v2962_v29 }
 0x5f2   : > { %v6247_v7 = vpop.f32.mrf.mxu0 }
 0x5f3   : > { %v2405_v17 = vpop.f32.mrf.mxu3  ;;  %v6243_v8 = vpop.f32.mrf.mxu2 }
 0x5f4   : > { %v2419_v2 = vadd.f32 %v6198_v39, %v2405_v17  ;;  %v2556_v44 = vpop.f32.mrf.mxu1 }
 0x5f6   : > { %v2489_v24 = vadd.f32 %v2478_v34, %v2419_v2 }
 0x5f8   : > { %v2567_v58 = vadd.f32 %v2556_v44, %v2489_v24 }
 0x5fa   : > { %v2767_v24 = vpop.f32.mrf.mxu0 }
 0x5fb   : > { %v6245_v30 = vpop.f32.mrf.mxu3  ;;  %v2634_v50 = vpop.f32.mrf.mxu2 }
 0x5fc   : > { %v2645_v46 = vadd.f32 %v2634_v50, %v2567_v58  ;;  %v6251_v13 = vpop.f32.mrf.mxu1 }
 0x603   : > { %v2689_v49 = vpop.f32.mrf.mxu3  ;;  %v6253_v2 = vpop.f32.mrf.mxu2 }
 0x604   : > { %v2709_v55 = vadd.f32 %v2689_v49, %v2639_v12  ;;  %v2845_v44 = vpop.f32.mrf.mxu1  ;;  %v2414_v12 = vadd.f32 %v6198_v39, %v6205_v60  ;;  %v2416_v60 = vadd.f32 %v6198_v39, %v6219_v16 }
 0x606   : > { %v2484_v49 = vadd.f32 %v6200_v26, %v2414_v12  ;;  %v2787_v35 = vadd.f32 %v2767_v24, %v2709_v55  ;;  %v2486_v26 = vadd.f32 %v6215_v61, %v2416_v60 }
 0x608   : > { %v2562_v6 = vadd.f32 %v6209_v18, %v2484_v49  ;;  %v2865_v5 = vadd.f32 %v2845_v44, %v2787_v35 }
 0x60a   : > { %v2640_v42 = vadd.f32 %v6213_v11, %v2562_v6 }
 0x60b   : > { %v2691_v10 = vpop.f32.mrf.mxu3  ;;  %v2915_v27 = vpop.f32.mrf.mxu2 }
 0x60c   : > { %v2710_v9 = vadd.f32 %v2691_v10, %v2640_v42  ;;  %v2935_v12 = vadd.f32 %v2915_v27, %v2865_v5  ;;  %v2564_v42 = vadd.f32 %v6223_v3, %v2486_v26 }
 0x60e   : > { %v2642_v11 = vadd.f32 %v6227_v20, %v2564_v42 }
 0x613   : > { %v2694_v51 = vpop.f32.mrf.mxu3 }
 0x614   : > { %v2711_v32 = vadd.f32 %v2694_v51, %v2641_v1  ;;  %v2769_v1 = vpop.f32.mrf.mxu0  ;;  %v2847_v51 = vpop.f32.mrf.mxu1 }
 0x61b   : > { %v2696_v29 = vpop.f32.mrf.mxu3 }
 0x61c   : > { %v2772_v47 = vpop.f32.mrf.mxu0  ;;  %v2712_v24 = vadd.f32 %v2696_v29, %v2642_v11 }
 0x61d   : > { %v2789_v35 = vadd.f32 %v2772_v47, %v2711_v32 }
 0x623   : > { %v2699_v15 = vpop.f32.mrf.mxu3 }
 0x624   : > { %v6249_v17 = vadd.f32 %v2699_v15, %v2643_v25  ;;  %v2917_v15 = vpop.f32.mrf.mxu2  ;;  %v2774_v18 = vpop.f32.mrf.mxu0 }
 0x625   : > { %v2790_v5 = vadd.f32 %v2774_v18, %v2712_v24 }
 0x62b   : > { %v2701_v34 = vpop.f32.mrf.mxu3 }
 0x62c   : > { %v2920_v53 = vpop.f32.mrf.mxu2 }
 0x633   : > { %v2704_v58 = vpop.f32.mrf.mxu3 }
 0x634   : > { %v6257_v50 = vadd.f32 %v2704_v58, %v2645_v46  ;;  %v2788_v46 = vadd.f32 %v2769_v1, %v2710_v9  ;;  %v2850_v58 = vpop.f32.mrf.mxu1  ;;  %v2922_v9 = vpop.f32.mrf.mxu2 }
 0x635   : > { %v2867_v61 = vadd.f32 %v2850_v58, %v2789_v35 }
 0x636   : > { %v2866_v23 = vadd.f32 %v2847_v51, %v2788_v46 }
 0x637   : > { %v2937_v3 = vadd.f32 %v2920_v53, %v2867_v61  ;;  %v4598_v53 = vld [vmem:[#allocation7 + $0x18] sm:$0xff] }
 0x638   : > { %v2936_v57 = vadd.f32 %v2917_v15, %v2866_v23  ;;  %v2418_v23 = vadd.f32 %v6198_v39, %v6236_v0  ;;  %3141 = vmatpush.bf16.msrb.mxu1 %v4598_v53 }
 0x63b   : > { %v6260_v25 = vpop.f32.mrf.mxu3 }
 0x63c   : > { %v2852_v55 = vpop.f32.mrf.mxu1 }
 0x63d   : > { %v2868_v20 = vadd.f32 %v2852_v55, %v2790_v5 }
 0x63f   : > { %v2938_v51 = vadd.f32 %v2922_v9, %v2868_v20 }
 0x643   : > { %v2993_v56 = vpop.f32.mrf.mxu3 }
 0x644   : > { %v3013_v38 = vadd.f32 %v2993_v56, %v2935_v12  ;;  %v2777_v56 = vpop.f32.mrf.mxu0  ;;  %v2855_v44 = vpop.f32.mrf.mxu1 }
 0x645   : > { %v2791_v58 = vadd.f32 %v2777_v56, %v6249_v17 }
 0x646   : > { %v3021_v10 = vmax.f32 %v3013_v38, 0.0  ;;  %v2925_v38 = vpop.f32.mrf.mxu2 }
 0x647   : > { %v2869_v11 = vadd.f32 %v2855_v44, %v2791_v58 }
 0x649   : > { %v2939_v55 = vadd.f32 %v2925_v38, %v2869_v11 }
 0x64b   : > { %v2995_v49 = vpop.f32.mrf.mxu3 }
 0x64c   : > { %v3014_v6 = vadd.f32 %v2995_v49, %v2936_v57  ;;  %v2488_v57 = vadd.f32 %v6234_v59, %v2418_v23  ;;  %v2779_v0 = vpop.f32.mrf.mxu0  ;;  %v2857_v59 = vpop.f32.mrf.mxu1 }
 0x64e   : > { %v3022_v16 = vmax.f32 %v3014_v6, 0.0  ;;  %v2566_v47 = vadd.f32 %v6238_v28, %v2488_v57  ;;  %v2927_v49 = vpop.f32.mrf.mxu2  ;;  %v2420_v6 = vadd.f32 %v6198_v39, %v6245_v30 }
 0x650   : > { %v3029_v1 = vpack.c.bf16 %v3022_v16, %v3021_v10  ;;  %v2644_v60 = vadd.f32 %v6243_v8, %v2566_v47  ;;  %v2490_v8 = vadd.f32 %v6247_v7, %v2420_v6 }
 0x652   : > { %4462 = vmatmul.msk.bf16.vlgmr.msra.gmra.mxu0 %vm574_vm0, %v3029_v1  ;;  %v2714_v12 = vadd.f32 %v2701_v34, %v2644_v60  ;;  %v2568_v24 = vadd.f32 %v6251_v13, %v2490_v8  ;;  %v6795_v8 = vmax.f32 %v5969_v54, 0.0  ;;  %v4599_v54 = vld [vmem:[#allocation10 + $0xd8] sm:$0xff] }
 0x653   : > { %v2998_v27 = vpop.f32.mrf.mxu3  ;;  %3229 = vmatpush.bf16.msrb.mxu2 %v4599_v54 }
 0x654   : > { %v3015_v15 = vadd.f32 %v2998_v27, %v2937_v3  ;;  %v2792_v28 = vadd.f32 %v2779_v0, %v2714_v12  ;;  %v2782_v34 = vpop.f32.mrf.mxu0  ;;  %v2860_v35 = vpop.f32.mrf.mxu1  ;;  %v2646_v23 = vadd.f32 %v6253_v2, %v2568_v24  ;;  %v6793_v12 = vmax.f32 %v5954_v14, 0.0 }
 0x655   : > { %v2793_v7 = vadd.f32 %v2782_v34, %v6257_v50 }
 0x656   : > { %v3023_v46 = vmax.f32 %v3015_v15, 0.0  ;;  %v2870_v10 = vadd.f32 %v2857_v59, %v2792_v28  ;;  %v2930_v27 = vpop.f32.mrf.mxu2  ;;  %v2716_v30 = vadd.f32 %v6260_v25, %v2646_v23  ;;  %v6794_v59 = vmax.f32 %v5958_v52, 0.0 }
 0x657   : > { %v2871_v20 = vadd.f32 %v2860_v35, %v2793_v7 }
 0x658   : > { %v2940_v16 = vadd.f32 %v2927_v49, %v2870_v10  ;;  %v6796_v10 = vmax.f32 %v5973_v48, 0.0  ;;  %v6797_v48 = vmax.f32 %v5984_v41, 0.0 }
 0x659   : > { %v2941_v38 = vadd.f32 %v2930_v27, %v2871_v20 }
 0x65b   : > { %v3000_v29 = vpop.f32.mrf.mxu3 }
 0x65c   : > { %v3016_v32 = vadd.f32 %v3000_v29, %v2938_v51  ;;  %v2784_v61 = vpop.f32.mrf.mxu0  ;;  %v2862_v44 = vpop.f32.mrf.mxu1 }
 0x65d   : > { %v2794_v3 = vadd.f32 %v2784_v61, %v2716_v30 }
 0x65e   : > { %v3024_v26 = vmax.f32 %v3016_v32, 0.0  ;;  %v2932_v13 = vpop.f32.mrf.mxu2 }
 0x65f   : > { %v2872_v51 = vadd.f32 %v2862_v44, %v2794_v3  ;;  %v6799_v3 = vmax.f32 %v5999_v4, 0.0  ;;  %v6800_v44 = vmax.f32 %v6003_v37, 0.0  ;;  %v4603_v4 = vld [vmem:[#allocation10 + $0xf8] sm:$0xff] }
 0x660   : > { %v3030_v18 = vpack.c.bf16 %v3024_v26, %v3023_v46  ;;  %v4738_v46 = vld [vmem:[#allocation14 + $0x2] ss:$0 sm:$0xff]  ;;  %3528 = vmatpush.bf16.msra.mxu2 %v4603_v4  ;;  %v6346_v37 = vld [vmem:[#allocation8 + $0x3] ss:$0 sm:$0xff] }
 0x661   : > { %v2942_v15 = vadd.f32 %v2932_v13, %v2872_v51 }
 0x662   : > { %4463 = vmatmul.msk.bf16.gmra.mxu0 %vm574_vm0, %v3030_v18 }
 0x663   : > { %v3003_v42 = vpop.f32.mrf.mxu3 }
 0x664   : > { %v3017_v9 = vadd.f32 %v3003_v42, %v2939_v55 }
 0x666   : > { %v3025_v5 = vmax.f32 %v3017_v9, 0.0 }
 0x66b   : > { %v3005_v17 = vpop.f32.mrf.mxu3 }
 0x66c   : > { %v3018_v1 = vadd.f32 %v3005_v17, %v2940_v16 }
 0x66e   : > { %v3026_v39 = vmax.f32 %v3018_v1, 0.0 }
 0x670   : > { %v3031_v56 = vpack.c.bf16 %v3026_v39, %v3025_v5  ;;  %v6798_v5 = vmax.f32 %v5988_v45, 0.0 }
 0x672   : > { %4464 = vmatmul.msk.bf16.gmra.mxu0 %vm574_vm0, %v3031_v56 }
 0x673   : > { %v3008_v57 = vpop.f32.mrf.mxu3 }
 0x674   : > { %v3019_v29 = vadd.f32 %v3008_v57, %v2941_v38 }
 0x676   : > { %v3027_v32 = vmax.f32 %v3019_v29, 0.0  ;;  %v4600_v29 = vld [vmem:[#allocation10 + $0xe0] sm:$0xff] }
 0x677   : > { %3302 = vmatpush.bf16.msrb.mxu3 %v4600_v29 }
 0x67b   : > { %v3010_v2 = vpop.f32.mrf.mxu3 }
 0x67c   : > { %v3020_v47 = vadd.f32 %v3010_v2, %v2942_v15  ;;  %v4601_v2 = vld [vmem:[#allocation10 + $0xe8] sm:$0xff] }
 0x67d   : > { %3380 = vmatpush.bf16.msrb.mxu0 %v4601_v2 }
 0x67e   : > { %v3028_v60 = vmax.f32 %v3020_v47, 0.0  ;;  %v4602_v47 = vld [vmem:[#allocation10 + $0xf0] sm:$0xff] }
 0x67f   : > { %3458 = vmatpush.bf16.msra.mxu1 %v4602_v47 }
 0x680   : > { %v3032_v25 = vpack.c.bf16 %v3028_v60, %v3027_v32 }
 0x682   : > { %4465 = vmatmul.msk.bf16.gmra.mxu0 %vm574_vm0, %v3032_v25 }
 0x6cf   : > { %v3068_v50 = vpop.f32.mrf.mxu0 }
 0x6d0   : > { %v3069_v26 = vadd.f32 %v4738_v46, %v3068_v50 }
 0x6d2   : > { %v6288_v18 = vadd.f32 %v3069_v26, %v6793_v12  ;;  %v3262_v26 = vld [vmem:[#allocation2 + $0x8] sm:$0xff] }
 0x6d4   : > { %v6744_v49 = vmax.f32 %v6288_v18, 0.0 }
 0x6d7   : > { %v3070_v0 = vpop.f32.mrf.mxu0 }
 0x6d8   : > { %v3071_v58 = vadd.f32 %v4738_v46, %v3070_v0 }
 0x6da   : > { %v6292_v53 = vadd.f32 %v3071_v58, %v6794_v59 }
 0x6dc   : > { %v6743_v42 = vmax.f32 %v6292_v53, 0.0 }
 0x6de   : > { %v3104_v6 = vpack.c.bf16 %v6743_v42, %v6744_v49 }
 0x6df   : > { %v3073_v28 = vpop.f32.mrf.mxu0 }
 0x6e0   : > { %4470 = vmatmul.msk.bf16.vlgmr.msrb.gmra.mxu1 %vm574_vm0, %v3104_v6  ;;  %v3074_v14 = vadd.f32 %v4738_v46, %v3073_v28 }
 0x6e2   : > { %v6303_v55 = vadd.f32 %v3074_v14, %v6795_v8 }
 0x6e4   : > { %v6742_v16 = vmax.f32 %v6303_v55, 0.0 }
 0x6e7   : > { %v3075_v11 = vpop.f32.mrf.mxu0 }
 0x6e8   : > { %v3076_v52 = vadd.f32 %v4738_v46, %v3075_v11 }
 0x6ea   : > { %v6307_v34 = vadd.f32 %v3076_v52, %v6796_v10 }
 0x6ec   : > { %v6741_v9 = vmax.f32 %v6307_v34, 0.0 }
 0x6ee   : > { %v3105_v17 = vpack.c.bf16 %v6741_v9, %v6742_v16 }
 0x6ef   : > { %v3078_v24 = vpop.f32.mrf.mxu0 }
 0x6f0   : > { %4471 = vmatmul.msk.bf16.gmra.mxu1 %vm574_vm0, %v3105_v17  ;;  %v3079_v1 = vadd.f32 %v4738_v46, %v3078_v24 }
 0x6f2   : > { %v6318_v27 = vadd.f32 %v3079_v1, %v6797_v48 }
 0x6f4   : > { %v6740_v30 = vmax.f32 %v6318_v27, 0.0 }
 0x6f7   : > { %v3080_v35 = vpop.f32.mrf.mxu0 }
 0x6f8   : > { %v3081_v23 = vadd.f32 %v4738_v46, %v3080_v35 }
 0x6fa   : > { %v6322_v39 = vadd.f32 %v3081_v23, %v6798_v5 }
 0x6fc   : > { %v6739_v56 = vmax.f32 %v6322_v39, 0.0 }
 0x6fe   : > { %v3106_v7 = vpack.c.bf16 %v6739_v56, %v6740_v30  ;;  %v6807_v56 = vld [vmem:[#allocation28_spill] sm:$0xff] }
 0x6ff   : > { %v3083_v61 = vpop.f32.mrf.mxu0 }
 0x700   : > { %4472 = vmatmul.msk.bf16.gmra.mxu1 %vm574_vm0, %v3106_v7  ;;  %v3084_v41 = vadd.f32 %v4738_v46, %v3083_v61 }
 0x702   : > { %v6333_v20 = vadd.f32 %v3084_v41, %v6799_v3 }
 0x704   : > { %v6738_v38 = vmax.f32 %v6333_v20, 0.0 }
 0x707   : > { %v3085_v57 = vpop.f32.mrf.mxu0 }
 0x708   : > { %v3086_v45 = vadd.f32 %v4738_v46, %v3085_v57 }
 0x70a   : > { %v6337_v13 = vadd.f32 %v3086_v45, %v6800_v44 }
 0x70c   : > { %v6737_v51 = vmax.f32 %v6337_v13, 0.0 }
 0x70e   : > { %v3107_v15 = vpack.c.bf16 %v6737_v51, %v6738_v38 }
 0x710   : > { %4473 = vmatmul.msk.bf16.gmra.mxu1 %vm574_vm0, %v3107_v15 }
 0x75d   : > { %v3143_v32 = vpop.f32.mrf.mxu1 }
 0x75e   : > { %v3144_v60 = vadd.f32 %v6346_v37, %v3143_v32 }
 0x760   : > { %v3163_v25 = vmax.f32 %v3144_v60, 0.0 }
 0x762   : > { %3171 = vst.msk [vmem:[#allocation2 + $0x10] sm:$0xff] %vm574_vm0, %v3163_v25 }
 0x765   : > { %v3145_v50 = vpop.f32.mrf.mxu1 }
 0x766   : > { %v3146_v46 = vadd.f32 %v6346_v37, %v3145_v50 }
 0x768   : > { %v3164_v0 = vmax.f32 %v3146_v46, 0.0 }
 0x769   : > { %v6351_v12 = vld [vmem:[#allocation2 + $0x10] sm:$0xff] }
 0x76a   : > { %v3182_v58 = vld [vmem:[#allocation2 + $0xf] sm:$0xff]  ;;  %3172 = vst.msk [vmem:[#allocation2 + $0x18] sm:$0xff] %vm574_vm0, %v3164_v0  ;;  %v3270_v59 = vpack.c.bf16 %v6351_v12, %v3262_v26 }
 0x76b   : > { %v3190_v6 = vmul.f32 %v5330_v43, %v3182_v58  ;;  %v3332_v8 = vld [vmem:[#allocation2 + $0x9] sm:$0xff] }
 0x76c   : > { %4486 = vmatmul.msk.bf16.vlgmr.msrb.gmra.mxu3 %vm574_vm0, %v3270_v59  ;;  %v3340_v24 = vmul.f32 %v5349_v62, %v3332_v8  ;;  %v4604_v8 = vld [vmem:[#allocation10 + $0x100] sm:$0xff] }
 0x76d   : > { %v3197_v28 = vpack.c.bf16 %v3190_v6, %v6018_v22  ;;  %v3148_v14 = vpop.f32.mrf.mxu1  ;;  %v3418_v22 = vmul.f32 %v5327_v36, %v3182_v58  ;;  %3606 = vmatpush.bf16.msra.mxu3 %v4604_v8 }
 0x76e   : > { %v3149_v11 = vadd.f32 %v6346_v37, %v3148_v14 }
 0x76f   : > { %4478 = vmatmul.msk.bf16.vlgmr.msrb.gmra.mxu2 %vm574_vm0, %v3197_v28 }
 0x770   : > { %v3165_v52 = vmax.f32 %v3149_v11, 0.0 }
 0x771   : > { %v6360_v10 = vld [vmem:[#allocation2 + $0x11] sm:$0xff] }
 0x772   : > { %v6362_v17 = vld [vmem:[#allocation2 + $0x17] sm:$0xff]  ;;  %3173 = vst.msk [vmem:[#allocation2 + $0x20] sm:$0xff] %vm574_vm0, %v3165_v52  ;;  %v3341_v54 = vmul.f32 %v5352_v63, %v6360_v10 }
 0x773   : > { %v3419_v1 = vmul.f32 %v5330_v43, %v6362_v17  ;;  %v6374_v61 = vld [vmem:[#allocation2 + $0x18] sm:$0xff]  ;;  %v3191_v45 = vmul.f32 %v5367_v19, %v6362_v17 }
 0x774   : > { %v3348_v35 = vpack.c.bf16 %v3341_v54, %v3340_v24 }
 0x775   : > { %v3426_v48 = vpack.c.bf16 %v3419_v1, %v3418_v22  ;;  %v3150_v23 = vpop.f32.mrf.mxu1 }
 0x776   : > { %v3151_v5 = vadd.f32 %v6346_v37, %v3150_v23  ;;  %4494 = vmatmul.msk.bf16.vlgmr.msrb.gmra.mxu0 %vm574_vm0, %v3348_v35 }
 0x777   : > { %4502 = vmatmul.msk.bf16.vlgmr.msra.gmra.mxu1 %vm574_vm0, %v3426_v48  ;;  %v6801_v48 = vld [vmem:[#allocation22_spill] sm:$0xff] }
 0x778   : > { %v3166_v7 = vmax.f32 %v3151_v5, 0.0 }
 0x779   : > { %v6376_v41 = vld [vmem:[#allocation2 + $0x20] sm:$0xff] }
 0x77a   : > { %v6378_v57 = vld [vmem:[#allocation2 + $0x1f] sm:$0xff]  ;;  %3174 = vst.msk [vmem:[#allocation2 + $0x28] sm:$0xff] %vm574_vm0, %v3166_v7  ;;  %v6383_v3 = vpack.c.bf16 %v6376_v41, %v6374_v61 }
 0x77b   : > { %v3192_v44 = vmul.f32 %v5370_v21, %v6378_v57  ;;  %v6393_v2 = vld [vmem:[#allocation2 + $0x19] sm:$0xff]  ;;  %v3420_v46 = vmul.f32 %v5367_v19, %v6378_v57 }
 0x77c   : > { %4487 = vmatmul.msk.bf16.gmra.mxu3 %vm574_vm0, %v6383_v3  ;;  %v3342_v25 = vmul.f32 %v5393_v31, %v6393_v2  ;;  %v6410_v0 = vmul.f32 %v5349_v62, %v6393_v2 }
 0x77d   : > { %v3198_v15 = vpack.c.bf16 %v3192_v44, %v3191_v45  ;;  %v3153_v29 = vpop.f32.mrf.mxu1  ;;  %v4607_v44 = vld [vmem:[#allocation10 + $0x118] sm:$0xff] }
 0x77e   : > { %v3154_v4 = vadd.f32 %v6346_v37, %v3153_v29  ;;  %v4606_v29 = vld [vmem:[#allocation10 + $0x110] sm:$0xff]  ;;  %3832 = vmatpush.bf16.msrb.mxu2 %v4607_v44 }
 0x77f   : > { %4479 = vmatmul.msk.bf16.gmra.mxu2 %vm574_vm0, %v3198_v15  ;;  %v4605_v15 = vld [vmem:[#allocation10 + $0x108] sm:$0xff]  ;;  %3754 = vmatpush.bf16.msrb.mxu1 %v4606_v29 }
 0x780   : > { %v3167_v47 = vmax.f32 %v3154_v4, 0.0  ;;  %3684 = vmatpush.bf16.msra.mxu0 %v4605_v15 }
 0x781   : > { %v6395_v32 = vld [vmem:[#allocation2 + $0x21] sm:$0xff] }
 0x782   : > { %v6397_v60 = vld [vmem:[#allocation2 + $0x27] sm:$0xff]  ;;  %3175 = vst.msk [vmem:[#allocation2 + $0x30] sm:$0xff] %vm574_vm0, %v3167_v47  ;;  %v3343_v50 = vmul.f32 %v5398_v33, %v6395_v32  ;;  %v6414_v58 = vmul.f32 %v5352_v63, %v6395_v32 }
 0x783   : > { %v3421_v26 = vmul.f32 %v5370_v21, %v6397_v60  ;;  %v6421_v24 = vld [vmem:[#allocation2 + $0x28] sm:$0xff]  ;;  %v3193_v35 = vmul.f32 %v6783_v40, %v6397_v60 }
 0x784   : > { %v3349_v59 = vpack.c.bf16 %v3343_v50, %v3342_v25  ;;  %v3800_v14 = vpack.c.bf16 %v6414_v58, %v6410_v0 }
 0x785   : > { %v3427_v6 = vpack.c.bf16 %v3421_v26, %v3420_v46  ;;  %v3155_v28 = vpop.f32.mrf.mxu1  ;;  %v6802_v46 = vld [vmem:[#allocation23_spill] sm:$0xff] }
 0x786   : > { %v3156_v11 = vadd.f32 %v6346_v37, %v3155_v28  ;;  %4495 = vmatmul.msk.bf16.gmra.mxu0 %vm574_vm0, %v3349_v59  ;;  %v6803_v59 = vld [vmem:[#allocation24_spill] sm:$0xff] }
 0x787   : > { %4503 = vmatmul.msk.bf16.gmra.mxu1 %vm574_vm0, %v3427_v6 }
 0x788   : > { %v3168_v52 = vmax.f32 %v3156_v11, 0.0 }
 0x789   : > { %v6423_v54 = vld [vmem:[#allocation2 + $0x30] sm:$0xff] }
 0x78a   : > { %v6425_v22 = vld [vmem:[#allocation2 + $0x2f] sm:$0xff]  ;;  %3176 = vst.msk [vmem:[#allocation2 + $0x38] sm:$0xff] %vm574_vm0, %v3168_v52  ;;  %v6430_v1 = vpack.c.bf16 %v6423_v54, %v6421_v24 }
 0x78b   : > { %v3194_v23 = vmul.f32 %v6801_v48, %v6425_v22  ;;  %v3336_v4 = vld [vmem:[#allocation2 + $0x29] sm:$0xff]  ;;  %v3422_v28 = vmul.f32 %v6783_v40, %v6425_v22 }
 0x78c   : > { %4488 = vmatmul.msk.bf16.gmra.mxu3 %vm574_vm0, %v6430_v1  ;;  %v3344_v26 = vmul.f32 %v6802_v46, %v3336_v4  ;;  %v6453_v8 = vmul.f32 %v5393_v31, %v3336_v4 }
 0x78d   : > { %v3199_v5 = vpack.c.bf16 %v3194_v23, %v3193_v35  ;;  %v3158_v7 = vpop.f32.mrf.mxu1 }
 0x78e   : > { %v3159_v45 = vadd.f32 %v6346_v37, %v3158_v7 }
 0x78f   : > { %4480 = vmatmul.msk.bf16.gmra.mxu2 %vm574_vm0, %v3199_v5 }
 0x790   : > { %v3169_v47 = vmax.f32 %v3159_v45, 0.0 }
 0x791   : > { %v6440_v25 = vld [vmem:[#allocation2 + $0x31] sm:$0xff] }
 0x792   : > { %v6442_v50 = vld [vmem:[#allocation2 + $0x37] sm:$0xff]  ;;  %3177 = vst.msk [vmem:[#allocation2 + $0x40] sm:$0xff] %vm574_vm0, %v3169_v47  ;;  %v3345_v6 = vmul.f32 %v6803_v59, %v6440_v25  ;;  %v6457_v52 = vmul.f32 %v5398_v33, %v6440_v25 }
 0x793   : > { %v3423_v11 = vmul.f32 %v6801_v48, %v6442_v50  ;;  %v3268_v15 = vld [vmem:[#allocation2 + $0x38] sm:$0xff] }
 0x794   : > { %v3350_v35 = vpack.c.bf16 %v3345_v6, %v3344_v26  ;;  %v3801_v7 = vpack.c.bf16 %v6457_v52, %v6453_v8  ;;  %v6804_v6 = vld [vmem:[#allocation25_spill] sm:$0xff] }
 0x795   : > { %v3428_v23 = vpack.c.bf16 %v3423_v11, %v3422_v28  ;;  %v3160_v5 = vpop.f32.mrf.mxu1  ;;  %v3195_v28 = vmul.f32 %v6804_v6, %v6442_v50  ;;  %v6805_v11 = vld [vmem:[#allocation26_spill] sm:$0xff] }
 0x796   : > { %v3161_v45 = vadd.f32 %v6346_v37, %v3160_v5  ;;  %4496 = vmatmul.msk.bf16.gmra.mxu0 %vm574_vm0, %v3350_v35 }
 0x797   : > { %4504 = vmatmul.msk.bf16.gmra.mxu1 %vm574_vm0, %v3428_v23 }
 0x798   : > { %v3170_v44 = vmax.f32 %v3161_v45, 0.0  ;;  %v6806_v45 = vld [vmem:[#allocation27_spill] sm:$0xff] }
 0x799   : > { %v6464_v29 = vld [vmem:[#allocation2 + $0x40] sm:$0xff] }
 0x79a   : > { %v3188_v47 = vld [vmem:[#allocation2 + $0x3f] sm:$0xff]  ;;  %3178 = vst.msk [vmem:[#allocation2 + $0x48] sm:$0xff] %vm574_vm0, %v3170_v44  ;;  %v3273_v26 = vpack.c.bf16 %v6464_v29, %v3268_v15 }
 0x79b   : > { %v3196_v51 = vmul.f32 %v6805_v11, %v3188_v47  ;;  %v3338_v35 = vld [vmem:[#allocation2 + $0x39] sm:$0xff]  ;;  %v3424_v44 = vmul.f32 %v6804_v6, %v3188_v47 }
 0x79c   : > { %4489 = vmatmul.msk.bf16.gmra.mxu3 %vm574_vm0, %v3273_v26  ;;  %v3346_v38 = vmul.f32 %v6806_v45, %v3338_v35  ;;  %v6478_v49 = vmul.f32 %v6802_v46, %v3338_v35 }
 0x79d   : > { %v3200_v37 = vpack.c.bf16 %v3196_v51, %v3195_v28  ;;  %v3567_v28 = vmul.f32 %v5352_v63, %v6393_v2  ;;  %v3644_v63 = vmul.f32 %v5327_v36, %v6362_v17  ;;  %v3647_v36 = vmul.f32 %v5370_v21, %v6425_v22 }
 0x79e   : > { %v3646_v17 = vmul.f32 %v5367_v19, %v6397_v60  ;;  %v3649_v19 = vmul.f32 %v6801_v48, %v3188_v47  ;;  %v3648_v21 = vmul.f32 %v6783_v40, %v6442_v50 }
 0x79f   : > { %4481 = vmatmul.msk.bf16.gmra.mxu2 %vm574_vm0, %v3200_v37 }
 0x7a0   : > { %v3654_v2 = vpack.c.bf16 %v3649_v19, %v3648_v21  ;;  %v4608_v19 = vld [vmem:[#allocation13 + $0x18] sm:$0xff] }
 0x7a1   : > { %v3339_v23 = vld [vmem:[#allocation2 + $0x41] sm:$0xff]  ;;  %3907 = vmatpush.bf16.msrb.mxu3 %v4608_v19 }
 0x7a2   : > { %v3417_v5 = vld [vmem:[#allocation2 + $0x47] sm:$0xff]  ;;  %v3347_v30 = vmul.f32 %v6807_v56, %v3339_v23  ;;  %v6481_v51 = vmul.f32 %v6803_v59, %v3339_v23 }
 0x7a3   : > { %v3425_v9 = vmul.f32 %v6805_v11, %v3417_v5  ;;  %v3650_v40 = vmul.f32 %v6804_v6, %v3417_v5 }
 0x7a4   : > { %v3351_v16 = vpack.c.bf16 %v3347_v30, %v3346_v38  ;;  %v3802_v37 = vpack.c.bf16 %v6481_v51, %v6478_v49  ;;  %v3566_v30 = vmul.f32 %v5349_v62, %v6360_v10  ;;  %v3496_v38 = vpack.c.bf16 %v6374_v61, %v6351_v12  ;;  %v6809_v49 = vld [vmem:[#allocation30_spill] sm:$0xff] }
 0x7a5   : > { %v3429_v42 = vpack.c.bf16 %v3425_v9, %v3424_v44  ;;  %v3569_v62 = vmul.f32 %v5398_v33, %v3336_v4  ;;  %v3568_v10 = vmul.f32 %v5393_v31, %v6395_v32  ;;  %v3653_v61 = vpack.c.bf16 %v3647_v36, %v3646_v17 }
 0x7a6   : > { %4497 = vmatmul.msk.bf16.gmra.mxu0 %vm574_vm0, %v3351_v16  ;;  %v3574_v9 = vpack.c.bf16 %v3567_v28, %v3566_v30  ;;  %v3571_v31 = vmul.f32 %v6803_v59, %v3338_v35  ;;  %v3570_v33 = vmul.f32 %v6802_v46, %v6440_v25  ;;  %v3572_v32 = vmul.f32 %v6806_v45, %v3339_v23  ;;  %v6808_v25 = vld [vmem:[#allocation29_spill] sm:$0xff] }
 0x7a7   : > { %4505 = vmatmul.msk.bf16.gmra.mxu1 %vm574_vm0, %v3429_v42  ;;  %v3645_v42 = vmul.f32 %v5330_v43, %v6378_v57  ;;  %v3575_v12 = vpack.c.bf16 %v3569_v62, %v3568_v10  ;;  %v3497_v43 = vpack.c.bf16 %v6421_v24, %v6376_v41  ;;  %v3498_v57 = vpack.c.bf16 %v3268_v15, %v6423_v54  ;;  %v3495_v24 = vld [vmem:[#allocation2 + $0x48] sm:$0xff] }
 0x7a8   : > { %v3576_v41 = vpack.c.bf16 %v3571_v31, %v3570_v33  ;;  %v3499_v54 = vpack.c.bf16 %v3495_v24, %v6464_v29  ;;  %v3725_v50 = vpack.c.bf16 %v6808_v25, %v3495_v24 }
 0x7a9   : > { %v3652_v16 = vpack.c.bf16 %v3645_v42, %v3644_v63 }
 0x7ac   : > { %4518 = vmatmul.msk.bf16.vlgmr.msra.gmra.mxu3 %vm574_vm0, %v3574_v9 }
 0x7af   : > { %4510 = vmatmul.msk.bf16.vlgmr.msra.gmra.mxu2 %vm574_vm0, %v3496_v38 }
 0x7b6   : > { %4526 = vmatmul.msk.bf16.vlgmr.msra.gmra.mxu0 %vm574_vm0, %v3652_v16 }
 0x7b7   : > { %4534 = vmatmul.msk.bf16.vlgmr.msrb.gmra.mxu1 %vm574_vm0, %v6383_v3  ;;  %v3565_v3 = vld [vmem:[#allocation2 + $0x49] sm:$0xff] }
 0x7b8   : > { %v3573_v60 = vmul.f32 %v6807_v56, %v3565_v3  ;;  %v6541_v56 = vld [vmem:[#allocation11 + $0x3] ss:$0 sm:$0xff]  ;;  %v3798_v31 = vmul.f32 %v6806_v45, %v3565_v3 }
 0x7ba   : > { %v3577_v22 = vpack.c.bf16 %v3573_v60, %v3572_v32  ;;  %v3803_v51 = vpack.c.bf16 %v6809_v49, %v3798_v31 }
 0x7bc   : > { %4519 = vmatmul.msk.bf16.gmra.mxu3 %vm574_vm0, %v3575_v12 }
 0x7bf   : > { %4511 = vmatmul.msk.bf16.gmra.mxu2 %vm574_vm0, %v3497_v43 }
 0x7c6   : > { %4527 = vmatmul.msk.bf16.gmra.mxu0 %vm574_vm0, %v3653_v61 }
 0x7c7   : > { %4535 = vmatmul.msk.bf16.gmra.mxu1 %vm574_vm0, %v6430_v1  ;;  %v3643_v1 = vld [vmem:[#allocation2 + $0x4f] sm:$0xff] }
 0x7c8   : > { %v3651_v48 = vmul.f32 %v6805_v11, %v3643_v1 }
 0x7ca   : > { %v3655_v4 = vpack.c.bf16 %v3651_v48, %v3650_v40 }
 0x7cc   : > { %4520 = vmatmul.msk.bf16.gmra.mxu3 %vm574_vm0, %v3576_v41 }
 0x7cf   : > { %4512 = vmatmul.msk.bf16.gmra.mxu2 %vm574_vm0, %v3498_v57 }
 0x7d6   : > { %4528 = vmatmul.msk.bf16.gmra.mxu0 %vm574_vm0, %v3654_v2 }
 0x7d7   : > { %4536 = vmatmul.msk.bf16.gmra.mxu1 %vm574_vm0, %v3273_v26 }
 0x7dc   : > { %4521 = vmatmul.msk.bf16.gmra.mxu3 %vm574_vm0, %v3577_v22 }
 0x7df   : > { %4513 = vmatmul.msk.bf16.gmra.mxu2 %vm574_vm0, %v3499_v54 }
 0x7e6   : > { %4529 = vmatmul.msk.bf16.gmra.mxu0 %vm574_vm0, %v3655_v4 }
 0x7e7   : > { %4537 = vmatmul.msk.bf16.gmra.mxu1 %vm574_vm0, %v3725_v50 }
 0x7ef   : > { %4542 = vmatmul.msk.bf16.vlgmr.msrb.gmra.mxu2 %vm574_vm0, %v3800_v14  ;;  %v3304_v46 = vpop.f32.mrf.mxu3 }
 0x7f2   : > { %v3231_v59 = vpop.f32.mrf.mxu2 }
 0x7f3   : > { %v3254_v15 = vadd.f32 %v6541_v56, %v3231_v59  ;;  %v3382_v29 = vpop.f32.mrf.mxu0 }
 0x7f4   : > { %v3460_v47 = vpop.f32.mrf.mxu1 }
 0x7f5   : > { %v3324_v26 = vadd.f32 %v3304_v46, %v3254_v15 }
 0x7f7   : > { %v3402_v6 = vadd.f32 %v3382_v29, %v3324_v26  ;;  %v3306_v11 = vpop.f32.mrf.mxu3 }
 0x7f9   : > { %v3480_v35 = vadd.f32 %v3460_v47, %v3402_v6 }
 0x7fa   : > { %v3233_v23 = vpop.f32.mrf.mxu2 }
 0x7fb   : > { %v3384_v5 = vpop.f32.mrf.mxu0 }
 0x7fc   : > { %v6544_v44 = vpop.f32.mrf.mxu1 }
 0x7ff   : > { %4543 = vmatmul.msk.bf16.gmra.mxu2 %vm574_vm0, %v3801_v7  ;;  %v3309_v0 = vpop.f32.mrf.mxu3 }
 0x802   : > { %v3236_v58 = vpop.f32.mrf.mxu2 }
 0x803   : > { %v3256_v14 = vadd.f32 %v6541_v56, %v3236_v58  ;;  %v3387_v28 = vpop.f32.mrf.mxu0  ;;  %v3255_v58 = vadd.f32 %v6541_v56, %v3233_v23 }
 0x804   : > { %v3465_v30 = vpop.f32.mrf.mxu1 }
 0x805   : > { %v3326_v9 = vadd.f32 %v3309_v0, %v3256_v14 }
 0x807   : > { %v3404_v38 = vadd.f32 %v3387_v28, %v3326_v9  ;;  %v6551_v42 = vpop.f32.mrf.mxu3  ;;  %v3325_v28 = vadd.f32 %v3306_v11, %v3255_v58 }
 0x809   : > { %v3482_v63 = vadd.f32 %v3465_v30, %v3404_v38  ;;  %v3403_v38 = vadd.f32 %v3384_v5, %v3325_v28 }
 0x80a   : > { %v3238_v16 = vpop.f32.mrf.mxu2 }
 0x80b   : > { %v6553_v62 = vpop.f32.mrf.mxu0 }
 0x80c   : > { %v6555_v10 = vpop.f32.mrf.mxu1 }
 0x80f   : > { %4544 = vmatmul.msk.bf16.gmra.mxu2 %vm574_vm0, %v3802_v37  ;;  %v3314_v8 = vpop.f32.mrf.mxu3 }
 0x812   : > { %v3241_v52 = vpop.f32.mrf.mxu2 }
 0x813   : > { %v3258_v7 = vadd.f32 %v6541_v56, %v3241_v52  ;;  %v3392_v12 = vpop.f32.mrf.mxu0  ;;  %v3481_v52 = vadd.f32 %v6544_v44, %v3403_v38 }
 0x814   : > { %v3470_v43 = vpop.f32.mrf.mxu1 }
 0x815   : > { %v3328_v36 = vadd.f32 %v3314_v8, %v3258_v7 }
 0x817   : > { %v3406_v17 = vadd.f32 %v3392_v12, %v3328_v36  ;;  %v6563_v33 = vpop.f32.mrf.mxu3  ;;  %v3257_v36 = vadd.f32 %v6541_v56, %v3238_v16 }
 0x819   : > { %v3484_v61 = vadd.f32 %v3470_v43, %v3406_v17  ;;  %v3327_v11 = vadd.f32 %v6551_v42, %v3257_v36 }
 0x81a   : > { %v6565_v41 = vpop.f32.mrf.mxu2 }
 0x81b   : > { %v6567_v57 = vpop.f32.mrf.mxu0  ;;  %v3405_v5 = vadd.f32 %v6553_v62, %v3327_v11  ;;  %v3259_v42 = vadd.f32 %v6541_v56, %v6565_v41 }
 0x81c   : > { %v6570_v37 = vpop.f32.mrf.mxu1 }
 0x81f   : > { %4545 = vmatmul.msk.bf16.gmra.mxu2 %vm574_vm0, %v3803_v51  ;;  %v3319_v32 = vpop.f32.mrf.mxu3 }
 0x822   : > { %v3246_v21 = vpop.f32.mrf.mxu2 }
 0x823   : > { %v3260_v2 = vadd.f32 %v6541_v56, %v3246_v21  ;;  %v3397_v45 = vpop.f32.mrf.mxu0 }
 0x824   : > { %v3475_v24 = vpop.f32.mrf.mxu1 }
 0x825   : > { %v3330_v60 = vadd.f32 %v3319_v32, %v3260_v2 }
 0x827   : > { %v3408_v3 = vadd.f32 %v3397_v45, %v3330_v60  ;;  %v6576_v46 = vpop.f32.mrf.mxu3  ;;  %v3483_v45 = vadd.f32 %v6555_v10, %v3405_v5 }
 0x829   : > { %v3486_v22 = vadd.f32 %v3475_v24, %v3408_v3 }
 0x82a   : > { %v6574_v54 = vpop.f32.mrf.mxu2 }
 0x82b   : > { %v6580_v29 = vpop.f32.mrf.mxu0 }
 0x82c   : > { %v6582_v47 = vpop.f32.mrf.mxu1 }
 0x82f   : > { %v3608_v26 = vpop.f32.mrf.mxu3 }
 0x832   : > { %v3530_v1 = vpop.f32.mrf.mxu2 }
 0x833   : > { %v3550_v40 = vadd.f32 %v3530_v1, %v3480_v35  ;;  %v3686_v0 = vpop.f32.mrf.mxu0 }
 0x834   : > { %v3756_v14 = vpop.f32.mrf.mxu1 }
 0x835   : > { %v3628_v17 = vadd.f32 %v3608_v26, %v3550_v40 }
 0x837   : > { %v3610_v9 = vpop.f32.mrf.mxu3  ;;  %v3706_v49 = vadd.f32 %v3686_v0, %v3628_v17  ;;  %v3329_v0 = vadd.f32 %v6563_v33, %v3259_v42  ;;  %v3261_v33 = vadd.f32 %v6541_v56, %v6574_v54 }
 0x839   : > { %v3776_v21 = vadd.f32 %v3756_v14, %v3706_v49 }
 0x83a   : > { %v3532_v48 = vpop.f32.mrf.mxu2 }
 0x83b   : > { %v3551_v12 = vadd.f32 %v3532_v48, %v3481_v52 }
 0x83c   : > { %v3758_v7 = vpop.f32.mrf.mxu1 }
 0x83f   : > { %v3613_v43 = vpop.f32.mrf.mxu3 }
 0x842   : > { %v3535_v4 = vpop.f32.mrf.mxu2 }
 0x843   : > { %v3552_v25 = vadd.f32 %v3535_v4, %v3482_v63  ;;  %v3688_v63 = vpop.f32.mrf.mxu0 }
 0x844   : > { %v3761_v19 = vpop.f32.mrf.mxu1 }
 0x845   : > { %v3630_v40 = vadd.f32 %v3613_v43, %v3552_v25 }
 0x847   : > { %v3615_v2 = vpop.f32.mrf.mxu3 }
 0x84a   : > { %v3537_v50 = vpop.f32.mrf.mxu2 }
 0x84b   : > { %v3691_v23 = vpop.f32.mrf.mxu0  ;;  %v3553_v24 = vadd.f32 %v3537_v50, %v3483_v45  ;;  %v3407_v50 = vadd.f32 %v6567_v57, %v3329_v0 }
 0x84c   : > { %v3763_v4 = vpop.f32.mrf.mxu1  ;;  %v3708_v58 = vadd.f32 %v3691_v23, %v3630_v40  ;;  %v4609_v23 = vld [vmem:[%s6681_s8] sm:$0xff] }
 0x84d   : > { %v3485_v25 = vadd.f32 %v6570_v37, %v3407_v50  ;;  %3980 = vmatpush.bf16.msrb.mxu0 %v4609_v23 }
 0x84f   : > { %v3618_v62 = vpop.f32.mrf.mxu3 }
 0x852   : > { %v3540_v59 = vpop.f32.mrf.mxu2 }
 0x853   : > { %v6578_v15 = vadd.f32 %v3540_v59, %v3484_v61  ;;  %v3629_v61 = vadd.f32 %v3610_v9, %v3551_v12  ;;  %v3693_v16 = vpop.f32.mrf.mxu0  ;;  %v3631_v59 = vadd.f32 %v3615_v2, %v3553_v24 }
 0x854   : > { %v3766_v38 = vpop.f32.mrf.mxu1 }
 0x855   : > { %v3707_v51 = vadd.f32 %v3688_v63, %v3629_v61  ;;  %v3709_v10 = vadd.f32 %v3693_v16, %v3631_v59  ;;  %v3632_v36 = vadd.f32 %v3618_v62, %v6578_v15 }
 0x857   : > { %v3777_v32 = vadd.f32 %v3758_v7, %v3707_v51  ;;  %v3779_v28 = vadd.f32 %v3763_v4, %v3709_v10  ;;  %v3620_v52 = vpop.f32.mrf.mxu3  ;;  %v4741_v10 = vld [vmem:[#allocation14 + $0x3] ss:$0 sm:$0xff] }
 0x85a   : > { %v3542_v6 = vpop.f32.mrf.mxu2 }
 0x85b   : > { %v3696_v14 = vpop.f32.mrf.mxu0  ;;  %v3555_v7 = vadd.f32 %v3542_v6, %v3485_v25 }
 0x85c   : > { %v3710_v6 = vadd.f32 %v3696_v14, %v3632_v36  ;;  %v3768_v11 = vpop.f32.mrf.mxu1 }
 0x85d   : > { %v3633_v57 = vadd.f32 %v3620_v52, %v3555_v7 }
 0x85e   : > { %v3780_v54 = vadd.f32 %v3766_v38, %v3710_v6  ;;  %v6811_v38 = vmax.f32 %v6292_v53, 0.0 }
 0x85f   : > { %v3623_v51 = vpop.f32.mrf.mxu3 }
 0x862   : > { %v3545_v35 = vpop.f32.mrf.mxu2 }
 0x863   : > { %v6585_v30 = vadd.f32 %v3545_v35, %v3486_v22  ;;  %v3778_v35 = vadd.f32 %v3761_v19, %v3708_v58  ;;  %v3698_v61 = vpop.f32.mrf.mxu0 }
 0x864   : > { %v3711_v49 = vadd.f32 %v3698_v61, %v3633_v57  ;;  %v6813_v61 = vmax.f32 %v6307_v34, 0.0 }
 0x866   : > { %v3781_v15 = vadd.f32 %v3768_v11, %v3711_v49  ;;  %v6814_v11 = vmax.f32 %v6318_v27, 0.0  ;;  %v6817_v27 = vmax.f32 %v6337_v13, 0.0 }
 0x867   : > { %v3625_v24 = vpop.f32.mrf.mxu3 }
 0x86a   : > { %v6587_v8 = vpop.f32.mrf.mxu2 }
 0x86b   : > { %v3701_v5 = vpop.f32.mrf.mxu0 }
 0x872   : > { %v3834_v31 = vpop.f32.mrf.mxu2 }
 0x873   : > { %v3854_v44 = vadd.f32 %v3834_v31, %v3776_v21  ;;  %v3331_v31 = vadd.f32 %v6576_v46, %v3261_v33  ;;  %v3771_v46 = vpop.f32.mrf.mxu1  ;;  %v3703_v42 = vpop.f32.mrf.mxu0  ;;  %v6812_v33 = vmax.f32 %v6303_v55, 0.0 }
 0x875   : > { %v3862_v22 = vmax.f32 %v3854_v44, 0.0  ;;  %v3409_v56 = vadd.f32 %v6580_v29, %v3331_v31 }
 0x877   : > { %v3487_v2 = vadd.f32 %v6582_v47, %v3409_v56  ;;  %v6815_v56 = vmax.f32 %v6322_v39, 0.0 }
 0x879   : > { %v3557_v44 = vadd.f32 %v6587_v8, %v3487_v2  ;;  %v6816_v2 = vmax.f32 %v6333_v20, 0.0 }
 0x87a   : > { %v3836_v60 = vpop.f32.mrf.mxu2 }
 0x87b   : > { %v3855_v3 = vadd.f32 %v3836_v60, %v3777_v32  ;;  %v3773_v4 = vpop.f32.mrf.mxu1 }
 0x87d   : > { %v3863_v1 = vmax.f32 %v3855_v3, 0.0  ;;  %v3634_v3 = vadd.f32 %v3623_v51, %v6585_v30 }
 0x87f   : > { %v3870_v48 = vpack.c.bf16 %v3863_v1, %v3862_v22  ;;  %v3635_v22 = vadd.f32 %v3625_v24, %v3557_v44  ;;  %v3712_v1 = vadd.f32 %v3701_v5, %v3634_v3  ;;  %v4742_v3 = vld [vmem:[%s6682_s9] ss:$0 sm:$0xff] }
 0x881   : > { %4550 = vmatmul.msk.bf16.vlgmr.msrb.gmra.mxu3 %vm574_vm0, %v3870_v48  ;;  %v3713_v40 = vadd.f32 %v3703_v42, %v3635_v22  ;;  %v3782_v48 = vadd.f32 %v3771_v46, %v3712_v1 }
 0x882   : > { %v3839_v26 = vpop.f32.mrf.mxu2 }
 0x883   : > { %v3856_v9 = vadd.f32 %v3839_v26, %v3778_v35  ;;  %v3783_v47 = vadd.f32 %v3773_v4, %v3713_v40  ;;  %v6810_v35 = vmax.f32 %v6288_v18, 0.0 }
 0x885   : > { %v3864_v12 = vmax.f32 %v3856_v9, 0.0 }
 0x88a   : > { %v3841_v41 = vpop.f32.mrf.mxu2 }
 0x88b   : > { %v3857_v63 = vadd.f32 %v3841_v41, %v3779_v28 }
 0x88d   : > { %v3865_v43 = vmax.f32 %v3857_v63, 0.0 }
 0x88f   : > { %v3871_v17 = vpack.c.bf16 %v3865_v43, %v3864_v12 }
 0x891   : > { %4551 = vmatmul.msk.bf16.gmra.mxu3 %vm574_vm0, %v3871_v17 }
 0x892   : > { %v3844_v37 = vpop.f32.mrf.mxu2 }
 0x893   : > { %v3858_v19 = vadd.f32 %v3844_v37, %v3780_v54 }
 0x895   : > { %v3866_v60 = vmax.f32 %v3858_v19, 0.0 }
 0x89a   : > { %v3846_v21 = vpop.f32.mrf.mxu2 }
 0x89b   : > { %v3859_v32 = vadd.f32 %v3846_v21, %v3781_v15 }
 0x89d   : > { %v3867_v45 = vmax.f32 %v3859_v32, 0.0 }
 0x89f   : > { %v3872_v16 = vpack.c.bf16 %v3867_v45, %v3866_v60 }
 0x8a1   : > { %4552 = vmatmul.msk.bf16.gmra.mxu3 %vm574_vm0, %v3872_v16  ;;  %v4002_v16 = vld [vmem:[#allocation5] sm:$0xff] }
 0x8a2   : > { %v3849_v29 = vpop.f32.mrf.mxu2 }
 0x8a3   : > { %v3860_v59 = vadd.f32 %v3849_v29, %v3782_v48  ;;  %v4003_v29 = vld [vmem:[#allocation5 + $0x8] sm:$0xff]  ;;  %v4004_v48 = vld [vmem:[#allocation5 + $0x10] sm:$0xff] }
 0x8a5   : > { %v3868_v26 = vmax.f32 %v3860_v59, 0.0 }
 0x8aa   : > { %v3851_v62 = vpop.f32.mrf.mxu2 }
 0x8ab   : > { %v3861_v8 = vadd.f32 %v3851_v62, %v3783_v47  ;;  %v4005_v62 = vld [vmem:[#allocation5 + $0x18] sm:$0xff] }
 0x8ad   : > { %v3869_v0 = vmax.f32 %v3861_v8, 0.0 }
 0x8af   : > { %v3873_v58 = vpack.c.bf16 %v3869_v0, %v3868_v26 }
 0x8b1   : > { %4553 = vmatmul.msk.bf16.gmra.mxu3 %vm574_vm0, %v3873_v58  ;;  %v4006_v58 = vld [vmem:[#allocation5 + $0x20] sm:$0xff] }
 0x904   : > { %v3909_v30 = vpop.f32.mrf.mxu3 }
 0x905   : > { %v3910_v14 = vadd.f32 %v4741_v10, %v3909_v30 }
 0x907   : > { %v3929_v28 = vadd.f32 %v3910_v14, %v6810_v35 }
 0x909   : > { %v3937_v25 = vmax.f32 %v3929_v28, 0.0 }
 0x90c   : > { %v3911_v50 = vpop.f32.mrf.mxu3 }
 0x90d   : > { %v3912_v9 = vadd.f32 %v4741_v10, %v3911_v50  ;;  %v4007_v50 = vld [vmem:[#allocation5 + $0x28] sm:$0xff] }
 0x90f   : > { %v3930_v41 = vadd.f32 %v3912_v9, %v6811_v38  ;;  %v4008_v38 = vld [vmem:[#allocation5 + $0x30] sm:$0xff] }
 0x911   : > { %v3938_v63 = vmax.f32 %v3930_v41, 0.0 }
 0x913   : > { %v3945_v52 = vpack.c.bf16 %v3938_v63, %v3937_v25 }
 0x914   : > { %v3914_v7 = vpop.f32.mrf.mxu3 }
 0x915   : > { %4558 = vmatmul.msk.bf16.vlgmr.msrb.gmra.mxu0 %vm574_vm0, %v3945_v52  ;;  %v3915_v12 = vadd.f32 %v4741_v10, %v3914_v7  ;;  %v4009_v52 = vld [vmem:[#allocation5 + $0x38] sm:$0xff] }
 0x917   : > { %v3931_v36 = vadd.f32 %v3915_v12, %v6812_v33 }
 0x919   : > { %v3939_v57 = vmax.f32 %v3931_v36, 0.0 }
 0x91c   : > { %v3916_v43 = vpop.f32.mrf.mxu3 }
 0x91d   : > { %v3917_v17 = vadd.f32 %v4741_v10, %v3916_v43 }
 0x91f   : > { %v3932_v18 = vadd.f32 %v3917_v17, %v6813_v61 }
 0x921   : > { %v3940_v23 = vmax.f32 %v3932_v18, 0.0 }
 0x923   : > { %v3946_v37 = vpack.c.bf16 %v3940_v23, %v3939_v57 }
 0x924   : > { %v3919_v53 = vpop.f32.mrf.mxu3 }
 0x925   : > { %4559 = vmatmul.msk.bf16.gmra.mxu0 %vm574_vm0, %v3946_v37  ;;  %v3920_v31 = vadd.f32 %v4741_v10, %v3919_v53 }
 0x927   : > { %v3933_v49 = vadd.f32 %v3920_v31, %v6814_v11 }
 0x929   : > { %v3941_v54 = vmax.f32 %v3933_v49, 0.0 }
 0x92c   : > { %v3921_v6 = vpop.f32.mrf.mxu3 }
 0x92d   : > { %v3922_v51 = vadd.f32 %v4741_v10, %v3921_v6 }
 0x92f   : > { %v3934_v55 = vadd.f32 %v3922_v51, %v6815_v56 }
 0x931   : > { %v3942_v15 = vmax.f32 %v3934_v55, 0.0 }
 0x933   : > { %v3947_v34 = vpack.c.bf16 %v3942_v15, %v3941_v54 }
 0x934   : > { %v3924_v19 = vpop.f32.mrf.mxu3 }
 0x935   : > { %4560 = vmatmul.msk.bf16.gmra.mxu0 %vm574_vm0, %v3947_v34  ;;  %v3925_v5 = vadd.f32 %v4741_v10, %v3924_v19 }
 0x937   : > { %v3935_v32 = vadd.f32 %v3925_v5, %v6816_v2 }
 0x939   : > { %v3943_v45 = vmax.f32 %v3935_v32, 0.0 }
 0x93c   : > { %v3926_v21 = vpop.f32.mrf.mxu3 }
 0x93d   : > { %v3927_v44 = vadd.f32 %v4741_v10, %v3926_v21 }
 0x93f   : > { %v3936_v60 = vadd.f32 %v3927_v44, %v6817_v27 }
 0x941   : > { %v3944_v46 = vmax.f32 %v3936_v60, 0.0 }
 0x943   : > { %v3948_v39 = vpack.c.bf16 %v3944_v46, %v3943_v45 }
 0x945   : > { %4561 = vmatmul.msk.bf16.gmra.mxu0 %vm574_vm0, %v3948_v39  ;;  %vm4018_vm0 = vcmask 261120  }
 0x992   : > { %v3982_v20 = vpop.f32.mrf.mxu0 }
 0x993   : > { %v3983_v24 = vadd.f32 %v4742_v3, %v3982_v20 }
 0x995   : > { %v4010_v13 = vadd.f32 %v4002_v16, %v3983_v24 }
 0x997   : > { %4019 = vst.msk [vmem:[%s6642_s19] sm:$0xff] %vm4018_vm0, %v4010_v13 }
 0x99a   : > { %v3984_v22 = vpop.f32.mrf.mxu0 }
 0x99b   : > { %v3985_v1 = vadd.f32 %v4742_v3, %v3984_v22 }
 0x99d   : > { %v4011_v42 = vadd.f32 %v4003_v29, %v3985_v1 }
 0x99f   : > { %4020 = vst.msk [vmem:[%s6642_s19 + $0x8] sm:$0xff] %vm4018_vm0, %v4011_v42 }
 0x9a2   : > { %v3987_v40 = vpop.f32.mrf.mxu0 }
 0x9a3   : > { %v3988_v4 = vadd.f32 %v4742_v3, %v3987_v40 }
 0x9a5   : > { %v4012_v47 = vadd.f32 %v4004_v48, %v3988_v4 }
 0x9a7   : > { %4021 = vst.msk [vmem:[%s6642_s19 + $0x10] sm:$0xff] %vm4018_vm0, %v4012_v47 }
 0x9aa   : > { %v3989_v59 = vpop.f32.mrf.mxu0 }
 0x9ab   : > { %v3990_v8 = vadd.f32 %v4742_v3, %v3989_v59 }
 0x9ad   : > { %v4013_v26 = vadd.f32 %v4005_v62, %v3990_v8 }
 0x9af   : > { %4022 = vst.msk [vmem:[%s6642_s19 + $0x18] sm:$0xff] %vm4018_vm0, %v4013_v26 }
 0x9b2   : > { %v3992_v0 = vpop.f32.mrf.mxu0 }
 0x9b3   : > { %v3993_v30 = vadd.f32 %v4742_v3, %v3992_v0 }
 0x9b5   : > { %v4014_v10 = vadd.f32 %v4006_v58, %v3993_v30 }
 0x9b7   : > { %4023 = vst.msk [vmem:[%s6642_s19 + $0x20] sm:$0xff] %vm4018_vm0, %v4014_v10 }
 0x9ba   : > { %v3994_v14 = vpop.f32.mrf.mxu0 }
 0x9bb   : > { %v3995_v35 = vadd.f32 %v4742_v3, %v3994_v14 }
 0x9bd   : > { %v4015_v28 = vadd.f32 %v4007_v50, %v3995_v35 }
 0x9bf   : > { %4024 = vst.msk [vmem:[%s6642_s19 + $0x28] sm:$0xff] %vm4018_vm0, %v4015_v28 }
 0x9c2   : > { %v3997_v9 = vpop.f32.mrf.mxu0 }
 0x9c3   : > { %v3998_v41 = vadd.f32 %v4742_v3, %v3997_v9 }
 0x9c5   : > { %v4016_v25 = vadd.f32 %v4008_v38, %v3998_v41 }
 0x9c7   : > { %4025 = vst.msk [vmem:[%s6642_s19 + $0x30] sm:$0xff] %vm4018_vm0, %v4016_v25 }
 0x9ca   : > { %v3999_v63 = vpop.f32.mrf.mxu0 }
 0x9cb   : > { %v4000_v7 = vadd.f32 %v4742_v3, %v3999_v63 }
 0x9cd   : > { %v4017_v12 = vadd.f32 %v4009_v52, %v4000_v7 }
 0x9cf   : > { %4026 = vst.msk [vmem:[%s6642_s19 + $0x38] sm:$0xff] %vm4018_vm0, %v4017_v12 }
 0x9d0 PF: > { %p24_p3 = scmp.ge.s32.totalorder %s5193_s20, 4   ;;  %s6819_s13 = smov %s5025_s14 }
 0x9d1   : > { %s6820_s14 = smov %s5029_s15  ;;  %s6821_s15 = smov %s5204_s30 }
 0x9d2   : > { %s6822_s16 = smov %s5193_s20  ;;  %26 = sbr.rel (!%p24_p3) target bundleno = 10 (0xa), region = 178 }
 0x9d7   :  { %4049 = vsyncpa [#allocation4], 1 }
 0x9d8   :  { %4051 = vsyncpa [#allocation4 + $0x1], 1 }
 0x9d9   :  { %4052 = vsyncpa [#allocation6], 1 }
 0x9da   :  { %4053 = vsyncpa [#allocation9], 1 }
 0x9db   :  { %4054 = vsyncpa [#allocation12], 1 }
 0x9dc   :  { %4055 = vsyncpa [#allocation15], 1 }

</bundles_post_ra>
